<compile_context>
chip_gen: v5e
topology: v5e:2x2
jax: 0.10.0
libtpu: 0.0.40
codegen_flags: <defaults>
</compile_context>

<pallas_src>
import functools

import jax
import jax.numpy as jnp
import numpy as np
from jax.experimental import pallas as pl
from jax.experimental.pallas import tpu as pltpu


def _num_tc_blocks(btot):
    """2 grid blocks only where there are 2 TensorCores per chip (v7x)."""
    try:
        kind = jax.devices()[0].device_kind.lower()
    except Exception:  # pragma: no cover - e.g. no devices yet
        return 1
    two_tc = ("v7" in kind) or ("7x" in kind)
    if two_tc and btot >= 2 and btot % 2 == 0:
        return 2
    return 1


def _conv3x3_valid_khfolded(x_flat, h, w, w_ref, b_ref):
    """Valid 3x3 conv with the kh taps folded into the contraction dim.

    x_flat : (Bblk, H*W, Cin)   bf16 value (NHWC flattened over H, W)
    h, w   : static spatial dims encoded in x_flat's row axis
    w_ref  : (3, 3*Cin, Cout)   VMEM ref, bf16; rows kh*Cin:(kh+1)*Cin of
             w_ref[kw] hold the original tap (kh, kw)
    b_ref  : (1, Cout)          VMEM ref, f32
    returns: (Bblk, (H-2)*(W-2), Cout) f32 value
    """
    bblk = x_flat.shape[0]
    cin = x_flat.shape[-1]
    cout = w_ref.shape[-1]
    ho, wo = h - 2, w - 2

    # Hoisted, kw-independent LHS: concat the 3 kh-shifted row blocks on the
    # lane (channel) axis -> a single K = 3*Cin operand shared by all 3
    # kw-group matmuls.  Each kh shift is a contiguous row-range slice.
    lhs = jnp.concatenate(
        [x_flat[:, kh * w: kh * w + ho * w, :] for kh in range(3)], axis=-1)
    lhs = lhs.reshape(bblk * ho * w, 3 * cin)            # (M, 3*Cin) bf16

    out = None
    for kw in range(3):
        acc = jax.lax.dot_general(
            lhs, w_ref[kw],
            dimension_numbers=(((1,), (0,)), ((), ())),
            preferred_element_type=jnp.float32)          # (M, Cout) f32
        acc = acc.reshape(bblk, ho, w, cout)
        # One kw shift per kw group, applied on the f32 result.
        # TODO(synk): optionally pre-shift the bf16 LHS (pltpu.roll) instead;
        # marginal once the K-fold is in place.
        part = acc[:, :, kw:kw + wo, :]                  # (Bblk, Ho, Wo, Cout)
        out = part if out is None else out + part

    out = out + b_ref[...]                               # bias broadcast (1,Cout)
    return out.reshape(bblk, ho * wo, cout)


def _fused_double_conv_kernel(h, w, x_ref, w1_ref, b1_ref, w2_ref, b2_ref,
                              o_ref):
    """conv2d_2(conv2d_1(x)) for one batch block; intermediate stays on-chip.

    x_ref  : (Bblk, H*W, 256)          bf16
    w*_ref : (3, 3*256, 256)           bf16 (kh folded into K)
    b*_ref : (1, 256)                  f32
    o_ref  : (Bblk, (H-4)*(W-4), 256)  f32
    """
    x = x_ref[...]                                       # bf16
    y1 = _conv3x3_valid_khfolded(x, h, w, w1_ref, b1_ref)        # f32
    y1 = y1.astype(jnp.bfloat16)   # intentional bf16 round for conv2 MXU operands
    y2 = _conv3x3_valid_khfolded(y1, h - 2, w - 2, w2_ref, b2_ref)
    o_ref[...] = y2.astype(o_ref.dtype)


def fused_double_conv(x, w1, b1, w2, b2, *, h, w, n_blocks):
    """Two chained valid 3x3 convs (stride 1) in one pallas_call.

    x  : (Btot, H*W, Cin)   bf16 (NHWC flattened)
    w* : (3, 3, Cin, Cout)  HWIO bf16
    b* : (Cout,)            f32
    returns (Btot, (H-4)*(W-4), Cout) f32
    """
    btot = x.shape[0]
    cin = x.shape[-1]
    cout = w1.shape[-1]
    ho2wo2 = (h - 4) * (w - 4)

    if btot % n_blocks != 0:
        n_blocks = 1
    bblk = btot // n_blocks

    # kh folded into K: (kh, kw, cin, cout) -> (kw, kh*cin + cin_idx, cout).
    w1f = jnp.transpose(w1, (1, 0, 2, 3)).reshape(3, 3 * cin, cout)
    w2f = jnp.transpose(w2, (1, 0, 2, 3)).reshape(3, 3 * cout, cout)
    b1r = b1.reshape(1, cout).astype(jnp.float32)
    b2r = b2.reshape(1, cout).astype(jnp.float32)

    # Advisory cost estimate so XLA can overlap this latency-bound call.
    m1 = btot * (h - 2) * w            # conv1 matmul M (full W kept per kw)
    m2 = btot * (h - 4) * (w - 2)      # conv2 matmul M
    flops = int(2 * 3 * (m1 * (3 * cin) * cout + m2 * (3 * cout) * cout))
    bytes_accessed = int(x.size * 2 + w1f.size * 2 + w2f.size * 2
                         + b1r.size * 4 + b2r.size * 4
                         + btot * ho2wo2 * cout * 4)

    def _const_spec(shape):
        # Constant index map across the grid -> DMA'd once and revisited;
        # Buffered(1) skips the pointless second buffer (VMEM headroom).
        return pl.BlockSpec(shape, lambda g: (0,) * len(shape),
                            pipeline_mode=pl.Buffered(1))

    return pl.pallas_call(
        functools.partial(_fused_double_conv_kernel, h, w),
        out_shape=jax.ShapeDtypeStruct((btot, ho2wo2, cout), jnp.float32),
        grid_spec=pltpu.PrefetchScalarGridSpec(
            num_scalar_prefetch=0,
            grid=(n_blocks,),
            in_specs=[
                pl.BlockSpec((bblk, h * w, cin), lambda g: (g, 0, 0)),
                _const_spec((3, 3 * cin, cout)),
                _const_spec((1, cout)),
                _const_spec((3, 3 * cout, cout)),
                _const_spec((1, cout)),
            ],
            out_specs=pl.BlockSpec((bblk, ho2wo2, cout), lambda g: (g, 0, 0)),
        ),
        compiler_params=pltpu.CompilerParams(
            dimension_semantics=("parallel",)),
        cost_estimate=pl.CostEstimate(
            flops=flops, transcendentals=0, bytes_accessed=bytes_accessed),
    )(x, w1f, b1r, w2f, b2r)


class VoxelConvPallas:
    """JAX/Pallas re-implementation of VoxelConv (with_pos_embed=False)."""

    def __init__(self, divide, key):
        self.divide = divide[0]
        c = 256
        k1, k2, k3, k4 = jax.random.split(key, 4)
        scale = 1.0 / np.sqrt(c * 9)
        # Weights stored HWIO in bf16 (kernel hot path), biases in f32.
        self.w1 = (jax.random.normal(k1, (3, 3, c, c), jnp.float32)
                   * scale).astype(jnp.bfloat16)
        self.b1 = jax.random.normal(k2, (c,), jnp.float32) * scale
        self.w2 = (jax.random.normal(k3, (3, 3, c, c), jnp.float32)
                   * scale).astype(jnp.bfloat16)
        self.b2 = jax.random.normal(k4, (c,), jnp.float32) * scale
        # with_pos_embed=False in the reference __init__, so
        # PositionEmbeddingLearned is never instantiated or used here.

    def __call__(self, prev_frame, curr_frame, prev_xyz, curr_xyz):
        del prev_xyz, curr_xyz  # unused when with_pos_embed is False
        b, f, m = prev_frame.shape
        d = self.divide

        # Both frames in one call: (2B, 256, H*W) -> (2B, H*W, 256) bf16.
        # The (B,256,d,d) NCHW reshape then NHWC flatten is exactly a single
        # transpose of the channel/position axes (one fused XLA op).
        x = jnp.concatenate([prev_frame, curr_frame], axis=0)
        x = x.transpose(0, 2, 1).astype(jnp.bfloat16)    # (2B, H*W, 256)

        y = fused_double_conv(x, self.w1, self.b1, self.w2, self.b2,
                              h=d, w=d, n_blocks=_num_tc_blocks(2 * b))

        # (2B, (d-4)^2, 256) -> PyTorch layout (2B, 256, (d-4)^2), then split.
        y = y.transpose(0, 2, 1)
        return y[:b], y[b:]


def _reference_double_conv(frame, divide, w1, b1, w2, b2):
    """Pure-jnp f32 reference (direct 3x3 valid convs) for validation."""
    bsz = frame.shape[0]
    x = frame.transpose(0, 2, 1).reshape(bsz, divide, divide, -1)  # NHWC f32

    def conv(x, wgt, bias):
        h, w = x.shape[1], x.shape[2]
        out = jnp.zeros((bsz, h - 2, w - 2, wgt.shape[-1]), jnp.float32)
        for kh in range(3):
            for kw in range(3):
                out = out + jnp.einsum(
                    "bhwc,cd->bhwd",
                    x[:, kh:kh + h - 2, kw:kw + w - 2, :], wgt[kh, kw])
        return out + bias

    y = conv(conv(x, w1, b1), w2, b2)                    # (B, d-4, d-4, 256)
    return y.reshape(bsz, -1, 256).transpose(0, 2, 1)    # (B, 256, (d-4)^2)


if __name__ == "__main__":
    key = jax.random.PRNGKey(0)
    k_mod, k_prev, k_curr, k_pxyz, k_cxyz = jax.random.split(key, 5)

    divide = (8,)
    B, C = 2, 256
    M = divide[0] * divide[0]

    prev_frame = jax.random.normal(k_prev, (B, C, M), jnp.float32)
    curr_frame = jax.random.normal(k_curr, (B, C, M), jnp.float32)
    prev_xyz = jax.random.normal(k_pxyz, (B, M, 3), jnp.float32)
    curr_xyz = jax.random.normal(k_cxyz, (B, M, 3), jnp.float32)

    model = VoxelConvPallas(divide, k_mod)
    out_prev, out_curr = model(prev_frame, curr_frame, prev_xyz, curr_xyz)
    jax.block_until_ready((out_prev, out_curr))

    assert out_prev.shape == (B, 256, (divide[0] - 4) ** 2), out_prev.shape
    assert out_curr.shape == (B, 256, (divide[0] - 4) ** 2), out_curr.shape

    # Numerical check against an f32 reference using the same bf16-rounded
    # weights/inputs (tolerance covers bf16 MXU math and the intentional
    # bf16 rounding of the conv1 intermediate).
    w1_f32 = model.w1.astype(jnp.float32)
    w2_f32 = model.w2.astype(jnp.float32)
    prev_q = prev_frame.astype(jnp.bfloat16).astype(jnp.float32)
    curr_q = curr_frame.astype(jnp.bfloat16).astype(jnp.float32)
    ref_prev = _reference_double_conv(prev_q, divide[0],
                                      w1_f32, model.b1, w2_f32, model.b2)
    ref_curr = _reference_double_conv(curr_q, divide[0],
                                      w1_f32, model.b1, w2_f32, model.b2)
    np.testing.assert_allclose(np.asarray(out_prev), np.asarray(ref_prev),
                               rtol=5e-2, atol=5e-2)
    np.testing.assert_allclose(np.asarray(out_curr), np.asarray(ref_curr),
                               rtol=5e-2, atol=5e-2)

    print("KERNEL_OK")
</pallas_src>

<mosaic_0001>
module attributes {stable_mosaic.version = 11 : i64} {
  func.func @_fused_double_conv_kernel(%arg0: i32, %arg1: memref<4x64x256xbf16, #tpu.memory_space<vmem>>, %arg2: memref<3x768x256xbf16, #tpu.memory_space<vmem>>, %arg3: memref<1x256xf32, #tpu.memory_space<vmem>>, %arg4: memref<3x768x256xbf16, #tpu.memory_space<vmem>>, %arg5: memref<1x256xf32, #tpu.memory_space<vmem>>, %arg6: memref<4x16x256xf32, #tpu.memory_space<vmem>>) attributes {dimension_semantics = [#tpu.dimension_semantics<parallel>], iteration_bounds = array<i64: 1>, scalar_prefetch = 0 : i64, scratch_operands = 0 : i64, tpu.core_type = #tpu.core_type<tc>, window_params = [{transform_indices = @transform_0, window_bounds = array<i64: 4, 64, 256>}, {pipeline_mode = #tpu.pipeline_mode<synchronous>, transform_indices = @transform_1, window_bounds = array<i64: 3, 768, 256>}, {pipeline_mode = #tpu.pipeline_mode<synchronous>, transform_indices = @transform_2, window_bounds = array<i64: 1, 256>}, {pipeline_mode = #tpu.pipeline_mode<synchronous>, transform_indices = @transform_3, window_bounds = array<i64: 3, 768, 256>}, {pipeline_mode = #tpu.pipeline_mode<synchronous>, transform_indices = @transform_4, window_bounds = array<i64: 1, 256>}, {transform_indices = @transform_5, window_bounds = array<i64: 4, 16, 256>}]} {
    %c0 = arith.constant 0 : index
    %c0_0 = arith.constant 0 : index
    %c0_1 = arith.constant 0 : index
    %0 = vector.load %arg1[%c0, %c0_0, %c0_1] : memref<4x64x256xbf16, #tpu.memory_space<vmem>>, vector<4x64x256xbf16>
    %1 = vector.extract_strided_slice %0 {offsets = [0, 0, 0], sizes = [4, 48, 256], strides = [1, 1, 1]} : vector<4x64x256xbf16> to vector<4x48x256xbf16>
    %2 = vector.extract_strided_slice %0 {offsets = [0, 8, 0], sizes = [4, 48, 256], strides = [1, 1, 1]} : vector<4x64x256xbf16> to vector<4x48x256xbf16>
    %3 = vector.extract_strided_slice %0 {offsets = [0, 16, 0], sizes = [4, 48, 256], strides = [1, 1, 1]} : vector<4x64x256xbf16> to vector<4x48x256xbf16>
    %4 = tpu.concatenate %1, %2, %3 in 2 : vector<4x48x256xbf16>, vector<4x48x256xbf16>, vector<4x48x256xbf16> -> vector<4x48x768xbf16>
    %5 = vector.shape_cast %4 : vector<4x48x768xbf16> to vector<192x768xbf16>
    %c0_2 = arith.constant 0 : index
    %c0_3 = arith.constant 0 : index
    %c0_4 = arith.constant 0 : index
    %6 = vector.load %arg2[%c0_2, %c0_3, %c0_4] : memref<3x768x256xbf16, #tpu.memory_space<vmem>>, vector<1x768x256xbf16>
    %7 = vector.shape_cast %6 : vector<1x768x256xbf16> to vector<768x256xbf16>
    %cst = arith.constant dense<0.000000e+00> : vector<192x256xf32>
    %8 = tpu.matmul %5, %7, %cst {dimension_numbers = #tpu.dot_dimension_numbers<[1], [0], [0], [1], [0, 0, 1, 1], [], []>} : vector<192x768xbf16>, vector<768x256xbf16>, vector<192x256xf32> -> vector<192x256xf32>
    %9 = vector.shape_cast %8 : vector<192x256xf32> to vector<4x6x8x256xf32>
    %10 = vector.extract_strided_slice %9 {offsets = [0, 0, 0, 0], sizes = [4, 6, 6, 256], strides = [1, 1, 1, 1]} : vector<4x6x8x256xf32> to vector<4x6x6x256xf32>
    %c1 = arith.constant 1 : index
    %c0_5 = arith.constant 0 : index
    %c0_6 = arith.constant 0 : index
    %11 = vector.load %arg2[%c1, %c0_5, %c0_6] : memref<3x768x256xbf16, #tpu.memory_space<vmem>>, vector<1x768x256xbf16>
    %12 = vector.shape_cast %11 : vector<1x768x256xbf16> to vector<768x256xbf16>
    %cst_7 = arith.constant dense<0.000000e+00> : vector<192x256xf32>
    %13 = tpu.matmul %5, %12, %cst_7 {dimension_numbers = #tpu.dot_dimension_numbers<[1], [0], [0], [1], [0, 0, 1, 1], [], []>} : vector<192x768xbf16>, vector<768x256xbf16>, vector<192x256xf32> -> vector<192x256xf32>
    %14 = vector.shape_cast %13 : vector<192x256xf32> to vector<4x6x8x256xf32>
    %15 = vector.extract_strided_slice %14 {offsets = [0, 0, 1, 0], sizes = [4, 6, 6, 256], strides = [1, 1, 1, 1]} : vector<4x6x8x256xf32> to vector<4x6x6x256xf32>
    %16 = arith.addf %10, %15 : vector<4x6x6x256xf32>
    %c2 = arith.constant 2 : index
    %c0_8 = arith.constant 0 : index
    %c0_9 = arith.constant 0 : index
    %17 = vector.load %arg2[%c2, %c0_8, %c0_9] : memref<3x768x256xbf16, #tpu.memory_space<vmem>>, vector<1x768x256xbf16>
    %18 = vector.shape_cast %17 : vector<1x768x256xbf16> to vector<768x256xbf16>
    %cst_10 = arith.constant dense<0.000000e+00> : vector<192x256xf32>
    %19 = tpu.matmul %5, %18, %cst_10 {dimension_numbers = #tpu.dot_dimension_numbers<[1], [0], [0], [1], [0, 0, 1, 1], [], []>} : vector<192x768xbf16>, vector<768x256xbf16>, vector<192x256xf32> -> vector<192x256xf32>
    %20 = vector.shape_cast %19 : vector<192x256xf32> to vector<4x6x8x256xf32>
    %21 = vector.extract_strided_slice %20 {offsets = [0, 0, 2, 0], sizes = [4, 6, 6, 256], strides = [1, 1, 1, 1]} : vector<4x6x8x256xf32> to vector<4x6x6x256xf32>
    %22 = arith.addf %16, %21 : vector<4x6x6x256xf32>
    %c0_11 = arith.constant 0 : index
    %c0_12 = arith.constant 0 : index
    %23 = vector.load %arg3[%c0_11, %c0_12] : memref<1x256xf32, #tpu.memory_space<vmem>>, vector<1x256xf32>
    %24 = vector.shape_cast %23 : vector<1x256xf32> to vector<1x1x1x256xf32>
    %25 = vector.broadcast %24 : vector<1x1x1x256xf32> to vector<4x6x6x256xf32>
    %26 = arith.addf %22, %25 : vector<4x6x6x256xf32>
    %27 = vector.shape_cast %26 : vector<4x6x6x256xf32> to vector<4x36x256xf32>
    %28 = arith.truncf %27 : vector<4x36x256xf32> to vector<4x36x256xbf16>
    %29 = vector.extract_strided_slice %28 {offsets = [0, 0, 0], sizes = [4, 24, 256], strides = [1, 1, 1]} : vector<4x36x256xbf16> to vector<4x24x256xbf16>
    %30 = vector.extract_strided_slice %28 {offsets = [0, 6, 0], sizes = [4, 24, 256], strides = [1, 1, 1]} : vector<4x36x256xbf16> to vector<4x24x256xbf16>
    %31 = vector.extract_strided_slice %28 {offsets = [0, 12, 0], sizes = [4, 24, 256], strides = [1, 1, 1]} : vector<4x36x256xbf16> to vector<4x24x256xbf16>
    %32 = tpu.concatenate %29, %30, %31 in 2 : vector<4x24x256xbf16>, vector<4x24x256xbf16>, vector<4x24x256xbf16> -> vector<4x24x768xbf16>
    %33 = vector.shape_cast %32 : vector<4x24x768xbf16> to vector<96x768xbf16>
    %c0_13 = arith.constant 0 : index
    %c0_14 = arith.constant 0 : index
    %c0_15 = arith.constant 0 : index
    %34 = vector.load %arg4[%c0_13, %c0_14, %c0_15] : memref<3x768x256xbf16, #tpu.memory_space<vmem>>, vector<1x768x256xbf16>
    %35 = vector.shape_cast %34 : vector<1x768x256xbf16> to vector<768x256xbf16>
    %cst_16 = arith.constant dense<0.000000e+00> : vector<96x256xf32>
    %36 = tpu.matmul %33, %35, %cst_16 {dimension_numbers = #tpu.dot_dimension_numbers<[1], [0], [0], [1], [0, 0, 1, 1], [], []>} : vector<96x768xbf16>, vector<768x256xbf16>, vector<96x256xf32> -> vector<96x256xf32>
    %37 = vector.shape_cast %36 : vector<96x256xf32> to vector<4x4x6x256xf32>
    %38 = vector.extract_strided_slice %37 {offsets = [0, 0, 0, 0], sizes = [4, 4, 4, 256], strides = [1, 1, 1, 1]} : vector<4x4x6x256xf32> to vector<4x4x4x256xf32>
    %c1_17 = arith.constant 1 : index
    %c0_18 = arith.constant 0 : index
    %c0_19 = arith.constant 0 : index
    %39 = vector.load %arg4[%c1_17, %c0_18, %c0_19] : memref<3x768x256xbf16, #tpu.memory_space<vmem>>, vector<1x768x256xbf16>
    %40 = vector.shape_cast %39 : vector<1x768x256xbf16> to vector<768x256xbf16>
    %cst_20 = arith.constant dense<0.000000e+00> : vector<96x256xf32>
    %41 = tpu.matmul %33, %40, %cst_20 {dimension_numbers = #tpu.dot_dimension_numbers<[1], [0], [0], [1], [0, 0, 1, 1], [], []>} : vector<96x768xbf16>, vector<768x256xbf16>, vector<96x256xf32> -> vector<96x256xf32>
    %42 = vector.shape_cast %41 : vector<96x256xf32> to vector<4x4x6x256xf32>
    %43 = vector.extract_strided_slice %42 {offsets = [0, 0, 1, 0], sizes = [4, 4, 4, 256], strides = [1, 1, 1, 1]} : vector<4x4x6x256xf32> to vector<4x4x4x256xf32>
    %44 = arith.addf %38, %43 : vector<4x4x4x256xf32>
    %c2_21 = arith.constant 2 : index
    %c0_22 = arith.constant 0 : index
    %c0_23 = arith.constant 0 : index
    %45 = vector.load %arg4[%c2_21, %c0_22, %c0_23] : memref<3x768x256xbf16, #tpu.memory_space<vmem>>, vector<1x768x256xbf16>
    %46 = vector.shape_cast %45 : vector<1x768x256xbf16> to vector<768x256xbf16>
    %cst_24 = arith.constant dense<0.000000e+00> : vector<96x256xf32>
    %47 = tpu.matmul %33, %46, %cst_24 {dimension_numbers = #tpu.dot_dimension_numbers<[1], [0], [0], [1], [0, 0, 1, 1], [], []>} : vector<96x768xbf16>, vector<768x256xbf16>, vector<96x256xf32> -> vector<96x256xf32>
    %48 = vector.shape_cast %47 : vector<96x256xf32> to vector<4x4x6x256xf32>
    %49 = vector.extract_strided_slice %48 {offsets = [0, 0, 2, 0], sizes = [4, 4, 4, 256], strides = [1, 1, 1, 1]} : vector<4x4x6x256xf32> to vector<4x4x4x256xf32>
    %50 = arith.addf %44, %49 : vector<4x4x4x256xf32>
    %c0_25 = arith.constant 0 : index
    %c0_26 = arith.constant 0 : index
    %51 = vector.load %arg5[%c0_25, %c0_26] : memref<1x256xf32, #tpu.memory_space<vmem>>, vector<1x256xf32>
    %52 = vector.shape_cast %51 : vector<1x256xf32> to vector<1x1x1x256xf32>
    %53 = vector.broadcast %52 : vector<1x1x1x256xf32> to vector<4x4x4x256xf32>
    %54 = arith.addf %50, %53 : vector<4x4x4x256xf32>
    %55 = vector.shape_cast %54 : vector<4x4x4x256xf32> to vector<4x16x256xf32>
    %c0_27 = arith.constant 0 : index
    %c0_28 = arith.constant 0 : index
    %c0_29 = arith.constant 0 : index
    %56 = vector.load %arg6[%c0_27, %c0_28, %c0_29] : memref<4x16x256xf32, #tpu.memory_space<vmem>>, vector<4x16x256xf32>
    tpu.vector_store %arg6[%c0_27, %c0_28, %c0_29], %55 {strides = array<i32>} : memref<4x16x256xf32, #tpu.memory_space<vmem>>, vector<4x16x256xf32>,
    return
  }
  func.func @transform_0(%arg0: i32) -> (i32, i32, i32) {
    %c0_i32 = arith.constant 0 : i32
    %c0_i32_0 = arith.constant 0 : i32
    %c0_i32_1 = arith.constant 0 : i32
    return %arg0, %c0_i32, %c0_i32_0 : i32, i32, i32
  }
  func.func @transform_1(%arg0: i32) -> (i32, i32, i32) {
    %c0_i32 = arith.constant 0 : i32
    %c0_i32_0 = arith.constant 0 : i32
    %c0_i32_1 = arith.constant 0 : i32
    %c0_i32_2 = arith.constant 0 : i32
    return %c0_i32, %c0_i32_0, %c0_i32_1 : i32, i32, i32
  }
  func.func @transform_2(%arg0: i32) -> (i32, i32) {
    %c0_i32 = arith.constant 0 : i32
    %c0_i32_0 = arith.constant 0 : i32
    %c0_i32_1 = arith.constant 0 : i32
    return %c0_i32, %c0_i32_0 : i32, i32
  }
  func.func @transform_3(%arg0: i32) -> (i32, i32, i32) {
    %c0_i32 = arith.constant 0 : i32
    %c0_i32_0 = arith.constant 0 : i32
    %c0_i32_1 = arith.constant 0 : i32
    %c0_i32_2 = arith.constant 0 : i32
    return %c0_i32, %c0_i32_0, %c0_i32_1 : i32, i32, i32
  }
  func.func @transform_4(%arg0: i32) -> (i32, i32) {
    %c0_i32 = arith.constant 0 : i32
    %c0_i32_0 = arith.constant 0 : i32
    %c0_i32_1 = arith.constant 0 : i32
    return %c0_i32, %c0_i32_0 : i32, i32
  }
  func.func @transform_5(%arg0: i32) -> (i32, i32, i32) {
    %c0_i32 = arith.constant 0 : i32
    %c0_i32_0 = arith.constant 0 : i32
    %c0_i32_1 = arith.constant 0 : i32
    return %arg0, %c0_i32, %c0_i32_0 : i32, i32, i32
  }
}

</mosaic_0001>

<bundles_post_ra>
// kernel: tpu_custom_call.1
= control target key start
LH: loop header
LB: loop body
LE: loop exit
PB: predicated region body
PF: predicated region fallthrough
CT: control target
= control target key end

     0   :  { %10 = vsyncpa [#allocation3], 0  ;;  %s15678_s0 = inlined_call_operand.hbm [shape: bf16[4,64,256], index: 0, kind: input, shape index: {}]   ;;  %s15679_s1 = inlined_call_operand.hbm [shape: bf16[3,768,256], index: 1, kind: input, shape index: {}]   ;;  %s15680_s2 = inlined_call_operand.hbm [shape: f32[1,256], index: 2, kind: input, shape index: {}]   ;;  %s15681_s3 = inlined_call_operand.hbm [shape: bf16[3,768,256], index: 3, kind: input, shape index: {}]   ;;  %s15682_s4 = inlined_call_operand.hbm [shape: f32[1,256], index: 4, kind: input, shape index: {}]   ;;  %s15683_s5 = inlined_call_operand.hbm [shape: f32[4,16,256], index: 5, kind: output, shape index: {}]  }
   0x1   :  { %11 = vsyncpa [#allocation6], 0 }
   0x2   :  { %12 = vsyncpa [#allocation9], 0 }
   0x3   :  { %13 = vsyncpa [#allocation4], 0  ;;  %s31_s20 = sshll.u32 %s15679_s1, 4  ;;  %s12597_s21 = smov [#allocation5]   ;;  %s32_s20 = int_to_ptr.hbm [resolvable:$true] %s31_s20 }
   0x4   :  { %s33_s22 = sshll.u32 %s12597_s21, 4  ;;  %s55_s25 = sshll.u32 %s15681_s3, 4  ;;  %s34_s22 = int_to_ptr.vmem [resolvable:$true] %s33_s22  ;;  %s56_s25 = int_to_ptr.hbm [resolvable:$true] %s55_s25 }
   0x5   :  { %s12598_s26 = smov 128   ;;  %s12599_s27 = smov 8  }
   0x6   :  { %39 = dma.hbm_to_vmem [thread:$0]  %s32_s20, 36864, %s34_s22, [#allocation6], %s12598_s26, %s12598_s26, %s12599_s27  }
   0x7   :  { %s12600_s28 = smov [#allocation8]   ;;  %s18_s7 = sshll.u32 %s15678_s0, 4  ;;  %s19_s7 = int_to_ptr.hbm [resolvable:$true] %s18_s7 }
   0x8   :  { %s57_s29 = sshll.u32 %s12600_s28, 4  ;;  %s45_s9 = sshll.u32 %s15680_s2, 4  ;;  %s58_s29 = int_to_ptr.vmem [resolvable:$true] %s57_s29  ;;  %s46_s9 = int_to_ptr.hbm [resolvable:$true] %s45_s9 }
   0x9   :  { %63 = dma.hbm_to_vmem [thread:$0]  %s56_s25, 36864, %s58_s29, [#allocation9], %s12598_s26, %s12598_s26, %s12599_s27  }
   0xa   :  { %s12601_s10 = smov [#allocation2]   ;;  %s12602_s3 = smov [#allocation7]  }
   0xb   :  { %s20_s11 = sshll.u32 %s12601_s10, 4  ;;  %s47_s12 = sshll.u32 %s12602_s3, 4  ;;  %s21_s11 = int_to_ptr.vmem [resolvable:$true] %s20_s11  ;;  %s48_s12 = int_to_ptr.vmem [resolvable:$true] %s47_s12 }
   0xc   :  { %26 = dma.hbm_to_vmem [thread:$0]  %s19_s7, 4096, %s21_s11, [#allocation3], %s12598_s26, %s12598_s26, %s12599_s27  }
   0xd   :  { %s69_s15 = sshll.u32 %s15682_s4, 4  ;;  %s12603_s0 = smov [#allocation10]   ;;  %s70_s15 = int_to_ptr.hbm [resolvable:$true] %s69_s15 }
   0xe   :  { %50 = dma.hbm_to_vmem [thread:$0]  %s46_s9, 32, %s48_s12, [#allocation6]  }
   0xf   :  { %s71_s16 = sshll.u32 %s12603_s0, 4  ;;  %s72_s16 = int_to_ptr.vmem [resolvable:$true] %s71_s16 }
  0x10   :  { %74 = dma.hbm_to_vmem [thread:$0]  %s70_s15, 32, %s72_s16, [#allocation9]  }
  0x11   :  { %12589 = dma.done.wait [#allocation3], 4096  }
  0x12   :  { %12590 = vsyncadd [#allocation3], 4294963200 }
  0x13   :  { %12591 = dma.done.wait [#allocation6], 36896  }
  0x14   :  { %12592 = vsyncadd [#allocation6], 4294930400 }
  0x15   :  { %12593 = dma.done.wait [#allocation9], 36896  }
  0x16   :  { %12594 = vsyncadd [#allocation9], 4294930400  ;;  %v9573_v0 = vld [vmem:[#allocation5 + $0x70] sm:$0xf]  ;;  %v11874_v1 = vld [vmem:[#allocation5 + $0x74] sm:$0xf0] }
  0x17   :  { %v9637_v2 = vld [vmem:[#allocation5 + $0xf0] sm:$0xf]  ;;  %v9574_v3 = vor.u32 %v11874_v1, %v9573_v0  ;;  %v11890_v4 = vld [vmem:[#allocation5 + $0xf4] sm:$0xf0]  ;;  %v9565_v11 = vld [vmem:[#allocation5 + $0x60] sm:$0xf] }
  0x18   :  { %v9701_v5 = vld [vmem:[#allocation5 + $0x170] sm:$0xf]  ;;  %v11906_v6 = vld [vmem:[#allocation5 + $0x174] sm:$0xf0]  ;;  %v9638_v7 = vor.u32 %v11890_v4, %v9637_v2  ;;  %v11872_v13 = vld [vmem:[#allocation5 + $0x64] sm:$0xf0] }
  0x19   :  { %v9702_v8 = vor.u32 %v11906_v6, %v9701_v5  ;;  %v9765_v9 = vld [vmem:[#allocation5 + $0x1f0] sm:$0xf]  ;;  %v11922_v10 = vld [vmem:[#allocation5 + $0x1f4] sm:$0xf0]  ;;  %911 = vmatpush.bf16.msra.mxu0 %v9574_v3  ;;  %v9629_v14 = vld [vmem:[#allocation5 + $0xe0] sm:$0xf]  ;;  %v9566_v16 = vor.u32 %v11872_v13, %v9565_v11 }
  0x1a   :  { %v9766_v12 = vor.u32 %v11922_v10, %v9765_v9  ;;  %v11888_v15 = vld [vmem:[#allocation5 + $0xe4] sm:$0xf0]  ;;  %980 = vmatpush.bf16.msra.mxu1 %v9638_v7  ;;  %v9693_v18 = vld [vmem:[#allocation5 + $0x160] sm:$0xf]  ;;  %v9557_v23 = vld [vmem:[#allocation5 + $0x50] sm:$0xf] }
  0x1b   :  { %1049 = vmatpush.bf16.msra.mxu2 %v9702_v8  ;;  %v9630_v17 = vor.u32 %v11888_v15, %v9629_v14  ;;  %v11904_v19 = vld [vmem:[#allocation5 + $0x164] sm:$0xf0]  ;;  %v9757_v20 = vld [vmem:[#allocation5 + $0x1e0] sm:$0xf]  ;;  %v11870_v24 = vld [vmem:[#allocation5 + $0x54] sm:$0xf0] }
  0x1c   :  { %1118 = vmatpush.bf16.msra.mxu3 %v9766_v12  ;;  %v9694_v21 = vor.u32 %v11904_v19, %v9693_v18  ;;  %v11920_v22 = vld [vmem:[#allocation5 + $0x1e4] sm:$0xf0]  ;;  %v9621_v26 = vld [vmem:[#allocation5 + $0xd0] sm:$0xf]  ;;  %v11886_v27 = vld [vmem:[#allocation5 + $0xd4] sm:$0xf0]  ;;  %v9558_v29 = vor.u32 %v11870_v24, %v9557_v23 }
  0x1d   :  { %v9758_v25 = vor.u32 %v11920_v22, %v9757_v20  ;;  %v9685_v28 = vld [vmem:[#allocation5 + $0x150] sm:$0xf]  ;;  %912 = vmatpush.bf16.msra.mxu0 %v9566_v16  ;;  %v11902_v30 = vld [vmem:[#allocation5 + $0x154] sm:$0xf0]  ;;  %v9622_v33 = vor.u32 %v11886_v27, %v9621_v26  ;;  %v9549_v35 = vld [vmem:[#allocation5 + $0x40] sm:$0xf] }
  0x1e   :  { %v9749_v31 = vld [vmem:[#allocation5 + $0x1d0] sm:$0xf]  ;;  %v11918_v32 = vld [vmem:[#allocation5 + $0x1d4] sm:$0xf0]  ;;  %981 = vmatpush.bf16.msra.mxu1 %v9630_v17  ;;  %v9686_v34 = vor.u32 %v11902_v30, %v9685_v28  ;;  %v11868_v36 = vld [vmem:[#allocation5 + $0x44] sm:$0xf0] }
  0x1f   :  { %1050 = vmatpush.bf16.msra.mxu2 %v9694_v21  ;;  %v9613_v37 = vld [vmem:[#allocation5 + $0xc0] sm:$0xf]  ;;  %v9750_v38 = vor.u32 %v11918_v32, %v9749_v31  ;;  %v11884_v39 = vld [vmem:[#allocation5 + $0xc4] sm:$0xf0]  ;;  %v9550_v44 = vor.u32 %v11868_v36, %v9549_v35  ;;  %v9541_v47 = vld [vmem:[#allocation5 + $0x30] sm:$0xf] }
  0x20   :  { %1119 = vmatpush.bf16.msra.mxu3 %v9758_v25  ;;  %v9677_v40 = vld [vmem:[#allocation5 + $0x140] sm:$0xf]  ;;  %v11900_v41 = vld [vmem:[#allocation5 + $0x144] sm:$0xf0]  ;;  %v9614_v45 = vor.u32 %v11884_v39, %v9613_v37  ;;  %v11866_v48 = vld [vmem:[#allocation5 + $0x34] sm:$0xf0] }
  0x21   :  { %v9741_v42 = vld [vmem:[#allocation5 + $0x1c0] sm:$0xf]  ;;  %v11916_v43 = vld [vmem:[#allocation5 + $0x1c4] sm:$0xf0]  ;;  %913 = vmatpush.bf16.msra.mxu0 %v9558_v29  ;;  %v9678_v46 = vor.u32 %v11900_v41, %v9677_v40  ;;  %v9605_v49 = vld [vmem:[#allocation5 + $0xb0] sm:$0xf]  ;;  %v9542_v56 = vor.u32 %v11866_v48, %v9541_v47 }
  0x22   :  { %982 = vmatpush.bf16.msra.mxu1 %v9622_v33  ;;  %v9742_v50 = vor.u32 %v11916_v43, %v9741_v42  ;;  %v11882_v51 = vld [vmem:[#allocation5 + $0xb4] sm:$0xf0]  ;;  %v9669_v52 = vld [vmem:[#allocation5 + $0x130] sm:$0xf]  ;;  %v9533_v59 = vld [vmem:[#allocation5 + $0x20] sm:$0xf] }
  0x23   :  { %1051 = vmatpush.bf16.msra.mxu2 %v9686_v34  ;;  %v11898_v53 = vld [vmem:[#allocation5 + $0x134] sm:$0xf0]  ;;  %v9733_v54 = vld [vmem:[#allocation5 + $0x1b0] sm:$0xf]  ;;  %v9606_v57 = vor.u32 %v11882_v51, %v9605_v49  ;;  %v11864_v60 = vld [vmem:[#allocation5 + $0x24] sm:$0xf0] }
  0x24   :  { %1120 = vmatpush.bf16.msra.mxu3 %v9750_v38  ;;  %v11914_v55 = vld [vmem:[#allocation5 + $0x1b4] sm:$0xf0]  ;;  %v9670_v58 = vor.u32 %v11898_v53, %v9669_v52  ;;  %v9597_v61 = vld [vmem:[#allocation5 + $0xa0] sm:$0xf]  ;;  %v11880_v63 = vld [vmem:[#allocation5 + $0xa4] sm:$0xf0]  ;;  %v9534_v4 = vor.u32 %v11864_v60, %v9533_v59 }
  0x25   :  { %914 = vmatpush.bf16.msra.mxu0 %v9550_v44  ;;  %v9734_v62 = vor.u32 %v11914_v55, %v9733_v54  ;;  %v9661_v0 = vld [vmem:[#allocation5 + $0x120] sm:$0xf]  ;;  %v11896_v1 = vld [vmem:[#allocation5 + $0x124] sm:$0xf0]  ;;  %v9598_v5 = vor.u32 %v11880_v63, %v9597_v61  ;;  %v9525_v7 = vld [vmem:[#allocation5 + $0x10] sm:$0xf] }
  0x26   :  { %983 = vmatpush.bf16.msra.mxu1 %v9614_v45  ;;  %v9725_v2 = vld [vmem:[#allocation5 + $0x1a0] sm:$0xf]  ;;  %v11912_v3 = vld [vmem:[#allocation5 + $0x1a4] sm:$0xf0]  ;;  %v9662_v6 = vor.u32 %v11896_v1, %v9661_v0  ;;  %v11862_v8 = vld [vmem:[#allocation5 + $0x14] sm:$0xf0] }
  0x27   :  { %1052 = vmatpush.bf16.msra.mxu2 %v9678_v46  ;;  %v9589_v9 = vld [vmem:[#allocation5 + $0x90] sm:$0xf]  ;;  %v9726_v10 = vor.u32 %v11912_v3, %v9725_v2  ;;  %v11878_v11 = vld [vmem:[#allocation5 + $0x94] sm:$0xf0]  ;;  %v9517_v16 = vld [vmem:[#allocation5] sm:$0xf]  ;;  %v9526_v17 = vor.u32 %v11862_v8, %v9525_v7 }
  0x28   :  { %1121 = vmatpush.bf16.msra.mxu3 %v9742_v50  ;;  %v9653_v12 = vld [vmem:[#allocation5 + $0x110] sm:$0xf]  ;;  %v11894_v13 = vld [vmem:[#allocation5 + $0x114] sm:$0xf0]  ;;  %v11860_v18 = vld [vmem:[#allocation5 + $0x4] sm:$0xf0]  ;;  %v9590_v21 = vor.u32 %v11878_v11, %v9589_v9 }
  0x29   :  { %915 = vmatpush.bf16.msra.mxu0 %v9542_v56  ;;  %v9717_v14 = vld [vmem:[#allocation5 + $0x190] sm:$0xf]  ;;  %v11910_v15 = vld [vmem:[#allocation5 + $0x194] sm:$0xf0]  ;;  %v95_v19 = vld [vmem:[#allocation2] sm:$0xff]  ;;  %v9654_v22 = vor.u32 %v11894_v13, %v9653_v12  ;;  %v9518_v35 = vor.u32 %v11860_v18, %v9517_v16  ;;  %vm5059_vm0 = vcmask 1041408  }
  0x2a   :  { %984 = vmatpush.bf16.msra.mxu1 %v9606_v57  ;;  %v96_v20 = vld [vmem:[#allocation2 + $0x8] sm:$0xff]  ;;  %v9581_v23 = vld [vmem:[#allocation5 + $0x80] sm:$0xf]  ;;  %v12652_v25 = vld [vmem:[#allocation2 + $0x10] sm:$0xff]  ;;  %v9718_v26 = vor.u32 %v11910_v15, %v9717_v14  ;;  %v151_v31 = vunpack.c.l.b16 %v95_v19  ;;  %v152_v36 = vunpack.c.h.b16 %v95_v19  ;;  %vm5061_vm1 = vcmask 1043458   ;;  %s12604_s2 = smov [#allocation11]  }
  0x2b   :  { %1053 = vmatpush.bf16.msra.mxu2 %v9670_v58  ;;  %v11876_v24 = vld [vmem:[#allocation5 + $0x84] sm:$0xf0]  ;;  %v9645_v27 = vld [vmem:[#allocation5 + $0x100] sm:$0xf]  ;;  %v153_v32 = vunpack.c.l.b16 %v96_v20  ;;  %v11873_v33 = vld [vmem:[#allocation5 + $0x74] sm:$0xf]  ;;  %v154_v37 = vunpack.c.h.b16 %v96_v20  ;;  %v155_v38 = vunpack.c.l.b16 %v12652_v25  ;;  %v156_v43 = vunpack.c.h.b16 %v12652_v25 }
  0x2c   :  { %1122 = vmatpush.bf16.msra.mxu3 %v9734_v62  ;;  %v11892_v28 = vld [vmem:[#allocation5 + $0x104] sm:$0xf0]  ;;  %v9709_v29 = vld [vmem:[#allocation5 + $0x180] sm:$0xf]  ;;  %v9575_v34 = vld [vmem:[#allocation5 + $0x78] sm:$0xf0]  ;;  %v9582_v41 = vor.u32 %v11876_v24, %v9581_v23 }
  0x2d   :  { %916 = vmatpush.bf16.msra.mxu0 %v9534_v4  ;;  %v11908_v30 = vld [vmem:[#allocation5 + $0x184] sm:$0xf0]  ;;  %v11889_v39 = vld [vmem:[#allocation5 + $0xf4] sm:$0xf]  ;;  %v9639_v40 = vld [vmem:[#allocation5 + $0xf8] sm:$0xf0]  ;;  %v9646_v42 = vor.u32 %v11892_v28, %v9645_v27  ;;  %v9578_v45 = vor.u32 %v11873_v33, %v9575_v34  ;;  %v12656_v49 = vpack.c.b16 %v153_v32, %v151_v31  ;;  %v12658_v54 = vpack.c.b16 %v154_v37, %v152_v36 }
  0x2e   :  { %985 = vmatpush.bf16.msra.mxu1 %v9598_v5  ;;  %v9710_v44 = vor.u32 %v11908_v30, %v9709_v29  ;;  %v9829_v46 = vld [vmem:[#allocation5 + $0x270] sm:$0xf]  ;;  %v11938_v47 = vld [vmem:[#allocation5 + $0x274] sm:$0xf0]  ;;  %v9642_v50 = vor.u32 %v11889_v39, %v9639_v40  ;;  %v11871_v52 = vld [vmem:[#allocation5 + $0x64] sm:$0xf]  ;;  %v12660_v55 = vpack.c.b16 %v155_v38, %v153_v32  ;;  %v12662_v58 = vpack.c.b16 %v156_v43, %v154_v37 }
  0x2f   :  { %1054 = vmatpush.bf16.msra.mxu2 %v9662_v6  ;;  %v9893_v48 = vld [vmem:[#allocation5 + $0x2f0] sm:$0xf]  ;;  %15902 = vst [vmem:[#allocation16_spill] sm:$0xff] %v12656_v49  ;;  %v11954_v51 = vld [vmem:[#allocation5 + $0x2f4] sm:$0xf0]  ;;  %v9830_v59 = vor.u32 %v11938_v47, %v9829_v46  ;;  %v99_v6 = vld [vmem:[#allocation2 + $0x20] sm:$0xff] }
  0x30   :  { %1123 = vmatpush.bf16.msra.mxu3 %v9726_v10  ;;  %v9567_v53 = vld [vmem:[#allocation5 + $0x68] sm:$0xf0]  ;;  %15903 = vst [vmem:[#allocation17_spill] sm:$0xff] %v12658_v54  ;;  %v11887_v56 = vld [vmem:[#allocation5 + $0xe4] sm:$0xf]  ;;  %v9894_v60 = vor.u32 %v11954_v51, %v9893_v48  ;;  %v98_v5 = vld [vmem:[#allocation2 + $0x18] sm:$0xff]  ;;  %v159_v9 = vunpack.c.l.b16 %v99_v6  ;;  %v160_v10 = vunpack.c.h.b16 %v99_v6 }
  0x31   :  { %917 = vmatpush.bf16.msra.mxu0 %v9526_v17  ;;  %v9631_v57 = vld [vmem:[#allocation5 + $0xe8] sm:$0xf0]  ;;  %v9570_v61 = vor.u32 %v11871_v52, %v9567_v53  ;;  %v9821_v62 = vld [vmem:[#allocation5 + $0x260] sm:$0xf]  ;;  %v11936_v63 = vld [vmem:[#allocation5 + $0x264] sm:$0xf0]  ;;  %v157_v7 = vunpack.c.l.b16 %v98_v5  ;;  %v158_v8 = vunpack.c.h.b16 %v98_v5 }
  0x32   :  { %986 = vmatpush.bf16.msra.mxu1 %v9590_v21  ;;  %v9634_v0 = vor.u32 %v11887_v56, %v9631_v57  ;;  %v9885_v1 = vld [vmem:[#allocation5 + $0x2e0] sm:$0xf]  ;;  %v11952_v2 = vld [vmem:[#allocation5 + $0x2e4] sm:$0xf0]  ;;  %v9822_v3 = vor.u32 %v11936_v63, %v9821_v62  ;;  %v11869_v15 = vld [vmem:[#allocation5 + $0x54] sm:$0xf] }
  0x33   :  { %1055 = vmatpush.bf16.msra.mxu2 %v9654_v22  ;;  %v9886_v4 = vor.u32 %v11952_v2, %v9885_v1  ;;  %v12668_v11 = vpack.c.b16 %v157_v7, %v155_v38  ;;  %v12670_v12 = vpack.c.b16 %v158_v8, %v156_v43  ;;  %v12672_v13 = vpack.c.b16 %v159_v9, %v157_v7  ;;  %v9559_v16 = vld [vmem:[#allocation5 + $0x58] sm:$0xf0]  ;;  %v9813_v17 = vld [vmem:[#allocation5 + $0x250] sm:$0xf]  ;;  %v11934_v19 = vld [vmem:[#allocation5 + $0x254] sm:$0xf0] }
  0x34   :  { %1124 = vmatpush.bf16.msra.mxu3 %v9718_v26  ;;  %v12674_v14 = vpack.c.b16 %v160_v10, %v158_v8  ;;  %v9562_v18 = vor.u32 %v11869_v15, %v9559_v16  ;;  %v11885_v20 = vld [vmem:[#allocation5 + $0xd4] sm:$0xf]  ;;  %v9623_v21 = vld [vmem:[#allocation5 + $0xd8] sm:$0xf0]  ;;  %v9814_v22 = vor.u32 %v11934_v19, %v9813_v17  ;;  %v9877_v24 = vld [vmem:[#allocation5 + $0x2d0] sm:$0xf] }
  0x35   :  { %918 = vmatpush.bf16.msra.mxu0 %v9518_v35  ;;  %v9626_v23 = vor.u32 %v11885_v20, %v9623_v21  ;;  %v11950_v25 = vld [vmem:[#allocation5 + $0x2d4] sm:$0xf0]  ;;  %v100_v26 = vld [vmem:[#allocation2 + $0x28] sm:$0xff]  ;;  %v12680_v28 = vld [vmem:[#allocation2 + $0x30] sm:$0xff]  ;;  %vm5064_vm2 = vcmask 1045508   ;;  %vm5425_vm3 = vcmask 1044480  }
  0x36   :  { %987 = vmatpush.bf16.msra.mxu1 %v9582_v41  ;;  %v9878_v27 = vor.u32 %v11950_v25, %v9877_v24  ;;  %v161_v29 = vunpack.c.l.b16 %v100_v26  ;;  %v162_v30 = vunpack.c.h.b16 %v100_v26  ;;  %v15689_v31 = vunpack.c.l.b16 %v12680_v28  ;;  %v11867_v37 = vld [vmem:[#allocation5 + $0x44] sm:$0xf]  ;;  %v9551_v38 = vld [vmem:[#allocation5 + $0x48] sm:$0xf0]  ;;  %v9805_v39 = vld [vmem:[#allocation5 + $0x240] sm:$0xf] }
  0x37   :  { %1056 = vmatpush.bf16.msra.mxu2 %v9646_v42  ;;  %v15688_v32 = vunpack.c.h.b16 %v12680_v28  ;;  %v9554_v40 = vor.u32 %v11867_v37, %v9551_v38  ;;  %v11932_v41 = vld [vmem:[#allocation5 + $0x244] sm:$0xf0]  ;;  %v11883_v42 = vld [vmem:[#allocation5 + $0xc4] sm:$0xf]  ;;  %v9615_v43 = vld [vmem:[#allocation5 + $0xc8] sm:$0xf0] }
  0x38   :  { %1125 = vmatpush.bf16.msra.mxu3 %v9710_v44  ;;  %919 = vmatmul.bf16.vlgmr.msra.gmra.mxu0 %v12656_v49  ;;  %v12684_v33 = vpack.c.b16 %v161_v29, %v159_v9  ;;  %v12686_v34 = vpack.c.b16 %v162_v30, %v160_v10  ;;  %v12690_v35 = vpack.c.b16 %v15689_v31, %v161_v29  ;;  %v9869_v46 = vld [vmem:[#allocation5 + $0x2c0] sm:$0xf]  ;;  %v11948_v47 = vld [vmem:[#allocation5 + $0x2c4] sm:$0xf0]  ;;  %v105_v52 = vld [vmem:[#allocation2 + $0x50] sm:$0xff]  ;;  %vm5478_vm4 = vcmask 1045504  }
  0x39   :  { %988 = vmatmul.bf16.vlgmr.msra.gmra.mxu1 %v12658_v54  ;;  %1187 = vmatpush.bf16.msrb.mxu0 %v9830_v59  ;;  %v12694_v36 = vpack.c.b16 %v15688_v32, %v162_v30  ;;  %v9806_v44 = vor.u32 %v11932_v41, %v9805_v39  ;;  %v103_v48 = vld [vmem:[#allocation2 + $0x40] sm:$0xff]  ;;  %v9870_v51 = vor.u32 %v11948_v47, %v9869_v46  ;;  %v106_v2 = vld [vmem:[#allocation2 + $0x58] sm:$0xff]  ;;  %v11865_v16 = vld [vmem:[#allocation5 + $0x34] sm:$0xf]  ;;  %vm7949_vm5 = vcmask 1040384   ;;  %s9498_s4 = sshll.u32 %s12604_s2, 4  ;;  %s9499_s4 = int_to_ptr.vmem [resolvable:$true] %s9498_s4 }
  0x3a   :  { %1057 = vmatmul.bf16.vlgmr.msra.gmra.mxu2 %v12660_v55  ;;  %1256 = vmatpush.bf16.msrb.mxu1 %v9894_v60  ;;  %v163_v53 = vunpack.c.l.b16 %v103_v48  ;;  %v164_v57 = vunpack.c.h.b16 %v103_v48  ;;  %v167_v60 = vunpack.c.l.b16 %v105_v52  ;;  %v170_v5 = vunpack.c.h.b16 %v106_v2  ;;  %v9543_v17 = vld [vmem:[#allocation5 + $0x38] sm:$0xf0]  ;;  %v11930_v20 = vld [vmem:[#allocation5 + $0x234] sm:$0xf0]  ;;  %v11881_v21 = vld [vmem:[#allocation5 + $0xb4] sm:$0xf] }
  0x3b   :  { %1325 = vmatpush.bf16.msrb.mxu2 %v9578_v45  ;;  %1126 = vmatmul.bf16.vlgmr.msra.gmra.mxu3 %v12662_v58  ;;  %v9618_v45 = vor.u32 %v11883_v42, %v9615_v43  ;;  %v9546_v19 = vor.u32 %v11865_v16, %v9543_v17  ;;  %v9861_v25 = vld [vmem:[#allocation5 + $0x2b0] sm:$0xf]  ;;  %v11946_v26 = vld [vmem:[#allocation5 + $0x2b4] sm:$0xf0]  ;;  %v9535_v46 = vld [vmem:[#allocation5 + $0x28] sm:$0xf0] }
  0x3c   :  { %1394 = vmatpush.bf16.msrb.mxu3 %v9642_v50  ;;  %v104_v50 = vld [vmem:[#allocation2 + $0x48] sm:$0xff]  ;;  %v9862_v29 = vor.u32 %v11946_v26, %v9861_v25  ;;  %v12724_v30 = vld [vmem:[#allocation2 + $0x70] sm:$0xff]  ;;  %v9789_v47 = vld [vmem:[#allocation5 + $0x220] sm:$0xf]  ;;  %vm7950_vm6 = vcmask 1042434   ;;  %vm7952_vm8 = vcmask 1044484  }
  0x3d   :  { %1188 = vmatpush.bf16.msrb.mxu0 %v9822_v3  ;;  %v165_v56 = vunpack.c.l.b16 %v104_v50  ;;  %v166_v59 = vunpack.c.h.b16 %v104_v50  ;;  %v107_v3 = vld [vmem:[#allocation2 + $0x60] sm:$0xff]  ;;  %v15687_v39 = vunpack.c.l.b16 %v12724_v30  ;;  %v11928_v50 = vld [vmem:[#allocation5 + $0x224] sm:$0xf0]  ;;  %vm7951_vm7 = vmor %vm7949_vm5, %vm7950_vm6  ;;  %vm7954_vm10 = vcmask 1046534   ;;  %s9500_s19 = sshll.u32 %s15683_s5, 4  ;;  %s12605_s20 = smov 256   ;;  %s9501_s19 = int_to_ptr.hbm [resolvable:$true] %s9500_s19 }
  0x3e   :  { %1257 = vmatpush.bf16.msrb.mxu1 %v9886_v4  ;;  %v169_v4 = vunpack.c.l.b16 %v106_v2  ;;  %v171_v6 = vunpack.c.l.b16 %v107_v3  ;;  %v172_v7 = vunpack.c.h.b16 %v107_v3  ;;  %v113_v3 = vld [vmem:[#allocation2 + $0x90] sm:$0xff]  ;;  %vm15088_vm9 = vmor %vm7951_vm7, %vm7952_vm8  ;;  %s12606_s21 = smov 16  }
  0x3f   :  { %1326 = vmatpush.bf16.msrb.mxu2 %v9570_v61  ;;  %v168_v61 = vunpack.c.h.b16 %v105_v52  ;;  %v12700_v62 = vpack.c.b16 %v165_v56, %v163_v53  ;;  %v12702_v63 = vpack.c.b16 %v166_v59, %v164_v57  ;;  %v9599_v52 = vld [vmem:[#allocation5 + $0xa8] sm:$0xf0]  ;;  %v9790_v53 = vor.u32 %v11928_v50, %v9789_v47  ;;  %v9853_v57 = vld [vmem:[#allocation5 + $0x2a0] sm:$0xf]  ;;  %v9527_v47 = vld [vmem:[#allocation5 + $0x18] sm:$0xf0] }
  0x40   :  { %1395 = vmatpush.bf16.msrb.mxu3 %v9634_v0  ;;  %v12704_v0 = vpack.c.b16 %v167_v60, %v165_v56  ;;  %v12712_v8 = vpack.c.b16 %v169_v4, %v167_v60  ;;  %v12716_v10 = vpack.c.b16 %v171_v6, %v169_v4  ;;  %v12718_v15 = vpack.c.b16 %v172_v7, %v170_v5  ;;  %v111_v60 = vld [vmem:[#allocation2 + $0x80] sm:$0xff]  ;;  %vm15104_vm11 = vmor %vm15088_vm9, %vm7954_vm10 }
  0x41   :  { %1189 = vmatpush.bf16.msrb.mxu0 %v9814_v22  ;;  %15904 = vst [vmem:[#allocation18_spill] sm:$0xff] %v12700_v62  ;;  %v12706_v1 = vpack.c.b16 %v168_v61, %v166_v59  ;;  %v12714_v9 = vpack.c.b16 %v170_v5, %v168_v61  ;;  %v9607_v22 = vld [vmem:[#allocation5 + $0xb8] sm:$0xf0]  ;;  %v11944_v59 = vld [vmem:[#allocation5 + $0x2a4] sm:$0xf0]  ;;  %v175_v4 = vunpack.c.l.b16 %v111_v60  ;;  %v179_v16 = vunpack.c.l.b16 %v113_v3 }
  0x42   :  { %1258 = vmatpush.bf16.msrb.mxu1 %v9878_v27  ;;  %15905 = vst [vmem:[#allocation19_spill] sm:$0xff] %v12702_v63  ;;  %v9610_v24 = vor.u32 %v11881_v21, %v9607_v22  ;;  %v108_v27 = vld [vmem:[#allocation2 + $0x68] sm:$0xff]  ;;  %v9854_v2 = vor.u32 %v11944_v59, %v9853_v57  ;;  %v180_v17 = vunpack.c.h.b16 %v113_v3  ;;  %v114_v22 = vld [vmem:[#allocation2 + $0x98] sm:$0xff] }
  0x43   :  { %1327 = vmatpush.bf16.msrb.mxu2 %v9562_v18  ;;  %15906 = vst [vmem:[#allocation20_spill] sm:$0xff] %v12704_v0  ;;  %v9797_v18 = vld [vmem:[#allocation5 + $0x230] sm:$0xf]  ;;  %v173_v37 = vunpack.c.l.b16 %v108_v27  ;;  %v174_v38 = vunpack.c.h.b16 %v108_v27  ;;  %v112_v61 = vld [vmem:[#allocation2 + $0x88] sm:$0xff]  ;;  %v182_v25 = vunpack.c.h.b16 %v114_v22 }
  0x44   :  { %1396 = vmatpush.bf16.msrb.mxu3 %v9626_v23  ;;  %15907 = vst [vmem:[#allocation21_spill] sm:$0xff] %v12706_v1  ;;  %v9798_v23 = vor.u32 %v11930_v20, %v9797_v18  ;;  %v177_v5 = vunpack.c.l.b16 %v112_v61  ;;  %v116_v59 = vld [vmem:[#allocation2 + $0xa8] sm:$0xff] }
  0x45   :  { %1190 = vmatpush.bf16.msrb.mxu0 %v9806_v44  ;;  %15908 = vst [vmem:[#allocation22_spill] sm:$0xff] %v12712_v8  ;;  %v12728_v41 = vpack.c.b16 %v173_v37, %v171_v6  ;;  %v12730_v42 = vpack.c.b16 %v174_v38, %v172_v7  ;;  %v12734_v43 = vpack.c.b16 %v15687_v39, %v173_v37  ;;  %v176_v6 = vunpack.c.h.b16 %v111_v60  ;;  %v12768_v60 = vld [vmem:[#allocation2 + $0xb0] sm:$0xff] }
  0x46   :  { %1259 = vmatpush.bf16.msrb.mxu1 %v9870_v51  ;;  %15909 = vst [vmem:[#allocation23_spill] sm:$0xff] %v12714_v9  ;;  %v11879_v51 = vld [vmem:[#allocation5 + $0xa4] sm:$0xf]  ;;  %v178_v7 = vunpack.c.h.b16 %v112_v61  ;;  %v12744_v18 = vpack.c.b16 %v177_v5, %v175_v4  ;;  %v12748_v20 = vpack.c.b16 %v179_v16, %v177_v5  ;;  %v12758_v37 = vpack.c.b16 %v182_v25, %v180_v17  ;;  %v9845_v61 = vld [vmem:[#allocation5 + $0x290] sm:$0xf] }
  0x47   :  { %1328 = vmatpush.bf16.msrb.mxu2 %v9554_v40  ;;  %15910 = vst [vmem:[#allocation24_spill] sm:$0xff] %v12716_v10  ;;  %v15686_v40 = vunpack.c.h.b16 %v12724_v30  ;;  %v9602_v56 = vor.u32 %v11879_v51, %v9599_v52  ;;  %v11926_v51 = vld [vmem:[#allocation5 + $0x214] sm:$0xf0]  ;;  %v11877_v52 = vld [vmem:[#allocation5 + $0x94] sm:$0xf]  ;;  %v185_v3 = vunpack.c.l.b16 %v116_v59  ;;  %v186_v5 = vunpack.c.h.b16 %v116_v59 }
  0x48   :  { %924 = vmatmul.bf16.gmra.mxu0 %v12668_v11  ;;  %1397 = vmatpush.bf16.msrb.mxu3 %v9618_v45  ;;  %15911 = vst [vmem:[#allocation25_spill] sm:$0xff] %v12718_v15  ;;  %v11863_v45 = vld [vmem:[#allocation5 + $0x24] sm:$0xf]  ;;  %v12750_v21 = vpack.c.b16 %v180_v17, %v178_v7 }
  0x49   :  { %993 = vmatmul.bf16.gmra.mxu1 %v12670_v12  ;;  %1191 = vmatpush.bf16.msrb.mxu0 %v9798_v23  ;;  %15912 = vst [vmem:[#allocation26_spill] sm:$0xff] %v12728_v41  ;;  %v12738_v44 = vpack.c.b16 %v15686_v40, %v174_v38  ;;  %v9538_v48 = vor.u32 %v11863_v45, %v9535_v46  ;;  %v115_v23 = vld [vmem:[#allocation2 + $0xa0] sm:$0xff]  ;;  %v11861_v46 = vld [vmem:[#allocation5 + $0x14] sm:$0xf] }
  0x4a   :  { %1062 = vmatmul.bf16.gmra.mxu2 %v12672_v13  ;;  %1260 = vmatpush.bf16.msrb.mxu1 %v9862_v29  ;;  %15913 = vst [vmem:[#allocation27_spill] sm:$0xff] %v12730_v42  ;;  %v183_v26 = vunpack.c.l.b16 %v115_v23  ;;  %v184_v27 = vunpack.c.h.b16 %v115_v23  ;;  %v9530_v50 = vor.u32 %v11861_v46, %v9527_v47  ;;  %v11859_v59 = vld [vmem:[#allocation5 + $0x4] sm:$0xf] }
  0x4b   :  { %1131 = vmatmul.bf16.gmra.mxu3 %v12674_v14  ;;  %1329 = vmatpush.bf16.msrb.mxu2 %v9546_v19  ;;  %15914 = vst [vmem:[#allocation28_spill] sm:$0xff] %v12734_v43  ;;  %v12746_v19 = vpack.c.b16 %v178_v7, %v176_v6  ;;  %v15685_v6 = vunpack.c.l.b16 %v12768_v60  ;;  %v15684_v7 = vunpack.c.h.b16 %v12768_v60 }
  0x4c   :  { %1398 = vmatpush.bf16.msrb.mxu3 %v9610_v24  ;;  %15915 = vst [vmem:[#allocation29_spill] sm:$0xff] %v12738_v44  ;;  %v181_v24 = vunpack.c.l.b16 %v114_v22  ;;  %v12762_v45 = vpack.c.b16 %v184_v27, %v182_v25  ;;  %v12774_v17 = vpack.c.b16 %v186_v5, %v184_v27 }
  0x4d   :  { %1192 = vmatpush.bf16.msrb.mxu0 %v9790_v53  ;;  %15916 = vst [vmem:[#allocation30_spill] sm:$0xff] %v12744_v18  ;;  %v9591_v53 = vld [vmem:[#allocation5 + $0x98] sm:$0xf0]  ;;  %v12778_v23 = vpack.c.b16 %v15685_v6, %v185_v3  ;;  %v12782_v25 = vpack.c.b16 %v15684_v7, %v186_v5  ;;  %v11875_v7 = vld [vmem:[#allocation5 + $0x84] sm:$0xf] }
  0x4e   :  { %1261 = vmatpush.bf16.msrb.mxu1 %v9854_v2  ;;  %15917 = vst [vmem:[#allocation31_spill] sm:$0xff] %v12746_v19  ;;  %v12756_v29 = vpack.c.b16 %v181_v24, %v179_v16  ;;  %v12760_v38 = vpack.c.b16 %v183_v26, %v181_v24  ;;  %v9594_v57 = vor.u32 %v11877_v52, %v9591_v53  ;;  %v11942_v2 = vld [vmem:[#allocation5 + $0x294] sm:$0xf0]  ;;  %v121_v53 = vld [vmem:[#allocation2 + $0xd0] sm:$0xff]  ;;  %v9583_v6 = vld [vmem:[#allocation5 + $0x88] sm:$0xf0] }
  0x4f   :  { %1330 = vmatpush.bf16.msrb.mxu2 %v9538_v48  ;;  %15918 = vst [vmem:[#allocation32_spill] sm:$0xff] %v12748_v20  ;;  %v9781_v48 = vld [vmem:[#allocation5 + $0x210] sm:$0xf]  ;;  %v9846_v4 = vor.u32 %v11942_v2, %v9845_v61  ;;  %v12772_v16 = vpack.c.b16 %v185_v3, %v183_v26  ;;  %v9519_v61 = vld [vmem:[#allocation5 + $0x8] sm:$0xf0]  ;;  %v9586_v39 = vor.u32 %v11875_v7, %v9583_v6  ;;  %v192_v32 = vunpack.c.h.b16 %v121_v53 }
  0x50   :  { %1399 = vmatpush.bf16.msrb.mxu3 %v9602_v56  ;;  %15919 = vst [vmem:[#allocation33_spill] sm:$0xff] %v12750_v21  ;;  %v9782_v56 = vor.u32 %v11926_v51, %v9781_v48  ;;  %v120_v51 = vld [vmem:[#allocation2 + $0xc8] sm:$0xff]  ;;  %v9773_v2 = vld [vmem:[#allocation5 + $0x200] sm:$0xf] }
  0x51   :  { %15920 = vst [vmem:[#allocation34_spill] sm:$0xff] %v12756_v29  ;;  %v9837_v7 = vld [vmem:[#allocation5 + $0x280] sm:$0xf] }
  0x52   :  { %15921 = vst [vmem:[#allocation35_spill] sm:$0xff] %v12758_v37  ;;  %1193 = vmatpush.bf16.msrb.mxu0 %v9782_v56  ;;  %1262 = vmatpush.bf16.msrb.mxu1 %v9846_v4  ;;  %v189_v4 = vunpack.c.l.b16 %v120_v51 }
  0x53   :  { %15922 = vst [vmem:[#allocation36_spill] sm:$0xff] %v12760_v38  ;;  %1331 = vmatpush.bf16.msrb.mxu2 %v9530_v50  ;;  %v119_v50 = vld [vmem:[#allocation2 + $0xc0] sm:$0xff] }
  0x54   :  { %15923 = vst [vmem:[#allocation37_spill] sm:$0xff] %v12762_v45  ;;  %1400 = vmatpush.bf16.msrb.mxu3 %v9594_v57  ;;  %v187_v3 = vunpack.c.l.b16 %v119_v50  ;;  %v188_v5 = vunpack.c.h.b16 %v119_v50 }
  0x55   :  { %15924 = vst [vmem:[#allocation38_spill] sm:$0xff] %v12772_v16 }
  0x56   :  { %15925 = vst [vmem:[#allocation39_spill] sm:$0xff] %v12774_v17 }
  0x57   :  { %15926 = vst [vmem:[#allocation40_spill] sm:$0xff] %v12778_v23 }
  0x58   :  { %929 = vmatmul.bf16.gmra.mxu0 %v12684_v33  ;;  %15927 = vst [vmem:[#allocation41_spill] sm:$0xff] %v12782_v25  ;;  %1401 = vmatpush.bf16.msrb.mxu3 %v9586_v39 }
  0x59   :  { %998 = vmatmul.bf16.gmra.mxu1 %v12686_v34 }
  0x5a   :  { %1067 = vmatmul.bf16.gmra.mxu2 %v12690_v35 }
  0x5b   :  { %1136 = vmatmul.bf16.gmra.mxu3 %v12694_v36 }
  0x68   :  { %934 = vmatmul.bf16.gmra.mxu0 %v12700_v62 }
  0x69   :  { %1003 = vmatmul.bf16.gmra.mxu1 %v12702_v63 }
  0x6a   :  { %1072 = vmatmul.bf16.gmra.mxu2 %v12704_v0 }
  0x6b   :  { %1141 = vmatmul.bf16.gmra.mxu3 %v12706_v1 }
  0x78   :  { %939 = vmatmul.bf16.gmra.mxu0 %v12712_v8 }
  0x79   :  { %1008 = vmatmul.bf16.gmra.mxu1 %v12714_v9 }
  0x7a   :  { %1077 = vmatmul.bf16.gmra.mxu2 %v12716_v10  ;;  %v9751_v10 = vld [vmem:[#allocation5 + $0x1d8] sm:$0xf0] }
  0x7b   :  { %1146 = vmatmul.bf16.gmra.mxu3 %v12718_v15  ;;  %v11917_v15 = vld [vmem:[#allocation5 + $0x1d4] sm:$0xf] }
  0x88   :  { %944 = vmatmul.bf16.gmra.mxu0 %v12728_v41 }
  0x89   :  { %1013 = vmatmul.bf16.gmra.mxu1 %v12730_v42 }
  0x8a   :  { %1082 = vmatmul.bf16.gmra.mxu2 %v12734_v43 }
  0x8b   :  { %1151 = vmatmul.bf16.gmra.mxu3 %v12738_v44 }
  0x98   :  { %949 = vmatmul.bf16.gmra.mxu0 %v12744_v18 }
  0x99   :  { %1018 = vmatmul.bf16.gmra.mxu1 %v12746_v19 }
  0x9a   :  { %1087 = vmatmul.bf16.gmra.mxu2 %v12748_v20 }
  0x9b   :  { %1156 = vmatmul.bf16.gmra.mxu3 %v12750_v21 }
  0xa8   :  { %954 = vmatmul.bf16.gmra.mxu0 %v12756_v29 }
  0xa9   :  { %1023 = vmatmul.bf16.gmra.mxu1 %v12758_v37 }
  0xaa   :  { %1092 = vmatmul.bf16.gmra.mxu2 %v12760_v38  ;;  %v12820_v38 = vld [vmem:[#allocation2 + $0xf0] sm:$0xff] }
  0xab   :  { %1161 = vmatmul.bf16.gmra.mxu3 %v12762_v45 }
  0xb5   :  { %v920_v22 = vpop.f32.mrf.mxu0 }
  0xb6   :  { %v989_v24 = vpop.f32.mrf.mxu1 }
  0xb7   :  { %v990_v46 = vadd.f32 %v989_v24, %v920_v22  ;;  %v9522_v22 = vor.u32 %v11859_v59, %v9519_v61  ;;  %v11924_v24 = vld [vmem:[#allocation5 + $0x204] sm:$0xf0] }
  0xb8   :  { %959 = vmatmul.bf16.gmra.mxu0 %v12772_v16  ;;  %v9774_v40 = vor.u32 %v11924_v24, %v9773_v2 }
  0xb9   :  { %1028 = vmatmul.bf16.gmra.mxu1 %v12774_v17  ;;  %1332 = vmatpush.bf16.msrb.mxu2 %v9522_v22  ;;  %v123_v22 = vld [vmem:[#allocation2 + $0xe0] sm:$0xff] }
  0xba   :  { %1097 = vmatmul.bf16.gmra.mxu2 %v12778_v23  ;;  %1194 = vmatpush.bf16.msrb.mxu0 %v9774_v40 }
  0xbb   :  { %1166 = vmatmul.bf16.gmra.mxu3 %v12782_v25 }
  0xbd   :  { %v1058_v26 = vpop.f32.mrf.mxu2  ;;  %v922_v48 = vpop.f32.mrf.mxu0 }
  0xbe   :  { %v1059_v27 = vadd.f32 %v1058_v26, %v990_v46  ;;  %v1127_v47 = vpop.f32.mrf.mxu3  ;;  %v991_v52 = vpop.f32.mrf.mxu1  ;;  %v190_v46 = vunpack.c.h.b16 %v120_v51  ;;  %v191_v26 = vunpack.c.l.b16 %v121_v53  ;;  %v11940_v53 = vld [vmem:[#allocation5 + $0x284] sm:$0xf0] }
  0xbf   :  { %v992_v57 = vadd.f32 %v991_v52, %v922_v48  ;;  %v9838_v39 = vor.u32 %v11940_v53, %v9837_v7 }
  0xc0   :  { %v12788_v56 = vadd.f32 %v1127_v47, %v1059_v27  ;;  %v12790_v47 = vpack.c.b16 %v189_v4, %v187_v3  ;;  %v12792_v25 = vpack.c.b16 %v190_v46, %v188_v5  ;;  %v12794_v50 = vpack.c.b16 %v191_v26, %v189_v4 }
  0xc1   :  { %v12796_v61 = vpack.c.b16 %v192_v32, %v190_v46  ;;  %1263 = vmatpush.bf16.msrb.mxu1 %v9838_v39 }
  0xc2   :  { %15928 = vst [vmem:[#allocation42_spill] sm:$0xff] %v12790_v47 }
  0xc3   :  { %15929 = vst [vmem:[#allocation43_spill] sm:$0xff] %v12792_v25 }
  0xc4   :  { %15930 = vst [vmem:[#allocation44_spill] sm:$0xff] %v12794_v50 }
  0xc5   :  { %v1060_v27 = vpop.f32.mrf.mxu2  ;;  %v925_v31 = vpop.f32.mrf.mxu0  ;;  %15931 = vst [vmem:[#allocation45_spill] sm:$0xff] %v12796_v61 }
  0xc6   :  { %v1061_v48 = vadd.f32 %v1060_v27, %v992_v57  ;;  %v1129_v52 = vpop.f32.mrf.mxu3  ;;  %v994_v59 = vpop.f32.mrf.mxu1  ;;  %v122_v57 = vld [vmem:[#allocation2 + $0xd8] sm:$0xff] }
  0xc7   :  { %v995_v6 = vadd.f32 %v994_v59, %v925_v31  ;;  %v193_v46 = vunpack.c.l.b16 %v122_v57  ;;  %v194_v27 = vunpack.c.h.b16 %v122_v57  ;;  %v11905_v57 = vld [vmem:[#allocation5 + $0x174] sm:$0xf] }
  0xc8   :  { %v12798_v51 = vadd.f32 %v1129_v52, %v1061_v48  ;;  %964 = vmatmul.bf16.gmra.mxu0 %v12790_v47  ;;  %v195_v48 = vunpack.c.l.b16 %v123_v22  ;;  %v196_v52 = vunpack.c.h.b16 %v123_v22  ;;  %v11953_v22 = vld [vmem:[#allocation5 + $0x2f4] sm:$0xf] }
  0xc9   :  { %1033 = vmatmul.bf16.gmra.mxu1 %v12792_v25  ;;  %v12806_v59 = vpack.c.b16 %v193_v46, %v191_v26  ;;  %v12808_v53 = vpack.c.b16 %v194_v27, %v192_v32  ;;  %v11937_v32 = vld [vmem:[#allocation5 + $0x274] sm:$0xf]  ;;  %v9831_v26 = vld [vmem:[#allocation5 + $0x278] sm:$0xf0] }
  0xca   :  { %1102 = vmatmul.bf16.gmra.mxu2 %v12794_v50  ;;  %v12812_v23 = vpack.c.b16 %v196_v52, %v194_v27 }
  0xcb   :  { %1171 = vmatmul.bf16.gmra.mxu3 %v12796_v61 }
  0xcc   :  { %15933 = vst [vmem:[#allocation47_spill] sm:$0xff] %v12812_v23 }
  0xcd   :  { %v1063_v40 = vpop.f32.mrf.mxu2  ;;  %v927_v4 = vpop.f32.mrf.mxu0 }
  0xce   :  { %v1064_v2 = vadd.f32 %v1063_v40, %v995_v6  ;;  %v1132_v3 = vpop.f32.mrf.mxu3  ;;  %v996_v5 = vpop.f32.mrf.mxu1  ;;  %v12810_v6 = vpack.c.b16 %v195_v48, %v193_v46 }
  0xcf   :  { %v997_v24 = vadd.f32 %v996_v5, %v927_v4  ;;  %v9834_v4 = vor.u32 %v11937_v32, %v9831_v26  ;;  %v9703_v5 = vld [vmem:[#allocation5 + $0x178] sm:$0xf0]  ;;  %v11921_v32 = vld [vmem:[#allocation5 + $0x1f4] sm:$0xf] }
  0xd0   :  { %v12804_v31 = vadd.f32 %v1132_v3, %v1064_v2  ;;  %15932 = vst [vmem:[#allocation46_spill] sm:$0xff] %v12810_v6  ;;  %v9706_v27 = vor.u32 %v11905_v57, %v9703_v5  ;;  %v9767_v26 = vld [vmem:[#allocation5 + $0x1f8] sm:$0xf0]  ;;  %v15713_v57 = vunpack.c.l.b16 %v12820_v38 }
  0xd1   :  { %1601 = vmatpush.bf16.msra.mxu2 %v9834_v4  ;;  %v9770_v20 = vor.u32 %v11921_v32, %v9767_v26  ;;  %v11935_v32 = vld [vmem:[#allocation5 + $0x264] sm:$0xf]  ;;  %v9823_v26 = vld [vmem:[#allocation5 + $0x268] sm:$0xf0] }
  0xd2   :  { %1463 = vmatpush.bf16.msra.mxu0 %v9706_v27 }
  0xd3   :  { %1532 = vmatpush.bf16.msra.mxu1 %v9770_v20 }
  0xd5   :  { %v1065_v7 = vpop.f32.mrf.mxu2  ;;  %v930_v50 = vpop.f32.mrf.mxu0 }
  0xd6   :  { %v1066_v39 = vadd.f32 %v1065_v7, %v997_v24  ;;  %v1134_v61 = vpop.f32.mrf.mxu3  ;;  %v999_v40 = vpop.f32.mrf.mxu1  ;;  %v9895_v24 = vld [vmem:[#allocation5 + $0x2f8] sm:$0xf0]  ;;  %v124_v7 = vld [vmem:[#allocation2 + $0xe8] sm:$0xff] }
  0xd7   :  { %v1000_v3 = vadd.f32 %v999_v40, %v930_v50  ;;  %v197_v21 = vunpack.c.l.b16 %v124_v7  ;;  %v198_v44 = vunpack.c.h.b16 %v124_v7 }
  0xd8   :  { %v12814_v2 = vadd.f32 %v1134_v61, %v1066_v39  ;;  %969 = vmatmul.bf16.gmra.mxu0 %v12806_v59  ;;  %v9898_v61 = vor.u32 %v11953_v22, %v9895_v24 }
  0xd9   :  { %1038 = vmatmul.bf16.gmra.mxu1 %v12808_v53  ;;  %v12826_v5 = vpack.c.b16 %v197_v21, %v195_v48  ;;  %v12828_v22 = vpack.c.b16 %v198_v44, %v196_v52 }
  0xda   :  { %1107 = vmatmul.bf16.gmra.mxu2 %v12810_v6  ;;  %1670 = vmatpush.bf16.msra.mxu3 %v9898_v61 }
  0xdb   :  { %1176 = vmatmul.bf16.gmra.mxu3 %v12812_v23  ;;  %15934 = vst [vmem:[#allocation48_spill] sm:$0xff] %v12826_v5 }
  0xdc   :  { %15935 = vst [vmem:[#allocation49_spill] sm:$0xff] %v12828_v22 }
  0xdd   :  { %v1068_v46 = vpop.f32.mrf.mxu2  ;;  %v932_v40 = vpop.f32.mrf.mxu0 }
  0xde   :  { %v1069_v50 = vadd.f32 %v1068_v46, %v1000_v3  ;;  %v1137_v39 = vpop.f32.mrf.mxu3  ;;  %v1001_v45 = vpop.f32.mrf.mxu1  ;;  %v15712_v3 = vunpack.c.h.b16 %v12820_v38 }
  0xdf   :  { %v1002_v6 = vadd.f32 %v1001_v45, %v932_v40  ;;  %v12832_v45 = vpack.c.b16 %v15713_v57, %v197_v21 }
  0xe0   :  { %v12822_v23 = vadd.f32 %v1137_v39, %v1069_v50  ;;  %v12836_v7 = vpack.c.b16 %v15712_v3, %v198_v44 }
  0xe1   :  { %15936 = vst [vmem:[#allocation50_spill] sm:$0xff] %v12832_v45 }
  0xe2   :  { %15937 = vst [vmem:[#allocation51_spill] sm:$0xff] %v12836_v7 }
  0xe5   :  { %v1070_v4 = vpop.f32.mrf.mxu2  ;;  %v935_v27 = vpop.f32.mrf.mxu0 }
  0xe6   :  { %v1071_v24 = vadd.f32 %v1070_v4, %v1002_v6  ;;  %v1139_v46 = vpop.f32.mrf.mxu3  ;;  %v1004_v61 = vpop.f32.mrf.mxu1  ;;  %v11903_v4 = vld [vmem:[#allocation5 + $0x164] sm:$0xf] }
  0xe7   :  { %v1005_v20 = vadd.f32 %v1004_v61, %v935_v27  ;;  %v11951_v27 = vld [vmem:[#allocation5 + $0x2e4] sm:$0xf]  ;;  %v9887_v61 = vld [vmem:[#allocation5 + $0x2e8] sm:$0xf0] }
  0xe8   :  { %v12838_v50 = vadd.f32 %v1139_v46, %v1071_v24  ;;  %974 = vmatmul.bf16.gmra.mxu0 %v12826_v5  ;;  %v9826_v24 = vor.u32 %v11935_v32, %v9823_v26  ;;  %v9695_v46 = vld [vmem:[#allocation5 + $0x168] sm:$0xf0]  ;;  %v9890_v57 = vor.u32 %v11951_v27, %v9887_v61 }
  0xe9   :  { %1043 = vmatmul.bf16.gmra.mxu1 %v12828_v22  ;;  %v9698_v3 = vor.u32 %v11903_v4, %v9695_v46 }
  0xea   :  { %1112 = vmatmul.bf16.gmra.mxu2 %v12832_v45  ;;  %1671 = vmatpush.bf16.msra.mxu3 %v9890_v57 }
  0xeb   :  { %1181 = vmatmul.bf16.gmra.mxu3 %v12836_v7  ;;  %1602 = vmatpush.bf16.msra.mxu2 %v9826_v24 }
  0xec   :  { %1464 = vmatpush.bf16.msra.mxu0 %v9698_v3 }
  0xed   :  { %v1073_v48 = vpop.f32.mrf.mxu2  ;;  %v937_v6 = vpop.f32.mrf.mxu0 }
  0xee   :  { %v1074_v52 = vadd.f32 %v1073_v48, %v1005_v20  ;;  %v1142_v21 = vpop.f32.mrf.mxu3  ;;  %v1006_v39 = vpop.f32.mrf.mxu1 }
  0xef   :  { %v1007_v44 = vadd.f32 %v1006_v39, %v937_v6  ;;  %v11919_v6 = vld [vmem:[#allocation5 + $0x1e4] sm:$0xf]  ;;  %v9759_v39 = vld [vmem:[#allocation5 + $0x1e8] sm:$0xf0] }
  0xf0   :  { %v12844_v40 = vadd.f32 %v1142_v21, %v1074_v52  ;;  %v9762_v32 = vor.u32 %v11919_v6, %v9759_v39  ;;  %v9815_v6 = vld [vmem:[#allocation5 + $0x258] sm:$0xf0]  ;;  %v11901_v39 = vld [vmem:[#allocation5 + $0x154] sm:$0xf] }
  0xf2   :  { %1533 = vmatpush.bf16.msra.mxu1 %v9762_v32 }
  0xf5   :  { %v1075_v7 = vpop.f32.mrf.mxu2  ;;  %v940_v45 = vpop.f32.mrf.mxu0 }
  0xf6   :  { %v1076_v20 = vadd.f32 %v1075_v7, %v1007_v44  ;;  %v1144_v48 = vpop.f32.mrf.mxu3  ;;  %v1009_v43 = vpop.f32.mrf.mxu1 }
  0xf7   :  { %v1010_v21 = vadd.f32 %v1009_v43, %v940_v45 }
  0xf8   :  { %v12846_v52 = vadd.f32 %v1144_v48, %v1076_v20  ;;  %1195 = vmatmul.bf16.vlgmr.msrb.gmra.mxu0 %v12668_v11 }
  0xf9   :  { %1264 = vmatmul.bf16.vlgmr.msrb.gmra.mxu1 %v12670_v12 }
  0xfa   :  { %1333 = vmatmul.bf16.vlgmr.msrb.gmra.mxu2 %v12656_v49 }
  0xfb   :  { %1402 = vmatmul.bf16.vlgmr.msrb.gmra.mxu3 %v12658_v54 }
  0xfd   :  { %v1078_v57 = vpop.f32.mrf.mxu2  ;;  %v942_v44 = vpop.f32.mrf.mxu0 }
  0xfe   :  { %v1079_v3 = vadd.f32 %v1078_v57, %v1010_v21  ;;  %v1147_v7 = vpop.f32.mrf.mxu3  ;;  %v1011_v26 = vpop.f32.mrf.mxu1  ;;  %v11933_v21 = vld [vmem:[#allocation5 + $0x254] sm:$0xf]  ;;  %v9687_v57 = vld [vmem:[#allocation5 + $0x158] sm:$0xf0] }
  0xff   :  { %v1012_v43 = vadd.f32 %v1011_v26, %v942_v44  ;;  %v9818_v32 = vor.u32 %v11933_v21, %v9815_v6  ;;  %v9690_v26 = vor.u32 %v11901_v39, %v9687_v57  ;;  %v9754_v6 = vor.u32 %v11917_v15, %v9751_v10 }
 0x100   :  { %v12852_v4 = vadd.f32 %v1147_v7, %v1079_v3  ;;  %v11949_v3 = vld [vmem:[#allocation5 + $0x2d4] sm:$0xf]  ;;  %v9879_v7 = vld [vmem:[#allocation5 + $0x2d8] sm:$0xf0]  ;;  %v15938_v39 = vunpack.c.l.b16 %v12680_v28 }
 0x101   :  { %1603 = vmatpush.bf16.msra.mxu2 %v9818_v32  ;;  %1465 = vmatpush.bf16.msra.mxu0 %v9690_v26 }
 0x102   :  { %1534 = vmatpush.bf16.msra.mxu1 %v9754_v6  ;;  %v9679_v6 = vld [vmem:[#allocation5 + $0x148] sm:$0xf0] }
 0x105   :  { %v1080_v45 = vpop.f32.mrf.mxu2  ;;  %v945_v27 = vpop.f32.mrf.mxu0 }
 0x106   :  { %v1081_v24 = vadd.f32 %v1080_v45, %v1012_v43  ;;  %v1149_v46 = vpop.f32.mrf.mxu3  ;;  %v1014_v61 = vpop.f32.mrf.mxu1  ;;  %v9882_v43 = vor.u32 %v11949_v3, %v9879_v7  ;;  %v15940_v7 = vunpack.c.h.b16 %v12680_v28 }
 0x107   :  { %v1015_v48 = vadd.f32 %v1014_v61, %v945_v27  ;;  %v102_v27 = vld [vmem:[#allocation2 + $0x38] sm:$0xff] }
 0x108   :  { %v12854_v20 = vadd.f32 %v1149_v46, %v1081_v24  ;;  %1200 = vmatmul.bf16.gmra.mxu0 %v12684_v33  ;;  %1672 = vmatpush.bf16.msra.mxu3 %v9882_v43  ;;  %v311_v21 = vunpack.c.l.b16 %v102_v27  ;;  %v312_v1 = vunpack.c.h.b16 %v102_v27  ;;  %v9807_v27 = vld [vmem:[#allocation5 + $0x248] sm:$0xf0] }
 0x109   :  { %1269 = vmatmul.bf16.gmra.mxu1 %v12686_v34 }
 0x10a   :  { %1338 = vmatmul.bf16.gmra.mxu2 %v12668_v11 }
 0x10b   :  { %1407 = vmatmul.bf16.gmra.mxu3 %v12670_v12 }
 0x10d   :  { %v1083_v44 = vpop.f32.mrf.mxu2  ;;  %v947_v46 = vpop.f32.mrf.mxu0 }
 0x10e   :  { %v1084_v45 = vadd.f32 %v1083_v44, %v1015_v48  ;;  %v1152_v24 = vpop.f32.mrf.mxu3  ;;  %v1016_v61 = vpop.f32.mrf.mxu1  ;;  %v12864_v48 = vpack.c.b16 %v311_v21, %v15938_v39  ;;  %v12868_v44 = vpack.c.b16 %v312_v1, %v15940_v7  ;;  %v11947_v39 = vld [vmem:[#allocation5 + $0x2c4] sm:$0xf] }
 0x10f   :  { %v1017_v49 = vadd.f32 %v1016_v61, %v947_v46  ;;  %v11931_v46 = vld [vmem:[#allocation5 + $0x244] sm:$0xf] }
 0x110   :  { %v12860_v54 = vadd.f32 %v1152_v24, %v1084_v45  ;;  %15939 = vst [vmem:[#allocation52_spill] sm:$0xff] %v12864_v48  ;;  %v11899_v61 = vld [vmem:[#allocation5 + $0x144] sm:$0xf]  ;;  %v9810_v21 = vor.u32 %v11931_v46, %v9807_v27 }
 0x111   :  { %15941 = vst [vmem:[#allocation53_spill] sm:$0xff] %v12868_v44 }
 0x112   :  { %1604 = vmatpush.bf16.msra.mxu2 %v9810_v21 }
 0x115   :  { %v1085_v0 = vpop.f32.mrf.mxu2  ;;  %v950_v32 = vpop.f32.mrf.mxu0 }
 0x116   :  { %v1086_v57 = vadd.f32 %v1085_v0, %v1017_v49  ;;  %v1154_v3 = vpop.f32.mrf.mxu3  ;;  %v1019_v26 = vpop.f32.mrf.mxu1 }
 0x117   :  { %v1020_v45 = vadd.f32 %v1019_v26, %v950_v32 }
 0x118   :  { %v12870_v43 = vadd.f32 %v1154_v3, %v1086_v57  ;;  %1205 = vmatmul.bf16.gmra.mxu0 %v12864_v48  ;;  %v9871_v57 = vld [vmem:[#allocation5 + $0x2c8] sm:$0xf0]  ;;  %v9682_v3 = vor.u32 %v11899_v61, %v9679_v6 }
 0x119   :  { %1274 = vmatmul.bf16.gmra.mxu1 %v12868_v44  ;;  %v9874_v32 = vor.u32 %v11947_v39, %v9871_v57 }
 0x11a   :  { %1343 = vmatmul.bf16.gmra.mxu2 %v12684_v33  ;;  %1466 = vmatpush.bf16.msra.mxu0 %v9682_v3 }
 0x11b   :  { %1412 = vmatmul.bf16.gmra.mxu3 %v12686_v34 }
 0x11c   :  { %1673 = vmatpush.bf16.msra.mxu3 %v9874_v32 }
 0x11d   :  { %v1088_v10 = vpop.f32.mrf.mxu2  ;;  %v952_v15 = vpop.f32.mrf.mxu0 }
 0x11e   :  { %v1089_v49 = vadd.f32 %v1088_v10, %v1020_v45  ;;  %v1157_v0 = vpop.f32.mrf.mxu3  ;;  %v1021_v24 = vpop.f32.mrf.mxu1 }
 0x11f   :  { %v1022_v1 = vadd.f32 %v1021_v24, %v952_v15  ;;  %v11915_v15 = vld [vmem:[#allocation5 + $0x1c4] sm:$0xf]  ;;  %v9743_v24 = vld [vmem:[#allocation5 + $0x1c8] sm:$0xf0] }
 0x120   :  { %v12876_v28 = vadd.f32 %v1157_v0, %v1089_v49  ;;  %v9746_v46 = vor.u32 %v11915_v15, %v9743_v24  ;;  %v9799_v15 = vld [vmem:[#allocation5 + $0x238] sm:$0xf0]  ;;  %v11897_v24 = vld [vmem:[#allocation5 + $0x134] sm:$0xf] }
 0x122   :  { %1535 = vmatpush.bf16.msra.mxu1 %v9746_v46 }
 0x125   :  { %v1090_v7 = vpop.f32.mrf.mxu2  ;;  %v955_v10 = vpop.f32.mrf.mxu0 }
 0x126   :  { %v1091_v26 = vadd.f32 %v1090_v7, %v1022_v1  ;;  %v1159_v45 = vpop.f32.mrf.mxu3  ;;  %v1024_v44 = vpop.f32.mrf.mxu1 }
 0x127   :  { %v1025_v0 = vadd.f32 %v1024_v44, %v955_v10 }
 0x128   :  { %v12878_v49 = vadd.f32 %v1159_v45, %v1091_v26  ;;  %1210 = vmatmul.bf16.gmra.mxu0 %v12712_v8 }
 0x129   :  { %1279 = vmatmul.bf16.gmra.mxu1 %v12714_v9 }
 0x12a   :  { %1348 = vmatmul.bf16.gmra.mxu2 %v12700_v62 }
 0x12b   :  { %1417 = vmatmul.bf16.gmra.mxu3 %v12702_v63 }
 0x12d   :  { %v1093_v27 = vpop.f32.mrf.mxu2  ;;  %v957_v21 = vpop.f32.mrf.mxu0 }
 0x12e   :  { %v1094_v1 = vadd.f32 %v1093_v27, %v1025_v0  ;;  %v1162_v61 = vpop.f32.mrf.mxu3  ;;  %v1026_v6 = vpop.f32.mrf.mxu1  ;;  %v11929_v0 = vld [vmem:[#allocation5 + $0x234] sm:$0xf]  ;;  %v9671_v27 = vld [vmem:[#allocation5 + $0x138] sm:$0xf0] }
 0x12f   :  { %v1027_v44 = vadd.f32 %v1026_v6, %v957_v21  ;;  %v9802_v46 = vor.u32 %v11929_v0, %v9799_v15  ;;  %v9674_v6 = vor.u32 %v11897_v24, %v9671_v27  ;;  %v15944_v24 = vunpack.c.l.b16 %v12724_v30 }
 0x130   :  { %v12884_v39 = vadd.f32 %v1162_v61, %v1094_v1  ;;  %v11945_v1 = vld [vmem:[#allocation5 + $0x2b4] sm:$0xf]  ;;  %v9863_v61 = vld [vmem:[#allocation5 + $0x2b8] sm:$0xf0] }
 0x131   :  { %1605 = vmatpush.bf16.msra.mxu2 %v9802_v46  ;;  %1467 = vmatpush.bf16.msra.mxu0 %v9674_v6 }
 0x132   :  { %15942 = vst [vmem:[#allocation54_spill] sm:$0xff] %v12884_v39 }
 0x135   :  { %v1095_v57 = vpop.f32.mrf.mxu2  ;;  %v960_v7 = vpop.f32.mrf.mxu0 }
 0x136   :  { %v1096_v3 = vadd.f32 %v1095_v57, %v1027_v44  ;;  %v1164_v32 = vpop.f32.mrf.mxu3  ;;  %v1029_v26 = vpop.f32.mrf.mxu1  ;;  %v9866_v44 = vor.u32 %v11945_v1, %v9863_v61  ;;  %v15946_v61 = vunpack.c.h.b16 %v12724_v30 }
 0x137   :  { %v1030_v10 = vadd.f32 %v1029_v26, %v960_v7  ;;  %v110_v7 = vld [vmem:[#allocation2 + $0x78] sm:$0xff] }
 0x138   :  { %v12886_v45 = vadd.f32 %v1164_v32, %v1096_v3  ;;  %1215 = vmatmul.bf16.gmra.mxu0 %v12728_v41  ;;  %1674 = vmatpush.bf16.msra.mxu3 %v9866_v44  ;;  %v313_v0 = vunpack.c.l.b16 %v110_v7 }
 0x139   :  { %1284 = vmatmul.bf16.gmra.mxu1 %v12730_v42 }
 0x13a   :  { %15943 = vst [vmem:[#allocation55_spill] sm:$0xff] %v12886_v45  ;;  %1353 = vmatmul.bf16.gmra.mxu2 %v12712_v8  ;;  %v11913_v45 = vld [vmem:[#allocation5 + $0x1b4] sm:$0xf]  ;;  %v314_v8 = vunpack.c.h.b16 %v110_v7  ;;  %v9791_v7 = vld [vmem:[#allocation5 + $0x228] sm:$0xf0] }
 0x13b   :  { %1422 = vmatmul.bf16.gmra.mxu3 %v12714_v9  ;;  %v9735_v9 = vld [vmem:[#allocation5 + $0x1b8] sm:$0xf0] }
 0x13c   :  { %v9738_v15 = vor.u32 %v11913_v45, %v9735_v9 }
 0x13d   :  { %v1098_v21 = vpop.f32.mrf.mxu2  ;;  %v962_v32 = vpop.f32.mrf.mxu0 }
 0x13e   :  { %v1099_v57 = vadd.f32 %v1098_v21, %v1030_v10  ;;  %v1167_v3 = vpop.f32.mrf.mxu3  ;;  %v1031_v26 = vpop.f32.mrf.mxu1  ;;  %1536 = vmatpush.bf16.msra.mxu1 %v9738_v15  ;;  %v12896_v10 = vpack.c.b16 %v313_v0, %v15944_v24  ;;  %v12900_v21 = vpack.c.b16 %v314_v8, %v15946_v61  ;;  %v9663_v15 = vld [vmem:[#allocation5 + $0x128] sm:$0xf0]  ;;  %v11943_v24 = vld [vmem:[#allocation5 + $0x2a4] sm:$0xf] }
 0x13f   :  { %v1032_v62 = vadd.f32 %v1031_v26, %v962_v32  ;;  %v11927_v32 = vld [vmem:[#allocation5 + $0x224] sm:$0xf] }
 0x140   :  { %v12892_v63 = vadd.f32 %v1167_v3, %v1099_v57  ;;  %15945 = vst [vmem:[#allocation56_spill] sm:$0xff] %v12896_v10  ;;  %v11895_v26 = vld [vmem:[#allocation5 + $0x124] sm:$0xf]  ;;  %v9794_v0 = vor.u32 %v11927_v32, %v9791_v7 }
 0x141   :  { %15947 = vst [vmem:[#allocation57_spill] sm:$0xff] %v12900_v21 }
 0x142   :  { %1606 = vmatpush.bf16.msra.mxu2 %v9794_v0 }
 0x145   :  { %v1100_v39 = vpop.f32.mrf.mxu2  ;;  %v965_v46 = vpop.f32.mrf.mxu0 }
 0x146   :  { %v1101_v27 = vadd.f32 %v1100_v39, %v1032_v62  ;;  %v1169_v1 = vpop.f32.mrf.mxu3  ;;  %v1034_v6 = vpop.f32.mrf.mxu1 }
 0x147   :  { %v1035_v57 = vadd.f32 %v1034_v6, %v965_v46 }
 0x148   :  { %v12902_v44 = vadd.f32 %v1169_v1, %v1101_v27  ;;  %1220 = vmatmul.bf16.gmra.mxu0 %v12896_v10  ;;  %v9855_v27 = vld [vmem:[#allocation5 + $0x2a8] sm:$0xf0]  ;;  %v9666_v1 = vor.u32 %v11895_v26, %v9663_v15 }
 0x149   :  { %1289 = vmatmul.bf16.gmra.mxu1 %v12900_v21  ;;  %v9858_v46 = vor.u32 %v11943_v24, %v9855_v27 }
 0x14a   :  { %1358 = vmatmul.bf16.gmra.mxu2 %v12728_v41  ;;  %1468 = vmatpush.bf16.msra.mxu0 %v9666_v1 }
 0x14b   :  { %1427 = vmatmul.bf16.gmra.mxu3 %v12730_v42 }
 0x14c   :  { %1675 = vmatpush.bf16.msra.mxu3 %v9858_v46 }
 0x14d   :  { %v1103_v9 = vpop.f32.mrf.mxu2  ;;  %v967_v45 = vpop.f32.mrf.mxu0 }
 0x14e   :  { %v1104_v62 = vadd.f32 %v1103_v9, %v1035_v57  ;;  %v1172_v39 = vpop.f32.mrf.mxu3  ;;  %v1036_v3 = vpop.f32.mrf.mxu1 }
 0x14f   :  { %v1037_v8 = vadd.f32 %v1036_v3, %v967_v45  ;;  %v11911_v45 = vld [vmem:[#allocation5 + $0x1a4] sm:$0xf]  ;;  %v9727_v3 = vld [vmem:[#allocation5 + $0x1a8] sm:$0xf0] }
 0x150   :  { %v12908_v30 = vadd.f32 %v1172_v39, %v1104_v62  ;;  %v9730_v32 = vor.u32 %v11911_v45, %v9727_v3  ;;  %v9783_v45 = vld [vmem:[#allocation5 + $0x218] sm:$0xf0]  ;;  %v11893_v3 = vld [vmem:[#allocation5 + $0x114] sm:$0xf] }
 0x152   :  { %1537 = vmatpush.bf16.msra.mxu1 %v9730_v32 }
 0x155   :  { %v1105_v61 = vpop.f32.mrf.mxu2  ;;  %v970_v9 = vpop.f32.mrf.mxu0 }
 0x156   :  { %v1106_v6 = vadd.f32 %v1105_v61, %v1037_v8  ;;  %v1174_v57 = vpop.f32.mrf.mxu3  ;;  %v1039_v21 = vpop.f32.mrf.mxu1 }
 0x157   :  { %v1040_v39 = vadd.f32 %v1039_v21, %v970_v9 }
 0x158   :  { %v12910_v62 = vadd.f32 %v1174_v57, %v1106_v6  ;;  %1225 = vmatmul.bf16.gmra.mxu0 %v12756_v29 }
 0x159   :  { %1294 = vmatmul.bf16.gmra.mxu1 %v12758_v37 }
 0x15a   :  { %1363 = vmatmul.bf16.gmra.mxu2 %v12744_v18  ;;  %v9719_v18 = vld [vmem:[#allocation5 + $0x198] sm:$0xf0] }
 0x15b   :  { %1432 = vmatmul.bf16.gmra.mxu3 %v12746_v19  ;;  %v11909_v19 = vld [vmem:[#allocation5 + $0x194] sm:$0xf] }
 0x15d   :  { %v1108_v7 = vpop.f32.mrf.mxu2  ;;  %v972_v0 = vpop.f32.mrf.mxu0 }
 0x15e   :  { %v1109_v8 = vadd.f32 %v1108_v7, %v1040_v39  ;;  %v1177_v26 = vpop.f32.mrf.mxu3  ;;  %v1041_v15 = vpop.f32.mrf.mxu1  ;;  %v11925_v39 = vld [vmem:[#allocation5 + $0x214] sm:$0xf]  ;;  %v9655_v7 = vld [vmem:[#allocation5 + $0x118] sm:$0xf0] }
 0x15f   :  { %v1042_v21 = vadd.f32 %v1041_v15, %v972_v0  ;;  %v9786_v32 = vor.u32 %v11925_v39, %v9783_v45  ;;  %v9658_v15 = vor.u32 %v11893_v3, %v9655_v7  ;;  %v9722_v39 = vor.u32 %v11909_v19, %v9719_v18 }
 0x160   :  { %v12916_v24 = vadd.f32 %v1177_v26, %v1109_v8  ;;  %v11941_v8 = vld [vmem:[#allocation5 + $0x294] sm:$0xf]  ;;  %v9847_v26 = vld [vmem:[#allocation5 + $0x298] sm:$0xf0]  ;;  %v15950_v3 = vunpack.c.l.b16 %v12768_v60 }
 0x161   :  { %1607 = vmatpush.bf16.msra.mxu2 %v9786_v32  ;;  %1469 = vmatpush.bf16.msra.mxu0 %v9658_v15 }
 0x162   :  { %15948 = vst [vmem:[#allocation58_spill] sm:$0xff] %v12916_v24  ;;  %1538 = vmatpush.bf16.msra.mxu1 %v9722_v39 }
 0x165   :  { %v1110_v27 = vpop.f32.mrf.mxu2  ;;  %v975_v61 = vpop.f32.mrf.mxu0 }
 0x166   :  { %v1111_v1 = vadd.f32 %v1110_v27, %v1042_v21  ;;  %v1179_v46 = vpop.f32.mrf.mxu3  ;;  %v1044_v6 = vpop.f32.mrf.mxu1  ;;  %v9850_v21 = vor.u32 %v11941_v8, %v9847_v26  ;;  %v15952_v26 = vunpack.c.h.b16 %v12768_v60 }
 0x167   :  { %v1045_v9 = vadd.f32 %v1044_v6, %v975_v61  ;;  %v118_v61 = vld [vmem:[#allocation2 + $0xb8] sm:$0xff] }
 0x168   :  { %v12918_v57 = vadd.f32 %v1179_v46, %v1111_v1  ;;  %1230 = vmatmul.bf16.gmra.mxu0 %v12772_v16  ;;  %1676 = vmatpush.bf16.msra.mxu3 %v9850_v21  ;;  %v315_v45 = vunpack.c.l.b16 %v118_v61 }
 0x169   :  { %1299 = vmatmul.bf16.gmra.mxu1 %v12774_v17 }
 0x16a   :  { %15949 = vst [vmem:[#allocation59_spill] sm:$0xff] %v12918_v57  ;;  %1368 = vmatmul.bf16.gmra.mxu2 %v12756_v29  ;;  %v316_v29 = vunpack.c.h.b16 %v118_v61  ;;  %v9775_v61 = vld [vmem:[#allocation5 + $0x208] sm:$0xf0] }
 0x16b   :  { %1437 = vmatmul.bf16.gmra.mxu3 %v12758_v37 }
 0x16d   :  { %v1113_v0 = vpop.f32.mrf.mxu2  ;;  %v977_v46 = vpop.f32.mrf.mxu0 }
 0x16e   :  { %v1114_v27 = vadd.f32 %v1113_v0, %v1045_v9  ;;  %v1182_v1 = vpop.f32.mrf.mxu3  ;;  %v1046_v6 = vpop.f32.mrf.mxu1  ;;  %v12928_v9 = vpack.c.b16 %v315_v45, %v15950_v3  ;;  %v12932_v0 = vpack.c.b16 %v316_v29, %v15952_v26  ;;  %v9647_v45 = vld [vmem:[#allocation5 + $0x108] sm:$0xf0]  ;;  %v11939_v3 = vld [vmem:[#allocation5 + $0x284] sm:$0xf] }
 0x16f   :  { %v1047_v37 = vadd.f32 %v1046_v6, %v977_v46  ;;  %v11923_v46 = vld [vmem:[#allocation5 + $0x204] sm:$0xf] }
 0x170   :  { %v12924_v57 = vadd.f32 %v1182_v1, %v1114_v27  ;;  %15951 = vst [vmem:[#allocation60_spill] sm:$0xff] %v12928_v9  ;;  %v11891_v6 = vld [vmem:[#allocation5 + $0x104] sm:$0xf]  ;;  %v9778_v39 = vor.u32 %v11923_v46, %v9775_v61 }
 0x171   :  { %15953 = vst [vmem:[#allocation61_spill] sm:$0xff] %v12932_v0 }
 0x172   :  { %1608 = vmatpush.bf16.msra.mxu2 %v9778_v39 }
 0x175   :  { %v1115_v24 = vpop.f32.mrf.mxu2  ;;  %v1196_v32 = vpop.f32.mrf.mxu0 }
 0x176   :  { %v1116_v7 = vadd.f32 %v1115_v24, %v1047_v37  ;;  %v1184_v8 = vpop.f32.mrf.mxu3  ;;  %v1197_v15 = vadd.f32 %v1196_v32, %v12788_v56  ;;  %v1265_v21 = vpop.f32.mrf.mxu1 }
 0x178   :  { %v12935_v27 = vadd.f32 %v1184_v8, %v1116_v7  ;;  %v12937_v18 = vadd.f32 %v1265_v21, %v1197_v15  ;;  %1235 = vmatmul.bf16.gmra.mxu0 %v12928_v9  ;;  %v9839_v7 = vld [vmem:[#allocation5 + $0x288] sm:$0xf0]  ;;  %v9650_v8 = vor.u32 %v11891_v6, %v9647_v45 }
 0x179   :  { %1304 = vmatmul.bf16.gmra.mxu1 %v12932_v0  ;;  %v9842_v32 = vor.u32 %v11939_v3, %v9839_v7 }
 0x17a   :  { %15954 = vst [vmem:[#allocation62_spill] sm:$0xff] %v12937_v18  ;;  %1373 = vmatmul.bf16.gmra.mxu2 %v12772_v16  ;;  %1470 = vmatpush.bf16.msra.mxu0 %v9650_v8 }
 0x17b   :  { %1442 = vmatmul.bf16.gmra.mxu3 %v12774_v17 }
 0x17c   :  { %1677 = vmatpush.bf16.msra.mxu3 %v9842_v32 }
 0x17d   :  { %v1334_v19 = vpop.f32.mrf.mxu2  ;;  %v1198_v60 = vpop.f32.mrf.mxu0 }
 0x17e   :  { %v1403_v37 = vpop.f32.mrf.mxu3  ;;  %v1199_v56 = vadd.f32 %v1198_v60, %v12798_v51  ;;  %v1267_v24 = vpop.f32.mrf.mxu1  ;;  %v11907_v60 = vld [vmem:[#allocation5 + $0x184] sm:$0xf] }
 0x17f   :  { %v12943_v29 = vadd.f32 %v1403_v37, %v1334_v19 }
 0x180   :  { %v12946_v1 = vadd.f32 %v1267_v24, %v1199_v56  ;;  %v9711_v56 = vld [vmem:[#allocation5 + $0x188] sm:$0xf0] }
 0x181   :  { %v9714_v24 = vor.u32 %v11907_v60, %v9711_v56  ;;  %v12002_v60 = vld [vmem:[#allocation5 + $0x474] sm:$0xf0]  ;;  %v9957_v56 = vld [vmem:[#allocation5 + $0x370] sm:$0xf] }
 0x182   :  { %15955 = vst [vmem:[#allocation63_spill] sm:$0xff] %v12946_v1 }
 0x183   :  { %1539 = vmatpush.bf16.msra.mxu1 %v9714_v24 }
 0x185   :  { %v1336_v26 = vpop.f32.mrf.mxu2  ;;  %v1201_v21 = vpop.f32.mrf.mxu0 }
 0x186   :  { %v1405_v15 = vpop.f32.mrf.mxu3  ;;  %v1202_v51 = vadd.f32 %v1201_v21, %v12804_v31  ;;  %v1270_v37 = vpop.f32.mrf.mxu1 }
 0x187   :  { %v12948_v19 = vadd.f32 %v1405_v15, %v1336_v26 }
 0x188   :  { %v12951_v46 = vadd.f32 %v1270_v37, %v1202_v51  ;;  %1240 = vmatmul.bf16.gmra.mxu0 %v12806_v59 }
 0x189   :  { %1309 = vmatmul.bf16.gmra.mxu1 %v12808_v53 }
 0x18a   :  { %15956 = vst [vmem:[#allocation64_spill] sm:$0xff] %v12951_v46  ;;  %1378 = vmatmul.bf16.gmra.mxu2 %v12790_v47  ;;  %v11986_v46 = vld [vmem:[#allocation5 + $0x3f4] sm:$0xf0]  ;;  %v15981_v47 = vld [vmem:[#allocation25_spill] sm:$0xff] }
 0x18b   :  { %1447 = vmatmul.bf16.gmra.mxu3 %v12792_v25 }
 0x18d   :  { %v1339_v61 = vpop.f32.mrf.mxu2  ;;  %v1203_v39 = vpop.f32.mrf.mxu0 }
 0x18e   :  { %v1408_v6 = vpop.f32.mrf.mxu3  ;;  %v1204_v31 = vadd.f32 %v1203_v39, %v12814_v2  ;;  %v1272_v3 = vpop.f32.mrf.mxu1  ;;  %v10085_v2 = vld [vmem:[#allocation5 + $0x470] sm:$0xf]  ;;  %v12018_v39 = vld [vmem:[#allocation5 + $0x4f4] sm:$0xf0] }
 0x18f   :  { %v12957_v45 = vadd.f32 %v1408_v6, %v1339_v61  ;;  %v10086_v24 = vor.u32 %v12002_v60, %v10085_v2  ;;  %v11970_v61 = vld [vmem:[#allocation5 + $0x374] sm:$0xf0]  ;;  %v10149_v6 = vld [vmem:[#allocation5 + $0x4f0] sm:$0xf] }
 0x190   :  { %v12960_v7 = vadd.f32 %v1272_v3, %v1204_v31  ;;  %v10150_v3 = vor.u32 %v12018_v39, %v10149_v6 }
 0x191   :  { %2454 = vmatpush.bf16.msrb.mxu2 %v10086_v24 }
 0x192   :  { %15957 = vst [vmem:[#allocation65_spill] sm:$0xff] %v12960_v7  ;;  %2523 = vmatpush.bf16.msrb.mxu3 %v10150_v3  ;;  %v10021_v7 = vld [vmem:[#allocation5 + $0x3f0] sm:$0xf] }
 0x193   :  { %v10022_v2 = vor.u32 %v11986_v46, %v10021_v7 }
 0x195   :  { %v1341_v8 = vpop.f32.mrf.mxu2  ;;  %v1206_v26 = vpop.f32.mrf.mxu0  ;;  %2385 = vmatpush.bf16.msrb.mxu1 %v10022_v2  ;;  %v9949_v2 = vld [vmem:[#allocation5 + $0x360] sm:$0xf] }
 0x196   :  { %v1410_v32 = vpop.f32.mrf.mxu3  ;;  %v1207_v21 = vadd.f32 %v1206_v26, %v12822_v23  ;;  %v1275_v51 = vpop.f32.mrf.mxu1  ;;  %v9958_v23 = vor.u32 %v11970_v61, %v9957_v56  ;;  %v126_v26 = vld [vmem:[#allocation2 + $0xf8] sm:$0xff]  ;;  %v15960_v61 = vunpack.c.l.b16 %v12820_v38 }
 0x197   :  { %v12962_v15 = vadd.f32 %v1410_v32, %v1341_v8  ;;  %v317_v1 = vunpack.c.l.b16 %v126_v26  ;;  %v318_v18 = vunpack.c.h.b16 %v126_v26  ;;  %v10077_v26 = vld [vmem:[#allocation5 + $0x460] sm:$0xf] }
 0x198   :  { %v12965_v37 = vadd.f32 %v1275_v51, %v1207_v21  ;;  %1245 = vmatmul.bf16.gmra.mxu0 %v12826_v5 }
 0x199   :  { %1314 = vmatmul.bf16.gmra.mxu1 %v12828_v22  ;;  %2316 = vmatpush.bf16.msrb.mxu0 %v9958_v23  ;;  %v12978_v6 = vpack.c.b16 %v317_v1, %v15960_v61  ;;  %v11968_v61 = vld [vmem:[#allocation5 + $0x364] sm:$0xf0] }
 0x19a   :  { %15958 = vst [vmem:[#allocation66_spill] sm:$0xff] %v12965_v37  ;;  %1383 = vmatmul.bf16.gmra.mxu2 %v12806_v59 }
 0x19b   :  { %1452 = vmatmul.bf16.gmra.mxu3 %v12808_v53 }
 0x19d   :  { %v1344_v31 = vpop.f32.mrf.mxu2  ;;  %v1208_v32 = vpop.f32.mrf.mxu0 }
 0x19e   :  { %v1413_v8 = vpop.f32.mrf.mxu3  ;;  %v1209_v51 = vadd.f32 %v1208_v32, %v12838_v50  ;;  %v1277_v37 = vpop.f32.mrf.mxu1  ;;  %v15961_v50 = vunpack.c.h.b16 %v12820_v38 }
 0x19f   :  { %v12971_v21 = vadd.f32 %v1413_v8, %v1344_v31 }
 0x1a0   :  { %v12974_v60 = vadd.f32 %v1277_v37, %v1209_v51  ;;  %v12982_v31 = vpack.c.b16 %v318_v18, %v15961_v50  ;;  %v12000_v51 = vld [vmem:[#allocation5 + $0x464] sm:$0xf0]  ;;  %v9950_v50 = vor.u32 %v11968_v61, %v9949_v2 }
 0x1a2   :  { %15959 = vst [vmem:[#allocation67_spill] sm:$0xff] %v12974_v60  ;;  %2317 = vmatpush.bf16.msrb.mxu0 %v9950_v50 }
 0x1a5   :  { %v1346_v56 = vpop.f32.mrf.mxu2  ;;  %v1211_v39 = vpop.f32.mrf.mxu0 }
 0x1a6   :  { %v1415_v24 = vpop.f32.mrf.mxu3  ;;  %v1212_v46 = vadd.f32 %v1211_v39, %v12844_v40  ;;  %v1280_v7 = vpop.f32.mrf.mxu1  ;;  %v12016_v39 = vld [vmem:[#allocation5 + $0x4e4] sm:$0xf0] }
 0x1a7   :  { %v12984_v23 = vadd.f32 %v1415_v24, %v1346_v56  ;;  %v10078_v56 = vor.u32 %v12000_v51, %v10077_v26  ;;  %v10141_v24 = vld [vmem:[#allocation5 + $0x4e0] sm:$0xf] }
 0x1a8   :  { %v12987_v37 = vadd.f32 %v1280_v7, %v1212_v46  ;;  %1250 = vmatmul.bf16.gmra.mxu0 %v12978_v6  ;;  %v10142_v46 = vor.u32 %v12016_v39, %v10141_v24 }
 0x1a9   :  { %1319 = vmatmul.bf16.gmra.mxu1 %v12982_v31  ;;  %2455 = vmatpush.bf16.msrb.mxu2 %v10078_v56 }
 0x1aa   :  { %15962 = vst [vmem:[#allocation68_spill] sm:$0xff] %v12987_v37  ;;  %1388 = vmatmul.bf16.gmra.mxu2 %v12826_v5  ;;  %2524 = vmatpush.bf16.msrb.mxu3 %v10142_v46 }
 0x1ab   :  { %1457 = vmatmul.bf16.gmra.mxu3 %v12828_v22 }
 0x1ad   :  { %v1349_v1 = vpop.f32.mrf.mxu2  ;;  %v1213_v38 = vpop.f32.mrf.mxu0 }
 0x1ae   :  { %v1418_v3 = vpop.f32.mrf.mxu3  ;;  %v1214_v8 = vadd.f32 %v1213_v38, %v12846_v52  ;;  %v1282_v32 = vpop.f32.mrf.mxu1 }
 0x1af   :  { %v12993_v18 = vadd.f32 %v1418_v3, %v1349_v1 }
 0x1b0   :  { %v12996_v40 = vadd.f32 %v1282_v32, %v1214_v8  ;;  %v10013_v8 = vld [vmem:[#allocation5 + $0x3e0] sm:$0xf]  ;;  %v11984_v32 = vld [vmem:[#allocation5 + $0x3e4] sm:$0xf0] }
 0x1b2   :  { %15963 = vst [vmem:[#allocation69_spill] sm:$0xff] %v12996_v40  ;;  %v10014_v40 = vor.u32 %v11984_v32, %v10013_v8  ;;  %v9941_v8 = vld [vmem:[#allocation5 + $0x350] sm:$0xf] }
 0x1b4   :  { %2386 = vmatpush.bf16.msrb.mxu1 %v10014_v40  ;;  %v11998_v40 = vld [vmem:[#allocation5 + $0x454] sm:$0xf0] }
 0x1b5   :  { %v1351_v7 = vpop.f32.mrf.mxu2  ;;  %v1216_v3 = vpop.f32.mrf.mxu0 }
 0x1b6   :  { %v1420_v1 = vpop.f32.mrf.mxu3  ;;  %v1217_v52 = vadd.f32 %v1216_v3, %v12852_v4  ;;  %v1285_v38 = vpop.f32.mrf.mxu1 }
 0x1b7   :  { %v12998_v37 = vadd.f32 %v1420_v1, %v1351_v7 }
 0x1b8   :  { %v13001_v26 = vadd.f32 %v1285_v38, %v1217_v52  ;;  %1471 = vmatmul.bf16.vlgmr.msra.gmra.mxu0 %v12660_v55 }
 0x1b9   :  { %1540 = vmatmul.bf16.vlgmr.msra.gmra.mxu1 %v12662_v58 }
 0x1ba   :  { %15964 = vst [vmem:[#allocation70_spill] sm:$0xff] %v13001_v26  ;;  %1609 = vmatmul.bf16.vlgmr.msra.gmra.mxu2 %v12668_v11 }
 0x1bb   :  { %1678 = vmatmul.bf16.vlgmr.msra.gmra.mxu3 %v12670_v12 }
 0x1bd   :  { %v1354_v51 = vpop.f32.mrf.mxu2  ;;  %v1218_v56 = vpop.f32.mrf.mxu0 }
 0x1be   :  { %v1423_v2 = vpop.f32.mrf.mxu3  ;;  %v1219_v4 = vadd.f32 %v1218_v56, %v12854_v20  ;;  %v1287_v24 = vpop.f32.mrf.mxu1  ;;  %v10069_v20 = vld [vmem:[#allocation5 + $0x450] sm:$0xf]  ;;  %v12014_v56 = vld [vmem:[#allocation5 + $0x4d4] sm:$0xf0] }
 0x1bf   :  { %v13007_v61 = vadd.f32 %v1423_v2, %v1354_v51  ;;  %v10070_v32 = vor.u32 %v11998_v40, %v10069_v20  ;;  %v11966_v51 = vld [vmem:[#allocation5 + $0x354] sm:$0xf0]  ;;  %v10133_v2 = vld [vmem:[#allocation5 + $0x4d0] sm:$0xf] }
 0x1c0   :  { %v13010_v39 = vadd.f32 %v1287_v24, %v1219_v4  ;;  %v10134_v24 = vor.u32 %v12014_v56, %v10133_v2 }
 0x1c1   :  { %2456 = vmatpush.bf16.msrb.mxu2 %v10070_v32 }
 0x1c2   :  { %15965 = vst [vmem:[#allocation71_spill] sm:$0xff] %v13010_v39  ;;  %2525 = vmatpush.bf16.msrb.mxu3 %v10134_v24  ;;  %v11982_v39 = vld [vmem:[#allocation5 + $0x3d4] sm:$0xf0]  ;;  %v10061_v24 = vld [vmem:[#allocation5 + $0x440] sm:$0xf] }
 0x1c5   :  { %v1356_v50 = vpop.f32.mrf.mxu2  ;;  %v1221_v7 = vpop.f32.mrf.mxu0 }
 0x1c6   :  { %v1425_v46 = vpop.f32.mrf.mxu3  ;;  %v1222_v3 = vadd.f32 %v1221_v7, %v12860_v54  ;;  %v1290_v52 = vpop.f32.mrf.mxu1  ;;  %v9942_v54 = vor.u32 %v11966_v51, %v9941_v8 }
 0x1c7   :  { %v13012_v1 = vadd.f32 %v1425_v46, %v1356_v50 }
 0x1c8   :  { %v13015_v38 = vadd.f32 %v1290_v52, %v1222_v3  ;;  %1476 = vmatmul.bf16.gmra.mxu0 %v12672_v13 }
 0x1c9   :  { %1545 = vmatmul.bf16.gmra.mxu1 %v12674_v14  ;;  %2318 = vmatpush.bf16.msrb.mxu0 %v9942_v54 }
 0x1ca   :  { %15966 = vst [vmem:[#allocation72_spill] sm:$0xff] %v13015_v38  ;;  %1614 = vmatmul.bf16.gmra.mxu2 %v12684_v33  ;;  %v10005_v38 = vld [vmem:[#allocation5 + $0x3d0] sm:$0xf] }
 0x1cb   :  { %1683 = vmatmul.bf16.gmra.mxu3 %v12686_v34  ;;  %v10006_v26 = vor.u32 %v11982_v39, %v10005_v38 }
 0x1cd   :  { %v1359_v4 = vpop.f32.mrf.mxu2  ;;  %v1223_v46 = vpop.f32.mrf.mxu0  ;;  %2387 = vmatpush.bf16.msrb.mxu1 %v10006_v26 }
 0x1ce   :  { %v1428_v50 = vpop.f32.mrf.mxu3  ;;  %v1224_v3 = vadd.f32 %v1223_v46, %v12870_v43  ;;  %v1292_v52 = vpop.f32.mrf.mxu1  ;;  %v15969_v43 = vld [vmem:[#allocation53_spill] sm:$0xff]  ;;  %v9933_v46 = vld [vmem:[#allocation5 + $0x340] sm:$0xf] }
 0x1cf   :  { %v13021_v7 = vadd.f32 %v1428_v50, %v1359_v4  ;;  %v11996_v50 = vld [vmem:[#allocation5 + $0x444] sm:$0xf0] }
 0x1d0   :  { %v13024_v20 = vadd.f32 %v1292_v52, %v1224_v3  ;;  %v10062_v3 = vor.u32 %v11996_v50, %v10061_v24  ;;  %v11964_v52 = vld [vmem:[#allocation5 + $0x344] sm:$0xf0] }
 0x1d1   :  { %v15973_v50 = vld [vmem:[#allocation20_spill] sm:$0xff] }
 0x1d2   :  { %15967 = vst [vmem:[#allocation73_spill] sm:$0xff] %v13024_v20  ;;  %2457 = vmatpush.bf16.msrb.mxu2 %v10062_v3  ;;  %v15975_v3 = vld [vmem:[#allocation22_spill] sm:$0xff] }
 0x1d5   :  { %v1361_v40 = vpop.f32.mrf.mxu2  ;;  %v1226_v8 = vpop.f32.mrf.mxu0 }
 0x1d6   :  { %v1430_v60 = vpop.f32.mrf.mxu3  ;;  %v1227_v32 = vadd.f32 %v1226_v8, %v12876_v28  ;;  %v1295_v2 = vpop.f32.mrf.mxu1  ;;  %v12012_v8 = vld [vmem:[#allocation5 + $0x4c4] sm:$0xf0] }
 0x1d7   :  { %v13026_v51 = vadd.f32 %v1430_v60, %v1361_v40  ;;  %v10125_v40 = vld [vmem:[#allocation5 + $0x4c0] sm:$0xf] }
 0x1d8   :  { %v13029_v56 = vadd.f32 %v1295_v2, %v1227_v32  ;;  %1481 = vmatmul.bf16.gmra.mxu0 %v12690_v35  ;;  %v9934_v32 = vor.u32 %v11964_v52, %v9933_v46  ;;  %v10126_v2 = vor.u32 %v12012_v8, %v10125_v40  ;;  %v15974_v46 = vld [vmem:[#allocation21_spill] sm:$0xff]  ;;  %v15976_v52 = vld [vmem:[#allocation23_spill] sm:$0xff] }
 0x1d9   :  { %1550 = vmatmul.bf16.gmra.mxu1 %v12694_v36 }
 0x1da   :  { %15968 = vst [vmem:[#allocation74_spill] sm:$0xff] %v13029_v56  ;;  %1619 = vmatmul.bf16.gmra.mxu2 %v12864_v48  ;;  %2319 = vmatpush.bf16.msrb.mxu0 %v9934_v32 }
 0x1db   :  { %1688 = vmatmul.bf16.gmra.mxu3 %v15969_v43 }
 0x1dc   :  { %2526 = vmatpush.bf16.msrb.mxu3 %v10126_v2  ;;  %v15977_v2 = vld [vmem:[#allocation55_spill] sm:$0xff] }
 0x1dd   :  { %v1364_v39 = vpop.f32.mrf.mxu2  ;;  %v1228_v38 = vpop.f32.mrf.mxu0 }
 0x1de   :  { %v1433_v26 = vpop.f32.mrf.mxu3  ;;  %v1229_v60 = vadd.f32 %v1228_v38, %v12878_v49  ;;  %v1297_v54 = vpop.f32.mrf.mxu1  ;;  %v15971_v49 = vld [vmem:[#allocation54_spill] sm:$0xff] }
 0x1df   :  { %v13035_v4 = vadd.f32 %v1433_v26, %v1364_v39 }
 0x1e0   :  { %v13038_v28 = vadd.f32 %v1297_v54, %v1229_v60  ;;  %v9997_v54 = vld [vmem:[#allocation5 + $0x3c0] sm:$0xf] }
 0x1e2   :  { %15970 = vst [vmem:[#allocation75_spill] sm:$0xff] %v13038_v28  ;;  %v11980_v28 = vld [vmem:[#allocation5 + $0x3c4] sm:$0xf0] }
 0x1e3   :  { %v9998_v43 = vor.u32 %v11980_v28, %v9997_v54 }
 0x1e5   :  { %v1366_v56 = vpop.f32.mrf.mxu2  ;;  %v1231_v26 = vpop.f32.mrf.mxu0  ;;  %2388 = vmatpush.bf16.msrb.mxu1 %v9998_v43  ;;  %v15980_v43 = vld [vmem:[#allocation24_spill] sm:$0xff] }
 0x1e6   :  { %v1435_v39 = vpop.f32.mrf.mxu3  ;;  %v1232_v38 = vadd.f32 %v1231_v26, %v15971_v49  ;;  %v1300_v60 = vpop.f32.mrf.mxu1 }
 0x1e7   :  { %v13040_v20 = vadd.f32 %v1435_v39, %v1366_v56 }
 0x1e8   :  { %v13043_v24 = vadd.f32 %v1300_v60, %v1232_v38  ;;  %1486 = vmatmul.bf16.gmra.mxu0 %v15973_v50 }
 0x1e9   :  { %1555 = vmatmul.bf16.gmra.mxu1 %v15974_v46 }
 0x1ea   :  { %15972 = vst [vmem:[#allocation54_spill] sm:$0xff] %v13043_v24  ;;  %1624 = vmatmul.bf16.gmra.mxu2 %v15975_v3 }
 0x1eb   :  { %1693 = vmatmul.bf16.gmra.mxu3 %v15976_v52 }
 0x1ed   :  { %v1369_v40 = vpop.f32.mrf.mxu2  ;;  %v1233_v8 = vpop.f32.mrf.mxu0 }
 0x1ee   :  { %v1438_v56 = vpop.f32.mrf.mxu3  ;;  %v1234_v39 = vadd.f32 %v1233_v8, %v15977_v2  ;;  %v1302_v26 = vpop.f32.mrf.mxu1  ;;  %v9925_v8 = vld [vmem:[#allocation5 + $0x330] sm:$0xf] }
 0x1ef   :  { %v13049_v32 = vadd.f32 %v1438_v56, %v1369_v40  ;;  %v10053_v40 = vld [vmem:[#allocation5 + $0x430] sm:$0xf]  ;;  %v11994_v56 = vld [vmem:[#allocation5 + $0x434] sm:$0xf0] }
 0x1f0   :  { %v13052_v28 = vadd.f32 %v1302_v26, %v1234_v39  ;;  %v10054_v2 = vor.u32 %v11994_v56, %v10053_v40  ;;  %v11962_v39 = vld [vmem:[#allocation5 + $0x334] sm:$0xf0]  ;;  %v10117_v26 = vld [vmem:[#allocation5 + $0x4b0] sm:$0xf] }
 0x1f2   :  { %15978 = vst [vmem:[#allocation55_spill] sm:$0xff] %v13052_v28  ;;  %2458 = vmatpush.bf16.msrb.mxu2 %v10054_v2 }
 0x1f5   :  { %v1371_v49 = vpop.f32.mrf.mxu2  ;;  %v1236_v60 = vpop.f32.mrf.mxu0 }
 0x1f6   :  { %v1440_v38 = vpop.f32.mrf.mxu3  ;;  %v1237_v24 = vadd.f32 %v1236_v60, %v12892_v63  ;;  %v1305_v48 = vpop.f32.mrf.mxu1  ;;  %v9926_v63 = vor.u32 %v11962_v39, %v9925_v8 }
 0x1f7   :  { %v13054_v54 = vadd.f32 %v1440_v38, %v1371_v49  ;;  %v12010_v49 = vld [vmem:[#allocation5 + $0x4b4] sm:$0xf0] }
 0x1f8   :  { %v13057_v25 = vadd.f32 %v1305_v48, %v1237_v24  ;;  %1491 = vmatmul.bf16.gmra.mxu0 %v15980_v43  ;;  %v10118_v60 = vor.u32 %v12010_v49, %v10117_v26 }
 0x1f9   :  { %1560 = vmatmul.bf16.gmra.mxu1 %v15981_v47  ;;  %2320 = vmatpush.bf16.msrb.mxu0 %v9926_v63  ;;  %v11978_v47 = vld [vmem:[#allocation5 + $0x3b4] sm:$0xf0] }
 0x1fa   :  { %15979 = vst [vmem:[#allocation76_spill] sm:$0xff] %v13057_v25  ;;  %1629 = vmatmul.bf16.gmra.mxu2 %v12728_v41  ;;  %2527 = vmatpush.bf16.msrb.mxu3 %v10118_v60  ;;  %v10045_v60 = vld [vmem:[#allocation5 + $0x420] sm:$0xf] }
 0x1fb   :  { %1698 = vmatmul.bf16.gmra.mxu3 %v12730_v42  ;;  %v9989_v42 = vld [vmem:[#allocation5 + $0x3b0] sm:$0xf] }
 0x1fc   :  { %v9990_v43 = vor.u32 %v11978_v47, %v9989_v42  ;;  %v15986_v42 = vld [vmem:[#allocation57_spill] sm:$0xff] }
 0x1fd   :  { %v1374_v38 = vpop.f32.mrf.mxu2  ;;  %v1238_v24 = vpop.f32.mrf.mxu0 }
 0x1fe   :  { %v1443_v48 = vpop.f32.mrf.mxu3  ;;  %v1239_v28 = vadd.f32 %v1238_v24, %v12902_v44  ;;  %v1307_v41 = vpop.f32.mrf.mxu1  ;;  %2389 = vmatpush.bf16.msrb.mxu1 %v9990_v43  ;;  %v15984_v44 = vld [vmem:[#allocation28_spill] sm:$0xff]  ;;  %v9917_v24 = vld [vmem:[#allocation5 + $0x320] sm:$0xf] }
 0x1ff   :  { %v13063_v25 = vadd.f32 %v1443_v48, %v1374_v38  ;;  %v15985_v38 = vld [vmem:[#allocation29_spill] sm:$0xff]  ;;  %v11992_v48 = vld [vmem:[#allocation5 + $0x424] sm:$0xf0] }
 0x200   :  { %v13066_v40 = vadd.f32 %v1307_v41, %v1239_v28 }
 0x202   :  { %15982 = vst [vmem:[#allocation77_spill] sm:$0xff] %v13066_v40 }
 0x205   :  { %v1376_v56 = vpop.f32.mrf.mxu2  ;;  %v1241_v8 = vpop.f32.mrf.mxu0 }
 0x206   :  { %v1445_v52 = vpop.f32.mrf.mxu3  ;;  %v1242_v2 = vadd.f32 %v1241_v8, %v12908_v30  ;;  %v1310_v26 = vpop.f32.mrf.mxu1  ;;  %v11960_v8 = vld [vmem:[#allocation5 + $0x324] sm:$0xf0] }
 0x207   :  { %v13068_v39 = vadd.f32 %v1445_v52, %v1376_v56  ;;  %v10046_v56 = vor.u32 %v11992_v48, %v10045_v60  ;;  %v15990_v48 = vld [vmem:[#allocation32_spill] sm:$0xff] }
 0x208   :  { %v13071_v49 = vadd.f32 %v1310_v26, %v1242_v2  ;;  %1496 = vmatmul.bf16.gmra.mxu0 %v15984_v44  ;;  %v10109_v2 = vld [vmem:[#allocation5 + $0x4a0] sm:$0xf]  ;;  %v12008_v26 = vld [vmem:[#allocation5 + $0x4a4] sm:$0xf0] }
 0x209   :  { %1565 = vmatmul.bf16.gmra.mxu1 %v15985_v38  ;;  %v10110_v40 = vor.u32 %v12008_v26, %v10109_v2  ;;  %2459 = vmatpush.bf16.msrb.mxu2 %v10046_v56  ;;  %v15992_v56 = vld [vmem:[#allocation34_spill] sm:$0xff]  ;;  %v15994_v26 = vld [vmem:[#allocation59_spill] sm:$0xff] }
 0x20a   :  { %15983 = vst [vmem:[#allocation78_spill] sm:$0xff] %v13071_v49  ;;  %1634 = vmatmul.bf16.gmra.mxu2 %v12896_v10  ;;  %v9918_v49 = vor.u32 %v11960_v8, %v9917_v24  ;;  %v15991_v24 = vld [vmem:[#allocation33_spill] sm:$0xff] }
 0x20b   :  { %1703 = vmatmul.bf16.gmra.mxu3 %v15986_v42 }
 0x20c   :  { %2321 = vmatpush.bf16.msrb.mxu0 %v9918_v49  ;;  %2528 = vmatpush.bf16.msrb.mxu3 %v10110_v40  ;;  %v15993_v49 = vld [vmem:[#allocation35_spill] sm:$0xff] }
 0x20d   :  { %v1379_v41 = vpop.f32.mrf.mxu2  ;;  %v1243_v28 = vpop.f32.mrf.mxu0 }
 0x20e   :  { %v1448_v47 = vpop.f32.mrf.mxu3  ;;  %v1244_v52 = vadd.f32 %v1243_v28, %v12910_v62  ;;  %v1312_v63 = vpop.f32.mrf.mxu1  ;;  %v15988_v62 = vld [vmem:[#allocation58_spill] sm:$0xff] }
 0x20f   :  { %v13077_v43 = vadd.f32 %v1448_v47, %v1379_v41 }
 0x210   :  { %v13080_v30 = vadd.f32 %v1312_v63, %v1244_v52  ;;  %v9981_v63 = vld [vmem:[#allocation5 + $0x3a0] sm:$0xf] }
 0x212   :  { %15987 = vst [vmem:[#allocation79_spill] sm:$0xff] %v13080_v30  ;;  %v11976_v30 = vld [vmem:[#allocation5 + $0x3a4] sm:$0xf0] }
 0x213   :  { %v9982_v38 = vor.u32 %v11976_v30, %v9981_v63 }
 0x215   :  { %v1381_v42 = vpop.f32.mrf.mxu2  ;;  %v1246_v47 = vpop.f32.mrf.mxu0  ;;  %2390 = vmatpush.bf16.msrb.mxu1 %v9982_v38  ;;  %v15998_v38 = vld [vmem:[#allocation36_spill] sm:$0xff] }
 0x216   :  { %v1450_v41 = vpop.f32.mrf.mxu3  ;;  %v1247_v28 = vadd.f32 %v1246_v47, %v15988_v62  ;;  %v1315_v52 = vpop.f32.mrf.mxu1 }
 0x217   :  { %v13082_v10 = vadd.f32 %v1450_v41, %v1381_v42 }
 0x218   :  { %v13085_v60 = vadd.f32 %v1315_v52, %v1247_v28  ;;  %1501 = vmatmul.bf16.gmra.mxu0 %v15990_v48 }
 0x219   :  { %1570 = vmatmul.bf16.gmra.mxu1 %v15991_v24  ;;  %v15999_v24 = vld [vmem:[#allocation37_spill] sm:$0xff] }
 0x21a   :  { %15989 = vst [vmem:[#allocation58_spill] sm:$0xff] %v13085_v60  ;;  %1639 = vmatmul.bf16.gmra.mxu2 %v15992_v56 }
 0x21b   :  { %1708 = vmatmul.bf16.gmra.mxu3 %v15993_v49 }
 0x21d   :  { %v1384_v40 = vpop.f32.mrf.mxu2  ;;  %v1248_v8 = vpop.f32.mrf.mxu0 }
 0x21e   :  { %v1453_v42 = vpop.f32.mrf.mxu3  ;;  %v1249_v41 = vadd.f32 %v1248_v8, %v15994_v26  ;;  %v1317_v47 = vpop.f32.mrf.mxu1  ;;  %v9909_v8 = vld [vmem:[#allocation5 + $0x310] sm:$0xf] }
 0x21f   :  { %v13091_v2 = vadd.f32 %v1453_v42, %v1384_v40  ;;  %v10037_v40 = vld [vmem:[#allocation5 + $0x410] sm:$0xf]  ;;  %v11990_v42 = vld [vmem:[#allocation5 + $0x414] sm:$0xf0] }
 0x220   :  { %v13094_v30 = vadd.f32 %v1317_v47, %v1249_v41  ;;  %v10038_v26 = vor.u32 %v11990_v42, %v10037_v40  ;;  %v11958_v41 = vld [vmem:[#allocation5 + $0x314] sm:$0xf0]  ;;  %v10101_v47 = vld [vmem:[#allocation5 + $0x490] sm:$0xf] }
 0x222   :  { %15995 = vst [vmem:[#allocation59_spill] sm:$0xff] %v13094_v30  ;;  %2460 = vmatpush.bf16.msrb.mxu2 %v10038_v26 }
 0x225   :  { %v1386_v62 = vpop.f32.mrf.mxu2  ;;  %v1251_v52 = vpop.f32.mrf.mxu0 }
 0x226   :  { %v1455_v28 = vpop.f32.mrf.mxu3  ;;  %v1252_v60 = vadd.f32 %v1251_v52, %v12924_v57  ;;  %v1320_v56 = vpop.f32.mrf.mxu1  ;;  %v9910_v57 = vor.u32 %v11958_v41, %v9909_v8 }
 0x227   :  { %v13096_v63 = vadd.f32 %v1455_v28, %v1386_v62  ;;  %v12006_v62 = vld [vmem:[#allocation5 + $0x494] sm:$0xf0] }
 0x228   :  { %v13099_v49 = vadd.f32 %v1320_v56, %v1252_v60  ;;  %1506 = vmatmul.bf16.gmra.mxu0 %v15998_v38  ;;  %v10102_v52 = vor.u32 %v12006_v62, %v10101_v47 }
 0x229   :  { %15996 = vst [vmem:[#allocation80_spill] sm:$0xff] %v13096_v63  ;;  %1575 = vmatmul.bf16.gmra.mxu1 %v15999_v24  ;;  %2322 = vmatpush.bf16.msrb.mxu0 %v9910_v57  ;;  %v11974_v24 = vld [vmem:[#allocation5 + $0x394] sm:$0xf0] }
 0x22a   :  { %15997 = vst [vmem:[#allocation81_spill] sm:$0xff] %v13099_v49  ;;  %1644 = vmatmul.bf16.gmra.mxu2 %v12772_v16  ;;  %2529 = vmatpush.bf16.msrb.mxu3 %v10102_v52 }
 0x22b   :  { %1713 = vmatmul.bf16.gmra.mxu3 %v12774_v17  ;;  %v9973_v17 = vld [vmem:[#allocation5 + $0x390] sm:$0xf] }
 0x22c   :  { %v9974_v40 = vor.u32 %v11974_v24, %v9973_v17 }
 0x22d   :  { %v1389_v28 = vpop.f32.mrf.mxu2  ;;  %v1253_v56 = vpop.f32.mrf.mxu0 }
 0x22e   :  { %v1458_v60 = vpop.f32.mrf.mxu3  ;;  %v1254_v30 = vadd.f32 %v1253_v56, %v12935_v27  ;;  %v1322_v16 = vpop.f32.mrf.mxu1  ;;  %2391 = vmatpush.bf16.msrb.mxu1 %v9974_v40  ;;  %v16002_v27 = vld [vmem:[#allocation41_spill] sm:$0xff]  ;;  %v11988_v56 = vld [vmem:[#allocation5 + $0x404] sm:$0xf0]  ;;  %v9901_v40 = vld [vmem:[#allocation5 + $0x300] sm:$0xf] }
 0x22f   :  { %v13105_v49 = vadd.f32 %v1458_v60, %v1389_v28  ;;  %v16001_v28 = vld [vmem:[#allocation40_spill] sm:$0xff]  ;;  %v10029_v60 = vld [vmem:[#allocation5 + $0x400] sm:$0xf] }
 0x230   :  { %v13108_v38 = vadd.f32 %v1322_v16, %v1254_v30 }
 0x232   :  { %16000 = vst [vmem:[#allocation82_spill] sm:$0xff] %v13108_v38 }
 0x235   :  { %v1391_v42 = vpop.f32.mrf.mxu2  ;;  %v1472_v8 = vpop.f32.mrf.mxu0 }
 0x236   :  { %v1460_v63 = vpop.f32.mrf.mxu3  ;;  %v1473_v26 = vadd.f32 %v1472_v8, %v12943_v29  ;;  %v1541_v47 = vpop.f32.mrf.mxu1  ;;  %v11956_v8 = vld [vmem:[#allocation5 + $0x304] sm:$0xf0] }
 0x237   :  { %v13110_v41 = vadd.f32 %v1460_v63, %v1391_v42  ;;  %v10030_v42 = vor.u32 %v11988_v56, %v10029_v60  ;;  %v9902_v38 = vor.u32 %v11956_v8, %v9901_v40  ;;  %v16005_v56 = vld [vmem:[#allocation44_spill] sm:$0xff]  ;;  %v16006_v40 = vld [vmem:[#allocation45_spill] sm:$0xff] }
 0x238   :  { %v1542_v62 = vadd.f32 %v1541_v47, %v1473_v26  ;;  %1511 = vmatmul.bf16.gmra.mxu0 %v16001_v28  ;;  %v10093_v26 = vld [vmem:[#allocation5 + $0x480] sm:$0xf]  ;;  %v12004_v47 = vld [vmem:[#allocation5 + $0x484] sm:$0xf0] }
 0x239   :  { %1580 = vmatmul.bf16.gmra.mxu1 %v16002_v27  ;;  %2461 = vmatpush.bf16.msrb.mxu2 %v10030_v42 }
 0x23a   :  { %1649 = vmatmul.bf16.gmra.mxu2 %v12928_v9  ;;  %v10094_v9 = vor.u32 %v12004_v47, %v10093_v26  ;;  %2323 = vmatpush.bf16.msrb.mxu0 %v9902_v38 }
 0x23b   :  { %1718 = vmatmul.bf16.gmra.mxu3 %v12932_v0 }
 0x23c   :  { %2530 = vmatpush.bf16.msrb.mxu3 %v10094_v9 }
 0x23d   :  { %v1610_v16 = vpop.f32.mrf.mxu2  ;;  %v1474_v30 = vpop.f32.mrf.mxu0 }
 0x23e   :  { %v1611_v17 = vadd.f32 %v1610_v16, %v1542_v62  ;;  %v1679_v24 = vpop.f32.mrf.mxu3  ;;  %v1475_v57 = vadd.f32 %v1474_v30, %v12948_v19  ;;  %v1543_v63 = vpop.f32.mrf.mxu1 }
 0x240   :  { %v13118_v52 = vadd.f32 %v1679_v24, %v1611_v17  ;;  %v1544_v29 = vadd.f32 %v1543_v63, %v1475_v57  ;;  %v9965_v57 = vld [vmem:[#allocation5 + $0x380] sm:$0xf]  ;;  %v11972_v63 = vld [vmem:[#allocation5 + $0x384] sm:$0xf0] }
 0x242   :  { %16003 = vst [vmem:[#allocation83_spill] sm:$0xff] %v13118_v52  ;;  %v9966_v52 = vor.u32 %v11972_v63, %v9965_v57  ;;  %v16009_v63 = vld [vmem:[#allocation46_spill] sm:$0xff] }
 0x244   :  { %2392 = vmatpush.bf16.msrb.mxu1 %v9966_v52 }
 0x245   :  { %v1612_v0 = vpop.f32.mrf.mxu2  ;;  %v1477_v19 = vpop.f32.mrf.mxu0 }
 0x246   :  { %v1613_v62 = vadd.f32 %v1612_v0, %v1544_v29  ;;  %v1681_v16 = vpop.f32.mrf.mxu3  ;;  %v1478_v17 = vadd.f32 %v1477_v19, %v12957_v45  ;;  %v1546_v24 = vpop.f32.mrf.mxu1 }
 0x248   :  { %v13121_v30 = vadd.f32 %v1681_v16, %v1613_v62  ;;  %v1547_v60 = vadd.f32 %v1546_v24, %v1478_v17  ;;  %1516 = vmatmul.bf16.gmra.mxu0 %v16005_v56 }
 0x249   :  { %1585 = vmatmul.bf16.gmra.mxu1 %v16006_v40 }
 0x24a   :  { %16004 = vst [vmem:[#allocation84_spill] sm:$0xff] %v13121_v30  ;;  %1654 = vmatmul.bf16.gmra.mxu2 %v12806_v59  ;;  %v12050_v30 = vld [vmem:[#allocation5 + $0x5f4] sm:$0xf0] }
 0x24b   :  { %1723 = vmatmul.bf16.gmra.mxu3 %v12808_v53 }
 0x24d   :  { %v1615_v9 = vpop.f32.mrf.mxu2  ;;  %v1479_v45 = vpop.f32.mrf.mxu0 }
 0x24e   :  { %v1616_v0 = vadd.f32 %v1615_v9, %v1547_v60  ;;  %v1684_v38 = vpop.f32.mrf.mxu3  ;;  %v1480_v29 = vadd.f32 %v1479_v45, %v12962_v15  ;;  %v1548_v42 = vpop.f32.mrf.mxu1  ;;  %v16010_v60 = vld [vmem:[#allocation47_spill] sm:$0xff]  ;;  %v11969_v15 = vld [vmem:[#allocation5 + $0x374] sm:$0xf]  ;;  %v12034_v45 = vld [vmem:[#allocation5 + $0x574] sm:$0xf0] }
 0x24f   :  { %v9959_v9 = vld [vmem:[#allocation5 + $0x378] sm:$0xf0] }
 0x250   :  { %v13128_v8 = vadd.f32 %v1684_v38, %v1616_v0  ;;  %v1549_v26 = vadd.f32 %v1548_v42, %v1480_v29  ;;  %v10213_v0 = vld [vmem:[#allocation5 + $0x570] sm:$0xf]  ;;  %v9962_v38 = vor.u32 %v11969_v15, %v9959_v9  ;;  %v11985_v29 = vld [vmem:[#allocation5 + $0x3f4] sm:$0xf]  ;;  %v10023_v42 = vld [vmem:[#allocation5 + $0x3f8] sm:$0xf0] }
 0x252   :  { %16007 = vst [vmem:[#allocation85_spill] sm:$0xff] %v13128_v8  ;;  %2730 = vmatpush.bf16.msra.mxu2 %v9962_v38  ;;  %v10277_v8 = vld [vmem:[#allocation5 + $0x5f0] sm:$0xf] }
 0x253   :  { %v10278_v9 = vor.u32 %v12050_v30, %v10277_v8 }
 0x255   :  { %v1617_v47 = vpop.f32.mrf.mxu2  ;;  %v1482_v19 = vpop.f32.mrf.mxu0  ;;  %2661 = vmatpush.bf16.msra.mxu1 %v10278_v9  ;;  %v11983_v9 = vld [vmem:[#allocation5 + $0x3e4] sm:$0xf] }
 0x256   :  { %v1618_v62 = vadd.f32 %v1617_v47, %v1549_v26  ;;  %v1686_v16 = vpop.f32.mrf.mxu3  ;;  %v1483_v17 = vadd.f32 %v1482_v19, %v12971_v21  ;;  %v1551_v24 = vpop.f32.mrf.mxu1  ;;  %v10214_v26 = vor.u32 %v12034_v45, %v10213_v0  ;;  %v10026_v47 = vor.u32 %v11985_v29, %v10023_v42  ;;  %v16013_v42 = vld [vmem:[#allocation50_spill] sm:$0xff] }
 0x258   :  { %v13131_v57 = vadd.f32 %v1686_v16, %v1618_v62  ;;  %v1552_v52 = vadd.f32 %v1551_v24, %v1483_v17  ;;  %1521 = vmatmul.bf16.gmra.mxu0 %v16009_v63  ;;  %2799 = vmatpush.bf16.msra.mxu3 %v10026_v47 }
 0x259   :  { %1590 = vmatmul.bf16.gmra.mxu1 %v16010_v60  ;;  %2592 = vmatpush.bf16.msra.mxu0 %v10214_v26 }
 0x25a   :  { %16008 = vst [vmem:[#allocation86_spill] sm:$0xff] %v13131_v57  ;;  %1659 = vmatmul.bf16.gmra.mxu2 %v12826_v5 }
 0x25b   :  { %1728 = vmatmul.bf16.gmra.mxu3 %v12828_v22 }
 0x25d   :  { %v1620_v21 = vpop.f32.mrf.mxu2  ;;  %v1484_v19 = vpop.f32.mrf.mxu0 }
 0x25e   :  { %v1621_v62 = vadd.f32 %v1620_v21, %v1552_v52  ;;  %v1689_v16 = vpop.f32.mrf.mxu3  ;;  %v1485_v17 = vadd.f32 %v1484_v19, %v12984_v23  ;;  %v1553_v24 = vpop.f32.mrf.mxu1  ;;  %v16014_v21 = vld [vmem:[#allocation51_spill] sm:$0xff]  ;;  %v9951_v19 = vld [vmem:[#allocation5 + $0x368] sm:$0xf0] }
 0x260   :  { %v13138_v57 = vadd.f32 %v1689_v16, %v1621_v62  ;;  %v1554_v15 = vadd.f32 %v1553_v24, %v1485_v17  ;;  %v11967_v16 = vld [vmem:[#allocation5 + $0x364] sm:$0xf]  ;;  %v10205_v17 = vld [vmem:[#allocation5 + $0x560] sm:$0xf] }
 0x261   :  { %v9954_v24 = vor.u32 %v11967_v16, %v9951_v19  ;;  %v16017_v19 = vld [vmem:[#allocation16_spill] sm:$0xff] }
 0x262   :  { %16011 = vst [vmem:[#allocation87_spill] sm:$0xff] %v13138_v57  ;;  %v12038_v57 = vld [vmem:[#allocation5 + $0x594] sm:$0xf0] }
 0x263   :  { %2731 = vmatpush.bf16.msra.mxu2 %v9954_v24 }
 0x265   :  { %v1622_v22 = vpop.f32.mrf.mxu2  ;;  %v1487_v45 = vpop.f32.mrf.mxu0 }
 0x266   :  { %v1623_v5 = vadd.f32 %v1622_v22, %v1554_v15  ;;  %v1691_v0 = vpop.f32.mrf.mxu3  ;;  %v1488_v52 = vadd.f32 %v1487_v45, %v12993_v18  ;;  %v1556_v29 = vpop.f32.mrf.mxu1  ;;  %v12032_v15 = vld [vmem:[#allocation5 + $0x564] sm:$0xf0] }
 0x267   :  { %v10206_v45 = vor.u32 %v12032_v15, %v10205_v17  ;;  %v16018_v17 = vld [vmem:[#allocation17_spill] sm:$0xff] }
 0x268   :  { %v13141_v38 = vadd.f32 %v1691_v0, %v1623_v5  ;;  %v1557_v23 = vadd.f32 %v1556_v29, %v1488_v52  ;;  %1526 = vmatmul.bf16.gmra.mxu0 %v16013_v42  ;;  %v10015_v0 = vld [vmem:[#allocation5 + $0x3e8] sm:$0xf0] }
 0x269   :  { %1595 = vmatmul.bf16.gmra.mxu1 %v16014_v21  ;;  %v10018_v52 = vor.u32 %v11983_v9, %v10015_v0  ;;  %2593 = vmatpush.bf16.msra.mxu0 %v10206_v45 }
 0x26a   :  { %16012 = vst [vmem:[#allocation88_spill] sm:$0xff] %v13141_v38  ;;  %1664 = vmatmul.bf16.gmra.mxu2 %v12978_v6  ;;  %v10229_v38 = vld [vmem:[#allocation5 + $0x590] sm:$0xf] }
 0x26b   :  { %1733 = vmatmul.bf16.gmra.mxu3 %v12982_v31 }
 0x26c   :  { %2800 = vmatpush.bf16.msra.mxu3 %v10018_v52 }
 0x26d   :  { %v1625_v30 = vpop.f32.mrf.mxu2  ;;  %v1489_v22 = vpop.f32.mrf.mxu0 }
 0x26e   :  { %v1626_v8 = vadd.f32 %v1625_v30, %v1557_v23  ;;  %v1694_v26 = vpop.f32.mrf.mxu3  ;;  %v1490_v47 = vadd.f32 %v1489_v22, %v12998_v37  ;;  %v1558_v62 = vpop.f32.mrf.mxu1 }
 0x270   :  { %v13148_v18 = vadd.f32 %v1694_v26, %v1626_v8  ;;  %v1559_v5 = vadd.f32 %v1558_v62, %v1490_v47  ;;  %v10269_v47 = vld [vmem:[#allocation5 + $0x5e0] sm:$0xf]  ;;  %v12048_v62 = vld [vmem:[#allocation5 + $0x5e4] sm:$0xf0] }
 0x272   :  { %16015 = vst [vmem:[#allocation89_spill] sm:$0xff] %v13148_v18  ;;  %v10270_v18 = vor.u32 %v12048_v62, %v10269_v47  ;;  %v9943_v62 = vld [vmem:[#allocation5 + $0x358] sm:$0xf0] }
 0x274   :  { %2662 = vmatpush.bf16.msra.mxu1 %v10270_v18 }
 0x275   :  { %v1627_v29 = vpop.f32.mrf.mxu2  ;;  %v1492_v37 = vpop.f32.mrf.mxu0 }
 0x276   :  { %v1628_v23 = vadd.f32 %v1627_v29, %v1559_v5  ;;  %v1696_v30 = vpop.f32.mrf.mxu3  ;;  %v1493_v8 = vadd.f32 %v1492_v37, %v13007_v61  ;;  %v1561_v26 = vpop.f32.mrf.mxu1 }
 0x278   :  { %v13151_v22 = vadd.f32 %v1696_v30, %v1628_v23  ;;  %v1562_v16 = vadd.f32 %v1561_v26, %v1493_v8  ;;  %2324 = vmatmul.bf16.vlgmr.msrb.gmra.mxu0 %v16017_v19 }
 0x279   :  { %2393 = vmatmul.bf16.vlgmr.msrb.gmra.mxu1 %v16018_v17 }
 0x27a   :  { %16016 = vst [vmem:[#allocation90_spill] sm:$0xff] %v13151_v22  ;;  %2462 = vmatmul.bf16.vlgmr.msrb.gmra.mxu2 %v12660_v55 }
 0x27b   :  { %2531 = vmatmul.bf16.vlgmr.msrb.gmra.mxu3 %v12662_v58 }
 0x27d   :  { %v1630_v5 = vpop.f32.mrf.mxu2  ;;  %v1494_v61 = vpop.f32.mrf.mxu0 }
 0x27e   :  { %v1631_v24 = vadd.f32 %v1630_v5, %v1562_v16  ;;  %v1699_v15 = vpop.f32.mrf.mxu3  ;;  %v1495_v9 = vadd.f32 %v1494_v61, %v13012_v1  ;;  %v1563_v0 = vpop.f32.mrf.mxu1  ;;  %v11965_v1 = vld [vmem:[#allocation5 + $0x354] sm:$0xf]  ;;  %v10197_v16 = vld [vmem:[#allocation5 + $0x550] sm:$0xf]  ;;  %v10007_v61 = vld [vmem:[#allocation5 + $0x3d8] sm:$0xf0] }
 0x27f   :  { %v9946_v5 = vor.u32 %v11965_v1, %v9943_v62 }
 0x280   :  { %v13158_v45 = vadd.f32 %v1699_v15, %v1631_v24  ;;  %v1564_v52 = vadd.f32 %v1563_v0, %v1495_v9  ;;  %v12030_v24 = vld [vmem:[#allocation5 + $0x554] sm:$0xf0]  ;;  %v11981_v15 = vld [vmem:[#allocation5 + $0x3d4] sm:$0xf] }
 0x281   :  { %v10198_v9 = vor.u32 %v12030_v24, %v10197_v16  ;;  %v10010_v0 = vor.u32 %v11981_v15, %v10007_v61  ;;  %2732 = vmatpush.bf16.msra.mxu2 %v9946_v5 }
 0x282   :  { %16019 = vst [vmem:[#allocation91_spill] sm:$0xff] %v13158_v45 }
 0x283   :  { %2594 = vmatpush.bf16.msra.mxu0 %v10198_v9  ;;  %2801 = vmatpush.bf16.msra.mxu3 %v10010_v0 }
 0x285   :  { %v1632_v29 = vpop.f32.mrf.mxu2  ;;  %v1497_v37 = vpop.f32.mrf.mxu0 }
 0x286   :  { %v1633_v23 = vadd.f32 %v1632_v29, %v1564_v52  ;;  %v1701_v30 = vpop.f32.mrf.mxu3  ;;  %v1498_v8 = vadd.f32 %v1497_v37, %v13021_v7  ;;  %v1566_v26 = vpop.f32.mrf.mxu1 }
 0x288   :  { %v13161_v47 = vadd.f32 %v1701_v30, %v1633_v23  ;;  %v1567_v18 = vadd.f32 %v1566_v26, %v1498_v8  ;;  %2329 = vmatmul.bf16.gmra.mxu0 %v12668_v11  ;;  %v10261_v26 = vld [vmem:[#allocation5 + $0x5d0] sm:$0xf] }
 0x289   :  { %2398 = vmatmul.bf16.gmra.mxu1 %v12670_v12 }
 0x28a   :  { %16020 = vst [vmem:[#allocation92_spill] sm:$0xff] %v13161_v47  ;;  %2467 = vmatmul.bf16.gmra.mxu2 %v12672_v13  ;;  %v12046_v47 = vld [vmem:[#allocation5 + $0x5d4] sm:$0xf0] }
 0x28b   :  { %2536 = vmatmul.bf16.gmra.mxu3 %v12674_v14  ;;  %v10262_v62 = vor.u32 %v12046_v47, %v10261_v26  ;;  %v11979_v26 = vld [vmem:[#allocation5 + $0x3c4] sm:$0xf] }
 0x28d   :  { %v1635_v7 = vpop.f32.mrf.mxu2  ;;  %v1499_v23 = vpop.f32.mrf.mxu0  ;;  %2663 = vmatpush.bf16.msra.mxu1 %v10262_v62 }
 0x28e   :  { %v1636_v52 = vadd.f32 %v1635_v7, %v1567_v18  ;;  %v1704_v29 = vpop.f32.mrf.mxu3  ;;  %v1500_v30 = vadd.f32 %v1499_v23, %v13026_v51  ;;  %v1568_v37 = vpop.f32.mrf.mxu1  ;;  %v10189_v23 = vld [vmem:[#allocation5 + $0x540] sm:$0xf] }
 0x290   :  { %v13168_v8 = vadd.f32 %v1704_v29, %v1636_v52  ;;  %v1569_v1 = vadd.f32 %v1568_v37, %v1500_v30  ;;  %v11963_v52 = vld [vmem:[#allocation5 + $0x344] sm:$0xf]  ;;  %v9935_v29 = vld [vmem:[#allocation5 + $0x348] sm:$0xf0]  ;;  %v12028_v37 = vld [vmem:[#allocation5 + $0x544] sm:$0xf0] }
 0x291   :  { %v9938_v30 = vor.u32 %v11963_v52, %v9935_v29  ;;  %v10190_v62 = vor.u32 %v12028_v37, %v10189_v23  ;;  %v16026_v29 = vld [vmem:[#allocation19_spill] sm:$0xff] }
 0x292   :  { %16021 = vst [vmem:[#allocation93_spill] sm:$0xff] %v13168_v8 }
 0x293   :  { %2733 = vmatpush.bf16.msra.mxu2 %v9938_v30  ;;  %2595 = vmatpush.bf16.msra.mxu0 %v10190_v62 }
 0x295   :  { %v1637_v45 = vpop.f32.mrf.mxu2  ;;  %v1502_v24 = vpop.f32.mrf.mxu0 }
 0x296   :  { %v1638_v22 = vadd.f32 %v1637_v45, %v1569_v1  ;;  %v1706_v16 = vpop.f32.mrf.mxu3  ;;  %v1503_v18 = vadd.f32 %v1502_v24, %v13035_v4  ;;  %v1571_v15 = vpop.f32.mrf.mxu1  ;;  %v9999_v1 = vld [vmem:[#allocation5 + $0x3c8] sm:$0xf0] }
 0x298   :  { %v13171_v5 = vadd.f32 %v1706_v16, %v1638_v22  ;;  %v1572_v51 = vadd.f32 %v1571_v15, %v1503_v18  ;;  %2334 = vmatmul.bf16.gmra.mxu0 %v12684_v33  ;;  %v10002_v16 = vor.u32 %v11979_v26, %v9999_v1 }
 0x299   :  { %2403 = vmatmul.bf16.gmra.mxu1 %v12686_v34 }
 0x29a   :  { %16022 = vst [vmem:[#allocation94_spill] sm:$0xff] %v13171_v5  ;;  %2472 = vmatmul.bf16.gmra.mxu2 %v12690_v35  ;;  %2802 = vmatpush.bf16.msra.mxu3 %v10002_v16 }
 0x29b   :  { %2541 = vmatmul.bf16.gmra.mxu3 %v12694_v36 }
 0x29d   :  { %v1640_v47 = vpop.f32.mrf.mxu2  ;;  %v1504_v45 = vpop.f32.mrf.mxu0 }
 0x29e   :  { %v1641_v61 = vadd.f32 %v1640_v47, %v1572_v51  ;;  %v1709_v7 = vpop.f32.mrf.mxu3  ;;  %v1505_v9 = vadd.f32 %v1504_v45, %v13040_v20  ;;  %v1573_v0 = vpop.f32.mrf.mxu1  ;;  %v12044_v45 = vld [vmem:[#allocation5 + $0x5c4] sm:$0xf0] }
 0x2a0   :  { %v13178_v4 = vadd.f32 %v1709_v7, %v1641_v61  ;;  %v1574_v22 = vadd.f32 %v1573_v0, %v1505_v9  ;;  %v10253_v7 = vld [vmem:[#allocation5 + $0x5c0] sm:$0xf]  ;;  %v16025_v0 = vld [vmem:[#allocation18_spill] sm:$0xff] }
 0x2a1   :  { %v10254_v52 = vor.u32 %v12044_v45, %v10253_v7  ;;  %v16029_v45 = vld [vmem:[#allocation23_spill] sm:$0xff] }
 0x2a2   :  { %16023 = vst [vmem:[#allocation95_spill] sm:$0xff] %v13178_v4 }
 0x2a3   :  { %2664 = vmatpush.bf16.msra.mxu1 %v10254_v52  ;;  %v11961_v52 = vld [vmem:[#allocation5 + $0x334] sm:$0xf] }
 0x2a5   :  { %v1642_v24 = vpop.f32.mrf.mxu2  ;;  %v1507_v20 = vpop.f32.mrf.mxu0 }
 0x2a6   :  { %v1643_v18 = vadd.f32 %v1642_v24, %v1574_v22  ;;  %v1711_v15 = vpop.f32.mrf.mxu3  ;;  %v1508_v51 = vadd.f32 %v1507_v20, %v13049_v32  ;;  %v1576_v47 = vpop.f32.mrf.mxu1 }
 0x2a8   :  { %v13181_v61 = vadd.f32 %v1711_v15, %v1643_v18  ;;  %v1577_v9 = vadd.f32 %v1576_v47, %v1508_v51  ;;  %2339 = vmatmul.bf16.gmra.mxu0 %v16025_v0 }
 0x2a9   :  { %2408 = vmatmul.bf16.gmra.mxu1 %v16026_v29 }
 0x2aa   :  { %16024 = vst [vmem:[#allocation96_spill] sm:$0xff] %v13181_v61  ;;  %2477 = vmatmul.bf16.gmra.mxu2 %v15973_v50  ;;  %v12042_v61 = vld [vmem:[#allocation5 + $0x5b4] sm:$0xf0] }
 0x2ab   :  { %2546 = vmatmul.bf16.gmra.mxu3 %v15974_v46 }
 0x2ad   :  { %v1645_v22 = vpop.f32.mrf.mxu2  ;;  %v1509_v32 = vpop.f32.mrf.mxu0 }
 0x2ae   :  { %v1646_v23 = vadd.f32 %v1645_v22, %v1577_v9  ;;  %v1714_v30 = vpop.f32.mrf.mxu3  ;;  %v1510_v37 = vadd.f32 %v1509_v32, %v13054_v54  ;;  %v1578_v26 = vpop.f32.mrf.mxu1  ;;  %v16030_v9 = vld [vmem:[#allocation24_spill] sm:$0xff]  ;;  %v16031_v54 = vld [vmem:[#allocation25_spill] sm:$0xff]  ;;  %v9927_v22 = vld [vmem:[#allocation5 + $0x338] sm:$0xf0] }
 0x2af   :  { %v12026_v32 = vld [vmem:[#allocation5 + $0x534] sm:$0xf0] }
 0x2b0   :  { %v13188_v1 = vadd.f32 %v1714_v30, %v1646_v23  ;;  %v1579_v62 = vadd.f32 %v1578_v26, %v1510_v37  ;;  %v10181_v23 = vld [vmem:[#allocation5 + $0x530] sm:$0xf]  ;;  %v9930_v30 = vor.u32 %v11961_v52, %v9927_v22  ;;  %v11977_v37 = vld [vmem:[#allocation5 + $0x3b4] sm:$0xf]  ;;  %v9991_v26 = vld [vmem:[#allocation5 + $0x3b8] sm:$0xf0] }
 0x2b2   :  { %16027 = vst [vmem:[#allocation97_spill] sm:$0xff] %v13188_v1  ;;  %2734 = vmatpush.bf16.msra.mxu2 %v9930_v30  ;;  %v10245_v1 = vld [vmem:[#allocation5 + $0x5b0] sm:$0xf] }
 0x2b3   :  { %v10246_v22 = vor.u32 %v12042_v61, %v10245_v1 }
 0x2b5   :  { %v1647_v16 = vpop.f32.mrf.mxu2  ;;  %v1512_v15 = vpop.f32.mrf.mxu0  ;;  %2665 = vmatpush.bf16.msra.mxu1 %v10246_v22  ;;  %v12024_v22 = vld [vmem:[#allocation5 + $0x524] sm:$0xf0] }
 0x2b6   :  { %v1648_v24 = vadd.f32 %v1647_v16, %v1579_v62  ;;  %v1716_v18 = vpop.f32.mrf.mxu3  ;;  %v1513_v20 = vadd.f32 %v1512_v15, %v13063_v25  ;;  %v1581_v51 = vpop.f32.mrf.mxu1  ;;  %v10182_v62 = vor.u32 %v12026_v32, %v10181_v23  ;;  %v9994_v16 = vor.u32 %v11977_v37, %v9991_v26  ;;  %v16034_v26 = vld [vmem:[#allocation26_spill] sm:$0xff] }
 0x2b8   :  { %v13191_v47 = vadd.f32 %v1716_v18, %v1648_v24  ;;  %v1582_v7 = vadd.f32 %v1581_v51, %v1513_v20  ;;  %2344 = vmatmul.bf16.gmra.mxu0 %v15975_v3  ;;  %2803 = vmatpush.bf16.msra.mxu3 %v9994_v16 }
 0x2b9   :  { %2413 = vmatmul.bf16.gmra.mxu1 %v16029_v45  ;;  %2596 = vmatpush.bf16.msra.mxu0 %v10182_v62  ;;  %v16036_v62 = vld [vmem:[#allocation29_spill] sm:$0xff] }
 0x2ba   :  { %16028 = vst [vmem:[#allocation98_spill] sm:$0xff] %v13191_v47  ;;  %2482 = vmatmul.bf16.gmra.mxu2 %v16030_v9 }
 0x2bb   :  { %2551 = vmatmul.bf16.gmra.mxu3 %v16031_v54 }
 0x2bd   :  { %v1650_v25 = vpop.f32.mrf.mxu2  ;;  %v1514_v15 = vpop.f32.mrf.mxu0 }
 0x2be   :  { %v1651_v24 = vadd.f32 %v1650_v25, %v1582_v7  ;;  %v1719_v18 = vpop.f32.mrf.mxu3  ;;  %v1515_v20 = vadd.f32 %v1514_v15, %v13068_v39  ;;  %v1583_v51 = vpop.f32.mrf.mxu1  ;;  %v16035_v25 = vld [vmem:[#allocation27_spill] sm:$0xff]  ;;  %v11959_v15 = vld [vmem:[#allocation5 + $0x324] sm:$0xf] }
 0x2c0   :  { %v13198_v47 = vadd.f32 %v1719_v18, %v1651_v24  ;;  %v1584_v52 = vadd.f32 %v1583_v51, %v1515_v20  ;;  %v9919_v20 = vld [vmem:[#allocation5 + $0x328] sm:$0xf0]  ;;  %v10173_v51 = vld [vmem:[#allocation5 + $0x520] sm:$0xf] }
 0x2c2   :  { %16032 = vst [vmem:[#allocation99_spill] sm:$0xff] %v13198_v47  ;;  %v16045_v47 = vld [vmem:[#allocation34_spill] sm:$0xff] }
 0x2c5   :  { %v1652_v4 = vpop.f32.mrf.mxu2  ;;  %v1517_v32 = vpop.f32.mrf.mxu0 }
 0x2c6   :  { %v1653_v5 = vadd.f32 %v1652_v4, %v1584_v52  ;;  %v1721_v23 = vpop.f32.mrf.mxu3  ;;  %v1518_v7 = vadd.f32 %v1517_v32, %v13077_v43  ;;  %v1586_v37 = vpop.f32.mrf.mxu1  ;;  %v9922_v52 = vor.u32 %v11959_v15, %v9919_v20  ;;  %v9983_v32 = vld [vmem:[#allocation5 + $0x3a8] sm:$0xf0]  ;;  %v16039_v20 = vld [vmem:[#allocation30_spill] sm:$0xff] }
 0x2c8   :  { %v13201_v30 = vadd.f32 %v1721_v23, %v1653_v5  ;;  %v1587_v39 = vadd.f32 %v1586_v37, %v1518_v7  ;;  %2349 = vmatmul.bf16.gmra.mxu0 %v16034_v26  ;;  %v11975_v23 = vld [vmem:[#allocation5 + $0x3a4] sm:$0xf]  ;;  %v10174_v7 = vor.u32 %v12024_v22, %v10173_v51  ;;  %2735 = vmatpush.bf16.msra.mxu2 %v9922_v52  ;;  %v16040_v51 = vld [vmem:[#allocation31_spill] sm:$0xff]  ;;  %v16041_v52 = vld [vmem:[#allocation33_spill] sm:$0xff] }
 0x2c9   :  { %2418 = vmatmul.bf16.gmra.mxu1 %v16035_v25  ;;  %v9986_v37 = vor.u32 %v11975_v23, %v9983_v32  ;;  %v16042_v23 = vld [vmem:[#allocation80_spill] sm:$0xff] }
 0x2ca   :  { %16033 = vst [vmem:[#allocation100_spill] sm:$0xff] %v13201_v30  ;;  %2487 = vmatmul.bf16.gmra.mxu2 %v15984_v44  ;;  %2597 = vmatpush.bf16.msra.mxu0 %v10174_v7 }
 0x2cb   :  { %2556 = vmatmul.bf16.gmra.mxu3 %v16036_v62  ;;  %v10135_v62 = vld [vmem:[#allocation5 + $0x4d8] sm:$0xf0] }
 0x2cc   :  { %2804 = vmatpush.bf16.msra.mxu3 %v9986_v37 }
 0x2cd   :  { %v1655_v61 = vpop.f32.mrf.mxu2  ;;  %v1519_v4 = vpop.f32.mrf.mxu0 }
 0x2ce   :  { %v1656_v1 = vadd.f32 %v1655_v61, %v1587_v39  ;;  %v1724_v16 = vpop.f32.mrf.mxu3  ;;  %v1520_v24 = vadd.f32 %v1519_v4, %v13082_v10  ;;  %v1588_v18 = vpop.f32.mrf.mxu1 }
 0x2d0   :  { %v13208_v43 = vadd.f32 %v1724_v16, %v1656_v1  ;;  %v1589_v5 = vadd.f32 %v1588_v18, %v1520_v24  ;;  %v10237_v24 = vld [vmem:[#allocation5 + $0x5a0] sm:$0xf]  ;;  %v12040_v18 = vld [vmem:[#allocation5 + $0x5a4] sm:$0xf0] }
 0x2d2   :  { %16037 = vst [vmem:[#allocation101_spill] sm:$0xff] %v13208_v43  ;;  %v10238_v43 = vor.u32 %v12040_v18, %v10237_v24 }
 0x2d4   :  { %2666 = vmatpush.bf16.msra.mxu1 %v10238_v43 }
 0x2d5   :  { %v1657_v30 = vpop.f32.mrf.mxu2  ;;  %v1522_v10 = vpop.f32.mrf.mxu0 }
 0x2d6   :  { %v1658_v39 = vadd.f32 %v1657_v30, %v1589_v5  ;;  %v1726_v61 = vpop.f32.mrf.mxu3  ;;  %v1523_v1 = vadd.f32 %v1522_v10, %v13091_v2  ;;  %v1591_v16 = vpop.f32.mrf.mxu1 }
 0x2d8   :  { %v13211_v4 = vadd.f32 %v1726_v61, %v1658_v39  ;;  %v1592_v15 = vadd.f32 %v1591_v16, %v1523_v1  ;;  %2354 = vmatmul.bf16.gmra.mxu0 %v16039_v20 }
 0x2d9   :  { %2423 = vmatmul.bf16.gmra.mxu1 %v16040_v51 }
 0x2da   :  { %16038 = vst [vmem:[#allocation102_spill] sm:$0xff] %v13211_v4  ;;  %2492 = vmatmul.bf16.gmra.mxu2 %v15990_v48 }
 0x2db   :  { %2561 = vmatmul.bf16.gmra.mxu3 %v16041_v52 }
 0x2dd   :  { %v1660_v30 = vpop.f32.mrf.mxu2  ;;  %v1524_v2 = vpop.f32.mrf.mxu0 }
 0x2de   :  { %v1661_v5 = vadd.f32 %v1660_v30, %v1592_v15  ;;  %v1729_v22 = vpop.f32.mrf.mxu3  ;;  %v1525_v32 = vadd.f32 %v1524_v2, %v16042_v23  ;;  %v1593_v7 = vpop.f32.mrf.mxu1  ;;  %v16046_v15 = vld [vmem:[#allocation35_spill] sm:$0xff]  ;;  %v16047_v30 = vld [vmem:[#allocation36_spill] sm:$0xff]  ;;  %v16048_v2 = vld [vmem:[#allocation37_spill] sm:$0xff] }
 0x2df   :  { %v10165_v23 = vld [vmem:[#allocation5 + $0x510] sm:$0xf] }
 0x2e0   :  { %v13218_v37 = vadd.f32 %v1729_v22, %v1661_v5  ;;  %v1594_v39 = vadd.f32 %v1593_v7, %v1525_v32  ;;  %v11957_v5 = vld [vmem:[#allocation5 + $0x314] sm:$0xf]  ;;  %v9911_v22 = vld [vmem:[#allocation5 + $0x318] sm:$0xf0]  ;;  %v12022_v7 = vld [vmem:[#allocation5 + $0x514] sm:$0xf0] }
 0x2e1   :  { %v9914_v32 = vor.u32 %v11957_v5, %v9911_v22  ;;  %v10230_v22 = vor.u32 %v12038_v57, %v10229_v38 }
 0x2e2   :  { %16043 = vst [vmem:[#allocation80_spill] sm:$0xff] %v13218_v37 }
 0x2e3   :  { %2736 = vmatpush.bf16.msra.mxu2 %v9914_v32  ;;  %2667 = vmatpush.bf16.msra.mxu1 %v10230_v22  ;;  %v9967_v22 = vld [vmem:[#allocation5 + $0x388] sm:$0xf0] }
 0x2e5   :  { %v1662_v61 = vpop.f32.mrf.mxu2  ;;  %v1527_v16 = vpop.f32.mrf.mxu0 }
 0x2e6   :  { %v1663_v10 = vadd.f32 %v1662_v61, %v1594_v39  ;;  %v1731_v1 = vpop.f32.mrf.mxu3  ;;  %v1528_v24 = vadd.f32 %v1527_v16, %v13105_v49  ;;  %v1596_v18 = vpop.f32.mrf.mxu1  ;;  %v11973_v39 = vld [vmem:[#allocation5 + $0x394] sm:$0xf]  ;;  %v9975_v61 = vld [vmem:[#allocation5 + $0x398] sm:$0xf0]  ;;  %v10166_v16 = vor.u32 %v12022_v7, %v10165_v23 }
 0x2e8   :  { %v13221_v4 = vadd.f32 %v1731_v1, %v1663_v10  ;;  %v1597_v43 = vadd.f32 %v1596_v18, %v1528_v24  ;;  %2359 = vmatmul.bf16.gmra.mxu0 %v16045_v47  ;;  %v9978_v10 = vor.u32 %v11973_v39, %v9975_v61  ;;  %v16051_v61 = vld [vmem:[#allocation38_spill] sm:$0xff] }
 0x2e9   :  { %2428 = vmatmul.bf16.gmra.mxu1 %v16046_v15  ;;  %2598 = vmatpush.bf16.msra.mxu0 %v10166_v16 }
 0x2ea   :  { %16044 = vst [vmem:[#allocation103_spill] sm:$0xff] %v13221_v4  ;;  %2497 = vmatmul.bf16.gmra.mxu2 %v16047_v30  ;;  %2805 = vmatpush.bf16.msra.mxu3 %v9978_v10  ;;  %v11955_v10 = vld [vmem:[#allocation5 + $0x304] sm:$0xf] }
 0x2eb   :  { %2566 = vmatmul.bf16.gmra.mxu3 %v16048_v2 }
 0x2ed   :  { %v1665_v49 = vpop.f32.mrf.mxu2  ;;  %v1529_v18 = vpop.f32.mrf.mxu0 }
 0x2ee   :  { %v1666_v1 = vadd.f32 %v1665_v49, %v1597_v43  ;;  %v1734_v24 = vpop.f32.mrf.mxu3  ;;  %v1530_v4 = vadd.f32 %v1529_v18, %v13110_v41  ;;  %v1598_v37 = vpop.f32.mrf.mxu1  ;;  %v16052_v41 = vld [vmem:[#allocation39_spill] sm:$0xff]  ;;  %v12020_v18 = vld [vmem:[#allocation5 + $0x504] sm:$0xf0] }
 0x2f0   :  { %v13228_v8 = vadd.f32 %v1734_v24, %v1666_v1  ;;  %v1599_v5 = vadd.f32 %v1598_v37, %v1530_v4  ;;  %v10157_v1 = vld [vmem:[#allocation5 + $0x500] sm:$0xf] }
 0x2f2   :  { %16049 = vst [vmem:[#allocation104_spill] sm:$0xff] %v13228_v8 }
 0x2f5   :  { %v1667_v2 = vpop.f32.mrf.mxu2  ;;  %v2325_v7 = vpop.f32.mrf.mxu0 }
 0x2f6   :  { %v1668_v30 = vadd.f32 %v1667_v2, %v1599_v5  ;;  %v1736_v23 = vpop.f32.mrf.mxu3  ;;  %v2394_v43 = vpop.f32.mrf.mxu1  ;;  %v11971_v5 = vld [vmem:[#allocation5 + $0x384] sm:$0xf] }
 0x2f7   :  { %v2395_v32 = vadd.f32 %v2394_v43, %v2325_v7  ;;  %v9970_v7 = vor.u32 %v11971_v5, %v9967_v22 }
 0x2f8   :  { %v13230_v39 = vadd.f32 %v1736_v23, %v1668_v30  ;;  %2364 = vmatmul.bf16.gmra.mxu0 %v16051_v61  ;;  %v9903_v30 = vld [vmem:[#allocation5 + $0x308] sm:$0xf0]  ;;  %v10158_v23 = vor.u32 %v12020_v18, %v10157_v1 }
 0x2f9   :  { %2433 = vmatmul.bf16.gmra.mxu1 %v16052_v41  ;;  %v9906_v24 = vor.u32 %v11955_v10, %v9903_v30  ;;  %2806 = vmatpush.bf16.msra.mxu3 %v9970_v7  ;;  %v16054_v30 = vld [vmem:[#allocation43_spill] sm:$0xff] }
 0x2fa   :  { %16050 = vst [vmem:[#allocation105_spill] sm:$0xff] %v13230_v39  ;;  %2502 = vmatmul.bf16.gmra.mxu2 %v16001_v28  ;;  %2599 = vmatpush.bf16.msra.mxu0 %v10158_v23 }
 0x2fb   :  { %2571 = vmatmul.bf16.gmra.mxu3 %v16002_v27  ;;  %2737 = vmatpush.bf16.msra.mxu2 %v9906_v24  ;;  %v16053_v27 = vld [vmem:[#allocation42_spill] sm:$0xff] }
 0x2fd   :  { %v2463_v49 = vpop.f32.mrf.mxu2  ;;  %v2327_v38 = vpop.f32.mrf.mxu0 }
 0x2fe   :  { %v2464_v4 = vadd.f32 %v2463_v49, %v2395_v32  ;;  %v2532_v57 = vpop.f32.mrf.mxu3  ;;  %v2396_v37 = vpop.f32.mrf.mxu1 }
 0x2ff   :  { %v2397_v16 = vadd.f32 %v2396_v37, %v2327_v38  ;;  %v10221_v38 = vld [vmem:[#allocation5 + $0x580] sm:$0xf]  ;;  %v12036_v37 = vld [vmem:[#allocation5 + $0x584] sm:$0xf0] }
 0x300   :  { %v13236_v2 = vadd.f32 %v2532_v57, %v2464_v4  ;;  %v10222_v10 = vor.u32 %v12036_v37, %v10221_v38  ;;  %v10215_v37 = vld [vmem:[#allocation5 + $0x578] sm:$0xf0] }
 0x302   :  { %2668 = vmatpush.bf16.msra.mxu1 %v10222_v10  ;;  %v12001_v10 = vld [vmem:[#allocation5 + $0x474] sm:$0xf] }
 0x305   :  { %v2465_v43 = vpop.f32.mrf.mxu2  ;;  %v2330_v39 = vpop.f32.mrf.mxu0 }
 0x306   :  { %v2466_v32 = vadd.f32 %v2465_v43, %v2397_v16  ;;  %v2534_v49 = vpop.f32.mrf.mxu3  ;;  %v2399_v8 = vpop.f32.mrf.mxu1 }
 0x307   :  { %v2400_v57 = vadd.f32 %v2399_v8, %v2330_v39 }
 0x308   :  { %v13238_v4 = vadd.f32 %v2534_v49, %v2466_v32  ;;  %2369 = vmatmul.bf16.gmra.mxu0 %v16053_v27 }
 0x309   :  { %2438 = vmatmul.bf16.gmra.mxu1 %v16054_v30 }
 0x30a   :  { %2507 = vmatmul.bf16.gmra.mxu2 %v16005_v56  ;;  %v10151_v56 = vld [vmem:[#allocation5 + $0x4f8] sm:$0xf0] }
 0x30b   :  { %2576 = vmatmul.bf16.gmra.mxu3 %v16006_v40  ;;  %v12017_v40 = vld [vmem:[#allocation5 + $0x4f4] sm:$0xf] }
 0x30c   :  { %v10154_v28 = vor.u32 %v12017_v40, %v10151_v56 }
 0x30d   :  { %v2468_v1 = vpop.f32.mrf.mxu2  ;;  %v2332_v18 = vpop.f32.mrf.mxu0 }
 0x30e   :  { %v2469_v16 = vadd.f32 %v2468_v1, %v2400_v57  ;;  %v2537_v24 = vpop.f32.mrf.mxu3  ;;  %v2401_v5 = vpop.f32.mrf.mxu1  ;;  %v12033_v57 = vld [vmem:[#allocation5 + $0x574] sm:$0xf]  ;;  %2937 = vmatpush.bf16.msrb.mxu1 %v10154_v28 }
 0x30f   :  { %v2402_v8 = vadd.f32 %v2401_v5, %v2332_v18  ;;  %v10218_v1 = vor.u32 %v12033_v57, %v10215_v37  ;;  %v10279_v18 = vld [vmem:[#allocation5 + $0x5f8] sm:$0xf0] }
 0x310   :  { %v13244_v22 = vadd.f32 %v2537_v24, %v2469_v16  ;;  %v10087_v16 = vld [vmem:[#allocation5 + $0x478] sm:$0xf0]  ;;  %v12049_v24 = vld [vmem:[#allocation5 + $0x5f4] sm:$0xf] }
 0x311   :  { %3006 = vmatpush.bf16.msrb.mxu2 %v10218_v1  ;;  %v16056_v1 = vld [vmem:[#allocation49_spill] sm:$0xff] }
 0x315   :  { %v2470_v39 = vpop.f32.mrf.mxu2  ;;  %v2335_v43 = vpop.f32.mrf.mxu0 }
 0x316   :  { %v2471_v23 = vadd.f32 %v2470_v39, %v2402_v8  ;;  %v2539_v7 = vpop.f32.mrf.mxu3  ;;  %v2404_v32 = vpop.f32.mrf.mxu1  ;;  %v10090_v8 = vor.u32 %v12001_v10, %v10087_v16  ;;  %v10282_v39 = vor.u32 %v12049_v24, %v10279_v18  ;;  %v16055_v24 = vld [vmem:[#allocation48_spill] sm:$0xff] }
 0x317   :  { %v2405_v38 = vadd.f32 %v2404_v32, %v2335_v43 }
 0x318   :  { %v13246_v49 = vadd.f32 %v2539_v7, %v2471_v23  ;;  %2374 = vmatmul.bf16.gmra.mxu0 %v12806_v59  ;;  %3075 = vmatpush.bf16.msrb.mxu3 %v10282_v39  ;;  %v12031_v39 = vld [vmem:[#allocation5 + $0x564] sm:$0xf] }
 0x319   :  { %2443 = vmatmul.bf16.gmra.mxu1 %v12808_v53  ;;  %2868 = vmatpush.bf16.msrb.mxu0 %v10090_v8 }
 0x31a   :  { %2512 = vmatmul.bf16.gmra.mxu2 %v16009_v63 }
 0x31b   :  { %2581 = vmatmul.bf16.gmra.mxu3 %v16010_v60 }
 0x31d   :  { %v2473_v5 = vpop.f32.mrf.mxu2  ;;  %v2337_v43 = vpop.f32.mrf.mxu0 }
 0x31e   :  { %v2474_v23 = vadd.f32 %v2473_v5, %v2405_v38  ;;  %v2542_v7 = vpop.f32.mrf.mxu3  ;;  %v2406_v32 = vpop.f32.mrf.mxu1 }
 0x31f   :  { %v2407_v60 = vadd.f32 %v2406_v32, %v2337_v43  ;;  %v12047_v43 = vld [vmem:[#allocation5 + $0x5e4] sm:$0xf]  ;;  %v10271_v32 = vld [vmem:[#allocation5 + $0x5e8] sm:$0xf0] }
 0x320   :  { %v13252_v63 = vadd.f32 %v2542_v7, %v2474_v23  ;;  %v11999_v23 = vld [vmem:[#allocation5 + $0x464] sm:$0xf]  ;;  %v10079_v7 = vld [vmem:[#allocation5 + $0x468] sm:$0xf0] }
 0x325   :  { %v2475_v57 = vpop.f32.mrf.mxu2  ;;  %v2340_v48 = vpop.f32.mrf.mxu0 }
 0x326   :  { %v2476_v37 = vadd.f32 %v2475_v57, %v2407_v60  ;;  %v2544_v52 = vpop.f32.mrf.mxu3  ;;  %v2409_v10 = vpop.f32.mrf.mxu1  ;;  %v10082_v57 = vor.u32 %v11999_v23, %v10079_v7 }
 0x327   :  { %v2410_v38 = vadd.f32 %v2409_v10, %v2340_v48 }
 0x328   :  { %v13254_v16 = vadd.f32 %v2544_v52, %v2476_v37  ;;  %2379 = vmatmul.bf16.gmra.mxu0 %v16055_v24  ;;  %v10207_v52 = vld [vmem:[#allocation5 + $0x568] sm:$0xf0]  ;;  %v10274_v37 = vor.u32 %v12047_v43, %v10271_v32 }
 0x329   :  { %2448 = vmatmul.bf16.gmra.mxu1 %v16056_v1  ;;  %v10210_v48 = vor.u32 %v12031_v39, %v10207_v52  ;;  %2869 = vmatpush.bf16.msrb.mxu0 %v10082_v57 }
 0x32a   :  { %2517 = vmatmul.bf16.gmra.mxu2 %v16013_v42  ;;  %3076 = vmatpush.bf16.msrb.mxu3 %v10274_v37 }
 0x32b   :  { %2586 = vmatmul.bf16.gmra.mxu3 %v16014_v21  ;;  %3007 = vmatpush.bf16.msrb.mxu2 %v10210_v48 }
 0x32d   :  { %v2478_v18 = vpop.f32.mrf.mxu2  ;;  %v2342_v28 = vpop.f32.mrf.mxu0 }
 0x32e   :  { %v2479_v5 = vadd.f32 %v2478_v18, %v2410_v38  ;;  %v2547_v56 = vpop.f32.mrf.mxu3  ;;  %v2411_v40 = vpop.f32.mrf.mxu1 }
 0x32f   :  { %v2412_v8 = vadd.f32 %v2411_v40, %v2342_v28  ;;  %v12015_v28 = vld [vmem:[#allocation5 + $0x4e4] sm:$0xf]  ;;  %v10143_v40 = vld [vmem:[#allocation5 + $0x4e8] sm:$0xf0] }
 0x330   :  { %v13260_v60 = vadd.f32 %v2547_v56, %v2479_v5  ;;  %v10146_v39 = vor.u32 %v12015_v28, %v10143_v40  ;;  %v10199_v28 = vld [vmem:[#allocation5 + $0x558] sm:$0xf0]  ;;  %v11997_v40 = vld [vmem:[#allocation5 + $0x454] sm:$0xf] }
 0x332   :  { %2938 = vmatpush.bf16.msrb.mxu1 %v10146_v39 }
 0x335   :  { %v2480_v10 = vpop.f32.mrf.mxu2  ;;  %v2345_v21 = vpop.f32.mrf.mxu0 }
 0x336   :  { %v2481_v38 = vadd.f32 %v2480_v10, %v2412_v8  ;;  %v2549_v18 = vpop.f32.mrf.mxu3  ;;  %v2414_v42 = vpop.f32.mrf.mxu1 }
 0x337   :  { %v2415_v56 = vadd.f32 %v2414_v42, %v2345_v21 }
 0x338   :  { %v13262_v5 = vadd.f32 %v2549_v18, %v2481_v38  ;;  %2600 = vmatmul.bf16.vlgmr.msra.gmra.mxu0 %v12668_v11 }
 0x339   :  { %2669 = vmatmul.bf16.vlgmr.msra.gmra.mxu1 %v12670_v12 }
 0x33a   :  { %2738 = vmatmul.bf16.vlgmr.msra.gmra.mxu2 %v16017_v19  ;;  %v12013_v19 = vld [vmem:[#allocation5 + $0x4d4] sm:$0xf] }
 0x33b   :  { %2807 = vmatmul.bf16.vlgmr.msra.gmra.mxu3 %v16018_v17  ;;  %v10138_v44 = vor.u32 %v12013_v19, %v10135_v62 }
 0x33d   :  { %v2483_v52 = vpop.f32.mrf.mxu2  ;;  %v2347_v48 = vpop.f32.mrf.mxu0  ;;  %2939 = vmatpush.bf16.msrb.mxu1 %v10138_v44 }
 0x33e   :  { %v2484_v8 = vadd.f32 %v2483_v52, %v2415_v56  ;;  %v2552_v23 = vpop.f32.mrf.mxu3  ;;  %v2416_v7 = vpop.f32.mrf.mxu1  ;;  %v12029_v56 = vld [vmem:[#allocation5 + $0x554] sm:$0xf]  ;;  %v10071_v52 = vld [vmem:[#allocation5 + $0x458] sm:$0xf0] }
 0x33f   :  { %v2417_v42 = vadd.f32 %v2416_v7, %v2347_v48  ;;  %v10202_v39 = vor.u32 %v12029_v56, %v10199_v28  ;;  %v10074_v7 = vor.u32 %v11997_v40, %v10071_v52 }
 0x340   :  { %v13268_v43 = vadd.f32 %v2552_v23, %v2484_v8  ;;  %v12045_v8 = vld [vmem:[#allocation5 + $0x5d4] sm:$0xf]  ;;  %v10263_v23 = vld [vmem:[#allocation5 + $0x5d8] sm:$0xf0] }
 0x341   :  { %3008 = vmatpush.bf16.msrb.mxu2 %v10202_v39  ;;  %2870 = vmatpush.bf16.msrb.mxu0 %v10074_v7  ;;  %v16058_v39 = vld [vmem:[#allocation53_spill] sm:$0xff] }
 0x345   :  { %v2485_v21 = vpop.f32.mrf.mxu2  ;;  %v2350_v37 = vpop.f32.mrf.mxu0 }
 0x346   :  { %v2486_v32 = vadd.f32 %v2485_v21, %v2417_v42  ;;  %v2554_v57 = vpop.f32.mrf.mxu3  ;;  %v2419_v10 = vpop.f32.mrf.mxu1  ;;  %v10266_v42 = vor.u32 %v12045_v8, %v10263_v23  ;;  %v16057_v8 = vld [vmem:[#allocation52_spill] sm:$0xff] }
 0x347   :  { %v2420_v18 = vadd.f32 %v2419_v10, %v2350_v37 }
 0x348   :  { %v13270_v38 = vadd.f32 %v2554_v57, %v2486_v32  ;;  %2605 = vmatmul.bf16.gmra.mxu0 %v12684_v33  ;;  %3077 = vmatpush.bf16.msrb.mxu3 %v10266_v42  ;;  %v12027_v42 = vld [vmem:[#allocation5 + $0x544] sm:$0xf] }
 0x349   :  { %2674 = vmatmul.bf16.gmra.mxu1 %v12686_v34 }
 0x34a   :  { %2743 = vmatmul.bf16.gmra.mxu2 %v12668_v11 }
 0x34b   :  { %2812 = vmatmul.bf16.gmra.mxu3 %v12670_v12 }
 0x34d   :  { %v2488_v48 = vpop.f32.mrf.mxu2  ;;  %v2352_v57 = vpop.f32.mrf.mxu0 }
 0x34e   :  { %v2489_v21 = vadd.f32 %v2488_v48, %v2420_v18  ;;  %v2557_v32 = vpop.f32.mrf.mxu3  ;;  %v2421_v37 = vpop.f32.mrf.mxu1 }
 0x34f   :  { %v2422_v17 = vadd.f32 %v2421_v37, %v2352_v57  ;;  %v12043_v57 = vld [vmem:[#allocation5 + $0x5c4] sm:$0xf]  ;;  %v10255_v37 = vld [vmem:[#allocation5 + $0x5c8] sm:$0xf0] }
 0x350   :  { %v13276_v10 = vadd.f32 %v2557_v32, %v2489_v21  ;;  %v11995_v21 = vld [vmem:[#allocation5 + $0x444] sm:$0xf]  ;;  %v10063_v32 = vld [vmem:[#allocation5 + $0x448] sm:$0xf0] }
 0x355   :  { %v2490_v56 = vpop.f32.mrf.mxu2  ;;  %v2355_v9 = vpop.f32.mrf.mxu0 }
 0x356   :  { %v2491_v28 = vadd.f32 %v2490_v56, %v2422_v17  ;;  %v2559_v54 = vpop.f32.mrf.mxu3  ;;  %v2424_v40 = vpop.f32.mrf.mxu1  ;;  %v10066_v56 = vor.u32 %v11995_v21, %v10063_v32 }
 0x357   :  { %v2425_v18 = vadd.f32 %v2424_v40, %v2355_v9 }
 0x358   :  { %v13278_v52 = vadd.f32 %v2559_v54, %v2491_v28  ;;  %2610 = vmatmul.bf16.gmra.mxu0 %v16057_v8  ;;  %v10191_v54 = vld [vmem:[#allocation5 + $0x548] sm:$0xf0]  ;;  %v10258_v28 = vor.u32 %v12043_v57, %v10255_v37 }
 0x359   :  { %2679 = vmatmul.bf16.gmra.mxu1 %v16058_v39  ;;  %v10194_v9 = vor.u32 %v12027_v42, %v10191_v54  ;;  %2871 = vmatpush.bf16.msrb.mxu0 %v10066_v56 }
 0x35a   :  { %2748 = vmatmul.bf16.gmra.mxu2 %v12684_v33  ;;  %3078 = vmatpush.bf16.msrb.mxu3 %v10258_v28 }
 0x35b   :  { %2817 = vmatmul.bf16.gmra.mxu3 %v12686_v34  ;;  %3009 = vmatpush.bf16.msrb.mxu2 %v10194_v9 }
 0x35d   :  { %v2493_v23 = vpop.f32.mrf.mxu2  ;;  %v2357_v44 = vpop.f32.mrf.mxu0 }
 0x35e   :  { %v2494_v48 = vadd.f32 %v2493_v23, %v2425_v18  ;;  %v2562_v19 = vpop.f32.mrf.mxu3  ;;  %v2426_v62 = vpop.f32.mrf.mxu1 }
 0x35f   :  { %v2427_v7 = vadd.f32 %v2426_v62, %v2357_v44  ;;  %v12011_v44 = vld [vmem:[#allocation5 + $0x4c4] sm:$0xf]  ;;  %v10127_v62 = vld [vmem:[#allocation5 + $0x4c8] sm:$0xf0] }
 0x360   :  { %v13284_v17 = vadd.f32 %v2562_v19, %v2494_v48  ;;  %v10130_v42 = vor.u32 %v12011_v44, %v10127_v62  ;;  %v10183_v44 = vld [vmem:[#allocation5 + $0x538] sm:$0xf0]  ;;  %v11993_v62 = vld [vmem:[#allocation5 + $0x434] sm:$0xf] }
 0x362   :  { %2940 = vmatpush.bf16.msrb.mxu1 %v10130_v42 }
 0x365   :  { %v2495_v40 = vpop.f32.mrf.mxu2  ;;  %v2360_v46 = vpop.f32.mrf.mxu0 }
 0x366   :  { %v2496_v18 = vadd.f32 %v2495_v40, %v2427_v7  ;;  %v2564_v23 = vpop.f32.mrf.mxu3  ;;  %v2429_v50 = vpop.f32.mrf.mxu1 }
 0x367   :  { %v2430_v19 = vadd.f32 %v2429_v50, %v2360_v46 }
 0x368   :  { %v13286_v48 = vadd.f32 %v2564_v23, %v2496_v18  ;;  %2615 = vmatmul.bf16.gmra.mxu0 %v15975_v3 }
 0x369   :  { %2684 = vmatmul.bf16.gmra.mxu1 %v16029_v45 }
 0x36a   :  { %2753 = vmatmul.bf16.gmra.mxu2 %v16025_v0  ;;  %v12009_v0 = vld [vmem:[#allocation5 + $0x4b4] sm:$0xf] }
 0x36b   :  { %2822 = vmatmul.bf16.gmra.mxu3 %v16026_v29 }
 0x36d   :  { %v2498_v54 = vpop.f32.mrf.mxu2  ;;  %v2362_v9 = vpop.f32.mrf.mxu0 }
 0x36e   :  { %v2499_v7 = vadd.f32 %v2498_v54, %v2430_v19  ;;  %v2567_v21 = vpop.f32.mrf.mxu3  ;;  %v2431_v32 = vpop.f32.mrf.mxu1  ;;  %v12025_v19 = vld [vmem:[#allocation5 + $0x534] sm:$0xf]  ;;  %v10055_v54 = vld [vmem:[#allocation5 + $0x438] sm:$0xf0] }
 0x36f   :  { %v2432_v50 = vadd.f32 %v2431_v32, %v2362_v9  ;;  %v10186_v42 = vor.u32 %v12025_v19, %v10183_v44  ;;  %v10058_v32 = vor.u32 %v11993_v62, %v10055_v54 }
 0x370   :  { %v13292_v57 = vadd.f32 %v2567_v21, %v2499_v7  ;;  %v12041_v7 = vld [vmem:[#allocation5 + $0x5b4] sm:$0xf]  ;;  %v10247_v21 = vld [vmem:[#allocation5 + $0x5b8] sm:$0xf0] }
 0x371   :  { %3010 = vmatpush.bf16.msrb.mxu2 %v10186_v42  ;;  %2872 = vmatpush.bf16.msrb.mxu0 %v10058_v32  ;;  %v16062_v42 = vld [vmem:[#allocation57_spill] sm:$0xff] }
 0x372   :  { %16059 = vst [vmem:[#allocation48_spill] sm:$0xff] %v13292_v57 }
 0x375   :  { %v2500_v46 = vpop.f32.mrf.mxu2  ;;  %v2365_v28 = vpop.f32.mrf.mxu0 }
 0x376   :  { %v2501_v37 = vadd.f32 %v2500_v46, %v2432_v50  ;;  %v2569_v56 = vpop.f32.mrf.mxu3  ;;  %v2434_v40 = vpop.f32.mrf.mxu1  ;;  %v10250_v50 = vor.u32 %v12041_v7, %v10247_v21  ;;  %v16061_v7 = vld [vmem:[#allocation56_spill] sm:$0xff] }
 0x377   :  { %v2435_v23 = vadd.f32 %v2434_v40, %v2365_v28 }
 0x378   :  { %v13294_v18 = vadd.f32 %v2569_v56, %v2501_v37  ;;  %2620 = vmatmul.bf16.gmra.mxu0 %v16034_v26  ;;  %3079 = vmatpush.bf16.msrb.mxu3 %v10250_v50  ;;  %v12023_v50 = vld [vmem:[#allocation5 + $0x524] sm:$0xf] }
 0x379   :  { %2689 = vmatmul.bf16.gmra.mxu1 %v16035_v25 }
 0x37a   :  { %16060 = vst [vmem:[#allocation106_spill] sm:$0xff] %v13294_v18  ;;  %2758 = vmatmul.bf16.gmra.mxu2 %v15975_v3  ;;  %v10119_v18 = vld [vmem:[#allocation5 + $0x4b8] sm:$0xf0] }
 0x37b   :  { %2827 = vmatmul.bf16.gmra.mxu3 %v16029_v45  ;;  %v10122_v45 = vor.u32 %v12009_v0, %v10119_v18 }
 0x37d   :  { %v2503_v9 = vpop.f32.mrf.mxu2  ;;  %v2367_v56 = vpop.f32.mrf.mxu0  ;;  %2941 = vmatpush.bf16.msrb.mxu1 %v10122_v45 }
 0x37e   :  { %v2504_v46 = vadd.f32 %v2503_v9, %v2435_v23  ;;  %v2572_v37 = vpop.f32.mrf.mxu3  ;;  %v2436_v28 = vpop.f32.mrf.mxu1 }
 0x37f   :  { %v2437_v29 = vadd.f32 %v2436_v28, %v2367_v56  ;;  %v12039_v56 = vld [vmem:[#allocation5 + $0x5a4] sm:$0xf]  ;;  %v10239_v28 = vld [vmem:[#allocation5 + $0x5a8] sm:$0xf0] }
 0x380   :  { %v13300_v40 = vadd.f32 %v2572_v37, %v2504_v46  ;;  %v11991_v46 = vld [vmem:[#allocation5 + $0x424] sm:$0xf]  ;;  %v10047_v37 = vld [vmem:[#allocation5 + $0x428] sm:$0xf0] }
 0x385   :  { %v2505_v19 = vpop.f32.mrf.mxu2  ;;  %v2370_v57 = vpop.f32.mrf.mxu0 }
 0x386   :  { %v2506_v44 = vadd.f32 %v2505_v19, %v2437_v29  ;;  %v2574_v3 = vpop.f32.mrf.mxu3  ;;  %v2439_v62 = vpop.f32.mrf.mxu1  ;;  %v10050_v19 = vor.u32 %v11991_v46, %v10047_v37 }
 0x387   :  { %v2440_v23 = vadd.f32 %v2439_v62, %v2370_v57 }
 0x388   :  { %v13302_v54 = vadd.f32 %v2574_v3, %v2506_v44  ;;  %2625 = vmatmul.bf16.gmra.mxu0 %v16061_v7  ;;  %v10175_v3 = vld [vmem:[#allocation5 + $0x528] sm:$0xf0]  ;;  %v10242_v44 = vor.u32 %v12039_v56, %v10239_v28 }
 0x389   :  { %2694 = vmatmul.bf16.gmra.mxu1 %v16062_v42  ;;  %v10178_v57 = vor.u32 %v12023_v50, %v10175_v3  ;;  %2873 = vmatpush.bf16.msrb.mxu0 %v10050_v19 }
 0x38a   :  { %2763 = vmatmul.bf16.gmra.mxu2 %v16034_v26  ;;  %3080 = vmatpush.bf16.msrb.mxu3 %v10242_v44 }
 0x38b   :  { %2832 = vmatmul.bf16.gmra.mxu3 %v16035_v25  ;;  %3011 = vmatpush.bf16.msrb.mxu2 %v10178_v57 }
 0x38d   :  { %v2508_v21 = vpop.f32.mrf.mxu2  ;;  %v2372_v45 = vpop.f32.mrf.mxu0 }
 0x38e   :  { %v2509_v9 = vadd.f32 %v2508_v21, %v2440_v23  ;;  %v2577_v0 = vpop.f32.mrf.mxu3  ;;  %v2441_v18 = vpop.f32.mrf.mxu1 }
 0x38f   :  { %v2442_v32 = vadd.f32 %v2441_v18, %v2372_v45  ;;  %v12007_v45 = vld [vmem:[#allocation5 + $0x4a4] sm:$0xf]  ;;  %v10111_v18 = vld [vmem:[#allocation5 + $0x4a8] sm:$0xf0] }
 0x390   :  { %v13308_v29 = vadd.f32 %v2577_v0, %v2509_v9  ;;  %v10114_v50 = vor.u32 %v12007_v45, %v10111_v18  ;;  %v12021_v45 = vld [vmem:[#allocation5 + $0x514] sm:$0xf]  ;;  %v10167_v18 = vld [vmem:[#allocation5 + $0x518] sm:$0xf0] }
 0x392   :  { %2942 = vmatpush.bf16.msrb.mxu1 %v10114_v50  ;;  %v11989_v50 = vld [vmem:[#allocation5 + $0x414] sm:$0xf] }
 0x395   :  { %v2510_v62 = vpop.f32.mrf.mxu2  ;;  %v2375_v42 = vpop.f32.mrf.mxu0 }
 0x396   :  { %v2511_v23 = vadd.f32 %v2510_v62, %v2442_v32  ;;  %v2579_v21 = vpop.f32.mrf.mxu3  ;;  %v2444_v7 = vpop.f32.mrf.mxu1 }
 0x397   :  { %v2445_v0 = vadd.f32 %v2444_v7, %v2375_v42 }
 0x398   :  { %v13310_v9 = vadd.f32 %v2579_v21, %v2511_v23  ;;  %2630 = vmatmul.bf16.gmra.mxu0 %v16045_v47 }
 0x399   :  { %2699 = vmatmul.bf16.gmra.mxu1 %v16046_v15 }
 0x39a   :  { %16063 = vst [vmem:[#allocation107_spill] sm:$0xff] %v13310_v9  ;;  %2768 = vmatmul.bf16.gmra.mxu2 %v16039_v20 }
 0x39b   :  { %2837 = vmatmul.bf16.gmra.mxu3 %v16040_v51  ;;  %v10103_v51 = vld [vmem:[#allocation5 + $0x498] sm:$0xf0] }
 0x39d   :  { %v2513_v3 = vpop.f32.mrf.mxu2  ;;  %v2377_v57 = vpop.f32.mrf.mxu0 }
 0x39e   :  { %v2514_v32 = vadd.f32 %v2513_v3, %v2445_v0  ;;  %v2582_v46 = vpop.f32.mrf.mxu3  ;;  %v2446_v37 = vpop.f32.mrf.mxu1 }
 0x39f   :  { %v2447_v7 = vadd.f32 %v2446_v37, %v2377_v57  ;;  %v10170_v57 = vor.u32 %v12021_v45, %v10167_v18  ;;  %v10039_v37 = vld [vmem:[#allocation5 + $0x418] sm:$0xf0] }
 0x3a0   :  { %v13316_v56 = vadd.f32 %v2582_v46, %v2514_v32 }
 0x3a1   :  { %3012 = vmatpush.bf16.msrb.mxu2 %v10170_v57 }
 0x3a2   :  { %16064 = vst [vmem:[#allocation108_spill] sm:$0xff] %v13316_v56 }
 0x3a5   :  { %v2515_v42 = vpop.f32.mrf.mxu2  ;;  %v2380_v44 = vpop.f32.mrf.mxu0 }
 0x3a6   :  { %v2516_v28 = vadd.f32 %v2515_v42, %v2447_v7  ;;  %v2584_v19 = vpop.f32.mrf.mxu3  ;;  %v2449_v62 = vpop.f32.mrf.mxu1  ;;  %v12037_v7 = vld [vmem:[#allocation5 + $0x594] sm:$0xf]  ;;  %v10231_v42 = vld [vmem:[#allocation5 + $0x598] sm:$0xf0] }
 0x3a7   :  { %v2450_v21 = vadd.f32 %v2449_v62, %v2380_v44  ;;  %v10234_v44 = vor.u32 %v12037_v7, %v10231_v42  ;;  %v12005_v62 = vld [vmem:[#allocation5 + $0x494] sm:$0xf] }
 0x3a8   :  { %v13318_v23 = vadd.f32 %v2584_v19, %v2516_v28  ;;  %2635 = vmatmul.bf16.gmra.mxu0 %v16051_v61  ;;  %v10042_v19 = vor.u32 %v11989_v50, %v10039_v37  ;;  %v16066_v37 = vld [vmem:[#allocation60_spill] sm:$0xff] }
 0x3a9   :  { %2704 = vmatmul.bf16.gmra.mxu1 %v16052_v41  ;;  %3081 = vmatpush.bf16.msrb.mxu3 %v10234_v44 }
 0x3aa   :  { %16065 = vst [vmem:[#allocation109_spill] sm:$0xff] %v13318_v23  ;;  %2773 = vmatmul.bf16.gmra.mxu2 %v16045_v47  ;;  %2874 = vmatpush.bf16.msrb.mxu0 %v10042_v19 }
 0x3ab   :  { %2842 = vmatmul.bf16.gmra.mxu3 %v16046_v15  ;;  %v10106_v15 = vor.u32 %v12005_v62, %v10103_v51  ;;  %v12019_v62 = vld [vmem:[#allocation5 + $0x504] sm:$0xf] }
 0x3ad   :  { %v2518_v0 = vpop.f32.mrf.mxu2  ;;  %v2382_v46 = vpop.f32.mrf.mxu0  ;;  %2943 = vmatpush.bf16.msrb.mxu1 %v10106_v15  ;;  %v16068_v15 = vld [vmem:[#allocation62_spill] sm:$0xff] }
 0x3ae   :  { %v2519_v3 = vadd.f32 %v2518_v0, %v2450_v21  ;;  %v2587_v32 = vpop.f32.mrf.mxu3  ;;  %v2451_v28 = vpop.f32.mrf.mxu1 }
 0x3af   :  { %v2452_v23 = vadd.f32 %v2451_v28, %v2382_v46  ;;  %v16070_v28 = vld [vmem:[#allocation63_spill] sm:$0xff] }
 0x3b0   :  { %v13324_v20 = vadd.f32 %v2587_v32, %v2519_v3  ;;  %v16067_v3 = vld [vmem:[#allocation61_spill] sm:$0xff] }
 0x3b5   :  { %v2520_v21 = vpop.f32.mrf.mxu2  ;;  %v2601_v45 = vpop.f32.mrf.mxu0 }
 0x3b6   :  { %v2521_v0 = vadd.f32 %v2520_v21, %v2452_v23  ;;  %v2589_v47 = vpop.f32.mrf.mxu3  ;;  %v2602_v18 = vadd.f32 %v2601_v45, %v13236_v2  ;;  %v2670_v56 = vpop.f32.mrf.mxu1  ;;  %v10159_v21 = vld [vmem:[#allocation5 + $0x508] sm:$0xf0] }
 0x3b8   :  { %v13327_v9 = vadd.f32 %v2589_v47, %v2521_v0  ;;  %v2671_v50 = vadd.f32 %v2670_v56, %v2602_v18  ;;  %2640 = vmatmul.bf16.gmra.mxu0 %v16066_v37  ;;  %v11987_v0 = vld [vmem:[#allocation5 + $0x404] sm:$0xf] }
 0x3b9   :  { %2709 = vmatmul.bf16.gmra.mxu1 %v16067_v3 }
 0x3ba   :  { %2778 = vmatmul.bf16.gmra.mxu2 %v16051_v61  ;;  %v3192_v51 = vrot.slane %v2671_v50, 1  ;;  %v10162_v50 = vor.u32 %v12019_v62, %v10159_v21 }
 0x3bb   :  { %2847 = vmatmul.bf16.gmra.mxu3 %v16052_v41 }
 0x3bc   :  { %v13334_v32 = vadd.f32 %v3192_v51, %v16068_v15  ;;  %v10031_v51 = vld [vmem:[#allocation5 + $0x408] sm:$0xf0]  ;;  %v12035_v15 = vld [vmem:[#allocation5 + $0x584] sm:$0xf]  ;;  %3013 = vmatpush.bf16.msrb.mxu2 %v10162_v50 }
 0x3bd   :  { %v2739_v23 = vpop.f32.mrf.mxu2  ;;  %v2603_v57 = vpop.f32.mrf.mxu0 }
 0x3be   :  { %16069 = vst [vmem:[#allocation62_spill] sm:$0xff] %v13334_v32  ;;  %v2808_v46 = vpop.f32.mrf.mxu3  ;;  %v2604_v47 = vadd.f32 %v2603_v57, %v13238_v4  ;;  %v2672_v56 = vpop.f32.mrf.mxu1  ;;  %v10223_v32 = vld [vmem:[#allocation5 + $0x588] sm:$0xf0]  ;;  %v10034_v57 = vor.u32 %v11987_v0, %v10031_v51 }
 0x3bf   :  { %v13336_v2 = vadd.f32 %v2808_v46, %v2739_v23 }
 0x3c0   :  { %v2673_v7 = vadd.f32 %v2672_v56, %v2604_v47  ;;  %v10226_v47 = vor.u32 %v12035_v15, %v10223_v32  ;;  %v12003_v56 = vld [vmem:[#allocation5 + $0x484] sm:$0xf]  ;;  %2875 = vmatpush.bf16.msrb.mxu0 %v10034_v57 }
 0x3c2   :  { %v3194_v42 = vrot.slane %v2673_v7, 1  ;;  %v10095_v7 = vld [vmem:[#allocation5 + $0x488] sm:$0xf0]  ;;  %3082 = vmatpush.bf16.msrb.mxu3 %v10226_v47 }
 0x3c4   :  { %v13340_v19 = vadd.f32 %v3194_v42, %v16070_v28  ;;  %v10098_v42 = vor.u32 %v12003_v56, %v10095_v7 }
 0x3c5   :  { %v2741_v44 = vpop.f32.mrf.mxu2  ;;  %v2606_v18 = vpop.f32.mrf.mxu0 }
 0x3c6   :  { %16071 = vst [vmem:[#allocation63_spill] sm:$0xff] %v13340_v19  ;;  %v2810_v45 = vpop.f32.mrf.mxu3  ;;  %v2607_v4 = vadd.f32 %v2606_v18, %v13244_v22  ;;  %v2675_v46 = vpop.f32.mrf.mxu1  ;;  %2944 = vmatpush.bf16.msrb.mxu1 %v10098_v42  ;;  %v16072_v22 = vld [vmem:[#allocation64_spill] sm:$0xff] }
 0x3c7   :  { %v13342_v23 = vadd.f32 %v2810_v45, %v2741_v44 }
 0x3c8   :  { %v2676_v28 = vadd.f32 %v2675_v46, %v2607_v4  ;;  %2645 = vmatmul.bf16.gmra.mxu0 %v12806_v59  ;;  %v16074_v4 = vld [vmem:[#allocation65_spill] sm:$0xff] }
 0x3c9   :  { %2714 = vmatmul.bf16.gmra.mxu1 %v12808_v53 }
 0x3ca   :  { %2783 = vmatmul.bf16.gmra.mxu2 %v16053_v27  ;;  %v3196_v62 = vrot.slane %v2676_v28, 1 }
 0x3cb   :  { %2852 = vmatmul.bf16.gmra.mxu3 %v16054_v30 }
 0x3cc   :  { %v13350_v44 = vadd.f32 %v3196_v62, %v16072_v22  ;;  %v16076_v22 = vld [vmem:[#allocation66_spill] sm:$0xff] }
 0x3cd   :  { %v2744_v32 = vpop.f32.mrf.mxu2  ;;  %v2608_v0 = vpop.f32.mrf.mxu0 }
 0x3ce   :  { %16073 = vst [vmem:[#allocation64_spill] sm:$0xff] %v13350_v44  ;;  %v2813_v21 = vpop.f32.mrf.mxu3  ;;  %v2609_v18 = vadd.f32 %v2608_v0, %v13246_v49  ;;  %v2677_v50 = vpop.f32.mrf.mxu1  ;;  %v10469_v0 = vld [vmem:[#allocation5 + $0x770] sm:$0xf] }
 0x3cf   :  { %v13352_v45 = vadd.f32 %v2813_v21, %v2744_v32  ;;  %v10405_v44 = vld [vmem:[#allocation5 + $0x6f0] sm:$0xf] }
 0x3d0   :  { %v2678_v51 = vadd.f32 %v2677_v50, %v2609_v18  ;;  %v12098_v18 = vld [vmem:[#allocation5 + $0x774] sm:$0xf0]  ;;  %v10341_v50 = vld [vmem:[#allocation5 + $0x670] sm:$0xf] }
 0x3d2   :  { %v3198_v15 = vrot.slane %v2678_v51, 1 }
 0x3d4   :  { %v13356_v46 = vadd.f32 %v3198_v15, %v16074_v4  ;;  %v10470_v15 = vor.u32 %v12098_v18, %v10469_v0  ;;  %v12066_v4 = vld [vmem:[#allocation5 + $0x674] sm:$0xf0]  ;;  %v16078_v0 = vld [vmem:[#allocation67_spill] sm:$0xff] }
 0x3d5   :  { %v2746_v47 = vpop.f32.mrf.mxu2  ;;  %v2611_v57 = vpop.f32.mrf.mxu0 }
 0x3d6   :  { %16075 = vst [vmem:[#allocation65_spill] sm:$0xff] %v13356_v46  ;;  %v2815_v56 = vpop.f32.mrf.mxu3  ;;  %v2612_v42 = vadd.f32 %v2611_v57, %v13252_v63  ;;  %v2680_v28 = vpop.f32.mrf.mxu1  ;;  %4051 = vmatpush.bf16.msra.mxu2 %v10470_v15 }
 0x3d7   :  { %v13358_v7 = vadd.f32 %v2815_v56, %v2746_v47  ;;  %v10533_v47 = vld [vmem:[#allocation5 + $0x7f0] sm:$0xf]  ;;  %v12114_v56 = vld [vmem:[#allocation5 + $0x7f4] sm:$0xf0] }
 0x3d8   :  { %v2681_v62 = vadd.f32 %v2680_v28, %v2612_v42  ;;  %2650 = vmatmul.bf16.gmra.mxu0 %v16055_v24  ;;  %v10534_v46 = vor.u32 %v12114_v56, %v10533_v47 }
 0x3d9   :  { %2719 = vmatmul.bf16.gmra.mxu1 %v16056_v1 }
 0x3da   :  { %2788 = vmatmul.bf16.gmra.mxu2 %v12806_v59  ;;  %v3200_v49 = vrot.slane %v2681_v62, 1  ;;  %v10342_v62 = vor.u32 %v12066_v4, %v10341_v50  ;;  %4120 = vmatpush.bf16.msra.mxu3 %v10534_v46 }
 0x3db   :  { %2857 = vmatmul.bf16.gmra.mxu3 %v12808_v53 }
 0x3dc   :  { %v13366_v32 = vadd.f32 %v3200_v49, %v16076_v22  ;;  %v12082_v49 = vld [vmem:[#allocation5 + $0x6f4] sm:$0xf0]  ;;  %3913 = vmatpush.bf16.msra.mxu0 %v10342_v62 }
 0x3dd   :  { %v2749_v21 = vpop.f32.mrf.mxu2  ;;  %v2613_v63 = vpop.f32.mrf.mxu0  ;;  %v10406_v22 = vor.u32 %v12082_v49, %v10405_v44 }
 0x3de   :  { %16077 = vst [vmem:[#allocation66_spill] sm:$0xff] %v13366_v32  ;;  %v2818_v51 = vpop.f32.mrf.mxu3  ;;  %v2614_v42 = vadd.f32 %v2613_v63, %v13254_v16  ;;  %v2682_v28 = vpop.f32.mrf.mxu1 }
 0x3df   :  { %v13368_v57 = vadd.f32 %v2818_v51, %v2749_v21  ;;  %3982 = vmatpush.bf16.msra.mxu1 %v10406_v22  ;;  %v10461_v22 = vld [vmem:[#allocation5 + $0x760] sm:$0xf] }
 0x3e0   :  { %v2683_v32 = vadd.f32 %v2682_v28, %v2614_v42  ;;  %v16082_v28 = vld [vmem:[#allocation69_spill] sm:$0xff] }
 0x3e2   :  { %v3202_v19 = vrot.slane %v2683_v32, 1 }
 0x3e4   :  { %v13372_v18 = vadd.f32 %v3202_v19, %v16078_v0  ;;  %v16080_v19 = vld [vmem:[#allocation68_spill] sm:$0xff] }
 0x3e5   :  { %v2751_v30 = vpop.f32.mrf.mxu2  ;;  %v2616_v51 = vpop.f32.mrf.mxu0  ;;  %v12096_v0 = vld [vmem:[#allocation5 + $0x764] sm:$0xf0] }
 0x3e6   :  { %16079 = vst [vmem:[#allocation67_spill] sm:$0xff] %v13372_v18  ;;  %v2820_v21 = vpop.f32.mrf.mxu3  ;;  %v2617_v16 = vadd.f32 %v2616_v51, %v13260_v60  ;;  %v2685_v50 = vpop.f32.mrf.mxu1 }
 0x3e7   :  { %v13374_v27 = vadd.f32 %v2820_v21, %v2751_v30  ;;  %v10333_v21 = vld [vmem:[#allocation5 + $0x660] sm:$0xf] }
 0x3e8   :  { %v2686_v63 = vadd.f32 %v2685_v50, %v2617_v16  ;;  %2655 = vmatmul.bf16.gmra.mxu0 %v12978_v6  ;;  %v10462_v50 = vor.u32 %v12096_v0, %v10461_v22 }
 0x3e9   :  { %2724 = vmatmul.bf16.gmra.mxu1 %v12982_v31 }
 0x3ea   :  { %2793 = vmatmul.bf16.gmra.mxu2 %v16055_v24  ;;  %v3204_v44 = vrot.slane %v2686_v63, 1  ;;  %v12064_v63 = vld [vmem:[#allocation5 + $0x664] sm:$0xf0] }
 0x3eb   :  { %2862 = vmatmul.bf16.gmra.mxu3 %v16056_v1  ;;  %4052 = vmatpush.bf16.msra.mxu2 %v10462_v50 }
 0x3ec   :  { %v13382_v46 = vadd.f32 %v3204_v44, %v16080_v19  ;;  %v10525_v44 = vld [vmem:[#allocation5 + $0x7e0] sm:$0xf]  ;;  %v12112_v19 = vld [vmem:[#allocation5 + $0x7e4] sm:$0xf0] }
 0x3ed   :  { %v2754_v32 = vpop.f32.mrf.mxu2  ;;  %v2618_v30 = vpop.f32.mrf.mxu0 }
 0x3ee   :  { %16081 = vst [vmem:[#allocation68_spill] sm:$0xff] %v13382_v46  ;;  %v2823_v15 = vpop.f32.mrf.mxu3  ;;  %v2619_v60 = vadd.f32 %v2618_v30, %v13262_v5  ;;  %v2687_v47 = vpop.f32.mrf.mxu1  ;;  %v10334_v30 = vor.u32 %v12064_v63, %v10333_v21 }
 0x3ef   :  { %v13384_v4 = vadd.f32 %v2823_v15, %v2754_v32 }
 0x3f0   :  { %v2688_v56 = vadd.f32 %v2687_v47, %v2619_v60  ;;  %v10526_v60 = vor.u32 %v12112_v19, %v10525_v44  ;;  %v10397_v47 = vld [vmem:[#allocation5 + $0x6e0] sm:$0xf]  ;;  %3914 = vmatpush.bf16.msra.mxu0 %v10334_v30 }
 0x3f2   :  { %v3206_v42 = vrot.slane %v2688_v56, 1  ;;  %v12080_v56 = vld [vmem:[#allocation5 + $0x6e4] sm:$0xf0]  ;;  %4121 = vmatpush.bf16.msra.mxu3 %v10526_v60 }
 0x3f4   :  { %v13388_v62 = vadd.f32 %v3206_v42, %v16082_v28  ;;  %v10398_v42 = vor.u32 %v12080_v56, %v10397_v47 }
 0x3f5   :  { %v2756_v49 = vpop.f32.mrf.mxu2  ;;  %v2621_v16 = vpop.f32.mrf.mxu0 }
 0x3f6   :  { %16083 = vst [vmem:[#allocation69_spill] sm:$0xff] %v13388_v62  ;;  %v2825_v51 = vpop.f32.mrf.mxu3  ;;  %v2622_v5 = vadd.f32 %v2621_v16, %v13268_v43  ;;  %v2690_v15 = vpop.f32.mrf.mxu1  ;;  %3983 = vmatpush.bf16.msra.mxu1 %v10398_v42  ;;  %v16084_v43 = vld [vmem:[#allocation70_spill] sm:$0xff] }
 0x3f7   :  { %v13390_v32 = vadd.f32 %v2825_v51, %v2756_v49 }
 0x3f8   :  { %v2691_v28 = vadd.f32 %v2690_v15, %v2622_v5  ;;  %2876 = vmatmul.bf16.vlgmr.msrb.gmra.mxu0 %v12660_v55  ;;  %v16086_v5 = vld [vmem:[#allocation71_spill] sm:$0xff] }
 0x3f9   :  { %2945 = vmatmul.bf16.vlgmr.msrb.gmra.mxu1 %v12662_v58 }
 0x3fa   :  { %3014 = vmatmul.bf16.vlgmr.msrb.gmra.mxu2 %v12668_v11  ;;  %v3208_v22 = vrot.slane %v2691_v28, 1 }
 0x3fb   :  { %3083 = vmatmul.bf16.vlgmr.msrb.gmra.mxu3 %v12670_v12 }
 0x3fc   :  { %v13398_v49 = vadd.f32 %v3208_v22, %v16084_v43  ;;  %v16088_v43 = vld [vmem:[#allocation72_spill] sm:$0xff] }
 0x3fd   :  { %v2759_v0 = vpop.f32.mrf.mxu2  ;;  %v2623_v51 = vpop.f32.mrf.mxu0 }
 0x3fe   :  { %16085 = vst [vmem:[#allocation70_spill] sm:$0xff] %v13398_v49  ;;  %v2828_v21 = vpop.f32.mrf.mxu3  ;;  %v2624_v50 = vadd.f32 %v2623_v51, %v13270_v38  ;;  %v2692_v63 = vpop.f32.mrf.mxu1  ;;  %v10453_v51 = vld [vmem:[#allocation5 + $0x750] sm:$0xf] }
 0x3ff   :  { %v13400_v16 = vadd.f32 %v2828_v21, %v2759_v0  ;;  %v10389_v49 = vld [vmem:[#allocation5 + $0x6d0] sm:$0xf] }
 0x400   :  { %v2693_v44 = vadd.f32 %v2692_v63, %v2624_v50  ;;  %v12094_v50 = vld [vmem:[#allocation5 + $0x754] sm:$0xf0]  ;;  %v10325_v63 = vld [vmem:[#allocation5 + $0x650] sm:$0xf] }
 0x402   :  { %v3210_v19 = vrot.slane %v2693_v44, 1 }
 0x404   :  { %v13404_v15 = vadd.f32 %v3210_v19, %v16086_v5  ;;  %v10454_v19 = vor.u32 %v12094_v50, %v10453_v51  ;;  %v12062_v5 = vld [vmem:[#allocation5 + $0x654] sm:$0xf0]  ;;  %v16090_v51 = vld [vmem:[#allocation73_spill] sm:$0xff] }
 0x405   :  { %v2761_v60 = vpop.f32.mrf.mxu2  ;;  %v2626_v30 = vpop.f32.mrf.mxu0 }
 0x406   :  { %16087 = vst [vmem:[#allocation71_spill] sm:$0xff] %v13404_v15  ;;  %v2830_v47 = vpop.f32.mrf.mxu3  ;;  %v2627_v42 = vadd.f32 %v2626_v30, %v13276_v10  ;;  %v2695_v28 = vpop.f32.mrf.mxu1  ;;  %4053 = vmatpush.bf16.msra.mxu2 %v10454_v19 }
 0x407   :  { %v13406_v56 = vadd.f32 %v2830_v47, %v2761_v60  ;;  %v10517_v60 = vld [vmem:[#allocation5 + $0x7d0] sm:$0xf]  ;;  %v12110_v47 = vld [vmem:[#allocation5 + $0x7d4] sm:$0xf0] }
 0x408   :  { %v2696_v22 = vadd.f32 %v2695_v28, %v2627_v42  ;;  %2881 = vmatmul.bf16.gmra.mxu0 %v12672_v13  ;;  %v10518_v15 = vor.u32 %v12110_v47, %v10517_v60 }
 0x409   :  { %2950 = vmatmul.bf16.gmra.mxu1 %v12674_v14 }
 0x40a   :  { %3019 = vmatmul.bf16.gmra.mxu2 %v12684_v33  ;;  %v3212_v38 = vrot.slane %v2696_v22, 1  ;;  %v10326_v22 = vor.u32 %v12062_v5, %v10325_v63  ;;  %4122 = vmatpush.bf16.msra.mxu3 %v10518_v15 }
 0x40b   :  { %3088 = vmatmul.bf16.gmra.mxu3 %v12686_v34 }
 0x40c   :  { %v13414_v0 = vadd.f32 %v3212_v38, %v16088_v43  ;;  %v12078_v38 = vld [vmem:[#allocation5 + $0x6d4] sm:$0xf0]  ;;  %3915 = vmatpush.bf16.msra.mxu0 %v10326_v22 }
 0x40d   :  { %v2764_v21 = vpop.f32.mrf.mxu2  ;;  %v2628_v10 = vpop.f32.mrf.mxu0  ;;  %v10390_v43 = vor.u32 %v12078_v38, %v10389_v49 }
 0x40e   :  { %16089 = vst [vmem:[#allocation72_spill] sm:$0xff] %v13414_v0  ;;  %v2833_v44 = vpop.f32.mrf.mxu3  ;;  %v2629_v42 = vadd.f32 %v2628_v10, %v13278_v52  ;;  %v2697_v28 = vpop.f32.mrf.mxu1 }
 0x40f   :  { %v13416_v30 = vadd.f32 %v2833_v44, %v2764_v21  ;;  %3984 = vmatpush.bf16.msra.mxu1 %v10390_v43  ;;  %v10445_v43 = vld [vmem:[#allocation5 + $0x740] sm:$0xf] }
 0x410   :  { %v2698_v0 = vadd.f32 %v2697_v28, %v2629_v42  ;;  %v16094_v28 = vld [vmem:[#allocation75_spill] sm:$0xff] }
 0x412   :  { %v3214_v62 = vrot.slane %v2698_v0, 1 }
 0x414   :  { %v13420_v50 = vadd.f32 %v3214_v62, %v16090_v51  ;;  %v16092_v62 = vld [vmem:[#allocation74_spill] sm:$0xff]  ;;  %v12092_v51 = vld [vmem:[#allocation5 + $0x744] sm:$0xf0] }
 0x415   :  { %v2766_v46 = vpop.f32.mrf.mxu2  ;;  %v2631_v44 = vpop.f32.mrf.mxu0 }
 0x416   :  { %16091 = vst [vmem:[#allocation73_spill] sm:$0xff] %v13420_v50  ;;  %v2835_v21 = vpop.f32.mrf.mxu3  ;;  %v2632_v52 = vadd.f32 %v2631_v44, %v13284_v17  ;;  %v2700_v63 = vpop.f32.mrf.mxu1  ;;  %v16098_v50 = vld [vmem:[#allocation21_spill] sm:$0xff] }
 0x417   :  { %v13422_v18 = vadd.f32 %v2835_v21, %v2766_v46  ;;  %v10317_v21 = vld [vmem:[#allocation5 + $0x640] sm:$0xf] }
 0x418   :  { %v2701_v10 = vadd.f32 %v2700_v63, %v2632_v52  ;;  %2886 = vmatmul.bf16.gmra.mxu0 %v12690_v35  ;;  %v10446_v63 = vor.u32 %v12092_v51, %v10445_v43  ;;  %v16099_v43 = vld [vmem:[#allocation22_spill] sm:$0xff] }
 0x419   :  { %2955 = vmatmul.bf16.gmra.mxu1 %v12694_v36 }
 0x41a   :  { %3024 = vmatmul.bf16.gmra.mxu2 %v16057_v8  ;;  %v3216_v49 = vrot.slane %v2701_v10, 1  ;;  %v12060_v10 = vld [vmem:[#allocation5 + $0x644] sm:$0xf0] }
 0x41b   :  { %3093 = vmatmul.bf16.gmra.mxu3 %v16058_v39  ;;  %4054 = vmatpush.bf16.msra.mxu2 %v10446_v63  ;;  %v16106_v8 = vld [vmem:[#allocation24_spill] sm:$0xff] }
 0x41c   :  { %v13430_v15 = vadd.f32 %v3216_v49, %v16092_v62  ;;  %v10509_v49 = vld [vmem:[#allocation5 + $0x7c0] sm:$0xf]  ;;  %v12108_v62 = vld [vmem:[#allocation5 + $0x7c4] sm:$0xf0] }
 0x41d   :  { %v2769_v0 = vpop.f32.mrf.mxu2  ;;  %v2633_v46 = vpop.f32.mrf.mxu0 }
 0x41e   :  { %16093 = vst [vmem:[#allocation74_spill] sm:$0xff] %v13430_v15  ;;  %v2838_v19 = vpop.f32.mrf.mxu3  ;;  %v2634_v17 = vadd.f32 %v2633_v46, %v13286_v48  ;;  %v2702_v60 = vpop.f32.mrf.mxu1  ;;  %v16097_v15 = vld [vmem:[#allocation20_spill] sm:$0xff] }
 0x41f   :  { %v13432_v5 = vadd.f32 %v2838_v19, %v2769_v0  ;;  %v16096_v19 = vld [vmem:[#allocation48_spill] sm:$0xff] }
 0x420   :  { %v2703_v47 = vadd.f32 %v2702_v60, %v2634_v17  ;;  %v10318_v17 = vor.u32 %v12060_v10, %v10317_v21  ;;  %v10510_v60 = vor.u32 %v12108_v62, %v10509_v49  ;;  %v16103_v62 = vld [vmem:[#allocation106_spill] sm:$0xff] }
 0x422   :  { %v3218_v42 = vrot.slane %v2703_v47, 1  ;;  %v10381_v47 = vld [vmem:[#allocation5 + $0x6c0] sm:$0xf]  ;;  %4123 = vmatpush.bf16.msra.mxu3 %v10510_v60  ;;  %3916 = vmatpush.bf16.msra.mxu0 %v10318_v17 }
 0x424   :  { %v13436_v22 = vadd.f32 %v3218_v42, %v16094_v28  ;;  %v12076_v42 = vld [vmem:[#allocation5 + $0x6c4] sm:$0xf0] }
 0x425   :  { %v2771_v38 = vpop.f32.mrf.mxu2  ;;  %v2636_v52 = vpop.f32.mrf.mxu0  ;;  %v10382_v28 = vor.u32 %v12076_v42, %v10381_v47  ;;  %v16104_v47 = vld [vmem:[#allocation55_spill] sm:$0xff] }
 0x426   :  { %16095 = vst [vmem:[#allocation75_spill] sm:$0xff] %v13436_v22  ;;  %v2840_v44 = vpop.f32.mrf.mxu3  ;;  %v2637_v48 = vadd.f32 %v2636_v52, %v16096_v19  ;;  %v2705_v46 = vpop.f32.mrf.mxu1 }
 0x427   :  { %v13438_v0 = vadd.f32 %v2840_v44, %v2771_v38  ;;  %v16100_v38 = vld [vmem:[#allocation23_spill] sm:$0xff]  ;;  %3985 = vmatpush.bf16.msra.mxu1 %v10382_v28  ;;  %v16101_v44 = vld [vmem:[#allocation54_spill] sm:$0xff] }
 0x428   :  { %v2706_v22 = vadd.f32 %v2705_v46, %v2637_v48  ;;  %2891 = vmatmul.bf16.gmra.mxu0 %v16097_v15 }
 0x429   :  { %2960 = vmatmul.bf16.gmra.mxu1 %v16098_v50 }
 0x42a   :  { %3029 = vmatmul.bf16.gmra.mxu2 %v16099_v43  ;;  %v3220_v51 = vrot.slane %v2706_v22, 1 }
 0x42b   :  { %3098 = vmatmul.bf16.gmra.mxu3 %v16100_v38 }
 0x42c   :  { %v13446_v21 = vadd.f32 %v3220_v51, %v16101_v44 }
 0x42d   :  { %v2774_v52 = vpop.f32.mrf.mxu2  ;;  %v2638_v63 = vpop.f32.mrf.mxu0 }
 0x42e   :  { %16102 = vst [vmem:[#allocation48_spill] sm:$0xff] %v13446_v21  ;;  %v2843_v10 = vpop.f32.mrf.mxu3  ;;  %v2639_v19 = vadd.f32 %v2638_v63, %v16103_v62  ;;  %v2707_v48 = vpop.f32.mrf.mxu1  ;;  %v16108_v63 = vld [vmem:[#allocation76_spill] sm:$0xff] }
 0x42f   :  { %v13448_v49 = vadd.f32 %v2843_v10, %v2774_v52  ;;  %v16107_v52 = vld [vmem:[#allocation25_spill] sm:$0xff] }
 0x430   :  { %v2708_v46 = vadd.f32 %v2707_v48, %v2639_v19  ;;  %v10437_v48 = vld [vmem:[#allocation5 + $0x730] sm:$0xf] }
 0x432   :  { %v3222_v60 = vrot.slane %v2708_v46, 1  ;;  %v10309_v46 = vld [vmem:[#allocation5 + $0x630] sm:$0xf] }
 0x434   :  { %v13452_v42 = vadd.f32 %v3222_v60, %v16104_v47 }
 0x435   :  { %v2776_v22 = vpop.f32.mrf.mxu2  ;;  %v2641_v17 = vpop.f32.mrf.mxu0 }
 0x436   :  { %16105 = vst [vmem:[#allocation54_spill] sm:$0xff] %v13452_v42  ;;  %v2845_v39 = vpop.f32.mrf.mxu3  ;;  %v2642_v51 = vadd.f32 %v2641_v17, %v13300_v40  ;;  %v2710_v44 = vpop.f32.mrf.mxu1  ;;  %v10501_v17 = vld [vmem:[#allocation5 + $0x7b0] sm:$0xf] }
 0x437   :  { %v13454_v28 = vadd.f32 %v2845_v39, %v2776_v22  ;;  %v12090_v39 = vld [vmem:[#allocation5 + $0x734] sm:$0xf0] }
 0x438   :  { %v2711_v21 = vadd.f32 %v2710_v44, %v2642_v51  ;;  %2896 = vmatmul.bf16.gmra.mxu0 %v16106_v8  ;;  %v10438_v47 = vor.u32 %v12090_v39, %v10437_v48  ;;  %v12058_v22 = vld [vmem:[#allocation5 + $0x634] sm:$0xf0]  ;;  %v16110_v48 = vld [vmem:[#allocation77_spill] sm:$0xff] }
 0x439   :  { %2965 = vmatmul.bf16.gmra.mxu1 %v16107_v52  ;;  %v12106_v51 = vld [vmem:[#allocation5 + $0x7b4] sm:$0xf0]  ;;  %v10373_v52 = vld [vmem:[#allocation5 + $0x6b0] sm:$0xf] }
 0x43a   :  { %3034 = vmatmul.bf16.gmra.mxu2 %v16034_v26  ;;  %v3224_v10 = vrot.slane %v2711_v21, 1  ;;  %v10310_v26 = vor.u32 %v12058_v22, %v10309_v46  ;;  %v16112_v22 = vld [vmem:[#allocation28_spill] sm:$0xff] }
 0x43b   :  { %3103 = vmatmul.bf16.gmra.mxu3 %v16035_v25  ;;  %v10502_v25 = vor.u32 %v12106_v51, %v10501_v17  ;;  %4055 = vmatpush.bf16.msra.mxu2 %v10438_v47 }
 0x43c   :  { %v13462_v62 = vadd.f32 %v3224_v10, %v16108_v63  ;;  %v12074_v10 = vld [vmem:[#allocation5 + $0x6b4] sm:$0xf0]  ;;  %3917 = vmatpush.bf16.msra.mxu0 %v10310_v26  ;;  %v16114_v26 = vld [vmem:[#allocation56_spill] sm:$0xff] }
 0x43d   :  { %v2779_v19 = vpop.f32.mrf.mxu2  ;;  %v2643_v40 = vpop.f32.mrf.mxu0  ;;  %v10374_v63 = vor.u32 %v12074_v10, %v10373_v52  ;;  %4124 = vmatpush.bf16.msra.mxu3 %v10502_v25  ;;  %v16113_v52 = vld [vmem:[#allocation29_spill] sm:$0xff] }
 0x43e   :  { %16109 = vst [vmem:[#allocation106_spill] sm:$0xff] %v13462_v62  ;;  %v2848_v60 = vpop.f32.mrf.mxu3  ;;  %v2644_v42 = vadd.f32 %v2643_v40, %v13302_v54  ;;  %v2712_v21 = vpop.f32.mrf.mxu1 }
 0x43f   :  { %v13464_v44 = vadd.f32 %v2848_v60, %v2779_v19  ;;  %3986 = vmatpush.bf16.msra.mxu1 %v10374_v63 }
 0x440   :  { %v2713_v62 = vadd.f32 %v2712_v21, %v2644_v42  ;;  %v16115_v42 = vld [vmem:[#allocation57_spill] sm:$0xff] }
 0x442   :  { %v3226_v8 = vrot.slane %v2713_v62, 1 }
 0x444   :  { %v13468_v39 = vadd.f32 %v3226_v8, %v16110_v48  ;;  %v16116_v8 = vld [vmem:[#allocation78_spill] sm:$0xff] }
 0x445   :  { %v2781_v38 = vpop.f32.mrf.mxu2  ;;  %v2646_v60 = vpop.f32.mrf.mxu0 }
 0x446   :  { %16111 = vst [vmem:[#allocation55_spill] sm:$0xff] %v13468_v39  ;;  %v2850_v19 = vpop.f32.mrf.mxu3  ;;  %v2647_v54 = vadd.f32 %v2646_v60, %v13308_v29  ;;  %v2715_v46 = vpop.f32.mrf.mxu1  ;;  %v16119_v29 = vld [vmem:[#allocation107_spill] sm:$0xff] }
 0x447   :  { %v13470_v43 = vadd.f32 %v2850_v19, %v2781_v38  ;;  %v16120_v19 = vld [vmem:[#allocation79_spill] sm:$0xff] }
 0x448   :  { %v2716_v40 = vadd.f32 %v2715_v46, %v2647_v54  ;;  %2901 = vmatmul.bf16.gmra.mxu0 %v16112_v22  ;;  %v10429_v46 = vld [vmem:[#allocation5 + $0x720] sm:$0xf]  ;;  %v16123_v22 = vld [vmem:[#allocation32_spill] sm:$0xff] }
 0x449   :  { %2970 = vmatmul.bf16.gmra.mxu1 %v16113_v52  ;;  %v10301_v39 = vld [vmem:[#allocation5 + $0x620] sm:$0xf]  ;;  %v12104_v52 = vld [vmem:[#allocation5 + $0x7a4] sm:$0xf0] }
 0x44a   :  { %3039 = vmatmul.bf16.gmra.mxu2 %v16114_v26  ;;  %v3228_v25 = vrot.slane %v2716_v40, 1  ;;  %v12088_v40 = vld [vmem:[#allocation5 + $0x724] sm:$0xf0]  ;;  %v10493_v26 = vld [vmem:[#allocation5 + $0x7a0] sm:$0xf] }
 0x44b   :  { %3108 = vmatmul.bf16.gmra.mxu3 %v16115_v42 }
 0x44c   :  { %v13478_v62 = vadd.f32 %v3228_v25, %v16116_v8  ;;  %v10430_v8 = vor.u32 %v12088_v40, %v10429_v46  ;;  %v16125_v46 = vld [vmem:[#allocation34_spill] sm:$0xff] }
 0x44d   :  { %v2784_v47 = vpop.f32.mrf.mxu2  ;;  %v2648_v38 = vpop.f32.mrf.mxu0 }
 0x44e   :  { %16117 = vst [vmem:[#allocation76_spill] sm:$0xff] %v13478_v62  ;;  %v2853_v17 = vpop.f32.mrf.mxu3  ;;  %v2649_v21 = vadd.f32 %v2648_v38, %v16119_v29  ;;  %v2717_v10 = vpop.f32.mrf.mxu1  ;;  %v12056_v62 = vld [vmem:[#allocation5 + $0x624] sm:$0xf0]  ;;  %4056 = vmatpush.bf16.msra.mxu2 %v10430_v8  ;;  %v16129_v8 = vld [vmem:[#allocation109_spill] sm:$0xff] }
 0x44f   :  { %v13480_v51 = vadd.f32 %v2853_v17, %v2784_v47  ;;  %v16122_v17 = vld [vmem:[#allocation108_spill] sm:$0xff] }
 0x450   :  { %v2718_v63 = vadd.f32 %v2717_v10, %v2649_v21  ;;  %v10302_v21 = vor.u32 %v12056_v62, %v10301_v39  ;;  %v10494_v10 = vor.u32 %v12104_v52, %v10493_v26 }
 0x451   :  { %16118 = vst [vmem:[#allocation77_spill] sm:$0xff] %v13480_v51  ;;  %v16124_v51 = vld [vmem:[#allocation33_spill] sm:$0xff] }
 0x452   :  { %v3230_v48 = vrot.slane %v2718_v63, 1  ;;  %v10365_v63 = vld [vmem:[#allocation5 + $0x6a0] sm:$0xf]  ;;  %4125 = vmatpush.bf16.msra.mxu3 %v10494_v10  ;;  %3918 = vmatpush.bf16.msra.mxu0 %v10302_v21 }
 0x454   :  { %v13484_v60 = vadd.f32 %v3230_v48, %v16120_v19  ;;  %v12072_v48 = vld [vmem:[#allocation5 + $0x6a4] sm:$0xf0] }
 0x455   :  { %v2786_v54 = vpop.f32.mrf.mxu2  ;;  %v2651_v25 = vpop.f32.mrf.mxu0  ;;  %v10366_v19 = vor.u32 %v12072_v48, %v10365_v63  ;;  %v16130_v63 = vld [vmem:[#allocation59_spill] sm:$0xff] }
 0x456   :  { %16121 = vst [vmem:[#allocation78_spill] sm:$0xff] %v13484_v60  ;;  %v2855_v42 = vpop.f32.mrf.mxu3  ;;  %v2652_v38 = vadd.f32 %v2651_v25, %v16122_v17  ;;  %v2720_v29 = vpop.f32.mrf.mxu1 }
 0x457   :  { %v13486_v47 = vadd.f32 %v2855_v42, %v2786_v54  ;;  %v16126_v42 = vld [vmem:[#allocation35_spill] sm:$0xff]  ;;  %3987 = vmatpush.bf16.msra.mxu1 %v10366_v19  ;;  %v16127_v54 = vld [vmem:[#allocation58_spill] sm:$0xff] }
 0x458   :  { %v2721_v60 = vadd.f32 %v2720_v29, %v2652_v38  ;;  %2906 = vmatmul.bf16.gmra.mxu0 %v16123_v22 }
 0x459   :  { %2975 = vmatmul.bf16.gmra.mxu1 %v16124_v51 }
 0x45a   :  { %3044 = vmatmul.bf16.gmra.mxu2 %v16125_v46  ;;  %v3232_v40 = vrot.slane %v2721_v60, 1  ;;  %v16133_v46 = vld [vmem:[#allocation36_spill] sm:$0xff] }
 0x45b   :  { %3113 = vmatmul.bf16.gmra.mxu3 %v16126_v42 }
 0x45c   :  { %v13494_v39 = vadd.f32 %v3232_v40, %v16127_v54 }
 0x45d   :  { %v2789_v52 = vpop.f32.mrf.mxu2  ;;  %v2653_v62 = vpop.f32.mrf.mxu0 }
 0x45e   :  { %16128 = vst [vmem:[#allocation107_spill] sm:$0xff] %v13494_v39  ;;  %v2858_v26 = vpop.f32.mrf.mxu3  ;;  %v2654_v17 = vadd.f32 %v2653_v62, %v16129_v8  ;;  %v2722_v38 = vpop.f32.mrf.mxu1  ;;  %v10421_v62 = vld [vmem:[#allocation5 + $0x710] sm:$0xf]  ;;  %v12086_v8 = vld [vmem:[#allocation5 + $0x714] sm:$0xf0] }
 0x45f   :  { %v13496_v25 = vadd.f32 %v2858_v26, %v2789_v52  ;;  %v16134_v52 = vld [vmem:[#allocation37_spill] sm:$0xff] }
 0x460   :  { %v2723_v29 = vadd.f32 %v2722_v38, %v2654_v17  ;;  %v10293_v17 = vld [vmem:[#allocation5 + $0x610] sm:$0xf] }
 0x461   :  { %v16135_v38 = vld [vmem:[#allocation81_spill] sm:$0xff] }
 0x462   :  { %v3234_v10 = vrot.slane %v2723_v29, 1 }
 0x464   :  { %v13500_v48 = vadd.f32 %v3234_v10, %v16130_v63  ;;  %v10422_v10 = vor.u32 %v12086_v8, %v10421_v62  ;;  %v10485_v63 = vld [vmem:[#allocation5 + $0x790] sm:$0xf]  ;;  %v16137_v62 = vld [vmem:[#allocation82_spill] sm:$0xff] }
 0x465   :  { %v2791_v60 = vpop.f32.mrf.mxu2  ;;  %v2656_v21 = vpop.f32.mrf.mxu0 }
 0x466   :  { %16131 = vst [vmem:[#allocation79_spill] sm:$0xff] %v13500_v48  ;;  %v2860_v42 = vpop.f32.mrf.mxu3  ;;  %v2657_v40 = vadd.f32 %v2656_v21, %v13324_v20  ;;  %v2725_v54 = vpop.f32.mrf.mxu1  ;;  %v12054_v20 = vld [vmem:[#allocation5 + $0x614] sm:$0xf0]  ;;  %4057 = vmatpush.bf16.msra.mxu2 %v10422_v10 }
 0x467   :  { %v13502_v19 = vadd.f32 %v2860_v42, %v2791_v60  ;;  %v12102_v60 = vld [vmem:[#allocation5 + $0x794] sm:$0xf0] }
 0x468   :  { %v2726_v39 = vadd.f32 %v2725_v54, %v2657_v40  ;;  %2911 = vmatmul.bf16.gmra.mxu0 %v16133_v46  ;;  %v10294_v54 = vor.u32 %v12054_v20, %v10293_v17  ;;  %v10486_v48 = vor.u32 %v12102_v60, %v10485_v63  ;;  %v16139_v63 = vld [vmem:[#allocation40_spill] sm:$0xff] }
 0x469   :  { %16132 = vst [vmem:[#allocation108_spill] sm:$0xff] %v13502_v19  ;;  %2980 = vmatmul.bf16.gmra.mxu1 %v16134_v52 }
 0x46a   :  { %3049 = vmatmul.bf16.gmra.mxu2 %v16051_v61  ;;  %v3236_v26 = vrot.slane %v2726_v39, 1  ;;  %3919 = vmatpush.bf16.msra.mxu0 %v10294_v54 }
 0x46b   :  { %3118 = vmatmul.bf16.gmra.mxu3 %v16052_v41 }
 0x46c   :  { %v13510_v29 = vadd.f32 %v3236_v26, %v16135_v38  ;;  %4126 = vmatpush.bf16.msra.mxu3 %v10486_v48  ;;  %v10357_v38 = vld [vmem:[#allocation5 + $0x690] sm:$0xf] }
 0x46d   :  { %v2794_v42 = vpop.f32.mrf.mxu2  ;;  %v2658_v40 = vpop.f32.mrf.mxu0 }
 0x46e   :  { %16136 = vst [vmem:[#allocation58_spill] sm:$0xff] %v13510_v29  ;;  %v2863_v21 = vpop.f32.mrf.mxu3  ;;  %v2659_v39 = vadd.f32 %v2658_v40, %v13327_v9  ;;  %v2727_v41 = vpop.f32.mrf.mxu1  ;;  %v12070_v29 = vld [vmem:[#allocation5 + $0x694] sm:$0xf0] }
 0x46f   :  { %v13512_v52 = vadd.f32 %v2863_v21, %v2794_v42  ;;  %v10358_v19 = vor.u32 %v12070_v29, %v10357_v38  ;;  %v10285_v38 = vld [vmem:[#allocation5 + $0x600] sm:$0xf] }
 0x470   :  { %v2728_v61 = vadd.f32 %v2727_v41, %v2659_v39  ;;  %v16140_v41 = vld [vmem:[#allocation41_spill] sm:$0xff]  ;;  %v10413_v39 = vld [vmem:[#allocation5 + $0x700] sm:$0xf] }
 0x471   :  { %3988 = vmatpush.bf16.msra.mxu1 %v10358_v19  ;;  %v16141_v19 = vld [vmem:[#allocation83_spill] sm:$0xff] }
 0x472   :  { %v3238_v26 = vrot.slane %v2728_v61, 1 }
 0x474   :  { %v13516_v8 = vadd.f32 %v3238_v26, %v16137_v62  ;;  %v12084_v26 = vld [vmem:[#allocation5 + $0x704] sm:$0xf0] }
 0x475   :  { %v2796_v46 = vpop.f32.mrf.mxu2  ;;  %v2877_v17 = vpop.f32.mrf.mxu0 }
 0x476   :  { %16138 = vst [vmem:[#allocation109_spill] sm:$0xff] %v13516_v8  ;;  %v2865_v51 = vpop.f32.mrf.mxu3  ;;  %v2878_v42 = vadd.f32 %v2877_v17, %v13336_v2  ;;  %v2946_v9 = vpop.f32.mrf.mxu1  ;;  %v10414_v17 = vor.u32 %v12084_v26, %v10413_v39  ;;  %v12100_v8 = vld [vmem:[#allocation5 + $0x784] sm:$0xf0] }
 0x477   :  { %v13518_v20 = vadd.f32 %v2865_v51, %v2796_v46 }
 0x478   :  { %v2947_v10 = vadd.f32 %v2946_v9, %v2878_v42  ;;  %2916 = vmatmul.bf16.gmra.mxu0 %v16139_v63  ;;  %v12052_v42 = vld [vmem:[#allocation5 + $0x604] sm:$0xf0]  ;;  %v10477_v9 = vld [vmem:[#allocation5 + $0x780] sm:$0xf]  ;;  %4058 = vmatpush.bf16.msra.mxu2 %v10414_v17 }
 0x479   :  { %2985 = vmatmul.bf16.gmra.mxu1 %v16140_v41 }
 0x47a   :  { %3054 = vmatmul.bf16.gmra.mxu2 %v16066_v37  ;;  %v10286_v37 = vor.u32 %v12052_v42, %v10285_v38 }
 0x47b   :  { %3123 = vmatmul.bf16.gmra.mxu3 %v16067_v3 }
 0x47c   :  { %3920 = vmatpush.bf16.msra.mxu0 %v10286_v37 }
 0x47d   :  { %v3015_v61 = vpop.f32.mrf.mxu2  ;;  %v2879_v60 = vpop.f32.mrf.mxu0 }
 0x47e   :  { %v3016_v48 = vadd.f32 %v3015_v61, %v2947_v10  ;;  %v3084_v29 = vpop.f32.mrf.mxu3  ;;  %v2880_v51 = vadd.f32 %v2879_v60, %v13342_v23  ;;  %v2948_v46 = vpop.f32.mrf.mxu1  ;;  %v10478_v23 = vor.u32 %v12100_v8, %v10477_v9  ;;  %v10349_v8 = vld [vmem:[#allocation5 + $0x680] sm:$0xf] }
 0x480   :  { %v3085_v21 = vadd.f32 %v3084_v29, %v3016_v48  ;;  %v2949_v2 = vadd.f32 %v2948_v46, %v2880_v51  ;;  %4127 = vmatpush.bf16.msra.mxu3 %v10478_v23  ;;  %v16143_v46 = vld [vmem:[#allocation44_spill] sm:$0xff] }
 0x482   :  { %v3193_v40 = vrot.slane %v3085_v21, 1 }
 0x484   :  { %v13527_v54 = vadd.f32 %v3193_v40, %v16141_v19  ;;  %v16144_v40 = vld [vmem:[#allocation45_spill] sm:$0xff] }
 0x485   :  { %v3017_v62 = vpop.f32.mrf.mxu2  ;;  %v2882_v3 = vpop.f32.mrf.mxu0 }
 0x486   :  { %16142 = vst [vmem:[#allocation59_spill] sm:$0xff] %v13527_v54  ;;  %v3018_v10 = vadd.f32 %v3017_v62, %v2949_v2  ;;  %v3086_v61 = vpop.f32.mrf.mxu3  ;;  %v2883_v48 = vadd.f32 %v2882_v3, %v13352_v45  ;;  %v2951_v29 = vpop.f32.mrf.mxu1  ;;  %v16145_v2 = vld [vmem:[#allocation84_spill] sm:$0xff] }
 0x487   :  { %v12068_v3 = vld [vmem:[#allocation5 + $0x684] sm:$0xf0] }
 0x488   :  { %v3087_v60 = vadd.f32 %v3086_v61, %v3018_v10  ;;  %v2952_v51 = vadd.f32 %v2951_v29, %v2883_v48  ;;  %2921 = vmatmul.bf16.gmra.mxu0 %v16143_v46  ;;  %v10350_v39 = vor.u32 %v12068_v3, %v10349_v8  ;;  %v16147_v61 = vld [vmem:[#allocation85_spill] sm:$0xff] }
 0x489   :  { %2990 = vmatmul.bf16.gmra.mxu1 %v16144_v40 }
 0x48a   :  { %v3195_v21 = vrot.slane %v3087_v60, 1  ;;  %3059 = vmatmul.bf16.gmra.mxu2 %v12806_v59  ;;  %3989 = vmatpush.bf16.msra.mxu1 %v10350_v39  ;;  %v16151_v39 = vld [vmem:[#allocation86_spill] sm:$0xff] }
 0x48b   :  { %3128 = vmatmul.bf16.gmra.mxu3 %v12808_v53 }
 0x48c   :  { %v13535_v19 = vadd.f32 %v3195_v21, %v16145_v2 }
 0x48d   :  { %v3020_v45 = vpop.f32.mrf.mxu2  ;;  %v2884_v38 = vpop.f32.mrf.mxu0 }
 0x48e   :  { %16146 = vst [vmem:[#allocation81_spill] sm:$0xff] %v13535_v19  ;;  %v3021_v26 = vadd.f32 %v3020_v45, %v2952_v51  ;;  %v3089_v37 = vpop.f32.mrf.mxu3  ;;  %v2885_v62 = vadd.f32 %v2884_v38, %v13358_v7  ;;  %v2953_v17 = vpop.f32.mrf.mxu1  ;;  %v16149_v45 = vld [vmem:[#allocation46_spill] sm:$0xff]  ;;  %v16150_v38 = vld [vmem:[#allocation47_spill] sm:$0xff] }
 0x490   :  { %v3090_v42 = vadd.f32 %v3089_v37, %v3021_v26  ;;  %v2954_v9 = vadd.f32 %v2953_v17, %v2885_v62  ;;  %v12065_v37 = vld [vmem:[#allocation5 + $0x674] sm:$0xf]  ;;  %v10343_v62 = vld [vmem:[#allocation5 + $0x678] sm:$0xf0]  ;;  %v10597_v17 = vld [vmem:[#allocation5 + $0x870] sm:$0xf] }
 0x492   :  { %v3197_v10 = vrot.slane %v3090_v42, 1 }
 0x494   :  { %v13539_v23 = vadd.f32 %v3197_v10, %v16147_v61  ;;  %v12081_v10 = vld [vmem:[#allocation5 + $0x6f4] sm:$0xf]  ;;  %v10407_v61 = vld [vmem:[#allocation5 + $0x6f8] sm:$0xf0] }
 0x495   :  { %v3022_v48 = vpop.f32.mrf.mxu2  ;;  %v2887_v21 = vpop.f32.mrf.mxu0 }
 0x496   :  { %16148 = vst [vmem:[#allocation82_spill] sm:$0xff] %v13539_v23  ;;  %v3023_v29 = vadd.f32 %v3022_v48, %v2954_v9  ;;  %v3091_v60 = vpop.f32.mrf.mxu3  ;;  %v2888_v2 = vadd.f32 %v2887_v21, %v13368_v57  ;;  %v2956_v8 = vpop.f32.mrf.mxu1  ;;  %v10346_v57 = vor.u32 %v12065_v37, %v10343_v62  ;;  %v12130_v9 = vld [vmem:[#allocation5 + $0x874] sm:$0xf0]  ;;  %v10661_v37 = vld [vmem:[#allocation5 + $0x8f0] sm:$0xf] }
 0x497   :  { %v10598_v21 = vor.u32 %v12130_v9, %v10597_v17  ;;  %v12146_v62 = vld [vmem:[#allocation5 + $0x8f4] sm:$0xf0] }
 0x498   :  { %v3092_v51 = vadd.f32 %v3091_v60, %v3023_v29  ;;  %v2957_v3 = vadd.f32 %v2956_v8, %v2888_v2  ;;  %2926 = vmatmul.bf16.gmra.mxu0 %v16149_v45  ;;  %v10410_v2 = vor.u32 %v12081_v10, %v10407_v61  ;;  %4327 = vmatpush.bf16.msrb.mxu2 %v10346_v57  ;;  %v16155_v61 = vld [vmem:[#allocation50_spill] sm:$0xff] }
 0x499   :  { %2995 = vmatmul.bf16.gmra.mxu1 %v16150_v38  ;;  %4189 = vmatpush.bf16.msrb.mxu0 %v10598_v21 }
 0x49a   :  { %v3199_v7 = vrot.slane %v3092_v51, 1  ;;  %3064 = vmatmul.bf16.gmra.mxu2 %v16055_v24  ;;  %4396 = vmatpush.bf16.msrb.mxu3 %v10410_v2 }
 0x49b   :  { %3133 = vmatmul.bf16.gmra.mxu3 %v16056_v1 }
 0x49c   :  { %v13547_v26 = vadd.f32 %v3199_v7, %v16151_v39 }
 0x49d   :  { %v3025_v42 = vpop.f32.mrf.mxu2  ;;  %v2889_v60 = vpop.f32.mrf.mxu0 }
 0x49e   :  { %16152 = vst [vmem:[#allocation83_spill] sm:$0xff] %v13547_v26  ;;  %v3026_v48 = vadd.f32 %v3025_v42, %v2957_v3  ;;  %v3094_v29 = vpop.f32.mrf.mxu3  ;;  %v2890_v8 = vadd.f32 %v2889_v60, %v13374_v27  ;;  %v2958_v51 = vpop.f32.mrf.mxu1  ;;  %v16153_v26 = vld [vmem:[#allocation87_spill] sm:$0xff]  ;;  %v10662_v3 = vor.u32 %v12146_v62, %v10661_v37  ;;  %v12063_v62 = vld [vmem:[#allocation5 + $0x664] sm:$0xf] }
 0x4a0   :  { %v3095_v23 = vadd.f32 %v3094_v29, %v3026_v48  ;;  %v2959_v7 = vadd.f32 %v2958_v51, %v2890_v8  ;;  %4258 = vmatpush.bf16.msrb.mxu1 %v10662_v3  ;;  %v10335_v3 = vld [vmem:[#allocation5 + $0x668] sm:$0xf0] }
 0x4a2   :  { %v3201_v39 = vrot.slane %v3095_v23, 1  ;;  %v16156_v23 = vld [vmem:[#allocation51_spill] sm:$0xff] }
 0x4a4   :  { %v13551_v19 = vadd.f32 %v3201_v39, %v16153_v26  ;;  %v16157_v26 = vld [vmem:[#allocation88_spill] sm:$0xff]  ;;  %v16159_v39 = vld [vmem:[#allocation89_spill] sm:$0xff] }
 0x4a5   :  { %v3027_v54 = vpop.f32.mrf.mxu2  ;;  %v2892_v17 = vpop.f32.mrf.mxu0 }
 0x4a6   :  { %16154 = vst [vmem:[#allocation84_spill] sm:$0xff] %v13551_v19  ;;  %v3028_v42 = vadd.f32 %v3027_v54, %v2959_v7  ;;  %v3096_v1 = vpop.f32.mrf.mxu3  ;;  %v2893_v9 = vadd.f32 %v2892_v17, %v13384_v4  ;;  %v2961_v27 = vpop.f32.mrf.mxu1 }
 0x4a8   :  { %v3097_v57 = vadd.f32 %v3096_v1, %v3028_v42  ;;  %v2962_v10 = vadd.f32 %v2961_v27, %v2893_v9  ;;  %2931 = vmatmul.bf16.gmra.mxu0 %v16155_v61  ;;  %v10589_v42 = vld [vmem:[#allocation5 + $0x860] sm:$0xf]  ;;  %v10338_v9 = vor.u32 %v12063_v62, %v10335_v3  ;;  %v12128_v27 = vld [vmem:[#allocation5 + $0x864] sm:$0xf0] }
 0x4a9   :  { %3000 = vmatmul.bf16.gmra.mxu1 %v16156_v23  ;;  %v10653_v62 = vld [vmem:[#allocation5 + $0x8e0] sm:$0xf] }
 0x4aa   :  { %v3203_v48 = vrot.slane %v3097_v57, 1  ;;  %3069 = vmatmul.bf16.gmra.mxu2 %v12978_v6  ;;  %v12079_v57 = vld [vmem:[#allocation5 + $0x6e4] sm:$0xf] }
 0x4ab   :  { %3138 = vmatmul.bf16.gmra.mxu3 %v12982_v31  ;;  %4328 = vmatpush.bf16.msrb.mxu2 %v10338_v9 }
 0x4ac   :  { %v13559_v29 = vadd.f32 %v3203_v48, %v16157_v26  ;;  %v10399_v48 = vld [vmem:[#allocation5 + $0x6e8] sm:$0xf0] }
 0x4ad   :  { %v3030_v54 = vpop.f32.mrf.mxu2  ;;  %v2894_v4 = vpop.f32.mrf.mxu0 }
 0x4ae   :  { %16158 = vst [vmem:[#allocation85_spill] sm:$0xff] %v13559_v29  ;;  %v3031_v60 = vadd.f32 %v3030_v54, %v2962_v10  ;;  %v3099_v21 = vpop.f32.mrf.mxu3  ;;  %v2895_v2 = vadd.f32 %v2894_v4, %v13390_v32  ;;  %v2963_v1 = vpop.f32.mrf.mxu1  ;;  %v10590_v29 = vor.u32 %v12128_v27, %v10589_v42  ;;  %v10402_v32 = vor.u32 %v12079_v57, %v10399_v48 }
 0x4b0   :  { %v3100_v8 = vadd.f32 %v3099_v21, %v3031_v60  ;;  %v2964_v51 = vadd.f32 %v2963_v1, %v2895_v2  ;;  %4190 = vmatpush.bf16.msrb.mxu0 %v10590_v29  ;;  %4397 = vmatpush.bf16.msrb.mxu3 %v10402_v32  ;;  %v16161_v1 = vld [vmem:[#allocation16_spill] sm:$0xff] }
 0x4b2   :  { %v3205_v7 = vrot.slane %v3100_v8, 1 }
 0x4b4   :  { %v13563_v37 = vadd.f32 %v3205_v7, %v16159_v39  ;;  %v16162_v7 = vld [vmem:[#allocation17_spill] sm:$0xff] }
 0x4b5   :  { %v3032_v17 = vpop.f32.mrf.mxu2  ;;  %v2897_v54 = vpop.f32.mrf.mxu0 }
 0x4b6   :  { %16160 = vst [vmem:[#allocation86_spill] sm:$0xff] %v13563_v37  ;;  %v3033_v10 = vadd.f32 %v3032_v17, %v2964_v51  ;;  %v3101_v26 = vpop.f32.mrf.mxu3  ;;  %v2898_v60 = vadd.f32 %v2897_v54, %v13400_v16  ;;  %v2966_v21 = vpop.f32.mrf.mxu1  ;;  %v16163_v51 = vld [vmem:[#allocation90_spill] sm:$0xff]  ;;  %v12144_v16 = vld [vmem:[#allocation5 + $0x8e4] sm:$0xf0]  ;;  %v16165_v54 = vld [vmem:[#allocation91_spill] sm:$0xff] }
 0x4b7   :  { %v10654_v42 = vor.u32 %v12144_v16, %v10653_v62 }
 0x4b8   :  { %v3102_v4 = vadd.f32 %v3101_v26, %v3033_v10  ;;  %v2967_v2 = vadd.f32 %v2966_v21, %v2898_v60  ;;  %3921 = vmatmul.bf16.vlgmr.msra.gmra.mxu0 %v16161_v1 }
 0x4b9   :  { %3990 = vmatmul.bf16.vlgmr.msra.gmra.mxu1 %v16162_v7 }
 0x4ba   :  { %v3207_v8 = vrot.slane %v3102_v4, 1  ;;  %4059 = vmatmul.bf16.vlgmr.msra.gmra.mxu2 %v12660_v55  ;;  %4259 = vmatpush.bf16.msrb.mxu1 %v10654_v42 }
 0x4bb   :  { %4128 = vmatmul.bf16.vlgmr.msra.gmra.mxu3 %v12662_v58 }
 0x4bc   :  { %v13571_v39 = vadd.f32 %v3207_v8, %v16163_v51 }
 0x4bd   :  { %v3035_v3 = vpop.f32.mrf.mxu2  ;;  %v2899_v9 = vpop.f32.mrf.mxu0 }
 0x4be   :  { %16164 = vst [vmem:[#allocation87_spill] sm:$0xff] %v13571_v39  ;;  %v3036_v17 = vadd.f32 %v3035_v3, %v2967_v2  ;;  %v3104_v29 = vpop.f32.mrf.mxu3  ;;  %v2900_v27 = vadd.f32 %v2899_v9, %v13406_v56  ;;  %v2968_v57 = vpop.f32.mrf.mxu1  ;;  %v16167_v3 = vld [vmem:[#allocation92_spill] sm:$0xff]  ;;  %v10581_v9 = vld [vmem:[#allocation5 + $0x850] sm:$0xf] }
 0x4c0   :  { %v3105_v48 = vadd.f32 %v3104_v29, %v3036_v17  ;;  %v2969_v10 = vadd.f32 %v2968_v57, %v2900_v27  ;;  %v12061_v17 = vld [vmem:[#allocation5 + $0x654] sm:$0xf]  ;;  %v10327_v29 = vld [vmem:[#allocation5 + $0x658] sm:$0xf0]  ;;  %v12126_v57 = vld [vmem:[#allocation5 + $0x854] sm:$0xf0] }
 0x4c2   :  { %v3209_v26 = vrot.slane %v3105_v48, 1  ;;  %v12077_v48 = vld [vmem:[#allocation5 + $0x6d4] sm:$0xf] }
 0x4c4   :  { %v13575_v32 = vadd.f32 %v3209_v26, %v16165_v54 }
 0x4c5   :  { %v3037_v60 = vpop.f32.mrf.mxu2  ;;  %v2902_v8 = vpop.f32.mrf.mxu0 }
 0x4c6   :  { %16166 = vst [vmem:[#allocation88_spill] sm:$0xff] %v13575_v32  ;;  %v3038_v21 = vadd.f32 %v3037_v60, %v2969_v10  ;;  %v3106_v4 = vpop.f32.mrf.mxu3  ;;  %v2903_v51 = vadd.f32 %v2902_v8, %v13416_v30  ;;  %v2971_v62 = vpop.f32.mrf.mxu1  ;;  %v10330_v30 = vor.u32 %v12061_v17, %v10327_v29  ;;  %v10391_v10 = vld [vmem:[#allocation5 + $0x6d8] sm:$0xf0]  ;;  %v10645_v17 = vld [vmem:[#allocation5 + $0x8d0] sm:$0xf] }
 0x4c7   :  { %v12142_v29 = vld [vmem:[#allocation5 + $0x8d4] sm:$0xf0] }
 0x4c8   :  { %v3107_v2 = vadd.f32 %v3106_v4, %v3038_v21  ;;  %v2972_v16 = vadd.f32 %v2971_v62, %v2903_v51  ;;  %3926 = vmatmul.bf16.gmra.mxu0 %v12668_v11  ;;  %v10582_v21 = vor.u32 %v12126_v57, %v10581_v9  ;;  %v10394_v4 = vor.u32 %v12077_v48, %v10391_v10 }
 0x4c9   :  { %3995 = vmatmul.bf16.gmra.mxu1 %v12670_v12  ;;  %4329 = vmatpush.bf16.msrb.mxu2 %v10330_v30 }
 0x4ca   :  { %v3211_v56 = vrot.slane %v3107_v2, 1  ;;  %4064 = vmatmul.bf16.gmra.mxu2 %v12672_v13  ;;  %4191 = vmatpush.bf16.msrb.mxu0 %v10582_v21 }
 0x4cb   :  { %4133 = vmatmul.bf16.gmra.mxu3 %v12674_v14 }
 0x4cc   :  { %v13583_v42 = vadd.f32 %v3211_v56, %v16167_v3  ;;  %4398 = vmatpush.bf16.msrb.mxu3 %v10394_v4  ;;  %v16169_v3 = vld [vmem:[#allocation93_spill] sm:$0xff] }
 0x4cd   :  { %v3040_v27 = vpop.f32.mrf.mxu2  ;;  %v2904_v60 = vpop.f32.mrf.mxu0 }
 0x4ce   :  { %16168 = vst [vmem:[#allocation89_spill] sm:$0xff] %v13583_v42  ;;  %v3041_v26 = vadd.f32 %v3040_v27, %v2972_v16  ;;  %v3109_v54 = vpop.f32.mrf.mxu3  ;;  %v2905_v8 = vadd.f32 %v2904_v60, %v13422_v18  ;;  %v2973_v51 = vpop.f32.mrf.mxu1  ;;  %v10646_v16 = vor.u32 %v12142_v29, %v10645_v17  ;;  %v10319_v17 = vld [vmem:[#allocation5 + $0x648] sm:$0xf0]  ;;  %v10573_v29 = vld [vmem:[#allocation5 + $0x840] sm:$0xf] }
 0x4d0   :  { %v3110_v62 = vadd.f32 %v3109_v54, %v3041_v26  ;;  %v2974_v2 = vadd.f32 %v2973_v51, %v2905_v8  ;;  %4260 = vmatpush.bf16.msrb.mxu1 %v10646_v16  ;;  %v16171_v26 = vld [vmem:[#allocation94_spill] sm:$0xff] }
 0x4d2   :  { %v3213_v56 = vrot.slane %v3110_v62, 1 }
 0x4d4   :  { %v13587_v42 = vadd.f32 %v3213_v56, %v16169_v3  ;;  %v12059_v3 = vld [vmem:[#allocation5 + $0x644] sm:$0xf] }
 0x4d5   :  { %v3042_v32 = vpop.f32.mrf.mxu2  ;;  %v2907_v9 = vpop.f32.mrf.mxu0 }
 0x4d6   :  { %16170 = vst [vmem:[#allocation16_spill] sm:$0xff] %v13587_v42  ;;  %v3043_v27 = vadd.f32 %v3042_v32, %v2974_v2  ;;  %v3111_v39 = vpop.f32.mrf.mxu3  ;;  %v2908_v57 = vadd.f32 %v2907_v9, %v13432_v5  ;;  %v2976_v18 = vpop.f32.mrf.mxu1  ;;  %v16173_v2 = vld [vmem:[#allocation95_spill] sm:$0xff]  ;;  %v12124_v9 = vld [vmem:[#allocation5 + $0x844] sm:$0xf0] }
 0x4d8   :  { %v3112_v30 = vadd.f32 %v3111_v39, %v3043_v27  ;;  %v2977_v48 = vadd.f32 %v2976_v18, %v2908_v57  ;;  %3931 = vmatmul.bf16.gmra.mxu0 %v12684_v33  ;;  %v10322_v27 = vor.u32 %v12059_v3, %v10319_v17  ;;  %v12075_v57 = vld [vmem:[#allocation5 + $0x6c4] sm:$0xf]  ;;  %v10383_v18 = vld [vmem:[#allocation5 + $0x6c8] sm:$0xf0] }
 0x4d9   :  { %4000 = vmatmul.bf16.gmra.mxu1 %v12686_v34 }
 0x4da   :  { %v3215_v10 = vrot.slane %v3112_v30, 1  ;;  %4069 = vmatmul.bf16.gmra.mxu2 %v12690_v35 }
 0x4db   :  { %4138 = vmatmul.bf16.gmra.mxu3 %v12694_v36  ;;  %4330 = vmatpush.bf16.msrb.mxu2 %v10322_v27 }
 0x4dc   :  { %v13595_v54 = vadd.f32 %v3215_v10, %v16171_v26  ;;  %v10574_v26 = vor.u32 %v12124_v9, %v10573_v29 }
 0x4dd   :  { %v3045_v32 = vpop.f32.mrf.mxu2  ;;  %v2909_v5 = vpop.f32.mrf.mxu0 }
 0x4de   :  { %16172 = vst [vmem:[#allocation17_spill] sm:$0xff] %v13595_v54  ;;  %v3046_v60 = vadd.f32 %v3045_v32, %v2977_v48  ;;  %v3114_v21 = vpop.f32.mrf.mxu3  ;;  %v2910_v4 = vadd.f32 %v2909_v5, %v13438_v0  ;;  %v2978_v39 = vpop.f32.mrf.mxu1  ;;  %v10386_v0 = vor.u32 %v12075_v57, %v10383_v18  ;;  %4192 = vmatpush.bf16.msrb.mxu0 %v10574_v26 }
 0x4e0   :  { %v3115_v8 = vadd.f32 %v3114_v21, %v3046_v60  ;;  %v2979_v51 = vadd.f32 %v2978_v39, %v2910_v4  ;;  %4399 = vmatpush.bf16.msrb.mxu3 %v10386_v0  ;;  %v16175_v4 = vld [vmem:[#allocation18_spill] sm:$0xff] }
 0x4e2   :  { %v3217_v62 = vrot.slane %v3115_v8, 1  ;;  %v16176_v8 = vld [vmem:[#allocation19_spill] sm:$0xff] }
 0x4e4   :  { %v13599_v56 = vadd.f32 %v3217_v62, %v16173_v2  ;;  %v10637_v2 = vld [vmem:[#allocation5 + $0x8c0] sm:$0xf] }
 0x4e5   :  { %v3047_v16 = vpop.f32.mrf.mxu2  ;;  %v2912_v10 = vpop.f32.mrf.mxu0 }
 0x4e6   :  { %16174 = vst [vmem:[#allocation90_spill] sm:$0xff] %v13599_v56  ;;  %v3048_v30 = vadd.f32 %v3047_v16, %v2979_v51  ;;  %v3116_v48 = vpop.f32.mrf.mxu3  ;;  %v2913_v32 = vadd.f32 %v2912_v10, %v13448_v49  ;;  %v2981_v60 = vpop.f32.mrf.mxu1  ;;  %v16177_v51 = vld [vmem:[#allocation96_spill] sm:$0xff]  ;;  %v16179_v10 = vld [vmem:[#allocation97_spill] sm:$0xff] }
 0x4e7   :  { %v12140_v49 = vld [vmem:[#allocation5 + $0x8c4] sm:$0xf0] }
 0x4e8   :  { %v3117_v21 = vadd.f32 %v3116_v48, %v3048_v30  ;;  %v2982_v5 = vadd.f32 %v2981_v60, %v2913_v32  ;;  %3936 = vmatmul.bf16.gmra.mxu0 %v16175_v4  ;;  %v10638_v17 = vor.u32 %v12140_v49, %v10637_v2  ;;  %v16181_v49 = vld [vmem:[#allocation22_spill] sm:$0xff] }
 0x4e9   :  { %4005 = vmatmul.bf16.gmra.mxu1 %v16176_v8 }
 0x4ea   :  { %v3219_v39 = vrot.slane %v3117_v21, 1  ;;  %4074 = vmatmul.bf16.gmra.mxu2 %v16097_v15  ;;  %4261 = vmatpush.bf16.msrb.mxu1 %v10638_v17  ;;  %v16183_v17 = vld [vmem:[#allocation24_spill] sm:$0xff] }
 0x4eb   :  { %4143 = vmatmul.bf16.gmra.mxu3 %v16098_v50 }
 0x4ec   :  { %v13607_v62 = vadd.f32 %v3219_v39, %v16177_v51 }
 0x4ed   :  { %v3050_v3 = vpop.f32.mrf.mxu2  ;;  %v2914_v27 = vpop.f32.mrf.mxu0 }
 0x4ee   :  { %16178 = vst [vmem:[#allocation91_spill] sm:$0xff] %v13607_v62  ;;  %v3051_v29 = vadd.f32 %v3050_v3, %v2982_v5  ;;  %v3119_v16 = vpop.f32.mrf.mxu3  ;;  %v2915_v9 = vadd.f32 %v2914_v27, %v13454_v28  ;;  %v2983_v57 = vpop.f32.mrf.mxu1  ;;  %v16182_v3 = vld [vmem:[#allocation23_spill] sm:$0xff] }
 0x4f0   :  { %v3120_v18 = vadd.f32 %v3119_v16, %v3051_v29  ;;  %v2984_v30 = vadd.f32 %v2983_v57, %v2915_v9  ;;  %v16184_v29 = vld [vmem:[#allocation25_spill] sm:$0xff]  ;;  %v16185_v16 = vld [vmem:[#allocation98_spill] sm:$0xff]  ;;  %v10311_v57 = vld [vmem:[#allocation5 + $0x638] sm:$0xf0] }
 0x4f1   :  { %v12057_v9 = vld [vmem:[#allocation5 + $0x634] sm:$0xf] }
 0x4f2   :  { %v3221_v48 = vrot.slane %v3120_v18, 1  ;;  %v10565_v18 = vld [vmem:[#allocation5 + $0x830] sm:$0xf] }
 0x4f4   :  { %v13611_v26 = vadd.f32 %v3221_v48, %v16179_v10  ;;  %v12122_v48 = vld [vmem:[#allocation5 + $0x834] sm:$0xf0]  ;;  %v12073_v10 = vld [vmem:[#allocation5 + $0x6b4] sm:$0xf] }
 0x4f5   :  { %v3052_v0 = vpop.f32.mrf.mxu2  ;;  %v2917_v21 = vpop.f32.mrf.mxu0 }
 0x4f6   :  { %16180 = vst [vmem:[#allocation92_spill] sm:$0xff] %v13611_v26  ;;  %v3053_v32 = vadd.f32 %v3052_v0, %v2984_v30  ;;  %v3121_v60 = vpop.f32.mrf.mxu3  ;;  %v2918_v39 = vadd.f32 %v2917_v21, %v13464_v44  ;;  %v2986_v51 = vpop.f32.mrf.mxu1  ;;  %v10314_v44 = vor.u32 %v12057_v9, %v10311_v57  ;;  %v10375_v0 = vld [vmem:[#allocation5 + $0x6b8] sm:$0xf0]  ;;  %v10629_v9 = vld [vmem:[#allocation5 + $0x8b0] sm:$0xf] }
 0x4f7   :  { %v12138_v57 = vld [vmem:[#allocation5 + $0x8b4] sm:$0xf0] }
 0x4f8   :  { %v3122_v5 = vadd.f32 %v3121_v60, %v3053_v32  ;;  %v2987_v2 = vadd.f32 %v2986_v51, %v2918_v39  ;;  %3941 = vmatmul.bf16.gmra.mxu0 %v16181_v49  ;;  %v10566_v39 = vor.u32 %v12122_v48, %v10565_v18  ;;  %v10378_v51 = vor.u32 %v12073_v10, %v10375_v0  ;;  %v16189_v48 = vld [vmem:[#allocation77_spill] sm:$0xff] }
 0x4f9   :  { %4010 = vmatmul.bf16.gmra.mxu1 %v16182_v3  ;;  %4331 = vmatpush.bf16.msrb.mxu2 %v10314_v44 }
 0x4fa   :  { %v3223_v28 = vrot.slane %v3122_v5, 1  ;;  %4079 = vmatmul.bf16.gmra.mxu2 %v16183_v17  ;;  %4193 = vmatpush.bf16.msrb.mxu0 %v10566_v39 }
 0x4fb   :  { %4148 = vmatmul.bf16.gmra.mxu3 %v16184_v29 }
 0x4fc   :  { %v13619_v27 = vadd.f32 %v3223_v28, %v16185_v16  ;;  %4400 = vmatpush.bf16.msrb.mxu3 %v10378_v51 }
 0x4fd   :  { %v3055_v30 = vpop.f32.mrf.mxu2  ;;  %v2919_v21 = vpop.f32.mrf.mxu0 }
 0x4fe   :  { %16186 = vst [vmem:[#allocation93_spill] sm:$0xff] %v13619_v27  ;;  %v3056_v32 = vadd.f32 %v3055_v30, %v2987_v2  ;;  %v3124_v60 = vpop.f32.mrf.mxu3  ;;  %v2920_v5 = vadd.f32 %v2919_v21, %v13470_v43  ;;  %v2988_v26 = vpop.f32.mrf.mxu1  ;;  %v16187_v27 = vld [vmem:[#allocation99_spill] sm:$0xff]  ;;  %v10630_v2 = vor.u32 %v12138_v57, %v10629_v9  ;;  %v16194_v21 = vld [vmem:[#allocation100_spill] sm:$0xff] }
 0x500   :  { %v3125_v62 = vadd.f32 %v3124_v60, %v3056_v32  ;;  %v2989_v28 = vadd.f32 %v2988_v26, %v2920_v5  ;;  %4262 = vmatpush.bf16.msrb.mxu1 %v10630_v2  ;;  %v16190_v32 = vld [vmem:[#allocation26_spill] sm:$0xff]  ;;  %v16193_v60 = vld [vmem:[#allocation29_spill] sm:$0xff] }
 0x502   :  { %v3225_v16 = vrot.slane %v3125_v62, 1  ;;  %v16191_v62 = vld [vmem:[#allocation27_spill] sm:$0xff] }
 0x504   :  { %v13623_v56 = vadd.f32 %v3225_v16, %v16187_v27  ;;  %v16192_v27 = vld [vmem:[#allocation28_spill] sm:$0xff] }
 0x505   :  { %v3057_v54 = vpop.f32.mrf.mxu2  ;;  %v2922_v18 = vpop.f32.mrf.mxu0 }
 0x506   :  { %16188 = vst [vmem:[#allocation94_spill] sm:$0xff] %v13623_v56  ;;  %v3058_v30 = vadd.f32 %v3057_v54, %v2989_v28  ;;  %v3126_v42 = vpop.f32.mrf.mxu3  ;;  %v2923_v10 = vadd.f32 %v2922_v18, %v16189_v48  ;;  %v2991_v43 = vpop.f32.mrf.mxu1  ;;  %v12055_v48 = vld [vmem:[#allocation5 + $0x624] sm:$0xf] }
 0x508   :  { %v3127_v44 = vadd.f32 %v3126_v42, %v3058_v30  ;;  %v2992_v0 = vadd.f32 %v2991_v43, %v2923_v10  ;;  %3946 = vmatmul.bf16.gmra.mxu0 %v16190_v32  ;;  %v16196_v30 = vld [vmem:[#allocation101_spill] sm:$0xff]  ;;  %v10557_v43 = vld [vmem:[#allocation5 + $0x820] sm:$0xf] }
 0x509   :  { %4015 = vmatmul.bf16.gmra.mxu1 %v16191_v62  ;;  %v10303_v10 = vld [vmem:[#allocation5 + $0x628] sm:$0xf0] }
 0x50a   :  { %v3227_v26 = vrot.slane %v3127_v44, 1  ;;  %4084 = vmatmul.bf16.gmra.mxu2 %v16192_v27  ;;  %v10306_v56 = vor.u32 %v12055_v48, %v10303_v10 }
 0x50b   :  { %4153 = vmatmul.bf16.gmra.mxu3 %v16193_v60 }
 0x50c   :  { %v13631_v39 = vadd.f32 %v3227_v26, %v16194_v21  ;;  %v12120_v26 = vld [vmem:[#allocation5 + $0x824] sm:$0xf0]  ;;  %v12071_v21 = vld [vmem:[#allocation5 + $0x6a4] sm:$0xf]  ;;  %4332 = vmatpush.bf16.msrb.mxu2 %v10306_v56 }
 0x50d   :  { %v3060_v54 = vpop.f32.mrf.mxu2  ;;  %v2924_v28 = vpop.f32.mrf.mxu0  ;;  %v10558_v19 = vor.u32 %v12120_v26, %v10557_v43 }
 0x50e   :  { %16195 = vst [vmem:[#allocation95_spill] sm:$0xff] %v13631_v39  ;;  %v3061_v51 = vadd.f32 %v3060_v54, %v2992_v0  ;;  %v3129_v5 = vpop.f32.mrf.mxu3  ;;  %v2925_v16 = vadd.f32 %v2924_v28, %v13486_v47  ;;  %v2993_v42 = vpop.f32.mrf.mxu1  ;;  %v10367_v39 = vld [vmem:[#allocation5 + $0x6a8] sm:$0xf0] }
 0x50f   :  { %v10370_v47 = vor.u32 %v12071_v21, %v10367_v39  ;;  %4194 = vmatpush.bf16.msrb.mxu0 %v10558_v19  ;;  %v10621_v39 = vld [vmem:[#allocation5 + $0x8a0] sm:$0xf] }
 0x510   :  { %v3130_v9 = vadd.f32 %v3129_v5, %v3061_v51  ;;  %v2994_v57 = vadd.f32 %v2993_v42, %v2925_v16  ;;  %v16198_v42 = vld [vmem:[#allocation30_spill] sm:$0xff] }
 0x511   :  { %4401 = vmatpush.bf16.msrb.mxu3 %v10370_v47 }
 0x512   :  { %v3229_v2 = vrot.slane %v3130_v9, 1 }
 0x514   :  { %v13635_v18 = vadd.f32 %v3229_v2, %v16196_v30  ;;  %v16199_v2 = vld [vmem:[#allocation31_spill] sm:$0xff]  ;;  %v16201_v30 = vld [vmem:[#allocation102_spill] sm:$0xff] }
 0x515   :  { %v3062_v44 = vpop.f32.mrf.mxu2  ;;  %v2927_v37 = vpop.f32.mrf.mxu0 }
 0x516   :  { %16197 = vst [vmem:[#allocation18_spill] sm:$0xff] %v13635_v18  ;;  %v3063_v0 = vadd.f32 %v3062_v44, %v2994_v57  ;;  %v3131_v54 = vpop.f32.mrf.mxu3  ;;  %v2928_v51 = vadd.f32 %v2927_v37, %v13496_v25  ;;  %v2996_v5 = vpop.f32.mrf.mxu1  ;;  %v16200_v57 = vld [vmem:[#allocation33_spill] sm:$0xff]  ;;  %v12136_v25 = vld [vmem:[#allocation5 + $0x8a4] sm:$0xf0] }
 0x517   :  { %v10622_v56 = vor.u32 %v12136_v25, %v10621_v39  ;;  %v16203_v44 = vld [vmem:[#allocation108_spill] sm:$0xff] }
 0x518   :  { %v3132_v28 = vadd.f32 %v3131_v54, %v3063_v0  ;;  %v2997_v16 = vadd.f32 %v2996_v5, %v2928_v51  ;;  %3951 = vmatmul.bf16.gmra.mxu0 %v16198_v42  ;;  %v16204_v51 = vld [vmem:[#allocation80_spill] sm:$0xff] }
 0x519   :  { %4020 = vmatmul.bf16.gmra.mxu1 %v16199_v2 }
 0x51a   :  { %v3231_v9 = vrot.slane %v3132_v28, 1  ;;  %4089 = vmatmul.bf16.gmra.mxu2 %v16123_v22  ;;  %4263 = vmatpush.bf16.msrb.mxu1 %v10622_v56  ;;  %v16208_v56 = vld [vmem:[#allocation36_spill] sm:$0xff] }
 0x51b   :  { %4158 = vmatmul.bf16.gmra.mxu3 %v16200_v57  ;;  %v10613_v57 = vld [vmem:[#allocation5 + $0x890] sm:$0xf] }
 0x51c   :  { %v13643_v48 = vadd.f32 %v3231_v9, %v16201_v30 }
 0x51d   :  { %v3065_v37 = vpop.f32.mrf.mxu2  ;;  %v2929_v43 = vpop.f32.mrf.mxu0 }
 0x51e   :  { %16202 = vst [vmem:[#allocation19_spill] sm:$0xff] %v13643_v48  ;;  %v3066_v10 = vadd.f32 %v3065_v37, %v2997_v16  ;;  %v3134_v19 = vpop.f32.mrf.mxu3  ;;  %v2930_v26 = vadd.f32 %v2929_v43, %v16203_v44  ;;  %v2998_v21 = vpop.f32.mrf.mxu1  ;;  %v16206_v37 = vld [vmem:[#allocation34_spill] sm:$0xff]  ;;  %v16207_v44 = vld [vmem:[#allocation35_spill] sm:$0xff] }
 0x520   :  { %v3135_v0 = vadd.f32 %v3134_v19, %v3066_v10  ;;  %v2999_v54 = vadd.f32 %v2998_v21, %v2930_v26  ;;  %v16209_v10 = vld [vmem:[#allocation37_spill] sm:$0xff]  ;;  %v12053_v19 = vld [vmem:[#allocation5 + $0x614] sm:$0xf]  ;;  %v10295_v26 = vld [vmem:[#allocation5 + $0x618] sm:$0xf0] }
 0x521   :  { %v10549_v21 = vld [vmem:[#allocation5 + $0x810] sm:$0xf] }
 0x522   :  { %v3233_v47 = vrot.slane %v3135_v0, 1  ;;  %v16210_v0 = vld [vmem:[#allocation103_spill] sm:$0xff] }
 0x524   :  { %v13647_v5 = vadd.f32 %v3233_v47, %v16204_v51  ;;  %v10298_v47 = vor.u32 %v12053_v19, %v10295_v26  ;;  %v10359_v51 = vld [vmem:[#allocation5 + $0x698] sm:$0xf0] }
 0x525   :  { %v3067_v28 = vpop.f32.mrf.mxu2  ;;  %v2932_v48 = vpop.f32.mrf.mxu0 }
 0x526   :  { %16205 = vst [vmem:[#allocation96_spill] sm:$0xff] %v13647_v5  ;;  %v3068_v9 = vadd.f32 %v3067_v28, %v2999_v54  ;;  %v3136_v30 = vpop.f32.mrf.mxu3  ;;  %v2933_v18 = vadd.f32 %v2932_v48, %v13512_v52  ;;  %v3001_v39 = vpop.f32.mrf.mxu1  ;;  %v12118_v52 = vld [vmem:[#allocation5 + $0x814] sm:$0xf0]  ;;  %v12069_v48 = vld [vmem:[#allocation5 + $0x694] sm:$0xf]  ;;  %4333 = vmatpush.bf16.msrb.mxu2 %v10298_v47 }
 0x527   :  { %v10550_v28 = vor.u32 %v12118_v52, %v10549_v21 }
 0x528   :  { %v3137_v16 = vadd.f32 %v3136_v30, %v3068_v9  ;;  %v3002_v25 = vadd.f32 %v3001_v39, %v2933_v18  ;;  %3956 = vmatmul.bf16.gmra.mxu0 %v16206_v37  ;;  %v10362_v9 = vor.u32 %v12069_v48, %v10359_v51 }
 0x529   :  { %4025 = vmatmul.bf16.gmra.mxu1 %v16207_v44  ;;  %4195 = vmatpush.bf16.msrb.mxu0 %v10550_v28 }
 0x52a   :  { %v3235_v43 = vrot.slane %v3137_v16, 1  ;;  %4094 = vmatmul.bf16.gmra.mxu2 %v16208_v56  ;;  %4402 = vmatpush.bf16.msrb.mxu3 %v10362_v9  ;;  %v16215_v9 = vld [vmem:[#allocation39_spill] sm:$0xff] }
 0x52b   :  { %4163 = vmatmul.bf16.gmra.mxu3 %v16209_v10 }
 0x52c   :  { %v13655_v54 = vadd.f32 %v3235_v43, %v16210_v0  ;;  %v12134_v43 = vld [vmem:[#allocation5 + $0x894] sm:$0xf0] }
 0x52d   :  { %v3070_v18 = vpop.f32.mrf.mxu2  ;;  %v2934_v16 = vpop.f32.mrf.mxu0  ;;  %v10614_v19 = vor.u32 %v12134_v43, %v10613_v57  ;;  %v16216_v57 = vld [vmem:[#allocation105_spill] sm:$0xff] }
 0x52e   :  { %16211 = vst [vmem:[#allocation97_spill] sm:$0xff] %v13655_v54  ;;  %v3071_v30 = vadd.f32 %v3070_v18, %v3002_v25  ;;  %v3139_v39 = vpop.f32.mrf.mxu3  ;;  %v2935_v5 = vadd.f32 %v2934_v16, %v13518_v20  ;;  %v3003_v10 = vpop.f32.mrf.mxu1  ;;  %v16212_v54 = vld [vmem:[#allocation104_spill] sm:$0xff]  ;;  %v16214_v18 = vld [vmem:[#allocation38_spill] sm:$0xff] }
 0x52f   :  { %4264 = vmatpush.bf16.msrb.mxu1 %v10614_v19  ;;  %v10287_v19 = vld [vmem:[#allocation5 + $0x608] sm:$0xf0] }
 0x530   :  { %v3140_v56 = vadd.f32 %v3139_v39, %v3071_v30  ;;  %v3004_v0 = vadd.f32 %v3003_v10, %v2935_v5 }
 0x532   :  { %v3237_v26 = vrot.slane %v3140_v56, 1 }
 0x534   :  { %v13659_v22 = vadd.f32 %v3237_v26, %v16212_v54  ;;  %v10541_v26 = vld [vmem:[#allocation5 + $0x800] sm:$0xf] }
 0x535   :  { %v3072_v21 = vpop.f32.mrf.mxu2  ;;  %v3922_v48 = vpop.f32.mrf.mxu0 }
 0x536   :  { %16213 = vst [vmem:[#allocation98_spill] sm:$0xff] %v13659_v22  ;;  %v3073_v25 = vadd.f32 %v3072_v21, %v3004_v0  ;;  %v3141_v52 = vpop.f32.mrf.mxu3  ;;  %v3991_v47 = vpop.f32.mrf.mxu1  ;;  %v12051_v0 = vld [vmem:[#allocation5 + $0x604] sm:$0xf]  ;;  %v16218_v22 = vld [vmem:[#allocation42_spill] sm:$0xff] }
 0x537   :  { %v3992_v20 = vadd.f32 %v3991_v47, %v3922_v48  ;;  %v10290_v21 = vor.u32 %v12051_v0, %v10287_v19  ;;  %v10351_v48 = vld [vmem:[#allocation5 + $0x688] sm:$0xf0]  ;;  %v16219_v19 = vld [vmem:[#allocation43_spill] sm:$0xff] }
 0x538   :  { %v3142_v51 = vadd.f32 %v3141_v52, %v3073_v25  ;;  %3961 = vmatmul.bf16.gmra.mxu0 %v16214_v18  ;;  %v12116_v25 = vld [vmem:[#allocation5 + $0x804] sm:$0xf0]  ;;  %v12067_v52 = vld [vmem:[#allocation5 + $0x684] sm:$0xf] }
 0x539   :  { %4030 = vmatmul.bf16.gmra.mxu1 %v16215_v9  ;;  %v10542_v47 = vor.u32 %v12116_v25, %v10541_v26  ;;  %4334 = vmatpush.bf16.msrb.mxu2 %v10290_v21 }
 0x53a   :  { %v3239_v28 = vrot.slane %v3142_v51, 1  ;;  %4099 = vmatmul.bf16.gmra.mxu2 %v16139_v63  ;;  %v10354_v51 = vor.u32 %v12067_v52, %v10351_v48 }
 0x53b   :  { %4168 = vmatmul.bf16.gmra.mxu3 %v16140_v41  ;;  %4196 = vmatpush.bf16.msrb.mxu0 %v10542_v47 }
 0x53c   :  { %v13666_v5 = vadd.f32 %v3239_v28, %v16216_v57  ;;  %4403 = vmatpush.bf16.msrb.mxu3 %v10354_v51 }
 0x53d   :  { %v4060_v56 = vpop.f32.mrf.mxu2  ;;  %v3924_v30 = vpop.f32.mrf.mxu0 }
 0x53e   :  { %16217 = vst [vmem:[#allocation99_spill] sm:$0xff] %v13666_v5  ;;  %v4061_v10 = vadd.f32 %v4060_v56, %v3992_v20  ;;  %v4129_v54 = vpop.f32.mrf.mxu3  ;;  %v3993_v39 = vpop.f32.mrf.mxu1 }
 0x53f   :  { %v3994_v43 = vadd.f32 %v3993_v39, %v3924_v30  ;;  %v10605_v30 = vld [vmem:[#allocation5 + $0x880] sm:$0xf]  ;;  %v12132_v39 = vld [vmem:[#allocation5 + $0x884] sm:$0xf0] }
 0x540   :  { %v13668_v16 = vadd.f32 %v4129_v54, %v4061_v10  ;;  %v10606_v0 = vor.u32 %v12132_v39, %v10605_v30  ;;  %v10599_v39 = vld [vmem:[#allocation5 + $0x878] sm:$0xf0] }
 0x542   :  { %4265 = vmatpush.bf16.msrb.mxu1 %v10606_v0  ;;  %v12097_v0 = vld [vmem:[#allocation5 + $0x774] sm:$0xf] }
 0x545   :  { %v4062_v28 = vpop.f32.mrf.mxu2  ;;  %v3927_v56 = vpop.f32.mrf.mxu0 }
 0x546   :  { %v4063_v20 = vadd.f32 %v4062_v28, %v3994_v43  ;;  %v4131_v57 = vpop.f32.mrf.mxu3  ;;  %v3996_v5 = vpop.f32.mrf.mxu1 }
 0x547   :  { %v3997_v54 = vadd.f32 %v3996_v5, %v3927_v56 }
 0x548   :  { %v13670_v10 = vadd.f32 %v4131_v57, %v4063_v20  ;;  %3966 = vmatmul.bf16.gmra.mxu0 %v16218_v22 }
 0x549   :  { %4035 = vmatmul.bf16.gmra.mxu1 %v16219_v19 }
 0x54a   :  { %4104 = vmatmul.bf16.gmra.mxu2 %v16143_v46  ;;  %v10535_v46 = vld [vmem:[#allocation5 + $0x7f8] sm:$0xf0] }
 0x54b   :  { %4173 = vmatmul.bf16.gmra.mxu3 %v16144_v40  ;;  %v12113_v40 = vld [vmem:[#allocation5 + $0x7f4] sm:$0xf] }
 0x54c   :  { %v10538_v41 = vor.u32 %v12113_v40, %v10535_v46 }
 0x54d   :  { %v4065_v26 = vpop.f32.mrf.mxu2  ;;  %v3929_v25 = vpop.f32.mrf.mxu0 }
 0x54e   :  { %v4066_v43 = vadd.f32 %v4065_v26, %v3997_v54  ;;  %v4134_v21 = vpop.f32.mrf.mxu3  ;;  %v3998_v52 = vpop.f32.mrf.mxu1  ;;  %v12129_v54 = vld [vmem:[#allocation5 + $0x874] sm:$0xf]  ;;  %4534 = vmatpush.bf16.msra.mxu1 %v10538_v41 }
 0x54f   :  { %v3999_v5 = vadd.f32 %v3998_v52, %v3929_v25  ;;  %v10602_v26 = vor.u32 %v12129_v54, %v10599_v39  ;;  %v10663_v25 = vld [vmem:[#allocation5 + $0x8f8] sm:$0xf0] }
 0x550   :  { %v13676_v48 = vadd.f32 %v4134_v21, %v4066_v43  ;;  %v10471_v43 = vld [vmem:[#allocation5 + $0x778] sm:$0xf0]  ;;  %v12145_v21 = vld [vmem:[#allocation5 + $0x8f4] sm:$0xf] }
 0x551   :  { %4603 = vmatpush.bf16.msra.mxu2 %v10602_v26  ;;  %v16220_v26 = vld [vmem:[#allocation49_spill] sm:$0xff] }
 0x555   :  { %v4067_v47 = vpop.f32.mrf.mxu2  ;;  %v3932_v20 = vpop.f32.mrf.mxu0 }
 0x556   :  { %v4068_v51 = vadd.f32 %v4067_v47, %v3999_v5  ;;  %v4136_v28 = vpop.f32.mrf.mxu3  ;;  %v4001_v57 = vpop.f32.mrf.mxu1  ;;  %v10474_v5 = vor.u32 %v12097_v0, %v10471_v43  ;;  %v10666_v47 = vor.u32 %v12145_v21, %v10663_v25 }
 0x557   :  { %v4002_v30 = vadd.f32 %v4001_v57, %v3932_v20 }
 0x558   :  { %v13678_v56 = vadd.f32 %v4136_v28, %v4068_v51  ;;  %3971 = vmatmul.bf16.gmra.mxu0 %v12806_v59  ;;  %4672 = vmatpush.bf16.msra.mxu3 %v10666_v47  ;;  %v12095_v47 = vld [vmem:[#allocation5 + $0x764] sm:$0xf] }
 0x559   :  { %4040 = vmatmul.bf16.gmra.mxu1 %v12808_v53  ;;  %4465 = vmatpush.bf16.msra.mxu0 %v10474_v5  ;;  %v12127_v5 = vld [vmem:[#allocation5 + $0x864] sm:$0xf] }
 0x55a   :  { %4109 = vmatmul.bf16.gmra.mxu2 %v16149_v45 }
 0x55b   :  { %4178 = vmatmul.bf16.gmra.mxu3 %v16150_v38 }
 0x55d   :  { %v4070_v52 = vpop.f32.mrf.mxu2  ;;  %v3934_v20 = vpop.f32.mrf.mxu0 }
 0x55e   :  { %v4071_v51 = vadd.f32 %v4070_v52, %v4002_v30  ;;  %v4139_v28 = vpop.f32.mrf.mxu3  ;;  %v4003_v57 = vpop.f32.mrf.mxu1 }
 0x55f   :  { %v4004_v38 = vadd.f32 %v4003_v57, %v3934_v20  ;;  %v10655_v20 = vld [vmem:[#allocation5 + $0x8e8] sm:$0xf0] }
 0x560   :  { %v13684_v45 = vadd.f32 %v4139_v28, %v4071_v51  ;;  %v10463_v51 = vld [vmem:[#allocation5 + $0x768] sm:$0xf0]  ;;  %v12143_v28 = vld [vmem:[#allocation5 + $0x8e4] sm:$0xf] }
 0x561   :  { %v10466_v57 = vor.u32 %v12095_v47, %v10463_v51 }
 0x563   :  { %4466 = vmatpush.bf16.msra.mxu0 %v10466_v57 }
 0x565   :  { %v4072_v54 = vpop.f32.mrf.mxu2  ;;  %v3937_v60 = vpop.f32.mrf.mxu0 }
 0x566   :  { %v4073_v39 = vadd.f32 %v4072_v54, %v4004_v38  ;;  %v4141_v63 = vpop.f32.mrf.mxu3  ;;  %v4006_v0 = vpop.f32.mrf.mxu1  ;;  %v10658_v54 = vor.u32 %v12143_v28, %v10655_v20 }
 0x567   :  { %v4007_v30 = vadd.f32 %v4006_v0, %v3937_v60 }
 0x568   :  { %v13686_v43 = vadd.f32 %v4141_v63, %v4073_v39  ;;  %3976 = vmatmul.bf16.gmra.mxu0 %v16055_v24  ;;  %v10591_v63 = vld [vmem:[#allocation5 + $0x868] sm:$0xf0]  ;;  %4673 = vmatpush.bf16.msra.mxu3 %v10658_v54 }
 0x569   :  { %4045 = vmatmul.bf16.gmra.mxu1 %v16220_v26  ;;  %v10594_v60 = vor.u32 %v12127_v5, %v10591_v63 }
 0x56a   :  { %4114 = vmatmul.bf16.gmra.mxu2 %v16155_v61  ;;  %v10519_v61 = vld [vmem:[#allocation5 + $0x7d8] sm:$0xf0] }
 0x56b   :  { %4183 = vmatmul.bf16.gmra.mxu3 %v16156_v23  ;;  %4604 = vmatpush.bf16.msra.mxu2 %v10594_v60 }
 0x56d   :  { %v4075_v21 = vpop.f32.mrf.mxu2  ;;  %v3939_v41 = vpop.f32.mrf.mxu0 }
 0x56e   :  { %v4076_v25 = vadd.f32 %v4075_v21, %v4007_v30  ;;  %v4144_v46 = vpop.f32.mrf.mxu3  ;;  %v4008_v40 = vpop.f32.mrf.mxu1 }
 0x56f   :  { %v4009_v52 = vadd.f32 %v4008_v40, %v3939_v41  ;;  %v12111_v41 = vld [vmem:[#allocation5 + $0x7e4] sm:$0xf]  ;;  %v10527_v40 = vld [vmem:[#allocation5 + $0x7e8] sm:$0xf0] }
 0x570   :  { %v13692_v38 = vadd.f32 %v4144_v46, %v4076_v25  ;;  %v10530_v5 = vor.u32 %v12111_v41, %v10527_v40  ;;  %v10455_v40 = vld [vmem:[#allocation5 + $0x758] sm:$0xf0] }
 0x572   :  { %4535 = vmatpush.bf16.msra.mxu1 %v10530_v5  ;;  %v12141_v5 = vld [vmem:[#allocation5 + $0x8d4] sm:$0xf] }
 0x575   :  { %v4077_v39 = vpop.f32.mrf.mxu2  ;;  %v3942_v21 = vpop.f32.mrf.mxu0 }
 0x576   :  { %v4078_v0 = vadd.f32 %v4077_v39, %v4009_v52  ;;  %v4146_v30 = vpop.f32.mrf.mxu3  ;;  %v4011_v23 = vpop.f32.mrf.mxu1 }
 0x577   :  { %v4012_v46 = vadd.f32 %v4011_v23, %v3942_v21 }
 0x578   :  { %v13694_v25 = vadd.f32 %v4146_v30, %v4078_v0  ;;  %4197 = vmatmul.bf16.vlgmr.msrb.gmra.mxu0 %v12668_v11 }
 0x579   :  { %4266 = vmatmul.bf16.vlgmr.msrb.gmra.mxu1 %v12670_v12 }
 0x57a   :  { %4335 = vmatmul.bf16.vlgmr.msrb.gmra.mxu2 %v16161_v1  ;;  %v12125_v1 = vld [vmem:[#allocation5 + $0x854] sm:$0xf] }
 0x57b   :  { %4404 = vmatmul.bf16.vlgmr.msrb.gmra.mxu3 %v16162_v7  ;;  %v10583_v7 = vld [vmem:[#allocation5 + $0x858] sm:$0xf0] }
 0x57c   :  { %v10586_v41 = vor.u32 %v12125_v1, %v10583_v7 }
 0x57d   :  { %v4080_v63 = vpop.f32.mrf.mxu2  ;;  %v3944_v60 = vpop.f32.mrf.mxu0 }
 0x57e   :  { %v4081_v52 = vadd.f32 %v4080_v63, %v4012_v46  ;;  %v4149_v47 = vpop.f32.mrf.mxu3  ;;  %v4013_v51 = vpop.f32.mrf.mxu1  ;;  %v12093_v46 = vld [vmem:[#allocation5 + $0x754] sm:$0xf]  ;;  %v10647_v63 = vld [vmem:[#allocation5 + $0x8d8] sm:$0xf0]  ;;  %4605 = vmatpush.bf16.msra.mxu2 %v10586_v41  ;;  %v16222_v41 = vld [vmem:[#allocation53_spill] sm:$0xff] }
 0x57f   :  { %v4014_v23 = vadd.f32 %v4013_v51, %v3944_v60  ;;  %v10650_v60 = vor.u32 %v12141_v5, %v10647_v63  ;;  %v16221_v5 = vld [vmem:[#allocation52_spill] sm:$0xff] }
 0x580   :  { %v13700_v28 = vadd.f32 %v4149_v47, %v4081_v52  ;;  %v10458_v47 = vor.u32 %v12093_v46, %v10455_v40 }
 0x581   :  { %4674 = vmatpush.bf16.msra.mxu3 %v10650_v60 }
 0x582   :  { %4467 = vmatpush.bf16.msra.mxu0 %v10458_v47 }
 0x585   :  { %v4082_v20 = vpop.f32.mrf.mxu2  ;;  %v3947_v39 = vpop.f32.mrf.mxu0 }
 0x586   :  { %v4083_v57 = vadd.f32 %v4082_v20, %v4014_v23  ;;  %v4151_v54 = vpop.f32.mrf.mxu3  ;;  %v4016_v0 = vpop.f32.mrf.mxu1 }
 0x587   :  { %v4017_v21 = vadd.f32 %v4016_v0, %v3947_v39  ;;  %v12109_v0 = vld [vmem:[#allocation5 + $0x7d4] sm:$0xf] }
 0x588   :  { %v13702_v30 = vadd.f32 %v4151_v54, %v4083_v57  ;;  %4202 = vmatmul.bf16.gmra.mxu0 %v12684_v33  ;;  %v10522_v27 = vor.u32 %v12109_v0, %v10519_v61  ;;  %v10639_v0 = vld [vmem:[#allocation5 + $0x8c8] sm:$0xf0] }
 0x589   :  { %4271 = vmatmul.bf16.gmra.mxu1 %v12686_v34 }
 0x58a   :  { %4340 = vmatmul.bf16.gmra.mxu2 %v12668_v11  ;;  %4536 = vmatpush.bf16.msra.mxu1 %v10522_v27 }
 0x58b   :  { %4409 = vmatmul.bf16.gmra.mxu3 %v12670_v12 }
 0x58d   :  { %v4085_v52 = vpop.f32.mrf.mxu2  ;;  %v3949_v20 = vpop.f32.mrf.mxu0 }
 0x58e   :  { %v4086_v51 = vadd.f32 %v4085_v52, %v4017_v21  ;;  %v4154_v23 = vpop.f32.mrf.mxu3  ;;  %v4018_v57 = vpop.f32.mrf.mxu1 }
 0x58f   :  { %v4019_v39 = vadd.f32 %v4018_v57, %v3949_v20  ;;  %v12091_v20 = vld [vmem:[#allocation5 + $0x744] sm:$0xf]  ;;  %v10447_v57 = vld [vmem:[#allocation5 + $0x748] sm:$0xf0] }
 0x590   :  { %v13708_v54 = vadd.f32 %v4154_v23, %v4086_v51  ;;  %v12123_v23 = vld [vmem:[#allocation5 + $0x844] sm:$0xf] }
 0x595   :  { %v4087_v1 = vpop.f32.mrf.mxu2  ;;  %v3952_v17 = vpop.f32.mrf.mxu0 }
 0x596   :  { %v4088_v7 = vadd.f32 %v4087_v1, %v4019_v39  ;;  %v4156_v29 = vpop.f32.mrf.mxu3  ;;  %v4021_v46 = vpop.f32.mrf.mxu1  ;;  %v12139_v39 = vld [vmem:[#allocation5 + $0x8c4] sm:$0xf]  ;;  %v10450_v1 = vor.u32 %v12091_v20, %v10447_v57 }
 0x597   :  { %v4022_v21 = vadd.f32 %v4021_v46, %v3952_v17 }
 0x598   :  { %v13710_v40 = vadd.f32 %v4156_v29, %v4088_v7  ;;  %4207 = vmatmul.bf16.gmra.mxu0 %v16221_v5  ;;  %v10575_v29 = vld [vmem:[#allocation5 + $0x848] sm:$0xf0]  ;;  %v10642_v7 = vor.u32 %v12139_v39, %v10639_v0 }
 0x599   :  { %4276 = vmatmul.bf16.gmra.mxu1 %v16222_v41  ;;  %v10578_v17 = vor.u32 %v12123_v23, %v10575_v29  ;;  %4468 = vmatpush.bf16.msra.mxu0 %v10450_v1 }
 0x59a   :  { %4345 = vmatmul.bf16.gmra.mxu2 %v12684_v33  ;;  %4675 = vmatpush.bf16.msra.mxu3 %v10642_v7 }
 0x59b   :  { %4414 = vmatmul.bf16.gmra.mxu3 %v12686_v34  ;;  %4606 = vmatpush.bf16.msra.mxu2 %v10578_v17 }
 0x59d   :  { %v4090_v63 = vpop.f32.mrf.mxu2  ;;  %v3954_v27 = vpop.f32.mrf.mxu0 }
 0x59e   :  { %v4091_v52 = vadd.f32 %v4090_v63, %v4022_v21  ;;  %v4159_v61 = vpop.f32.mrf.mxu3  ;;  %v4023_v47 = vpop.f32.mrf.mxu1 }
 0x59f   :  { %v4024_v51 = vadd.f32 %v4023_v47, %v3954_v27  ;;  %v12107_v27 = vld [vmem:[#allocation5 + $0x7c4] sm:$0xf]  ;;  %v10511_v47 = vld [vmem:[#allocation5 + $0x7c8] sm:$0xf0] }
 0x5a0   :  { %v13716_v60 = vadd.f32 %v4159_v61, %v4091_v52  ;;  %v10514_v23 = vor.u32 %v12107_v27, %v10511_v47  ;;  %v10439_v47 = vld [vmem:[#allocation5 + $0x738] sm:$0xf0] }
 0x5a2   :  { %4537 = vmatpush.bf16.msra.mxu1 %v10514_v23  ;;  %v12137_v23 = vld [vmem:[#allocation5 + $0x8b4] sm:$0xf] }
 0x5a5   :  { %v4092_v46 = vpop.f32.mrf.mxu2  ;;  %v3957_v50 = vpop.f32.mrf.mxu0 }
 0x5a6   :  { %v4093_v21 = vadd.f32 %v4092_v46, %v4024_v51  ;;  %v4161_v63 = vpop.f32.mrf.mxu3  ;;  %v4026_v15 = vpop.f32.mrf.mxu1 }
 0x5a7   :  { %v4027_v61 = vadd.f32 %v4026_v15, %v3957_v50 }
 0x5a8   :  { %v13718_v52 = vadd.f32 %v4161_v63, %v4093_v21  ;;  %4212 = vmatmul.bf16.gmra.mxu0 %v16181_v49 }
 0x5a9   :  { %4281 = vmatmul.bf16.gmra.mxu1 %v16182_v3 }
 0x5aa   :  { %4350 = vmatmul.bf16.gmra.mxu2 %v16175_v4  ;;  %v12121_v4 = vld [vmem:[#allocation5 + $0x834] sm:$0xf] }
 0x5ab   :  { %4419 = vmatmul.bf16.gmra.mxu3 %v16176_v8  ;;  %v10567_v8 = vld [vmem:[#allocation5 + $0x838] sm:$0xf0] }
 0x5ac   :  { %v10570_v27 = vor.u32 %v12121_v4, %v10567_v8 }
 0x5ad   :  { %v4095_v29 = vpop.f32.mrf.mxu2  ;;  %v3959_v17 = vpop.f32.mrf.mxu0 }
 0x5ae   :  { %v4096_v51 = vadd.f32 %v4095_v29, %v4027_v61  ;;  %v4164_v20 = vpop.f32.mrf.mxu3  ;;  %v4028_v57 = vpop.f32.mrf.mxu1  ;;  %v12089_v61 = vld [vmem:[#allocation5 + $0x734] sm:$0xf]  ;;  %v10631_v29 = vld [vmem:[#allocation5 + $0x8b8] sm:$0xf0]  ;;  %4607 = vmatpush.bf16.msra.mxu2 %v10570_v27  ;;  %v16226_v27 = vld [vmem:[#allocation57_spill] sm:$0xff] }
 0x5af   :  { %v4029_v50 = vadd.f32 %v4028_v57, %v3959_v17  ;;  %v10634_v17 = vor.u32 %v12137_v23, %v10631_v29  ;;  %v16225_v23 = vld [vmem:[#allocation56_spill] sm:$0xff] }
 0x5b0   :  { %v13724_v39 = vadd.f32 %v4164_v20, %v4096_v51  ;;  %v10442_v20 = vor.u32 %v12089_v61, %v10439_v47 }
 0x5b1   :  { %4676 = vmatpush.bf16.msra.mxu3 %v10634_v17 }
 0x5b2   :  { %16223 = vst [vmem:[#allocation77_spill] sm:$0xff] %v13724_v39  ;;  %4469 = vmatpush.bf16.msra.mxu0 %v10442_v20 }
 0x5b5   :  { %v4097_v15 = vpop.f32.mrf.mxu2  ;;  %v3962_v7 = vpop.f32.mrf.mxu0 }
 0x5b6   :  { %v4098_v0 = vadd.f32 %v4097_v15, %v4029_v50  ;;  %v4166_v1 = vpop.f32.mrf.mxu3  ;;  %v4031_v46 = vpop.f32.mrf.mxu1 }
 0x5b7   :  { %v4032_v63 = vadd.f32 %v4031_v46, %v3962_v7  ;;  %v12105_v46 = vld [vmem:[#allocation5 + $0x7b4] sm:$0xf] }
 0x5b8   :  { %v13726_v21 = vadd.f32 %v4166_v1, %v4098_v0  ;;  %4217 = vmatmul.bf16.gmra.mxu0 %v16190_v32 }
 0x5b9   :  { %4286 = vmatmul.bf16.gmra.mxu1 %v16191_v62 }
 0x5ba   :  { %16224 = vst [vmem:[#allocation26_spill] sm:$0xff] %v13726_v21  ;;  %4355 = vmatmul.bf16.gmra.mxu2 %v16181_v49  ;;  %v10503_v21 = vld [vmem:[#allocation5 + $0x7b8] sm:$0xf0] }
 0x5bb   :  { %4424 = vmatmul.bf16.gmra.mxu3 %v16182_v3  ;;  %v10506_v3 = vor.u32 %v12105_v46, %v10503_v21  ;;  %v10623_v46 = vld [vmem:[#allocation5 + $0x8a8] sm:$0xf0] }
 0x5bd   :  { %v4100_v51 = vpop.f32.mrf.mxu2  ;;  %v3964_v15 = vpop.f32.mrf.mxu0  ;;  %4538 = vmatpush.bf16.msra.mxu1 %v10506_v3 }
 0x5be   :  { %v4101_v57 = vadd.f32 %v4100_v51, %v4032_v63  ;;  %v4169_v50 = vpop.f32.mrf.mxu3  ;;  %v4033_v0 = vpop.f32.mrf.mxu1 }
 0x5bf   :  { %v4034_v7 = vadd.f32 %v4033_v0, %v3964_v15  ;;  %v12087_v15 = vld [vmem:[#allocation5 + $0x724] sm:$0xf]  ;;  %v10431_v0 = vld [vmem:[#allocation5 + $0x728] sm:$0xf0] }
 0x5c0   :  { %v13732_v1 = vadd.f32 %v4169_v50, %v4101_v57  ;;  %v12119_v50 = vld [vmem:[#allocation5 + $0x824] sm:$0xf] }
 0x5c5   :  { %v4102_v4 = vpop.f32.mrf.mxu2  ;;  %v3967_v39 = vpop.f32.mrf.mxu0 }
 0x5c6   :  { %v4103_v8 = vadd.f32 %v4102_v4, %v4034_v7  ;;  %v4171_v49 = vpop.f32.mrf.mxu3  ;;  %v4036_v61 = vpop.f32.mrf.mxu1  ;;  %v12135_v7 = vld [vmem:[#allocation5 + $0x8a4] sm:$0xf]  ;;  %v10434_v4 = vor.u32 %v12087_v15, %v10431_v0 }
 0x5c7   :  { %v4037_v63 = vadd.f32 %v4036_v61, %v3967_v39 }
 0x5c8   :  { %v13734_v47 = vadd.f32 %v4171_v49, %v4103_v8  ;;  %4222 = vmatmul.bf16.gmra.mxu0 %v16225_v23  ;;  %v10559_v49 = vld [vmem:[#allocation5 + $0x828] sm:$0xf0]  ;;  %v10626_v8 = vor.u32 %v12135_v7, %v10623_v46 }
 0x5c9   :  { %4291 = vmatmul.bf16.gmra.mxu1 %v16226_v27  ;;  %v10562_v39 = vor.u32 %v12119_v50, %v10559_v49  ;;  %4470 = vmatpush.bf16.msra.mxu0 %v10434_v4 }
 0x5ca   :  { %4360 = vmatmul.bf16.gmra.mxu2 %v16190_v32  ;;  %4677 = vmatpush.bf16.msra.mxu3 %v10626_v8 }
 0x5cb   :  { %4429 = vmatmul.bf16.gmra.mxu3 %v16191_v62  ;;  %4608 = vmatpush.bf16.msra.mxu2 %v10562_v39 }
 0x5cd   :  { %v4105_v29 = vpop.f32.mrf.mxu2  ;;  %v3969_v3 = vpop.f32.mrf.mxu0 }
 0x5ce   :  { %v4106_v51 = vadd.f32 %v4105_v29, %v4037_v63  ;;  %v4174_v21 = vpop.f32.mrf.mxu3  ;;  %v4038_v20 = vpop.f32.mrf.mxu1 }
 0x5cf   :  { %v4039_v57 = vadd.f32 %v4038_v20, %v3969_v3  ;;  %v12103_v3 = vld [vmem:[#allocation5 + $0x7a4] sm:$0xf]  ;;  %v10495_v20 = vld [vmem:[#allocation5 + $0x7a8] sm:$0xf0] }
 0x5d0   :  { %v13740_v17 = vadd.f32 %v4174_v21, %v4106_v51  ;;  %v10498_v50 = vor.u32 %v12103_v3, %v10495_v20 }
 0x5d2   :  { %4539 = vmatpush.bf16.msra.mxu1 %v10498_v50  ;;  %v12117_v50 = vld [vmem:[#allocation5 + $0x814] sm:$0xf] }
 0x5d5   :  { %v4107_v61 = vpop.f32.mrf.mxu2  ;;  %v3972_v27 = vpop.f32.mrf.mxu0 }
 0x5d6   :  { %v4108_v63 = vadd.f32 %v4107_v61, %v4039_v57  ;;  %v4176_v29 = vpop.f32.mrf.mxu3  ;;  %v4041_v23 = vpop.f32.mrf.mxu1 }
 0x5d7   :  { %v4042_v21 = vadd.f32 %v4041_v23, %v3972_v27 }
 0x5d8   :  { %v13742_v51 = vadd.f32 %v4176_v29, %v4108_v63  ;;  %4227 = vmatmul.bf16.gmra.mxu0 %v16206_v37 }
 0x5d9   :  { %4296 = vmatmul.bf16.gmra.mxu1 %v16207_v44 }
 0x5da   :  { %4365 = vmatmul.bf16.gmra.mxu2 %v16198_v42 }
 0x5db   :  { %4434 = vmatmul.bf16.gmra.mxu3 %v16199_v2 }
 0x5dd   :  { %v4110_v49 = vpop.f32.mrf.mxu2  ;;  %v3974_v39 = vpop.f32.mrf.mxu0 }
 0x5de   :  { %v4111_v57 = vadd.f32 %v4110_v49, %v4042_v21  ;;  %v4179_v15 = vpop.f32.mrf.mxu3  ;;  %v4043_v0 = vpop.f32.mrf.mxu1  ;;  %v10551_v49 = vld [vmem:[#allocation5 + $0x818] sm:$0xf0] }
 0x5df   :  { %v4044_v23 = vadd.f32 %v4043_v0, %v3974_v39  ;;  %v10554_v0 = vor.u32 %v12117_v50, %v10551_v49  ;;  %v16229_v50 = vld [vmem:[#allocation60_spill] sm:$0xff]  ;;  %v16230_v49 = vld [vmem:[#allocation61_spill] sm:$0xff] }
 0x5e0   :  { %v13748_v7 = vadd.f32 %v4179_v15, %v4111_v57  ;;  %v12085_v57 = vld [vmem:[#allocation5 + $0x714] sm:$0xf] }
 0x5e1   :  { %4609 = vmatpush.bf16.msra.mxu2 %v10554_v0 }
 0x5e2   :  { %16227 = vst [vmem:[#allocation27_spill] sm:$0xff] %v13748_v7 }
 0x5e5   :  { %v4112_v27 = vpop.f32.mrf.mxu2  ;;  %v3977_v8 = vpop.f32.mrf.mxu0 }
 0x5e6   :  { %v4113_v46 = vadd.f32 %v4112_v27, %v4044_v23  ;;  %v4181_v4 = vpop.f32.mrf.mxu3  ;;  %v4046_v61 = vpop.f32.mrf.mxu1  ;;  %v10423_v23 = vld [vmem:[#allocation5 + $0x718] sm:$0xf0]  ;;  %v12133_v27 = vld [vmem:[#allocation5 + $0x894] sm:$0xf] }
 0x5e7   :  { %v4047_v29 = vadd.f32 %v4046_v61, %v3977_v8  ;;  %v12101_v61 = vld [vmem:[#allocation5 + $0x794] sm:$0xf] }
 0x5e8   :  { %v13750_v63 = vadd.f32 %v4181_v4, %v4113_v46  ;;  %4232 = vmatmul.bf16.gmra.mxu0 %v16214_v18  ;;  %v10615_v46 = vld [vmem:[#allocation5 + $0x898] sm:$0xf0]  ;;  %v10426_v4 = vor.u32 %v12085_v57, %v10423_v23 }
 0x5e9   :  { %4301 = vmatmul.bf16.gmra.mxu1 %v16215_v9  ;;  %v10618_v8 = vor.u32 %v12133_v27, %v10615_v46 }
 0x5ea   :  { %16228 = vst [vmem:[#allocation100_spill] sm:$0xff] %v13750_v63  ;;  %4370 = vmatmul.bf16.gmra.mxu2 %v16206_v37  ;;  %v10487_v63 = vld [vmem:[#allocation5 + $0x798] sm:$0xf0]  ;;  %4471 = vmatpush.bf16.msra.mxu0 %v10426_v4 }
 0x5eb   :  { %4439 = vmatmul.bf16.gmra.mxu3 %v16207_v44  ;;  %v10490_v44 = vor.u32 %v12101_v61, %v10487_v63  ;;  %v16233_v4 = vld [vmem:[#allocation63_spill] sm:$0xff] }
 0x5ec   :  { %4678 = vmatpush.bf16.msra.mxu3 %v10618_v8 }
 0x5ed   :  { %v4115_v42 = vpop.f32.mrf.mxu2  ;;  %v3979_v3 = vpop.f32.mrf.mxu0  ;;  %4540 = vmatpush.bf16.msra.mxu1 %v10490_v44  ;;  %v16231_v44 = vld [vmem:[#allocation62_spill] sm:$0xff] }
 0x5ee   :  { %v4116_v2 = vadd.f32 %v4115_v42, %v4047_v29  ;;  %v4184_v21 = vpop.f32.mrf.mxu3  ;;  %v4048_v20 = vpop.f32.mrf.mxu1 }
 0x5ef   :  { %v4049_v39 = vadd.f32 %v4048_v20, %v3979_v3 }
 0x5f0   :  { %v13756_v15 = vadd.f32 %v4184_v21, %v4116_v2 }
 0x5f5   :  { %v4117_v29 = vpop.f32.mrf.mxu2  ;;  %v4198_v7 = vpop.f32.mrf.mxu0 }
 0x5f6   :  { %v4118_v42 = vadd.f32 %v4117_v29, %v4049_v39  ;;  %v4186_v37 = vpop.f32.mrf.mxu3  ;;  %v4199_v2 = vadd.f32 %v4198_v7, %v13668_v16  ;;  %v4267_v21 = vpop.f32.mrf.mxu1 }
 0x5f8   :  { %v13759_v3 = vadd.f32 %v4186_v37, %v4118_v42  ;;  %v4268_v20 = vadd.f32 %v4267_v21, %v4199_v2  ;;  %4237 = vmatmul.bf16.gmra.mxu0 %v16229_v50 }
 0x5f9   :  { %4306 = vmatmul.bf16.gmra.mxu1 %v16230_v49 }
 0x5fa   :  { %4375 = vmatmul.bf16.gmra.mxu2 %v16214_v18  ;;  %v4789_v63 = vrot.slane %v4268_v20, 2 }
 0x5fb   :  { %4444 = vmatmul.bf16.gmra.mxu3 %v16215_v9 }
 0x5fc   :  { %v13766_v57 = vadd.f32 %v4789_v63, %v16231_v44  ;;  %v12115_v63 = vld [vmem:[#allocation5 + $0x804] sm:$0xf]  ;;  %v10543_v44 = vld [vmem:[#allocation5 + $0x808] sm:$0xf0] }
 0x5fd   :  { %v4336_v39 = vpop.f32.mrf.mxu2  ;;  %v4200_v23 = vpop.f32.mrf.mxu0 }
 0x5fe   :  { %16232 = vst [vmem:[#allocation101_spill] sm:$0xff] %v13766_v57  ;;  %v4405_v0 = vpop.f32.mrf.mxu3  ;;  %v4201_v37 = vadd.f32 %v4200_v23, %v13670_v10  ;;  %v4269_v7 = vpop.f32.mrf.mxu1  ;;  %v10415_v57 = vld [vmem:[#allocation5 + $0x708] sm:$0xf0]  ;;  %v12131_v10 = vld [vmem:[#allocation5 + $0x884] sm:$0xf] }
 0x5ff   :  { %v13768_v16 = vadd.f32 %v4405_v0, %v4336_v39  ;;  %v12083_v39 = vld [vmem:[#allocation5 + $0x704] sm:$0xf]  ;;  %v10546_v0 = vor.u32 %v12115_v63, %v10543_v44  ;;  %v10607_v23 = vld [vmem:[#allocation5 + $0x888] sm:$0xf0] }
 0x600   :  { %v4270_v27 = vadd.f32 %v4269_v7, %v4201_v37  ;;  %v10418_v7 = vor.u32 %v12083_v39, %v10415_v57 }
 0x601   :  { %4610 = vmatpush.bf16.msra.mxu2 %v10546_v0 }
 0x602   :  { %v4791_v46 = vrot.slane %v4270_v27, 2  ;;  %v10610_v27 = vor.u32 %v12131_v10, %v10607_v23  ;;  %4472 = vmatpush.bf16.msra.mxu0 %v10418_v7  ;;  %v16235_v23 = vld [vmem:[#allocation65_spill] sm:$0xff] }
 0x604   :  { %v13772_v8 = vadd.f32 %v4791_v46, %v16233_v4  ;;  %v12099_v46 = vld [vmem:[#allocation5 + $0x784] sm:$0xf]  ;;  %v10479_v4 = vld [vmem:[#allocation5 + $0x788] sm:$0xf0]  ;;  %4679 = vmatpush.bf16.msra.mxu3 %v10610_v27 }
 0x605   :  { %v4338_v61 = vpop.f32.mrf.mxu2  ;;  %v4203_v42 = vpop.f32.mrf.mxu0 }
 0x606   :  { %v4407_v29 = vpop.f32.mrf.mxu3  ;;  %v4204_v21 = vadd.f32 %v4203_v42, %v13676_v48  ;;  %v4272_v20 = vpop.f32.mrf.mxu1  ;;  %v10482_v48 = vor.u32 %v12099_v46, %v10479_v4 }
 0x607   :  { %v13774_v2 = vadd.f32 %v4407_v29, %v4338_v61  ;;  %v16234_v29 = vld [vmem:[#allocation64_spill] sm:$0xff] }
 0x608   :  { %v4273_v37 = vadd.f32 %v4272_v20, %v4204_v21  ;;  %4242 = vmatmul.bf16.gmra.mxu0 %v12806_v59  ;;  %4541 = vmatpush.bf16.msra.mxu1 %v10482_v48 }
 0x609   :  { %4311 = vmatmul.bf16.gmra.mxu1 %v12808_v53 }
 0x60a   :  { %4380 = vmatmul.bf16.gmra.mxu2 %v16218_v22  ;;  %v4793_v61 = vrot.slane %v4273_v37, 2 }
 0x60b   :  { %4449 = vmatmul.bf16.gmra.mxu3 %v16219_v19 }
 0x60c   :  { %v13782_v42 = vadd.f32 %v4793_v61, %v16234_v29  ;;  %v16236_v61 = vld [vmem:[#allocation66_spill] sm:$0xff] }
 0x60d   :  { %v4341_v21 = vpop.f32.mrf.mxu2  ;;  %v4205_v20 = vpop.f32.mrf.mxu0 }
 0x60e   :  { %v4410_v57 = vpop.f32.mrf.mxu3  ;;  %v4206_v44 = vadd.f32 %v4205_v20, %v13678_v56  ;;  %v4274_v39 = vpop.f32.mrf.mxu1 }
 0x60f   :  { %v13784_v63 = vadd.f32 %v4410_v57, %v4341_v21 }
 0x610   :  { %v4275_v22 = vadd.f32 %v4274_v39, %v4206_v44 }
 0x612   :  { %v4795_v10 = vrot.slane %v4275_v22, 2 }
 0x614   :  { %v13788_v37 = vadd.f32 %v4795_v10, %v16235_v23  ;;  %v16237_v23 = vld [vmem:[#allocation67_spill] sm:$0xff] }
 0x615   :  { %v4343_v19 = vpop.f32.mrf.mxu2  ;;  %v4208_v7 = vpop.f32.mrf.mxu0 }
 0x616   :  { %v4412_v0 = vpop.f32.mrf.mxu3  ;;  %v4209_v46 = vadd.f32 %v4208_v7, %v13684_v45  ;;  %v4277_v4 = vpop.f32.mrf.mxu1 }
 0x617   :  { %v13790_v27 = vadd.f32 %v4412_v0, %v4343_v19 }
 0x618   :  { %v4278_v48 = vadd.f32 %v4277_v4, %v4209_v46  ;;  %4247 = vmatmul.bf16.gmra.mxu0 %v16055_v24 }
 0x619   :  { %4316 = vmatmul.bf16.gmra.mxu1 %v16220_v26 }
 0x61a   :  { %4385 = vmatmul.bf16.gmra.mxu2 %v12806_v59  ;;  %v4797_v56 = vrot.slane %v4278_v48, 2 }
 0x61b   :  { %4454 = vmatmul.bf16.gmra.mxu3 %v12808_v53 }
 0x61c   :  { %v13798_v29 = vadd.f32 %v4797_v56, %v16236_v61 }
 0x61d   :  { %v4346_v21 = vpop.f32.mrf.mxu2  ;;  %v4210_v20 = vpop.f32.mrf.mxu0 }
 0x61e   :  { %v4415_v57 = vpop.f32.mrf.mxu3  ;;  %v4211_v45 = vadd.f32 %v4210_v20, %v13686_v43  ;;  %v4279_v39 = vpop.f32.mrf.mxu1 }
 0x61f   :  { %v13800_v44 = vadd.f32 %v4415_v57, %v4346_v21  ;;  %v16239_v21 = vld [vmem:[#allocation68_spill] sm:$0xff] }
 0x620   :  { %v4280_v22 = vadd.f32 %v4279_v39, %v4211_v45 }
 0x622   :  { %v4799_v10 = vrot.slane %v4280_v22, 2 }
 0x624   :  { %v13804_v19 = vadd.f32 %v4799_v10, %v16237_v23 }
 0x625   :  { %v4348_v0 = vpop.f32.mrf.mxu2  ;;  %v4213_v46 = vpop.f32.mrf.mxu0 }
 0x626   :  { %16238 = vst [vmem:[#allocation30_spill] sm:$0xff] %v13804_v19  ;;  %v4417_v7 = vpop.f32.mrf.mxu3  ;;  %v4214_v48 = vadd.f32 %v4213_v46, %v13692_v38  ;;  %v4282_v56 = vpop.f32.mrf.mxu1 }
 0x627   :  { %v13806_v4 = vadd.f32 %v4417_v7, %v4348_v0  ;;  %v16241_v7 = vld [vmem:[#allocation69_spill] sm:$0xff] }
 0x628   :  { %v4283_v61 = vadd.f32 %v4282_v56, %v4214_v48  ;;  %4252 = vmatmul.bf16.gmra.mxu0 %v12978_v6 }
 0x629   :  { %4321 = vmatmul.bf16.gmra.mxu1 %v12982_v31 }
 0x62a   :  { %4390 = vmatmul.bf16.gmra.mxu2 %v16055_v24  ;;  %v4801_v43 = vrot.slane %v4283_v61, 2 }
 0x62b   :  { %4459 = vmatmul.bf16.gmra.mxu3 %v16220_v26 }
 0x62c   :  { %v13814_v57 = vadd.f32 %v4801_v43, %v16239_v21 }
 0x62d   :  { %v4351_v20 = vpop.f32.mrf.mxu2  ;;  %v4215_v39 = vpop.f32.mrf.mxu0 }
 0x62e   :  { %16240 = vst [vmem:[#allocation31_spill] sm:$0xff] %v13814_v57  ;;  %v4420_v45 = vpop.f32.mrf.mxu3  ;;  %v4216_v38 = vadd.f32 %v4215_v39, %v13694_v25  ;;  %v4284_v10 = vpop.f32.mrf.mxu1 }
 0x62f   :  { %v13816_v22 = vadd.f32 %v4420_v45, %v4351_v20  ;;  %v16242_v20 = vld [vmem:[#allocation70_spill] sm:$0xff] }
 0x630   :  { %v4285_v23 = vadd.f32 %v4284_v10, %v4216_v38 }
 0x632   :  { %v4803_v0 = vrot.slane %v4285_v23, 2 }
 0x634   :  { %v13820_v46 = vadd.f32 %v4803_v0, %v16241_v7 }
 0x635   :  { %v4353_v48 = vpop.f32.mrf.mxu2  ;;  %v4218_v61 = vpop.f32.mrf.mxu0 }
 0x636   :  { %v4422_v56 = vpop.f32.mrf.mxu3  ;;  %v4219_v43 = vadd.f32 %v4218_v61, %v13700_v28  ;;  %v4287_v21 = vpop.f32.mrf.mxu1 }
 0x637   :  { %v13822_v19 = vadd.f32 %v4422_v56, %v4353_v48  ;;  %v16243_v48 = vld [vmem:[#allocation71_spill] sm:$0xff] }
 0x638   :  { %v4288_v57 = vadd.f32 %v4287_v21, %v4219_v43  ;;  %4473 = vmatmul.bf16.vlgmr.msra.gmra.mxu0 %v12660_v55 }
 0x639   :  { %4542 = vmatmul.bf16.vlgmr.msra.gmra.mxu1 %v12662_v58 }
 0x63a   :  { %4611 = vmatmul.bf16.vlgmr.msra.gmra.mxu2 %v12668_v11  ;;  %v4805_v25 = vrot.slane %v4288_v57, 2 }
 0x63b   :  { %4680 = vmatmul.bf16.vlgmr.msra.gmra.mxu3 %v12670_v12 }
 0x63c   :  { %v13830_v45 = vadd.f32 %v4805_v25, %v16242_v20  ;;  %v16244_v25 = vld [vmem:[#allocation72_spill] sm:$0xff] }
 0x63d   :  { %v4356_v39 = vpop.f32.mrf.mxu2  ;;  %v4220_v10 = vpop.f32.mrf.mxu0 }
 0x63e   :  { %v4425_v38 = vpop.f32.mrf.mxu3  ;;  %v4221_v28 = vadd.f32 %v4220_v10, %v13702_v30  ;;  %v4289_v0 = vpop.f32.mrf.mxu1 }
 0x63f   :  { %v13832_v23 = vadd.f32 %v4425_v38, %v4356_v39 }
 0x640   :  { %v4290_v7 = vadd.f32 %v4289_v0, %v4221_v28 }
 0x642   :  { %v4807_v55 = vrot.slane %v4290_v7, 2 }
 0x644   :  { %v13836_v58 = vadd.f32 %v4807_v55, %v16243_v48  ;;  %v16245_v55 = vld [vmem:[#allocation73_spill] sm:$0xff] }
 0x645   :  { %v4358_v11 = vpop.f32.mrf.mxu2  ;;  %v4223_v56 = vpop.f32.mrf.mxu0 }
 0x646   :  { %v4427_v57 = vpop.f32.mrf.mxu3  ;;  %v4224_v61 = vadd.f32 %v4223_v56, %v13708_v54  ;;  %v4292_v43 = vpop.f32.mrf.mxu1 }
 0x647   :  { %v13838_v12 = vadd.f32 %v4427_v57, %v4358_v11 }
 0x648   :  { %v4293_v21 = vadd.f32 %v4292_v43, %v4224_v61  ;;  %4478 = vmatmul.bf16.gmra.mxu0 %v12672_v13  ;;  %v16246_v43 = vld [vmem:[#allocation74_spill] sm:$0xff] }
 0x649   :  { %4547 = vmatmul.bf16.gmra.mxu1 %v12674_v14 }
 0x64a   :  { %4616 = vmatmul.bf16.gmra.mxu2 %v12684_v33  ;;  %v4809_v30 = vrot.slane %v4293_v21, 2 }
 0x64b   :  { %4685 = vmatmul.bf16.gmra.mxu3 %v12686_v34 }
 0x64c   :  { %v13846_v20 = vadd.f32 %v4809_v30, %v16244_v25 }
 0x64d   :  { %v4361_v39 = vpop.f32.mrf.mxu2  ;;  %v4225_v10 = vpop.f32.mrf.mxu0 }
 0x64e   :  { %v4430_v38 = vpop.f32.mrf.mxu3  ;;  %v4226_v54 = vadd.f32 %v4225_v10, %v13710_v40  ;;  %v4294_v0 = vpop.f32.mrf.mxu1 }
 0x64f   :  { %v13848_v28 = vadd.f32 %v4430_v38, %v4361_v39 }
 0x650   :  { %v4295_v7 = vadd.f32 %v4294_v0, %v4226_v54  ;;  %v16247_v0 = vld [vmem:[#allocation75_spill] sm:$0xff] }
 0x652   :  { %v4811_v13 = vrot.slane %v4295_v7, 2 }
 0x654   :  { %v13852_v14 = vadd.f32 %v4811_v13, %v16245_v55  ;;  %v16248_v55 = vld [vmem:[#allocation77_spill] sm:$0xff] }
 0x655   :  { %v4363_v33 = vpop.f32.mrf.mxu2  ;;  %v4228_v11 = vpop.f32.mrf.mxu0 }
 0x656   :  { %v4432_v48 = vpop.f32.mrf.mxu3  ;;  %v4229_v57 = vadd.f32 %v4228_v11, %v13716_v60  ;;  %v4297_v56 = vpop.f32.mrf.mxu1 }
 0x657   :  { %v13854_v34 = vadd.f32 %v4432_v48, %v4363_v33 }
 0x658   :  { %v4298_v61 = vadd.f32 %v4297_v56, %v4229_v57  ;;  %4483 = vmatmul.bf16.gmra.mxu0 %v12690_v35  ;;  %v16249_v57 = vld [vmem:[#allocation20_spill] sm:$0xff]  ;;  %v16250_v56 = vld [vmem:[#allocation21_spill] sm:$0xff] }
 0x659   :  { %4552 = vmatmul.bf16.gmra.mxu1 %v12694_v36 }
 0x65a   :  { %4621 = vmatmul.bf16.gmra.mxu2 %v16221_v5  ;;  %v4813_v40 = vrot.slane %v4298_v61, 2 }
 0x65b   :  { %4690 = vmatmul.bf16.gmra.mxu3 %v16222_v41 }
 0x65c   :  { %v13862_v21 = vadd.f32 %v4813_v40, %v16246_v43  ;;  %v16252_v40 = vld [vmem:[#allocation23_spill] sm:$0xff]  ;;  %v16253_v43 = vld [vmem:[#allocation48_spill] sm:$0xff] }
 0x65d   :  { %v4366_v30 = vpop.f32.mrf.mxu2  ;;  %v4230_v39 = vpop.f32.mrf.mxu0 }
 0x65e   :  { %v4435_v25 = vpop.f32.mrf.mxu3  ;;  %v4231_v60 = vadd.f32 %v4230_v39, %v13718_v52  ;;  %v4299_v10 = vpop.f32.mrf.mxu1  ;;  %v16251_v52 = vld [vmem:[#allocation22_spill] sm:$0xff] }
 0x65f   :  { %v13864_v38 = vadd.f32 %v4435_v25, %v4366_v30 }
 0x660   :  { %v4300_v54 = vadd.f32 %v4299_v10, %v4231_v60 }
 0x662   :  { %v4815_v35 = vrot.slane %v4300_v54, 2  ;;  %v16254_v54 = vld [vmem:[#allocation26_spill] sm:$0xff] }
 0x664   :  { %v13868_v36 = vadd.f32 %v4815_v35, %v16247_v0 }
 0x665   :  { %v4368_v5 = vpop.f32.mrf.mxu2  ;;  %v4233_v13 = vpop.f32.mrf.mxu0 }
 0x666   :  { %v4437_v7 = vpop.f32.mrf.mxu3  ;;  %v4234_v33 = vadd.f32 %v4233_v13, %v16248_v55  ;;  %v4302_v48 = vpop.f32.mrf.mxu1  ;;  %v16255_v13 = vld [vmem:[#allocation54_spill] sm:$0xff] }
 0x667   :  { %v13870_v41 = vadd.f32 %v4437_v7, %v4368_v5 }
 0x668   :  { %v4303_v11 = vadd.f32 %v4302_v48, %v4234_v33  ;;  %4488 = vmatmul.bf16.gmra.mxu0 %v16249_v57 }
 0x669   :  { %4557 = vmatmul.bf16.gmra.mxu1 %v16250_v56 }
 0x66a   :  { %4626 = vmatmul.bf16.gmra.mxu2 %v16251_v52  ;;  %v4817_v61 = vrot.slane %v4303_v11, 2 }
 0x66b   :  { %4695 = vmatmul.bf16.gmra.mxu3 %v16252_v40  ;;  %v16256_v40 = vld [vmem:[#allocation24_spill] sm:$0xff] }
 0x66c   :  { %v13878_v30 = vadd.f32 %v4817_v61, %v16253_v43  ;;  %v16257_v43 = vld [vmem:[#allocation25_spill] sm:$0xff] }
 0x66d   :  { %v4371_v25 = vpop.f32.mrf.mxu2  ;;  %v4235_v60 = vpop.f32.mrf.mxu0 }
 0x66e   :  { %v4440_v39 = vpop.f32.mrf.mxu3  ;;  %v4236_v35 = vadd.f32 %v4235_v60, %v16254_v54  ;;  %v4304_v0 = vpop.f32.mrf.mxu1 }
 0x66f   :  { %v13880_v10 = vadd.f32 %v4440_v39, %v4371_v25  ;;  %v16258_v39 = vld [vmem:[#allocation106_spill] sm:$0xff] }
 0x670   :  { %v4305_v5 = vadd.f32 %v4304_v0, %v4236_v35 }
 0x672   :  { %v4819_v7 = vrot.slane %v4305_v5, 2 }
 0x674   :  { %v13884_v55 = vadd.f32 %v4819_v7, %v16255_v13  ;;  %v10853_v13 = vld [vmem:[#allocation8 + $0x170] sm:$0xf] }
 0x675   :  { %v4373_v33 = vpop.f32.mrf.mxu2  ;;  %v4238_v11 = vpop.f32.mrf.mxu0 }
 0x676   :  { %v4442_v48 = vpop.f32.mrf.mxu3  ;;  %v4239_v56 = vadd.f32 %v4238_v11, %v13732_v1  ;;  %v4307_v52 = vpop.f32.mrf.mxu1 }
 0x677   :  { %v13886_v57 = vadd.f32 %v4442_v48, %v4373_v33  ;;  %v12194_v33 = vld [vmem:[#allocation8 + $0x174] sm:$0xf0]  ;;  %v10725_v48 = vld [vmem:[#allocation8 + $0x70] sm:$0xf] }
 0x678   :  { %v4308_v61 = vadd.f32 %v4307_v52, %v4239_v56  ;;  %4493 = vmatmul.bf16.gmra.mxu0 %v16256_v40  ;;  %v10854_v11 = vor.u32 %v12194_v33, %v10853_v13  ;;  %v12162_v56 = vld [vmem:[#allocation8 + $0x74] sm:$0xf0] }
 0x679   :  { %4562 = vmatmul.bf16.gmra.mxu1 %v16257_v43  ;;  %v12210_v52 = vld [vmem:[#allocation8 + $0x1f4] sm:$0xf0]  ;;  %v10789_v43 = vld [vmem:[#allocation8 + $0xf0] sm:$0xf] }
 0x67a   :  { %4631 = vmatmul.bf16.gmra.mxu2 %v16190_v32  ;;  %v4821_v25 = vrot.slane %v4308_v61, 2  ;;  %v10917_v32 = vld [vmem:[#allocation8 + $0x1f0] sm:$0xf] }
 0x67b   :  { %4700 = vmatmul.bf16.gmra.mxu3 %v16191_v62  ;;  %v10726_v62 = vor.u32 %v12162_v56, %v10725_v48  ;;  %v10918_v40 = vor.u32 %v12210_v52, %v10917_v32  ;;  %6269 = vmatpush.bf16.msrb.mxu2 %v10854_v11  ;;  %v16262_v56 = vld [vmem:[#allocation28_spill] sm:$0xff]  ;;  %v16263_v11 = vld [vmem:[#allocation29_spill] sm:$0xff] }
 0x67c   :  { %v13894_v60 = vadd.f32 %v4821_v25, %v16258_v39  ;;  %v12178_v25 = vld [vmem:[#allocation8 + $0xf4] sm:$0xf0]  ;;  %v16264_v32 = vld [vmem:[#allocation56_spill] sm:$0xff] }
 0x67d   :  { %v4376_v54 = vpop.f32.mrf.mxu2  ;;  %v4240_v0 = vpop.f32.mrf.mxu0  ;;  %v10790_v39 = vor.u32 %v12178_v25, %v10789_v43  ;;  %6191 = vmatpush.bf16.msrb.mxu0 %v10726_v62  ;;  %6308 = vmatpush.bf16.msrb.mxu3 %v10918_v40 }
 0x67e   :  { %16259 = vst [vmem:[#allocation102_spill] sm:$0xff] %v13894_v60  ;;  %v4445_v35 = vpop.f32.mrf.mxu3  ;;  %v4241_v1 = vadd.f32 %v4240_v0, %v13734_v47  ;;  %v4309_v7 = vpop.f32.mrf.mxu1  ;;  %v16260_v47 = vld [vmem:[#allocation55_spill] sm:$0xff] }
 0x67f   :  { %v13896_v5 = vadd.f32 %v4445_v35, %v4376_v54  ;;  %6230 = vmatpush.bf16.msrb.mxu1 %v10790_v39 }
 0x680   :  { %v4310_v61 = vadd.f32 %v4309_v7, %v4241_v1 }
 0x682   :  { %v4823_v60 = vrot.slane %v4310_v61, 2  ;;  %v16265_v61 = vld [vmem:[#allocation57_spill] sm:$0xff] }
 0x684   :  { %v13900_v54 = vadd.f32 %v4823_v60, %v16260_v47  ;;  %v16266_v60 = vld [vmem:[#allocation76_spill] sm:$0xff] }
 0x685   :  { %v4378_v35 = vpop.f32.mrf.mxu2  ;;  %v4243_v13 = vpop.f32.mrf.mxu0 }
 0x686   :  { %16261 = vst [vmem:[#allocation108_spill] sm:$0xff] %v13900_v54  ;;  %v4447_v0 = vpop.f32.mrf.mxu3  ;;  %v4244_v1 = vadd.f32 %v4243_v13, %v13740_v17  ;;  %v4312_v7 = vpop.f32.mrf.mxu1  ;;  %v16269_v13 = vld [vmem:[#allocation78_spill] sm:$0xff]  ;;  %v12160_v54 = vld [vmem:[#allocation8 + $0x64] sm:$0xf0] }
 0x687   :  { %v13902_v33 = vadd.f32 %v4447_v0, %v4378_v35 }
 0x688   :  { %v4313_v48 = vadd.f32 %v4312_v7, %v4244_v1  ;;  %4498 = vmatmul.bf16.gmra.mxu0 %v16262_v56 }
 0x689   :  { %4567 = vmatmul.bf16.gmra.mxu1 %v16263_v11 }
 0x68a   :  { %4636 = vmatmul.bf16.gmra.mxu2 %v16264_v32  ;;  %v4825_v52 = vrot.slane %v4313_v48, 2  ;;  %v16271_v32 = vld [vmem:[#allocation27_spill] sm:$0xff] }
 0x68b   :  { %4705 = vmatmul.bf16.gmra.mxu3 %v16265_v61 }
 0x68c   :  { %v13910_v62 = vadd.f32 %v4825_v52, %v16266_v60  ;;  %v10845_v60 = vld [vmem:[#allocation8 + $0x160] sm:$0xf] }
 0x68d   :  { %v4381_v40 = vpop.f32.mrf.mxu2  ;;  %v4245_v25 = vpop.f32.mrf.mxu0 }
 0x68e   :  { %16267 = vst [vmem:[#allocation80_spill] sm:$0xff] %v13910_v62  ;;  %v4450_v43 = vpop.f32.mrf.mxu3  ;;  %v4246_v17 = vadd.f32 %v4245_v25, %v13742_v51  ;;  %v4314_v47 = vpop.f32.mrf.mxu1  ;;  %v12192_v62 = vld [vmem:[#allocation8 + $0x164] sm:$0xf0]  ;;  %v10909_v51 = vld [vmem:[#allocation8 + $0x1e0] sm:$0xf] }
 0x68f   :  { %v13912_v39 = vadd.f32 %v4450_v43, %v4381_v40  ;;  %v10717_v40 = vld [vmem:[#allocation8 + $0x60] sm:$0xf]  ;;  %v10846_v43 = vor.u32 %v12192_v62, %v10845_v60  ;;  %v12208_v25 = vld [vmem:[#allocation8 + $0x1e4] sm:$0xf0] }
 0x690   :  { %v4315_v35 = vadd.f32 %v4314_v47, %v4246_v17  ;;  %v16272_v47 = vld [vmem:[#allocation32_spill] sm:$0xff]  ;;  %v16276_v62 = vld [vmem:[#allocation107_spill] sm:$0xff] }
 0x691   :  { %16268 = vst [vmem:[#allocation103_spill] sm:$0xff] %v13912_v39  ;;  %v16273_v39 = vld [vmem:[#allocation33_spill] sm:$0xff]  ;;  %6270 = vmatpush.bf16.msrb.mxu2 %v10846_v43 }
 0x692   :  { %v4827_v0 = vrot.slane %v4315_v35, 2  ;;  %v10718_v35 = vor.u32 %v12160_v54, %v10717_v40 }
 0x694   :  { %v13916_v1 = vadd.f32 %v4827_v0, %v16269_v13  ;;  %v10910_v0 = vor.u32 %v12208_v25, %v10909_v51  ;;  %v10781_v13 = vld [vmem:[#allocation8 + $0xe0] sm:$0xf]  ;;  %6192 = vmatpush.bf16.msrb.mxu0 %v10718_v35 }
 0x695   :  { %v4383_v7 = vpop.f32.mrf.mxu2  ;;  %v4248_v56 = vpop.f32.mrf.mxu0  ;;  %v16277_v51 = vld [vmem:[#allocation100_spill] sm:$0xff] }
 0x696   :  { %16270 = vst [vmem:[#allocation104_spill] sm:$0xff] %v13916_v1  ;;  %v4452_v48 = vpop.f32.mrf.mxu3  ;;  %v4249_v52 = vadd.f32 %v4248_v56, %v16271_v32  ;;  %v4317_v61 = vpop.f32.mrf.mxu1  ;;  %v12176_v1 = vld [vmem:[#allocation8 + $0xe4] sm:$0xf0]  ;;  %v16275_v32 = vld [vmem:[#allocation35_spill] sm:$0xff]  ;;  %6309 = vmatpush.bf16.msrb.mxu3 %v10910_v0 }
 0x697   :  { %v13918_v11 = vadd.f32 %v4452_v48, %v4383_v7  ;;  %v16274_v7 = vld [vmem:[#allocation34_spill] sm:$0xff]  ;;  %v10782_v48 = vor.u32 %v12176_v1, %v10781_v13 }
 0x698   :  { %v4318_v17 = vadd.f32 %v4317_v61, %v4249_v52  ;;  %4503 = vmatmul.bf16.gmra.mxu0 %v16272_v47 }
 0x699   :  { %4572 = vmatmul.bf16.gmra.mxu1 %v16273_v39 }
 0x69a   :  { %4641 = vmatmul.bf16.gmra.mxu2 %v16274_v7  ;;  %v4829_v56 = vrot.slane %v4318_v17, 2  ;;  %6231 = vmatpush.bf16.msrb.mxu1 %v10782_v48  ;;  %v16278_v17 = vld [vmem:[#allocation79_spill] sm:$0xff] }
 0x69b   :  { %4710 = vmatmul.bf16.gmra.mxu3 %v16275_v32 }
 0x69c   :  { %v13926_v60 = vadd.f32 %v4829_v56, %v16276_v62  ;;  %v16280_v62 = vld [vmem:[#allocation36_spill] sm:$0xff] }
 0x69d   :  { %v4386_v52 = vpop.f32.mrf.mxu2  ;;  %v4250_v61 = vpop.f32.mrf.mxu0 }
 0x69e   :  { %v4455_v54 = vpop.f32.mrf.mxu3  ;;  %v4251_v39 = vadd.f32 %v4250_v61, %v16277_v51  ;;  %v4319_v25 = vpop.f32.mrf.mxu1  ;;  %v16282_v61 = vld [vmem:[#allocation58_spill] sm:$0xff] }
 0x69f   :  { %v13928_v40 = vadd.f32 %v4455_v54, %v4386_v52  ;;  %v16281_v52 = vld [vmem:[#allocation37_spill] sm:$0xff] }
 0x6a0   :  { %v4320_v47 = vadd.f32 %v4319_v25, %v4251_v39 }
 0x6a2   :  { %v4831_v1 = vrot.slane %v4320_v47, 2 }
 0x6a4   :  { %v13932_v13 = vadd.f32 %v4831_v1, %v16278_v17 }
 0x6a5   :  { %v4388_v43 = vpop.f32.mrf.mxu2  ;;  %v4253_v0 = vpop.f32.mrf.mxu0 }
 0x6a6   :  { %16279 = vst [vmem:[#allocation38_spill] sm:$0xff] %v13932_v13  ;;  %v4457_v35 = vpop.f32.mrf.mxu3  ;;  %v4254_v56 = vadd.f32 %v4253_v0, %v13756_v15  ;;  %v4322_v48 = vpop.f32.mrf.mxu1  ;;  %v16284_v0 = vld [vmem:[#allocation109_spill] sm:$0xff] }
 0x6a7   :  { %v13934_v7 = vadd.f32 %v4457_v35, %v4388_v43 }
 0x6a8   :  { %v4323_v32 = vadd.f32 %v4322_v48, %v4254_v56  ;;  %4508 = vmatmul.bf16.gmra.mxu0 %v16280_v62 }
 0x6a9   :  { %4577 = vmatmul.bf16.gmra.mxu1 %v16281_v52 }
 0x6aa   :  { %4646 = vmatmul.bf16.gmra.mxu2 %v16214_v18  ;;  %v4833_v54 = vrot.slane %v4323_v32, 2 }
 0x6ab   :  { %4715 = vmatmul.bf16.gmra.mxu3 %v16215_v9 }
 0x6ac   :  { %v13942_v51 = vadd.f32 %v4833_v54, %v16282_v61  ;;  %v16287_v54 = vld [vmem:[#allocation40_spill] sm:$0xff]  ;;  %v16288_v61 = vld [vmem:[#allocation41_spill] sm:$0xff] }
 0x6ad   :  { %v4391_v39 = vpop.f32.mrf.mxu2  ;;  %v4255_v47 = vpop.f32.mrf.mxu0 }
 0x6ae   :  { %16283 = vst [vmem:[#allocation39_spill] sm:$0xff] %v13942_v51  ;;  %v4460_v25 = vpop.f32.mrf.mxu3  ;;  %v4256_v15 = vadd.f32 %v4255_v47, %v13759_v3  ;;  %v4324_v17 = vpop.f32.mrf.mxu1  ;;  %v10837_v3 = vld [vmem:[#allocation8 + $0x150] sm:$0xf] }
 0x6af   :  { %v13944_v1 = vadd.f32 %v4460_v25, %v4391_v39  ;;  %v12190_v39 = vld [vmem:[#allocation8 + $0x154] sm:$0xf0]  ;;  %v10709_v25 = vld [vmem:[#allocation8 + $0x50] sm:$0xf] }
 0x6b0   :  { %v4325_v43 = vadd.f32 %v4324_v17, %v4256_v15  ;;  %v10838_v47 = vor.u32 %v12190_v39, %v10837_v3  ;;  %v12158_v15 = vld [vmem:[#allocation8 + $0x54] sm:$0xf0]  ;;  %v10901_v17 = vld [vmem:[#allocation8 + $0x1d0] sm:$0xf] }
 0x6b2   :  { %v4835_v35 = vrot.slane %v4325_v43, 2  ;;  %v12206_v43 = vld [vmem:[#allocation8 + $0x1d4] sm:$0xf0]  ;;  %6271 = vmatpush.bf16.msrb.mxu2 %v10838_v47 }
 0x6b4   :  { %v13948_v56 = vadd.f32 %v4835_v35, %v16284_v0  ;;  %v10710_v0 = vor.u32 %v12158_v15, %v10709_v25  ;;  %v16289_v25 = vld [vmem:[#allocation59_spill] sm:$0xff] }
 0x6b5   :  { %v4393_v18 = vpop.f32.mrf.mxu2  ;;  %v4474_v32 = vpop.f32.mrf.mxu0 }
 0x6b6   :  { %16285 = vst [vmem:[#allocation105_spill] sm:$0xff] %v13948_v56  ;;  %v4462_v48 = vpop.f32.mrf.mxu3  ;;  %v4543_v62 = vpop.f32.mrf.mxu1  ;;  %v4475_v52 = vadd.f32 %v4474_v32, %v13768_v16  ;;  %v12174_v16 = vld [vmem:[#allocation8 + $0xd4] sm:$0xf0]  ;;  %6193 = vmatpush.bf16.msrb.mxu0 %v10710_v0 }
 0x6b7   :  { %v13950_v9 = vadd.f32 %v4462_v48, %v4393_v18  ;;  %v10902_v18 = vor.u32 %v12206_v43, %v10901_v17  ;;  %v10773_v48 = vld [vmem:[#allocation8 + $0xd0] sm:$0xf] }
 0x6b8   :  { %4513 = vmatmul.bf16.gmra.mxu0 %v16287_v54  ;;  %v4544_v35 = vadd.f32 %v4543_v62, %v4475_v52  ;;  %v10774_v54 = vor.u32 %v12174_v16, %v10773_v48  ;;  %v10701_v16 = vld [vmem:[#allocation8 + $0x40] sm:$0xf] }
 0x6b9   :  { %16286 = vst [vmem:[#allocation42_spill] sm:$0xff] %v13950_v9  ;;  %4582 = vmatmul.bf16.gmra.mxu1 %v16288_v61  ;;  %6310 = vmatpush.bf16.msrb.mxu3 %v10902_v18 }
 0x6ba   :  { %4651 = vmatmul.bf16.gmra.mxu2 %v16229_v50  ;;  %6232 = vmatpush.bf16.msrb.mxu1 %v10774_v54  ;;  %v10765_v54 = vld [vmem:[#allocation8 + $0xc0] sm:$0xf] }
 0x6bb   :  { %4720 = vmatmul.bf16.gmra.mxu3 %v16230_v49  ;;  %v4933_v49 = vld [vmem:[#allocation7] sm:$0x3] }
 0x6bc   :  { %v13958_v62 = vperm.slane %v4933_v49, 1  ;;  %v13960_v52 = vperm.slane %v4933_v49, 0  ;;  %v12172_v49 = vld [vmem:[#allocation8 + $0xc4] sm:$0xf0] }
 0x6bd   :  { %v4612_v32 = vpop.f32.mrf.mxu2  ;;  %v4476_v50 = vpop.f32.mrf.mxu0 }
 0x6be   :  { %v4613_v61 = vadd.f32 %v4612_v32, %v4544_v35  ;;  %v4681_v56 = vpop.f32.mrf.mxu3  ;;  %v4545_v51 = vpop.f32.mrf.mxu1  ;;  %v4477_v39 = vadd.f32 %v4476_v50, %v13774_v2  ;;  %v12156_v32 = vld [vmem:[#allocation8 + $0x44] sm:$0xf0] }
 0x6c0   :  { %v4682_v3 = vadd.f32 %v4681_v56, %v4613_v61  ;;  %v4546_v47 = vadd.f32 %v4545_v51, %v4477_v39  ;;  %v16290_v56 = vld [vmem:[#allocation101_spill] sm:$0xff]  ;;  %v10766_v39 = vor.u32 %v12172_v49, %v10765_v54  ;;  %v12170_v49 = vld [vmem:[#allocation8 + $0xb4] sm:$0xf0] }
 0x6c1   :  { %v4939_v2 = vadd.f32 %v13960_v52, %v16290_v56  ;;  %v16292_v56 = vld [vmem:[#allocation45_spill] sm:$0xff] }
 0x6c2   :  { %v4790_v9 = vrot.slane %v4682_v3, 2  ;;  %v16291_v3 = vld [vmem:[#allocation44_spill] sm:$0xff]  ;;  %6233 = vmatpush.bf16.msrb.mxu1 %v10766_v39  ;;  %v10757_v54 = vld [vmem:[#allocation8 + $0xb0] sm:$0xf] }
 0x6c4   :  { %v4886_v15 = vadd.f32 %v4790_v9, %v16289_v25  ;;  %v10702_v9 = vor.u32 %v12156_v32, %v10701_v16  ;;  %v12154_v32 = vld [vmem:[#allocation8 + $0x34] sm:$0xf0] }
 0x6c5   :  { %v4614_v17 = vpop.f32.mrf.mxu2  ;;  %v4479_v18 = vpop.f32.mrf.mxu0 }
 0x6c6   :  { %v4940_v43 = vadd.f32 %v13958_v62, %v4886_v15  ;;  %v4615_v35 = vadd.f32 %v4614_v17, %v4546_v47  ;;  %v4683_v0 = vpop.f32.mrf.mxu3  ;;  %v4548_v48 = vpop.f32.mrf.mxu1  ;;  %v4480_v51 = vadd.f32 %v4479_v18, %v13784_v63  ;;  %6194 = vmatpush.bf16.msrb.mxu0 %v10702_v9  ;;  %v10693_v63 = vld [vmem:[#allocation8 + $0x30] sm:$0xf] }
 0x6c8   :  { %v5035_v61 = vrot.slane %v4940_v43, 6  ;;  %v4684_v50 = vadd.f32 %v4683_v0, %v4615_v35  ;;  %4518 = vmatmul.bf16.gmra.mxu0 %v16291_v3  ;;  %v16293_v0 = vld [vmem:[#allocation81_spill] sm:$0xff]  ;;  %v4549_v16 = vadd.f32 %v4548_v48, %v4480_v51  ;;  %v10893_v51 = vld [vmem:[#allocation8 + $0x1c0] sm:$0xf] }
 0x6c9   :  { %4587 = vmatmul.bf16.gmra.mxu1 %v16292_v56  ;;  %v12188_v48 = vld [vmem:[#allocation8 + $0x144] sm:$0xf0] }
 0x6ca   :  { %v5060_v25 = vsel %vm5059_vm0, %v4939_v2, %v5035_v61  ;;  %v5062_v15 = vsel %vm5061_vm1, %v4939_v2, %v5035_v61  ;;  %v5065_v47 = vsel %vm5064_vm2, %v4939_v2, %v5035_v61  ;;  %v4792_v17 = vrot.slane %v4684_v50, 2  ;;  %4656 = vmatmul.bf16.gmra.mxu2 %v12806_v59 }
 0x6cb   :  { %v5063_v43 = vrot.slane %v5062_v15, 2  ;;  %v5066_v35 = vrot.slane %v5065_v47, 4  ;;  %5182 = vst [vmem:[#allocation1] ss:$4 sm:$0xff] %v5060_v25  ;;  %4725 = vmatmul.bf16.gmra.mxu3 %v12808_v53  ;;  %v10694_v61 = vor.u32 %v12154_v32, %v10693_v63  ;;  %v10758_v50 = vor.u32 %v12170_v49, %v10757_v54  ;;  %v10829_v47 = vld [vmem:[#allocation8 + $0x140] sm:$0xf] }
 0x6cc   :  { %v4888_v18 = vadd.f32 %v4792_v17, %v16293_v0  ;;  %v4941_v53 = vadd.f32 %v13960_v52, %v13772_v8  ;;  %v12204_v63 = vld [vmem:[#allocation8 + $0x1c4] sm:$0xf0] }
 0x6cd   :  { %5184 = vst [vmem:[#allocation1 + $0x1] ss:$4 sm:$0xff] %v5063_v43  ;;  %v4617_v2 = vpop.f32.mrf.mxu2  ;;  %v4481_v15 = vpop.f32.mrf.mxu0  ;;  %6195 = vmatpush.bf16.msrb.mxu0 %v10694_v61  ;;  %v10830_v43 = vor.u32 %v12188_v48, %v10829_v47  ;;  %6234 = vmatpush.bf16.msrb.mxu1 %v10758_v50  ;;  %v10894_v0 = vor.u32 %v12204_v63, %v10893_v51  ;;  %v12168_v32 = vld [vmem:[#allocation8 + $0xa4] sm:$0xf0]  ;;  %v10677_v50 = vld [vmem:[#allocation8 + $0x10] sm:$0xf] }
 0x6ce   :  { %5186 = vst [vmem:[#allocation1 + $0x2] ss:$4 sm:$0xff] %v5066_v35  ;;  %v4942_v59 = vadd.f32 %v13958_v62, %v4888_v18  ;;  %v4618_v3 = vadd.f32 %v4617_v2, %v4549_v16  ;;  %v4686_v25 = vpop.f32.mrf.mxu3  ;;  %v4550_v9 = vpop.f32.mrf.mxu1  ;;  %v4482_v56 = vadd.f32 %v4481_v15, %v13790_v27  ;;  %v10685_v35 = vld [vmem:[#allocation8 + $0x20] sm:$0xf]  ;;  %v12152_v18 = vld [vmem:[#allocation8 + $0x24] sm:$0xf0] }
 0x6cf   :  { %v10749_v16 = vld [vmem:[#allocation8 + $0xa0] sm:$0xf]  ;;  %6272 = vmatpush.bf16.msrb.mxu2 %v10830_v43  ;;  %6311 = vmatpush.bf16.msrb.mxu3 %v10894_v0  ;;  %v10686_v27 = vor.u32 %v12152_v18, %v10685_v35  ;;  %v12150_v48 = vld [vmem:[#allocation8 + $0x14] sm:$0xf0]  ;;  %v10741_v51 = vld [vmem:[#allocation8 + $0x90] sm:$0xf] }
 0x6d0   :  { %v5036_v39 = vrot.slane %v4942_v59, 6  ;;  %v4687_v17 = vadd.f32 %v4686_v25, %v4618_v3  ;;  %v10750_v3 = vor.u32 %v12168_v32, %v10749_v16  ;;  %v16294_v25 = vld [vmem:[#allocation82_spill] sm:$0xff]  ;;  %v4551_v47 = vadd.f32 %v4550_v9, %v4482_v56 }
 0x6d1   :  { %v12166_v63 = vld [vmem:[#allocation8 + $0x94] sm:$0xf0]  ;;  %6196 = vmatpush.bf16.msrb.mxu0 %v10686_v27  ;;  %v10885_v32 = vld [vmem:[#allocation8 + $0x1b0] sm:$0xf]  ;;  %v4943_v9 = vadd.f32 %v13960_v52, %v13782_v42 }
 0x6d2   :  { %v5067_v54 = vsel %vm5059_vm0, %v4941_v53, %v5036_v39  ;;  %v5068_v8 = vsel %vm5061_vm1, %v4941_v53, %v5036_v39  ;;  %v5070_v49 = vsel %vm5064_vm2, %v4941_v53, %v5036_v39  ;;  %v4794_v2 = vrot.slane %v4687_v17, 2  ;;  %6235 = vmatpush.bf16.msrb.mxu1 %v10750_v3  ;;  %v10821_v39 = vld [vmem:[#allocation8 + $0x130] sm:$0xf]  ;;  %v12186_v17 = vld [vmem:[#allocation8 + $0x134] sm:$0xf0] }
 0x6d3   :  { %v5069_v61 = vrot.slane %v5068_v8, 2  ;;  %v5071_v59 = vrot.slane %v5070_v49, 4  ;;  %5188 = vst [vmem:[#allocation1 + $0x3] ss:$4 sm:$0xff] %v5067_v54  ;;  %v10742_v53 = vor.u32 %v12166_v63, %v10741_v51  ;;  %v10822_v16 = vor.u32 %v12186_v17, %v10821_v39  ;;  %v12202_v54 = vld [vmem:[#allocation8 + $0x1b4] sm:$0xf0] }
 0x6d4   :  { %v4890_v15 = vadd.f32 %v4794_v2, %v16294_v25  ;;  %v10678_v8 = vor.u32 %v12150_v48, %v10677_v50  ;;  %v10669_v49 = vld [vmem:[#allocation8] sm:$0xf]  ;;  %v12148_v2 = vld [vmem:[#allocation8 + $0x4] sm:$0xf0]  ;;  %v10886_v25 = vor.u32 %v12202_v54, %v10885_v32 }
 0x6d5   :  { %5190 = vst [vmem:[#allocation1 + $0x20] ss:$4 sm:$0xff] %v5069_v61  ;;  %v4619_v13 = vpop.f32.mrf.mxu2  ;;  %v4484_v18 = vpop.f32.mrf.mxu0  ;;  %v10733_v61 = vld [vmem:[#allocation8 + $0x80] sm:$0xf]  ;;  %6273 = vmatpush.bf16.msrb.mxu2 %v10822_v16  ;;  %v12184_v39 = vld [vmem:[#allocation8 + $0x124] sm:$0xf0] }
 0x6d6   :  { %5192 = vst [vmem:[#allocation1 + $0x21] ss:$4 sm:$0xff] %v5071_v59  ;;  %v4944_v43 = vadd.f32 %v13958_v62, %v4890_v15  ;;  %v4620_v0 = vadd.f32 %v4619_v13, %v4551_v47  ;;  %v4688_v35 = vpop.f32.mrf.mxu3  ;;  %v4553_v56 = vpop.f32.mrf.mxu1  ;;  %v4485_v59 = vadd.f32 %v4484_v18, %v13800_v44  ;;  %v12164_v13 = vld [vmem:[#allocation8 + $0x84] sm:$0xf0]  ;;  %v16295_v15 = vld [vmem:[#allocation46_spill] sm:$0xff]  ;;  %6236 = vmatpush.bf16.msrb.mxu1 %v10742_v53  ;;  %v16296_v17 = vld [vmem:[#allocation47_spill] sm:$0xff] }
 0x6d7   :  { %v10670_v47 = vor.u32 %v12148_v2, %v10669_v49  ;;  %v10734_v51 = vor.u32 %v12164_v13, %v10733_v61  ;;  %v10813_v63 = vld [vmem:[#allocation8 + $0x120] sm:$0xf]  ;;  %6197 = vmatpush.bf16.msrb.mxu0 %v10678_v8  ;;  %6312 = vmatpush.bf16.msrb.mxu3 %v10886_v25  ;;  %v12200_v54 = vld [vmem:[#allocation8 + $0x1a4] sm:$0xf0]  ;;  %v10805_v61 = vld [vmem:[#allocation8 + $0x110] sm:$0xf] }
 0x6d8   :  { %v5037_v27 = vrot.slane %v4944_v43, 6  ;;  %v4689_v3 = vadd.f32 %v4688_v35, %v4620_v0  ;;  %4523 = vmatmul.bf16.gmra.mxu0 %v16295_v15  ;;  %v10877_v44 = vld [vmem:[#allocation8 + $0x1a0] sm:$0xf]  ;;  %v10814_v18 = vor.u32 %v12184_v39, %v10813_v63  ;;  %v4554_v32 = vadd.f32 %v4553_v56, %v4485_v59  ;;  %v10869_v15 = vld [vmem:[#allocation8 + $0x190] sm:$0xf] }
 0x6d9   :  { %4592 = vmatmul.bf16.gmra.mxu1 %v16296_v17  ;;  %v10878_v2 = vor.u32 %v12200_v54, %v10877_v44  ;;  %v12198_v63 = vld [vmem:[#allocation8 + $0x194] sm:$0xf0]  ;;  %v12180_v17 = vld [vmem:[#allocation8 + $0x104] sm:$0xf0] }
 0x6da   :  { %v5072_v42 = vsel %vm5059_vm0, %v4943_v9, %v5037_v27  ;;  %v5073_v50 = vsel %vm5061_vm1, %v4943_v9, %v5037_v27  ;;  %v5075_v48 = vsel %vm5064_vm2, %v4943_v9, %v5037_v27  ;;  %4661 = vmatmul.bf16.gmra.mxu2 %v16055_v24  ;;  %v13993_v43 = vld.sshfl [vmem:[#allocation1] sm:$0xff pattern:$0x73625140]  ;;  %v4796_v53 = vrot.slane %v4689_v3, 2  ;;  %6237 = vmatpush.bf16.msrb.mxu1 %v10734_v51 }
 0x6db   :  { %v5074_v0 = vrot.slane %v5073_v50, 2  ;;  %v5076_v35 = vrot.slane %v5075_v48, 4  ;;  %5194 = vst [vmem:[#allocation1 + $0x22] ss:$4 sm:$0xff] %v5072_v42  ;;  %4730 = vmatmul.bf16.gmra.mxu3 %v16220_v26  ;;  %v16297_v9 = vld [vmem:[#allocation83_spill] sm:$0xff]  ;;  %6274 = vmatpush.bf16.msrb.mxu2 %v10814_v18  ;;  %v10870_v51 = vor.u32 %v12198_v63, %v10869_v15  ;;  %v4945_v42 = vadd.f32 %v13960_v52, %v13788_v37 }
 0x6dc   :  { %v13996_v16 = vld.sshfl [vmem:[#allocation1 + $0x8] sm:$0xff pattern:$0x73625140]  ;;  %v4892_v49 = vadd.f32 %v4796_v53, %v16297_v9  ;;  %v12182_v27 = vld [vmem:[#allocation8 + $0x114] sm:$0xf0]  ;;  %6198 = vmatpush.bf16.msrb.mxu0 %v10670_v47  ;;  %6313 = vmatpush.bf16.msrb.mxu3 %v10878_v2 }
 0x6dd   :  { %5196 = vst [vmem:[#allocation1 + $0x23] ss:$4 sm:$0xff] %v5074_v0  ;;  %v4622_v24 = vpop.f32.mrf.mxu2  ;;  %v4486_v26 = vpop.f32.mrf.mxu0  ;;  %v10806_v8 = vor.u32 %v12182_v27, %v10805_v61  ;;  %v10797_v48 = vld [vmem:[#allocation8 + $0x100] sm:$0xf]  ;;  %v12196_v53 = vld [vmem:[#allocation8 + $0x184] sm:$0xf0] }
 0x6de   :  { %5201 = vst [vmem:[#allocation1] ss:$4 sm:$0xff] %v5076_v35  ;;  %v4623_v3 = vadd.f32 %v4622_v24, %v4554_v32  ;;  %v4691_v13 = vpop.f32.mrf.mxu3  ;;  %v4946_v56 = vadd.f32 %v13958_v62, %v4892_v49  ;;  %v4555_v59 = vpop.f32.mrf.mxu1  ;;  %v4487_v39 = vadd.f32 %v4486_v26, %v13806_v4  ;;  %v10798_v0 = vor.u32 %v12180_v17, %v10797_v48  ;;  %v10861_v35 = vld [vmem:[#allocation8 + $0x180] sm:$0xf] }
 0x6df   :  { %6275 = vmatpush.bf16.msrb.mxu2 %v10806_v8  ;;  %v16298_v4 = vld [vmem:[#allocation84_spill] sm:$0xff]  ;;  %v10862_v49 = vor.u32 %v12196_v53, %v10861_v35  ;;  %v4947_v8 = vadd.f32 %v13960_v52, %v13798_v29  ;;  %v16300_v17 = vld [vmem:[#allocation51_spill] sm:$0xff] }
 0x6e0   :  { %v4692_v25 = vadd.f32 %v4691_v13, %v4623_v3  ;;  %v5038_v50 = vrot.slane %v4946_v56, 6  ;;  %v4556_v9 = vadd.f32 %v4555_v59, %v4487_v39  ;;  %6314 = vmatpush.bf16.msrb.mxu3 %v10870_v51 }
 0x6e2   :  { %v4798_v44 = vrot.slane %v4692_v25, 2  ;;  %v5077_v18 = vsel %vm5059_vm0, %v4945_v42, %v5038_v50  ;;  %v5078_v47 = vsel %vm5061_vm1, %v4945_v42, %v5038_v50  ;;  %v5080_v32 = vsel %vm5064_vm2, %v4945_v42, %v5038_v50  ;;  %v16299_v25 = vld [vmem:[#allocation50_spill] sm:$0xff] }
 0x6e3   :  { %v5079_v37 = vrot.slane %v5078_v47, 2  ;;  %v5081_v24 = vrot.slane %v5080_v32, 4  ;;  %5202 = vst [vmem:[#allocation1 + $0x1] ss:$4 sm:$0xff] %v5077_v18  ;;  %6276 = vmatpush.bf16.msrb.mxu2 %v10798_v0 }
 0x6e4   :  { %v4894_v54 = vadd.f32 %v4798_v44, %v16298_v4  ;;  %6315 = vmatpush.bf16.msrb.mxu3 %v10862_v49  ;;  %v5199_v59 = vld.sshfl [vmem:[#allocation1 + $0x20] sm:$0xff pattern:$0x73625140]  ;;  %v5200_v39 = vld.sshfl [vmem:[#allocation1 + $0x28] sm:$0xff pattern:$0x73625140] }
 0x6e5   :  { %v4624_v2 = vpop.f32.mrf.mxu2  ;;  %v4489_v13 = vpop.f32.mrf.mxu0  ;;  %5203 = vst [vmem:[#allocation1 + $0x2] ss:$4 sm:$0xff] %v5079_v37  ;;  %v5342_v18 = vpack.c.bf16 %v5200_v39, %v5199_v59 }
 0x6e6   :  { %v4948_v61 = vadd.f32 %v13958_v62, %v4894_v54  ;;  %v4625_v27 = vadd.f32 %v4624_v2, %v4556_v9  ;;  %v4693_v3 = vpop.f32.mrf.mxu3  ;;  %v4558_v26 = vpop.f32.mrf.mxu1  ;;  %5204 = vst [vmem:[#allocation1 + $0x3] ss:$4 sm:$0xff] %v5081_v24  ;;  %v4490_v56 = vadd.f32 %v4489_v13, %v13816_v22  ;;  %v16301_v22 = vld [vmem:[#allocation85_spill] sm:$0xff]  ;;  %v16302_v9 = vld [vmem:[#allocation30_spill] sm:$0xff] }
 0x6e7   :  { %v5375_v13 = vunpack.c.l.b16 %v5342_v18 }
 0x6e8   :  { %v5039_v15 = vrot.slane %v4948_v61, 6  ;;  %v4694_v63 = vadd.f32 %v4693_v3, %v4625_v27  ;;  %4528 = vmatmul.bf16.gmra.mxu0 %v16299_v25  ;;  %v4559_v35 = vadd.f32 %v4558_v26, %v4490_v56  ;;  %v5341_v3 = vpack.c.bf16 %v13996_v16, %v13993_v43 }
 0x6e9   :  { %4597 = vmatmul.bf16.gmra.mxu1 %v16300_v17  ;;  %v5376_v26 = vunpack.c.h.b16 %v5342_v18 }
 0x6ea   :  { %v5082_v51 = vsel %vm5059_vm0, %v4947_v8, %v5039_v15  ;;  %v5083_v42 = vsel %vm5061_vm1, %v4947_v8, %v5039_v15  ;;  %v5085_v50 = vsel %vm5064_vm2, %v4947_v8, %v5039_v15  ;;  %v4800_v48 = vrot.slane %v4694_v63, 2  ;;  %4666 = vmatmul.bf16.gmra.mxu2 %v12978_v6 }
 0x6eb   :  { %v5084_v29 = vrot.slane %v5083_v42, 2  ;;  %v5086_v44 = vrot.slane %v5085_v50, 4  ;;  %5205 = vst [vmem:[#allocation1 + $0x20] ss:$4 sm:$0xff] %v5082_v51  ;;  %4735 = vmatmul.bf16.gmra.mxu3 %v12982_v31  ;;  %v4949_v6 = vadd.f32 %v13960_v52, %v16302_v9  ;;  %v5373_v16 = vunpack.c.l.b16 %v5341_v3 }
 0x6ec   :  { %v4896_v0 = vadd.f32 %v4800_v48, %v16301_v22 }
 0x6ed   :  { %5206 = vst [vmem:[#allocation1 + $0x21] ss:$4 sm:$0xff] %v5084_v29  ;;  %v4627_v53 = vpop.f32.mrf.mxu2  ;;  %v4491_v54 = vpop.f32.mrf.mxu0  ;;  %v5209_v49 = vld.sshfl [vmem:[#allocation1] sm:$0xff pattern:$0x73625140] }
 0x6ee   :  { %5207 = vst [vmem:[#allocation1 + $0x22] ss:$4 sm:$0xff] %v5086_v44  ;;  %v4950_v47 = vadd.f32 %v13958_v62, %v4896_v0  ;;  %v4628_v32 = vadd.f32 %v4627_v53, %v4559_v35  ;;  %v4696_v4 = vpop.f32.mrf.mxu3  ;;  %v5210_v37 = vld.sshfl [vmem:[#allocation1 + $0x8] sm:$0xff pattern:$0x73625140]  ;;  %v4560_v24 = vpop.f32.mrf.mxu1  ;;  %v4492_v61 = vadd.f32 %v4491_v54, %v13822_v19  ;;  %v16303_v19 = vld [vmem:[#allocation86_spill] sm:$0xff]  ;;  %v5374_v35 = vunpack.c.h.b16 %v5341_v3 }
 0x6ef   :  { %v5343_v27 = vpack.c.bf16 %v5210_v37, %v5209_v49  ;;  %v16304_v53 = vld [vmem:[#allocation31_spill] sm:$0xff] }
 0x6f0   :  { %v5040_v2 = vrot.slane %v4950_v47, 6  ;;  %v4697_v31 = vadd.f32 %v4696_v4, %v4628_v32  ;;  %v4561_v50 = vadd.f32 %v4560_v24, %v4492_v61  ;;  %v4951_v18 = vadd.f32 %v13960_v52, %v16304_v53 }
 0x6f1   :  { %v14028_v39 = vunpack.c.l.b16 %v5343_v27  ;;  %v14030_v51 = vunpack.c.h.b16 %v5343_v27  ;;  %v14042_v32 = vpack.c.b16 %v5375_v13, %v5373_v16 }
 0x6f2   :  { %v5087_v8 = vsel %vm5059_vm0, %v4949_v6, %v5040_v2  ;;  %v5088_v15 = vsel %vm5061_vm1, %v4949_v6, %v5040_v2  ;;  %v5090_v63 = vsel %vm5064_vm2, %v4949_v6, %v5040_v2  ;;  %v4802_v56 = vrot.slane %v4697_v31, 2 }
 0x6f3   :  { %v5089_v59 = vrot.slane %v5088_v15, 2  ;;  %v5091_v25 = vrot.slane %v5090_v63, 4  ;;  %5208 = vst [vmem:[#allocation1 + $0x23] ss:$4 sm:$0xff] %v5087_v8  ;;  %v14034_v48 = vpack.c.b16 %v14028_v39, %v5375_v13  ;;  %v14037_v17 = vpack.c.b16 %v14030_v51, %v5376_v26  ;;  %v16307_v63 = vld [vmem:[#allocation87_spill] sm:$0xff] }
 0x6f4   :  { %v4898_v42 = vadd.f32 %v4802_v56, %v16303_v19  ;;  %16305 = vst [vmem:[#allocation43_spill] sm:$0xff] %v14042_v32  ;;  %v14045_v6 = vpack.c.b16 %v5376_v26, %v5374_v35  ;;  %v4953_v26 = vadd.f32 %v13960_v52, %v13820_v46  ;;  %v5426_v16 = vrot.slane %v14042_v32, 3 }
 0x6f5   :  { %5213 = vst [vmem:[#allocation1] ss:$4 sm:$0xff] %v5089_v59  ;;  %v4629_v43 = vpop.f32.mrf.mxu2  ;;  %v4494_v0 = vpop.f32.mrf.mxu0 }
 0x6f6   :  { %5214 = vst [vmem:[#allocation1 + $0x1] ss:$4 sm:$0xff] %v5091_v25  ;;  %v4952_v29 = vadd.f32 %v13958_v62, %v4898_v42  ;;  %v4630_v44 = vadd.f32 %v4629_v43, %v4561_v50  ;;  %v4698_v22 = vpop.f32.mrf.mxu3  ;;  %v4563_v47 = vpop.f32.mrf.mxu1  ;;  %v4495_v9 = vadd.f32 %v4494_v0, %v13832_v23  ;;  %v5429_v35 = vrot.slane %v14045_v6, 3 }
 0x6f7   :  { %16306 = vst [vmem:[#allocation49_spill] sm:$0xff] %v14045_v6 }
 0x6f8   :  { %v5041_v4 = vrot.slane %v4952_v29, 6  ;;  %v4699_v54 = vadd.f32 %v4698_v22, %v4630_v44  ;;  %6199 = vmatmul.bf16.vlgmr.msrb.gmra.mxu0 %v14042_v32  ;;  %v4564_v23 = vadd.f32 %v4563_v47, %v4495_v9 }
 0x6f9   :  { %6238 = vmatmul.bf16.vlgmr.msrb.gmra.mxu1 %v14045_v6 }
 0x6fa   :  { %v5211_v49 = vld.sshfl [vmem:[#allocation1 + $0x20] sm:$0xff pattern:$0x73625140]  ;;  %v5212_v37 = vld.sshfl [vmem:[#allocation1 + $0x28] sm:$0xff pattern:$0x73625140]  ;;  %v5092_v24 = vsel %vm5059_vm0, %v4951_v18, %v5041_v4  ;;  %v5093_v2 = vsel %vm5061_vm1, %v4951_v18, %v5041_v4  ;;  %v5095_v31 = vsel %vm5064_vm2, %v4951_v18, %v5041_v4 }
 0x6fb   :  { %v5094_v61 = vrot.slane %v5093_v2, 2  ;;  %v5096_v27 = vrot.slane %v5095_v31, 4  ;;  %5217 = vst [vmem:[#allocation1 + $0x20] ss:$4 sm:$0xff] %v5092_v24  ;;  %v4804_v3 = vrot.slane %v4699_v54, 2  ;;  %v5344_v13 = vpack.c.bf16 %v5212_v37, %v5211_v49 }
 0x6fc   :  { %v5479_v2 = vrot.slane %v14034_v48, 2 }
 0x6fd   :  { %v5215_v8 = vld.sshfl [vmem:[#allocation1] sm:$0xff pattern:$0x73625140]  ;;  %v5216_v15 = vld.sshfl [vmem:[#allocation1 + $0x8] sm:$0xff pattern:$0x73625140]  ;;  %v4900_v56 = vadd.f32 %v4804_v3, %v16307_v63  ;;  %v4632_v59 = vpop.f32.mrf.mxu2  ;;  %v5401_v25 = vunpack.c.l.b16 %v5344_v13  ;;  %v5402_v19 = vunpack.c.h.b16 %v5344_v13  ;;  %v4496_v43 = vpop.f32.mrf.mxu0 }
 0x6fe   :  { %5218 = vst [vmem:[#allocation1 + $0x21] ss:$4 sm:$0xff] %v5094_v61  ;;  %v4633_v42 = vadd.f32 %v4632_v59, %v4564_v23  ;;  %v4701_v50 = vpop.f32.mrf.mxu3  ;;  %v5345_v29 = vpack.c.bf16 %v5216_v15, %v5215_v8  ;;  %v4565_v22 = vpop.f32.mrf.mxu1  ;;  %v4497_v18 = vadd.f32 %v4496_v43, %v13838_v12  ;;  %v16309_v8 = vld [vmem:[#allocation88_spill] sm:$0xff]  ;;  %v5482_v59 = vrot.slane %v14037_v17, 2 }
 0x6ff   :  { %5219 = vst [vmem:[#allocation1 + $0x22] ss:$4 sm:$0xff] %v5096_v27  ;;  %v4954_v44 = vadd.f32 %v13958_v62, %v4900_v56  ;;  %v14058_v46 = vpack.c.b16 %v5401_v25, %v14028_v39  ;;  %v14061_v0 = vpack.c.b16 %v5402_v19, %v14030_v51 }
 0x700   :  { %v4702_v53 = vadd.f32 %v4701_v50, %v4633_v42  ;;  %v5454_v47 = vunpack.c.l.b16 %v5345_v29  ;;  %v5455_v4 = vunpack.c.h.b16 %v5345_v29  ;;  %v4566_v63 = vadd.f32 %v4565_v22, %v4497_v18 }
 0x701   :  { %v5042_v54 = vrot.slane %v4954_v44, 6  ;;  %v5427_v9 = vrot.slane %v14058_v46, 3  ;;  %v5430_v49 = vrot.slane %v14061_v0, 3  ;;  %v4955_v22 = vadd.f32 %v13960_v52, %v13830_v45 }
 0x702   :  { %v4806_v37 = vrot.slane %v4702_v53, 2  ;;  %v14067_v24 = vpack.c.b16 %v5454_v47, %v5401_v25  ;;  %v14070_v31 = vpack.c.b16 %v5455_v4, %v5402_v19 }
 0x703   :  { %v5097_v61 = vsel %vm5059_vm0, %v4953_v26, %v5042_v54  ;;  %v5098_v27 = vsel %vm5061_vm1, %v4953_v26, %v5042_v54  ;;  %v5100_v12 = vsel %vm5064_vm2, %v4953_v26, %v5042_v54  ;;  %v14078_v3 = vsel %vm5425_vm3, %v5426_v16, %v5427_v9 }
 0x704   :  { %16308 = vst [vmem:[#allocation52_spill] sm:$0xff] %v14078_v3  ;;  %v5099_v13 = vrot.slane %v5098_v27, 2  ;;  %v5101_v23 = vrot.slane %v5100_v12, 4  ;;  %v4902_v15 = vadd.f32 %v4806_v37, %v16309_v8  ;;  %6277 = vmatmul.bf16.vlgmr.msrb.gmra.mxu2 %v14078_v3  ;;  %v14085_v48 = vsel %vm5425_vm3, %v5429_v35, %v5430_v49 }
 0x705   :  { %5220 = vst [vmem:[#allocation1 + $0x23] ss:$4 sm:$0xff] %v5097_v61  ;;  %v4634_v56 = vpop.f32.mrf.mxu2  ;;  %v5480_v26 = vrot.slane %v14067_v24, 2  ;;  %v5483_v25 = vrot.slane %v14070_v31, 2  ;;  %6316 = vmatmul.bf16.vlgmr.msrb.gmra.mxu3 %v14085_v48  ;;  %v4499_v43 = vpop.f32.mrf.mxu0 }
 0x706   :  { %16310 = vst [vmem:[#allocation53_spill] sm:$0xff] %v14085_v48  ;;  %v4956_v19 = vadd.f32 %v13958_v62, %v4902_v15  ;;  %v4635_v42 = vadd.f32 %v4634_v56, %v4566_v63  ;;  %v4703_v50 = vpop.f32.mrf.mxu3  ;;  %v4500_v16 = vadd.f32 %v4499_v43, %v13848_v28  ;;  %v4568_v29 = vpop.f32.mrf.mxu1 }
 0x707   :  { %5223 = vst [vmem:[#allocation1] ss:$4 sm:$0xff] %v5099_v13  ;;  %v14096_v44 = vsel %vm5478_vm4, %v5479_v2, %v5480_v26  ;;  %v14101_v17 = vsel %vm5478_vm4, %v5482_v59, %v5483_v25  ;;  %v16312_v13 = vld [vmem:[#allocation89_spill] sm:$0xff] }
 0x708   :  { %5224 = vst [vmem:[#allocation1 + $0x1] ss:$4 sm:$0xff] %v5101_v23  ;;  %v5043_v35 = vrot.slane %v4956_v19, 6  ;;  %v4704_v53 = vadd.f32 %v4703_v50, %v4635_v42  ;;  %v4569_v2 = vadd.f32 %v4568_v29, %v4500_v16  ;;  %v4957_v42 = vadd.f32 %v13960_v52, %v13836_v58 }
 0x709   :  { %16311 = vst [vmem:[#allocation60_spill] sm:$0xff] %v14101_v17 }
 0x70a   :  { %v5102_v18 = vsel %vm5059_vm0, %v4955_v22, %v5043_v35  ;;  %v5103_v28 = vsel %vm5061_vm1, %v4955_v22, %v5043_v35  ;;  %v5105_v47 = vsel %vm5064_vm2, %v4955_v22, %v5043_v35  ;;  %v4808_v4 = vrot.slane %v4704_v53, 2 }
 0x70b   :  { %v5104_v61 = vrot.slane %v5103_v28, 2  ;;  %v5106_v27 = vrot.slane %v5105_v47, 4  ;;  %5225 = vst [vmem:[#allocation1 + $0x2] ss:$4 sm:$0xff] %v5102_v18 }
 0x70c   :  { %v5221_v54 = vld.sshfl [vmem:[#allocation1 + $0x20] sm:$0xff pattern:$0x73625140]  ;;  %v5222_v37 = vld.sshfl [vmem:[#allocation1 + $0x28] sm:$0xff pattern:$0x73625140]  ;;  %v4904_v23 = vadd.f32 %v4808_v4, %v16312_v13 }
 0x70d   :  { %v14108_v12 = vpack.c.bf16 %v5222_v37, %v5221_v54  ;;  %v4637_v45 = vpop.f32.mrf.mxu2  ;;  %5226 = vst [vmem:[#allocation1 + $0x3] ss:$4 sm:$0xff] %v5104_v61  ;;  %v4501_v19 = vpop.f32.mrf.mxu0 }
 0x70e   :  { %v4958_v63 = vadd.f32 %v13958_v62, %v4904_v23  ;;  %v4638_v56 = vadd.f32 %v4637_v45, %v4569_v2  ;;  %v4706_v59 = vpop.f32.mrf.mxu3  ;;  %5227 = vst [vmem:[#allocation1 + $0x20] ss:$4 sm:$0xff] %v5106_v27  ;;  %v4502_v50 = vadd.f32 %v4501_v19, %v13854_v34  ;;  %v4570_v43 = vpop.f32.mrf.mxu1  ;;  %v4959_v23 = vadd.f32 %v13960_v52, %v13846_v20  ;;  %v16316_v20 = vld [vmem:[#allocation17_spill] sm:$0xff] }
 0x70f   :  { %v5379_v8 = vunpack.c.l.b16 %v14108_v12  ;;  %v5380_v15 = vunpack.c.h.b16 %v14108_v12 }
 0x710   :  { %v5044_v16 = vrot.slane %v4958_v63, 6  ;;  %v4707_v29 = vadd.f32 %v4706_v59, %v4638_v56  ;;  %v4571_v54 = vadd.f32 %v4570_v43, %v4502_v50 }
 0x711   :  { %v14120_v22 = vpack.c.b16 %v5379_v8, %v14028_v39  ;;  %v14125_v35 = vpack.c.b16 %v5380_v15, %v14030_v51  ;;  %v16315_v39 = vld [vmem:[#allocation16_spill] sm:$0xff] }
 0x712   :  { %v5107_v53 = vsel %vm5059_vm0, %v4957_v42, %v5044_v16  ;;  %v5108_v58 = vsel %vm5061_vm1, %v4957_v42, %v5044_v16  ;;  %v5110_v18 = vsel %vm5064_vm2, %v4957_v42, %v5044_v16  ;;  %v4810_v34 = vrot.slane %v4707_v29, 2 }
 0x713   :  { %16313 = vst [vmem:[#allocation61_spill] sm:$0xff] %v14120_v22  ;;  %6204 = vmatmul.bf16.gmra.mxu0 %v14120_v22  ;;  %6243 = vmatmul.bf16.gmra.mxu1 %v14125_v35  ;;  %v5109_v28 = vrot.slane %v5108_v58, 2  ;;  %v5111_v47 = vrot.slane %v5110_v18, 4 }
 0x714   :  { %16314 = vst [vmem:[#allocation62_spill] sm:$0xff] %v14125_v35  ;;  %v4906_v4 = vadd.f32 %v4810_v34, %v16315_v39  ;;  %v5231_v59 = vld.sshfl [vmem:[#allocation1] sm:$0xff pattern:$0x73625140] }
 0x715   :  { %5228 = vst [vmem:[#allocation1 + $0x21] ss:$4 sm:$0xff] %v5107_v53  ;;  %v4639_v37 = vpop.f32.mrf.mxu2  ;;  %v4504_v27 = vpop.f32.mrf.mxu0  ;;  %v5232_v19 = vld.sshfl [vmem:[#allocation1 + $0x8] sm:$0xff pattern:$0x73625140] }
 0x716   :  { %5229 = vst [vmem:[#allocation1 + $0x22] ss:$4 sm:$0xff] %v5109_v28  ;;  %v4960_v51 = vadd.f32 %v13958_v62, %v4906_v4  ;;  %v4640_v2 = vadd.f32 %v4639_v37, %v4571_v54  ;;  %v4708_v61 = vpop.f32.mrf.mxu3  ;;  %v4573_v13 = vpop.f32.mrf.mxu1  ;;  %v4505_v56 = vadd.f32 %v4504_v27, %v13864_v38  ;;  %v5347_v18 = vpack.c.bf16 %v5232_v19, %v5231_v59 }
 0x717   :  { %5230 = vst [vmem:[#allocation1 + $0x23] ss:$4 sm:$0xff] %v5111_v47  ;;  %v4961_v27 = vadd.f32 %v13960_v52, %v13852_v14 }
 0x718   :  { %v5045_v45 = vrot.slane %v4960_v51, 6  ;;  %v4709_v63 = vadd.f32 %v4708_v61, %v4640_v2  ;;  %v4574_v58 = vadd.f32 %v4573_v13, %v4505_v56  ;;  %v5382_v59 = vunpack.c.h.b16 %v5347_v18 }
 0x71a   :  { %v5112_v42 = vsel %vm5059_vm0, %v4959_v23, %v5045_v45  ;;  %v5113_v50 = vsel %vm5061_vm1, %v4959_v23, %v5045_v45  ;;  %v5115_v16 = vsel %vm5064_vm2, %v4959_v23, %v5045_v45  ;;  %v4812_v29 = vrot.slane %v4709_v63, 2 }
 0x71b   :  { %v5114_v43 = vrot.slane %v5113_v50, 2  ;;  %5235 = vst [vmem:[#allocation1] ss:$4 sm:$0xff] %v5112_v42  ;;  %v5116_v53 = vrot.slane %v5115_v16, 4  ;;  %v5381_v23 = vunpack.c.l.b16 %v5347_v18 }
 0x71c   :  { %v4908_v34 = vadd.f32 %v4812_v29, %v16316_v20 }
 0x71d   :  { %5236 = vst [vmem:[#allocation1 + $0x1] ss:$4 sm:$0xff] %v5114_v43  ;;  %v4642_v28 = vpop.f32.mrf.mxu2  ;;  %v4506_v54 = vpop.f32.mrf.mxu0 }
 0x71e   :  { %v5233_v47 = vld.sshfl [vmem:[#allocation1 + $0x20] sm:$0xff pattern:$0x73625140]  ;;  %v5234_v38 = vld.sshfl [vmem:[#allocation1 + $0x28] sm:$0xff pattern:$0x73625140]  ;;  %v4643_v39 = vadd.f32 %v4642_v28, %v4574_v58  ;;  %v4711_v4 = vpop.f32.mrf.mxu3  ;;  %v4962_v51 = vadd.f32 %v13958_v62, %v4908_v34  ;;  %v4507_v2 = vadd.f32 %v4506_v54, %v13870_v41  ;;  %v4575_v61 = vpop.f32.mrf.mxu1  ;;  %v4963_v54 = vadd.f32 %v13960_v52, %v13862_v21 }
 0x71f   :  { %v14141_v37 = vpack.c.bf16 %v5234_v38, %v5233_v47  ;;  %5237 = vst [vmem:[#allocation1 + $0x2] ss:$4 sm:$0xff] %v5116_v53  ;;  %v16318_v53 = vld [vmem:[#allocation90_spill] sm:$0xff]  ;;  %v5413_v21 = vpack.c.b16 %v5381_v23, %v5379_v8  ;;  %v5511_v8 = vunpack.c.l.b16 %v5427_v9 }
 0x720   :  { %v4712_v13 = vadd.f32 %v4711_v4, %v4643_v39  ;;  %v5046_v56 = vrot.slane %v4962_v51, 6  ;;  %v4576_v42 = vadd.f32 %v4575_v61, %v4507_v2 }
 0x721   :  { %v5383_v45 = vunpack.c.l.b16 %v14141_v37  ;;  %v5384_v63 = vunpack.c.h.b16 %v14141_v37 }
 0x722   :  { %v4814_v19 = vrot.slane %v4712_v13, 2  ;;  %v5117_v50 = vsel %vm5059_vm0, %v4961_v27, %v5046_v56  ;;  %v5118_v43 = vsel %vm5061_vm1, %v4961_v27, %v5046_v56  ;;  %v5120_v41 = vsel %vm5064_vm2, %v4961_v27, %v5046_v56 }
 0x723   :  { %v14152_v16 = vpack.c.b16 %v5383_v45, %v5381_v23  ;;  %v5119_v29 = vrot.slane %v5118_v43, 2  ;;  %v5121_v14 = vrot.slane %v5120_v41, 4  ;;  %5238 = vst [vmem:[#allocation1 + $0x3] ss:$4 sm:$0xff] %v5117_v50  ;;  %v14155_v20 = vpack.c.b16 %v5384_v63, %v5382_v59  ;;  %v16320_v41 = vld [vmem:[#allocation91_spill] sm:$0xff] }
 0x724   :  { %v4910_v58 = vadd.f32 %v4814_v19, %v16318_v53 }
 0x725   :  { %16317 = vst [vmem:[#allocation63_spill] sm:$0xff] %v14152_v16  ;;  %6209 = vmatmul.bf16.gmra.mxu0 %v14152_v16  ;;  %v4644_v18 = vpop.f32.mrf.mxu2  ;;  %6248 = vmatmul.bf16.gmra.mxu1 %v14155_v20  ;;  %v4509_v38 = vpop.f32.mrf.mxu0  ;;  %v5488_v24 = vrot.slane %v14155_v20, 2 }
 0x726   :  { %16319 = vst [vmem:[#allocation64_spill] sm:$0xff] %v14155_v20  ;;  %v4964_v34 = vadd.f32 %v13958_v62, %v4910_v58  ;;  %v4645_v28 = vadd.f32 %v4644_v18, %v4576_v42  ;;  %v4713_v47 = vpop.f32.mrf.mxu3  ;;  %v4510_v39 = vadd.f32 %v4509_v38, %v13880_v10  ;;  %v4578_v4 = vpop.f32.mrf.mxu1 }
 0x727   :  { %5239 = vst [vmem:[#allocation1 + $0x20] ss:$4 sm:$0xff] %v5119_v29 }
 0x728   :  { %5240 = vst [vmem:[#allocation1 + $0x21] ss:$4 sm:$0xff] %v5121_v14  ;;  %v5047_v37 = vrot.slane %v4964_v34, 6  ;;  %v4714_v51 = vadd.f32 %v4713_v47, %v4645_v28  ;;  %v4579_v42 = vadd.f32 %v4578_v4, %v4510_v39  ;;  %v5414_v14 = vpack.c.b16 %v5382_v59, %v5380_v15 }
 0x72a   :  { %v5122_v2 = vsel %vm5059_vm0, %v4963_v54, %v5047_v37  ;;  %v5123_v61 = vsel %vm5061_vm1, %v4963_v54, %v5047_v37  ;;  %v5125_v27 = vsel %vm5064_vm2, %v4963_v54, %v5047_v37  ;;  %v4816_v13 = vrot.slane %v4714_v51, 2  ;;  %v5241_v56 = vld.sshfl [vmem:[#allocation1] sm:$0xff pattern:$0x73625140] }
 0x72b   :  { %v5242_v19 = vld.sshfl [vmem:[#allocation1 + $0x8] sm:$0xff pattern:$0x73625140]  ;;  %v5124_v43 = vrot.slane %v5123_v61, 2  ;;  %v5126_v10 = vrot.slane %v5125_v27, 4  ;;  %v4965_v54 = vadd.f32 %v13960_v52, %v13868_v36  ;;  %v5432_v61 = vrot.slane %v5413_v21, 3 }
 0x72c   :  { %v14166_v50 = vpack.c.bf16 %v5242_v19, %v5241_v56  ;;  %5245 = vst [vmem:[#allocation1] ss:$4 sm:$0xff] %v5122_v2  ;;  %v4912_v29 = vadd.f32 %v4816_v13, %v16320_v41  ;;  %v5435_v27 = vrot.slane %v5414_v14, 3  ;;  %v5512_v36 = vunpack.c.l.b16 %v5430_v49 }
 0x72d   :  { %v4647_v53 = vpop.f32.mrf.mxu2  ;;  %v4511_v4 = vpop.f32.mrf.mxu0  ;;  %5246 = vst [vmem:[#allocation1 + $0x1] ss:$4 sm:$0xff] %v5124_v43 }
 0x72e   :  { %v5403_v34 = vunpack.c.l.b16 %v14166_v50  ;;  %v5404_v28 = vunpack.c.h.b16 %v14166_v50  ;;  %v4966_v47 = vadd.f32 %v13958_v62, %v4912_v29  ;;  %v4648_v38 = vadd.f32 %v4647_v53, %v4579_v42  ;;  %v4716_v39 = vpop.f32.mrf.mxu3  ;;  %v4580_v15 = vpop.f32.mrf.mxu1  ;;  %5247 = vst [vmem:[#allocation1 + $0x2] ss:$4 sm:$0xff] %v5126_v10  ;;  %v16321_v29 = vld [vmem:[#allocation92_spill] sm:$0xff] }
 0x72f   :  { %v5243_v58 = vld.sshfl [vmem:[#allocation1 + $0x20] sm:$0xff pattern:$0x73625140]  ;;  %v5244_v18 = vld.sshfl [vmem:[#allocation1 + $0x28] sm:$0xff pattern:$0x73625140]  ;;  %v4512_v12 = vadd.f32 %v4511_v4, %v13886_v57 }
 0x730   :  { %v5350_v23 = vpack.c.bf16 %v5244_v18, %v5243_v58  ;;  %v14181_v59 = vpack.c.b16 %v5403_v34, %v5383_v45  ;;  %v14183_v37 = vpack.c.b16 %v5404_v28, %v5384_v63  ;;  %v5048_v51 = vrot.slane %v4966_v47, 6 }
 0x731   :  { %v4717_v2 = vadd.f32 %v4716_v39, %v4648_v38  ;;  %v4581_v43 = vadd.f32 %v4580_v15, %v4512_v12  ;;  %v5485_v47 = vrot.slane %v14152_v16, 2 }
 0x732   :  { %v5456_v13 = vunpack.c.l.b16 %v5350_v23  ;;  %v5433_v46 = vrot.slane %v14181_v59, 3  ;;  %v5436_v9 = vrot.slane %v14183_v37, 3  ;;  %v5127_v57 = vsel %vm5059_vm0, %v4965_v54, %v5048_v51  ;;  %v16327_v59 = vld [vmem:[#allocation94_spill] sm:$0xff] }
 0x733   :  { %v5128_v45 = vsel %vm5061_vm1, %v4965_v54, %v5048_v51  ;;  %v5130_v63 = vsel %vm5064_vm2, %v4965_v54, %v5048_v51  ;;  %5248 = vst [vmem:[#allocation1 + $0x3] ss:$4 sm:$0xff] %v5127_v57  ;;  %v4818_v19 = vrot.slane %v4717_v2, 2  ;;  %v5457_v53 = vunpack.c.h.b16 %v5350_v23  ;;  %v16328_v37 = vld [vmem:[#allocation102_spill] sm:$0xff] }
 0x734   :  { %v5129_v56 = vrot.slane %v5128_v45, 2  ;;  %v14192_v42 = vpack.c.b16 %v5456_v13, %v5403_v34  ;;  %v14197_v0 = vsel %vm5425_vm3, %v5432_v61, %v5433_v46  ;;  %v14202_v49 = vsel %vm5425_vm3, %v5435_v27, %v5436_v9 }
 0x735   :  { %v5131_v50 = vrot.slane %v5130_v63, 4  ;;  %v5515_v10 = vunpack.c.l.b16 %v14197_v0  ;;  %v5516_v41 = vunpack.c.l.b16 %v14202_v49  ;;  %v4914_v21 = vadd.f32 %v4818_v19, %v16321_v29  ;;  %v4649_v14 = vpop.f32.mrf.mxu2  ;;  %v4514_v34 = vpop.f32.mrf.mxu0 }
 0x736   :  { %5249 = vst [vmem:[#allocation1 + $0x20] ss:$4 sm:$0xff] %v5129_v56  ;;  %v4650_v58 = vadd.f32 %v4649_v14, %v4581_v43  ;;  %v4718_v18 = vpop.f32.mrf.mxu3  ;;  %v15825_v38 = vrot.slane %v14192_v42, 2  ;;  %v4583_v12 = vpop.f32.mrf.mxu1  ;;  %v4515_v51 = vadd.f32 %v4514_v34, %v13896_v5  ;;  %v4967_v2 = vadd.f32 %v13960_v52, %v13878_v30  ;;  %v16325_v43 = vld [vmem:[#allocation93_spill] sm:$0xff] }
 0x737   :  { %5250 = vst [vmem:[#allocation1 + $0x21] ss:$4 sm:$0xff] %v5131_v50  ;;  %v14209_v39 = vpack.c.b16 %v5515_v10, %v5511_v8  ;;  %v14211_v4 = vpack.c.b16 %v5516_v41, %v5512_v36  ;;  %v4968_v54 = vadd.f32 %v13958_v62, %v4914_v21  ;;  %v14225_v27 = vpack.c.b16 %v5457_v53, %v5404_v28 }
 0x738   :  { %v4719_v15 = vadd.f32 %v4718_v18, %v4650_v58  ;;  %v14218_v23 = vsel %vm5478_vm4, %v5485_v47, %v15825_v38  ;;  %v5513_v5 = vunpack.c.l.b16 %v5480_v26  ;;  %v4584_v63 = vadd.f32 %v4583_v12, %v4515_v51 }
 0x739   :  { %16322 = vst [vmem:[#allocation65_spill] sm:$0xff] %v14209_v39  ;;  %v5049_v61 = vrot.slane %v4968_v54, 6  ;;  %6282 = vmatmul.bf16.gmra.mxu2 %v14209_v39  ;;  %6321 = vmatmul.bf16.gmra.mxu3 %v14211_v4  ;;  %v5517_v8 = vunpack.c.l.b16 %v14218_v23  ;;  %v15824_v26 = vrot.slane %v14225_v27, 2  ;;  %v5514_v54 = vunpack.c.l.b16 %v5483_v25 }
 0x73a   :  { %16323 = vst [vmem:[#allocation66_spill] sm:$0xff] %v14211_v4  ;;  %v4820_v45 = vrot.slane %v4719_v15, 2  ;;  %v5253_v50 = vld.sshfl [vmem:[#allocation1] sm:$0xff pattern:$0x73625140]  ;;  %v4969_v15 = vadd.f32 %v13960_v52, %v13884_v55  ;;  %v5524_v55 = vunpack.c.l.b16 %v5436_v9  ;;  %v4971_v9 = vadd.f32 %v13960_v52, %v16328_v37 }
 0x73b   :  { %v5132_v36 = vsel %vm5059_vm0, %v4967_v2, %v5049_v61  ;;  %v5133_v13 = vsel %vm5061_vm1, %v4967_v2, %v5049_v61  ;;  %v5135_v57 = vsel %vm5064_vm2, %v4967_v2, %v5049_v61  ;;  %v14232_v19 = vpack.c.b16 %v5517_v8, %v5513_v5  ;;  %v5254_v41 = vld.sshfl [vmem:[#allocation1 + $0x8] sm:$0xff pattern:$0x73625140] }
 0x73c   :  { %v5134_v30 = vrot.slane %v5133_v13, 2  ;;  %v5136_v56 = vrot.slane %v5135_v57, 4  ;;  %5251 = vst [vmem:[#allocation1 + $0x22] ss:$4 sm:$0xff] %v5132_v36  ;;  %v4916_v28 = vadd.f32 %v4820_v45, %v16325_v43  ;;  %v14241_v18 = vsel %vm5478_vm4, %v5488_v24, %v15824_v26  ;;  %v10949_v26 = vld [vmem:[#allocation8 + $0x230] sm:$0xf] }
 0x73d   :  { %16324 = vst [vmem:[#allocation67_spill] sm:$0xff] %v14232_v19  ;;  %v4652_v10 = vpop.f32.mrf.mxu2  ;;  %v4516_v14 = vpop.f32.mrf.mxu0  ;;  %v5518_v12 = vunpack.c.l.b16 %v14241_v18  ;;  %v5523_v2 = vunpack.c.l.b16 %v5433_v46  ;;  %v5519_v8 = vunpack.c.h.b16 %v14197_v0  ;;  %v5520_v5 = vunpack.c.h.b16 %v14202_v49 }
 0x73e   :  { %5252 = vst [vmem:[#allocation1 + $0x23] ss:$4 sm:$0xff] %v5134_v30  ;;  %v4653_v29 = vadd.f32 %v4652_v10, %v4584_v63  ;;  %v4721_v21 = vpop.f32.mrf.mxu3  ;;  %v4970_v53 = vadd.f32 %v13958_v62, %v4916_v28  ;;  %v4585_v58 = vpop.f32.mrf.mxu1  ;;  %v4517_v47 = vadd.f32 %v4516_v14, %v13902_v33 }
 0x73f   :  { %5257 = vst [vmem:[#allocation1] ss:$4 sm:$0xff] %v5136_v56  ;;  %v14253_v36 = vpack.c.b16 %v5518_v12, %v5514_v54  ;;  %v5351_v56 = vpack.c.bf16 %v5254_v41, %v5253_v50 }
 0x740   :  { %v4722_v34 = vadd.f32 %v4721_v21, %v4653_v29  ;;  %v5050_v51 = vrot.slane %v4970_v53, 6  ;;  %v4586_v45 = vadd.f32 %v4585_v58, %v4517_v47  ;;  %v16329_v29 = vld [vmem:[#allocation103_spill] sm:$0xff]  ;;  %v14267_v53 = vpack.c.b16 %v5523_v2, %v5519_v8 }
 0x741   :  { %16326 = vst [vmem:[#allocation68_spill] sm:$0xff] %v14253_v36  ;;  %v14269_v58 = vpack.c.b16 %v5524_v55, %v5520_v5  ;;  %v5385_v54 = vunpack.c.l.b16 %v5351_v56  ;;  %v5386_v12 = vunpack.c.h.b16 %v5351_v56  ;;  %v16333_v55 = vld [vmem:[#allocation95_spill] sm:$0xff]  ;;  %v12177_v56 = vld [vmem:[#allocation8 + $0xf4] sm:$0xf] }
 0x742   :  { %v4822_v61 = vrot.slane %v4722_v34, 2  ;;  %v5137_v33 = vsel %vm5059_vm0, %v4969_v15, %v5050_v51  ;;  %v5138_v31 = vsel %vm5061_vm1, %v4969_v15, %v5050_v51  ;;  %v5140_v25 = vsel %vm5064_vm2, %v4969_v15, %v5050_v51 }
 0x743   :  { %v5139_v13 = vrot.slane %v5138_v31, 2  ;;  %v5141_v57 = vrot.slane %v5140_v25, 4  ;;  %5258 = vst [vmem:[#allocation1 + $0x1] ss:$4 sm:$0xff] %v5137_v33  ;;  %v12161_v25 = vld [vmem:[#allocation8 + $0x74] sm:$0xf] }
 0x744   :  { %v4918_v46 = vadd.f32 %v4822_v61, %v16327_v59  ;;  %16330 = vst [vmem:[#allocation69_spill] sm:$0xff] %v14269_v58  ;;  %v10727_v59 = vld [vmem:[#allocation8 + $0x78] sm:$0xf0] }
 0x745   :  { %v5255_v0 = vld.sshfl [vmem:[#allocation1 + $0x20] sm:$0xff pattern:$0x73625140]  ;;  %v5256_v30 = vld.sshfl [vmem:[#allocation1 + $0x28] sm:$0xff pattern:$0x73625140]  ;;  %v4654_v49 = vpop.f32.mrf.mxu2  ;;  %v4519_v10 = vpop.f32.mrf.mxu0 }
 0x746   :  { %5259 = vst [vmem:[#allocation1 + $0x2] ss:$4 sm:$0xff] %v5139_v13  ;;  %v4972_v63 = vadd.f32 %v13958_v62, %v4918_v46  ;;  %v4655_v43 = vadd.f32 %v4654_v49, %v4586_v45  ;;  %v4723_v28 = vpop.f32.mrf.mxu3  ;;  %v14262_v24 = vpack.c.bf16 %v5256_v30, %v5255_v0  ;;  %v4520_v21 = vadd.f32 %v4519_v10, %v16329_v29  ;;  %v4588_v14 = vpop.f32.mrf.mxu1  ;;  %v10981_v46 = vld [vmem:[#allocation8 + $0x270] sm:$0xf]  ;;  %v12226_v45 = vld [vmem:[#allocation8 + $0x274] sm:$0xf0] }
 0x747   :  { %5260 = vst [vmem:[#allocation1 + $0x3] ss:$4 sm:$0xff] %v5141_v57  ;;  %v10730_v30 = vor.u32 %v12161_v25, %v10727_v59  ;;  %v10982_v49 = vor.u32 %v12226_v45, %v10981_v46 }
 0x748   :  { %v5051_v50 = vrot.slane %v4972_v63, 6  ;;  %v4724_v41 = vadd.f32 %v4723_v28, %v4655_v43  ;;  %v5387_v34 = vunpack.c.l.b16 %v14262_v24  ;;  %v5388_v47 = vunpack.c.h.b16 %v14262_v24  ;;  %v10791_v63 = vld [vmem:[#allocation8 + $0xf8] sm:$0xf0] }
 0x749   :  { %6287 = vmatmul.bf16.gmra.mxu2 %v14267_v53  ;;  %6326 = vmatmul.bf16.gmra.mxu3 %v14269_v58  ;;  %v4589_v57 = vadd.f32 %v4588_v14, %v4520_v21  ;;  %v10794_v29 = vor.u32 %v12177_v56, %v10791_v63  ;;  %v16334_v21 = vld [vmem:[#allocation108_spill] sm:$0xff] }
 0x74a   :  { %v5142_v15 = vsel %vm5059_vm0, %v4971_v9, %v5051_v50  ;;  %v5143_v51 = vsel %vm5061_vm1, %v4971_v9, %v5051_v50  ;;  %v5145_v2 = vsel %vm5064_vm2, %v4971_v9, %v5051_v50  ;;  %v4824_v61 = vrot.slane %v4724_v41, 2  ;;  %6425 = vmatpush.bf16.msra.mxu2 %v10730_v30  ;;  %6347 = vmatpush.bf16.msra.mxu0 %v10982_v49  ;;  %v11045_v41 = vld [vmem:[#allocation8 + $0x2f0] sm:$0xf]  ;;  %v12159_v63 = vld [vmem:[#allocation8 + $0x64] sm:$0xf] }
 0x74b   :  { %v5144_v8 = vrot.slane %v5143_v51, 2  ;;  %v5146_v5 = vrot.slane %v5145_v2, 4  ;;  %5261 = vst [vmem:[#allocation1 + $0x20] ss:$4 sm:$0xff] %v5142_v15  ;;  %v14278_v33 = vpack.c.b16 %v5387_v34, %v5385_v54  ;;  %v14280_v31 = vpack.c.b16 %v5388_v47, %v5386_v12  ;;  %v12242_v54 = vld [vmem:[#allocation8 + $0x2f4] sm:$0xf0]  ;;  %6464 = vmatpush.bf16.msra.mxu3 %v10794_v29 }
 0x74c   :  { %v4920_v13 = vadd.f32 %v4824_v61, %v16333_v55  ;;  %v4973_v14 = vadd.f32 %v13960_v52, %v16334_v21  ;;  %v11046_v61 = vor.u32 %v12242_v54, %v11045_v41  ;;  %v16336_v29 = vld [vmem:[#allocation80_spill] sm:$0xff] }
 0x74d   :  { %16331 = vst [vmem:[#allocation70_spill] sm:$0xff] %v14278_v33  ;;  %6214 = vmatmul.bf16.gmra.mxu0 %v14278_v33  ;;  %6253 = vmatmul.bf16.gmra.mxu1 %v14280_v31  ;;  %v4657_v0 = vpop.f32.mrf.mxu2  ;;  %v4521_v9 = vpop.f32.mrf.mxu0  ;;  %v12175_v41 = vld [vmem:[#allocation8 + $0xe4] sm:$0xf] }
 0x74e   :  { %16332 = vst [vmem:[#allocation71_spill] sm:$0xff] %v14280_v31  ;;  %v5265_v43 = vld.sshfl [vmem:[#allocation1] sm:$0xff pattern:$0x73625140]  ;;  %v4974_v10 = vadd.f32 %v13958_v62, %v4920_v13  ;;  %v4658_v24 = vadd.f32 %v4657_v0, %v4589_v57  ;;  %v4726_v37 = vpop.f32.mrf.mxu3  ;;  %v4590_v50 = vpop.f32.mrf.mxu1  ;;  %v4522_v2 = vadd.f32 %v4521_v9, %v13918_v11  ;;  %6386 = vmatpush.bf16.msra.mxu1 %v11046_v61 }
 0x74f   :  { %5262 = vst [vmem:[#allocation1 + $0x21] ss:$4 sm:$0xff] %v5144_v8  ;;  %v5266_v28 = vld.sshfl [vmem:[#allocation1 + $0x8] sm:$0xff pattern:$0x73625140]  ;;  %v16335_v0 = vld [vmem:[#allocation18_spill] sm:$0xff] }
 0x750   :  { %5263 = vst [vmem:[#allocation1 + $0x22] ss:$4 sm:$0xff] %v5146_v5  ;;  %v5353_v12 = vpack.c.bf16 %v5266_v28, %v5265_v43  ;;  %v5052_v15 = vrot.slane %v4974_v10, 6  ;;  %v4727_v51 = vadd.f32 %v4726_v37, %v4658_v24  ;;  %v4591_v49 = vadd.f32 %v4590_v50, %v4522_v2  ;;  %v10719_v43 = vld [vmem:[#allocation8 + $0x68] sm:$0xf0] }
 0x751   :  { %v10722_v9 = vor.u32 %v12159_v63, %v10719_v43  ;;  %v11037_v2 = vld [vmem:[#allocation8 + $0x2e0] sm:$0xf]  ;;  %v5438_v43 = vrot.slane %v14278_v33, 3 }
 0x752   :  { %v14289_v8 = vunpack.c.l.b16 %v5353_v12  ;;  %v14291_v25 = vunpack.c.h.b16 %v5353_v12  ;;  %v5147_v55 = vsel %vm5059_vm0, %v4973_v14, %v5052_v15  ;;  %v5148_v5 = vsel %vm5061_vm1, %v4973_v14, %v5052_v15 }
 0x753   :  { %v5150_v13 = vsel %vm5064_vm2, %v4973_v14, %v5052_v15  ;;  %v4826_v57 = vrot.slane %v4727_v51, 2  ;;  %v5149_v59 = vrot.slane %v5148_v5, 2  ;;  %5264 = vst [vmem:[#allocation1 + $0x23] ss:$4 sm:$0xff] %v5147_v55  ;;  %v12224_v14 = vld [vmem:[#allocation8 + $0x264] sm:$0xf0]  ;;  %6426 = vmatpush.bf16.msra.mxu2 %v10722_v9 }
 0x754   :  { %v5151_v46 = vrot.slane %v5150_v13, 4  ;;  %v14297_v45 = vpack.c.b16 %v14289_v8, %v5387_v34  ;;  %v14300_v11 = vpack.c.b16 %v14291_v25, %v5388_v47  ;;  %v4975_v34 = vadd.f32 %v13960_v52, %v16336_v29  ;;  %v10973_v47 = vld [vmem:[#allocation8 + $0x260] sm:$0xf]  ;;  %v10783_v51 = vld [vmem:[#allocation8 + $0xe8] sm:$0xf0] }
 0x755   :  { %v4922_v30 = vadd.f32 %v4826_v57, %v16335_v0  ;;  %5269 = vst [vmem:[#allocation1] ss:$4 sm:$0xff] %v5149_v59  ;;  %v4659_v56 = vpop.f32.mrf.mxu2  ;;  %v4524_v37 = vpop.f32.mrf.mxu0  ;;  %v10974_v15 = vor.u32 %v12224_v14, %v10973_v47  ;;  %v10786_v61 = vor.u32 %v12175_v41, %v10783_v51  ;;  %v12240_v55 = vld [vmem:[#allocation8 + $0x2e4] sm:$0xf0] }
 0x756   :  { %5270 = vst [vmem:[#allocation1 + $0x1] ss:$4 sm:$0xff] %v5151_v46  ;;  %v4660_v10 = vadd.f32 %v4659_v56, %v4591_v49  ;;  %v4728_v24 = vpop.f32.mrf.mxu3  ;;  %v4593_v21 = vpop.f32.mrf.mxu1  ;;  %v4525_v12 = vadd.f32 %v4524_v37, %v13928_v40  ;;  %v11038_v0 = vor.u32 %v12240_v55, %v11037_v2  ;;  %v16337_v37 = vld [vmem:[#allocation19_spill] sm:$0xff]  ;;  %v16338_v14 = vld [vmem:[#allocation104_spill] sm:$0xff] }
 0x757   :  { %v4976_v28 = vadd.f32 %v13958_v62, %v4922_v30  ;;  %6348 = vmatpush.bf16.msra.mxu0 %v10974_v15  ;;  %6465 = vmatpush.bf16.msra.mxu3 %v10786_v61  ;;  %v4977_v41 = vadd.f32 %v13960_v52, %v16338_v14  ;;  %v10711_v15 = vld [vmem:[#allocation8 + $0x58] sm:$0xf0] }
 0x758   :  { %v4729_v50 = vadd.f32 %v4728_v24, %v4660_v10  ;;  %v4594_v63 = vadd.f32 %v4593_v21, %v4525_v12  ;;  %6387 = vmatpush.bf16.msra.mxu1 %v11038_v0  ;;  %v12157_v12 = vld [vmem:[#allocation8 + $0x54] sm:$0xf] }
 0x759   :  { %v5053_v54 = vrot.slane %v4976_v28, 6  ;;  %v5441_v28 = vrot.slane %v14280_v31, 3  ;;  %v10714_v0 = vor.u32 %v12157_v12, %v10711_v15 }
 0x75a   :  { %v5267_v5 = vld.sshfl [vmem:[#allocation1 + $0x20] sm:$0xff pattern:$0x73625140]  ;;  %v5268_v13 = vld.sshfl [vmem:[#allocation1 + $0x28] sm:$0xff pattern:$0x73625140] }
 0x75b   :  { %v5152_v57 = vsel %vm5059_vm0, %v4975_v34, %v5053_v54  ;;  %v5153_v59 = vsel %vm5061_vm1, %v4975_v34, %v5053_v54  ;;  %v5155_v46 = vsel %vm5064_vm2, %v4975_v34, %v5053_v54  ;;  %v4828_v40 = vrot.slane %v4729_v50, 2  ;;  %6427 = vmatpush.bf16.msra.mxu2 %v10714_v0 }
 0x75c   :  { %v5154_v30 = vrot.slane %v5153_v59, 2  ;;  %v5156_v49 = vrot.slane %v5155_v46, 4  ;;  %5273 = vst [vmem:[#allocation1 + $0x20] ss:$4 sm:$0xff] %v5152_v57  ;;  %v14310_v56 = vpack.c.bf16 %v5268_v13, %v5267_v5  ;;  %v10965_v57 = vld [vmem:[#allocation8 + $0x250] sm:$0xf] }
 0x75d   :  { %v5271_v10 = vld.sshfl [vmem:[#allocation1] sm:$0xff pattern:$0x73625140]  ;;  %v5272_v24 = vld.sshfl [vmem:[#allocation1 + $0x8] sm:$0xff pattern:$0x73625140]  ;;  %v4924_v9 = vadd.f32 %v4828_v40, %v16337_v37  ;;  %v4662_v29 = vpop.f32.mrf.mxu2  ;;  %v4526_v50 = vpop.f32.mrf.mxu0 }
 0x75e   :  { %v5405_v34 = vunpack.c.l.b16 %v14310_v56  ;;  %v5406_v47 = vunpack.c.h.b16 %v14310_v56  ;;  %5274 = vst [vmem:[#allocation1 + $0x21] ss:$4 sm:$0xff] %v5154_v30  ;;  %v4663_v54 = vadd.f32 %v4662_v29, %v4594_v63  ;;  %v4731_v21 = vpop.f32.mrf.mxu3  ;;  %v14319_v51 = vpack.c.bf16 %v5272_v24, %v5271_v10  ;;  %v4595_v55 = vpop.f32.mrf.mxu1  ;;  %v12222_v59 = vld [vmem:[#allocation8 + $0x254] sm:$0xf0]  ;;  %v12173_v40 = vld [vmem:[#allocation8 + $0xd4] sm:$0xf] }
 0x75f   :  { %5275 = vst [vmem:[#allocation1 + $0x22] ss:$4 sm:$0xff] %v5156_v49  ;;  %v4978_v2 = vadd.f32 %v13958_v62, %v4924_v9  ;;  %v4527_v61 = vadd.f32 %v4526_v50, %v13934_v7  ;;  %v10966_v30 = vor.u32 %v12222_v59, %v10965_v57  ;;  %v10775_v49 = vld [vmem:[#allocation8 + $0xd8] sm:$0xf0]  ;;  %v11029_v63 = vld [vmem:[#allocation8 + $0x2d0] sm:$0xf] }
 0x760   :  { %v14324_v5 = vpack.c.b16 %v5405_v34, %v14289_v8  ;;  %v14329_v13 = vpack.c.b16 %v5406_v47, %v14291_v25  ;;  %v4732_v46 = vadd.f32 %v4731_v21, %v4663_v54  ;;  %v5458_v10 = vunpack.c.l.b16 %v14319_v51  ;;  %v12238_v9 = vld [vmem:[#allocation8 + $0x2d4] sm:$0xf0]  ;;  %v10957_v59 = vld [vmem:[#allocation8 + $0x240] sm:$0xf] }
 0x761   :  { %v5054_v7 = vrot.slane %v4978_v2, 6  ;;  %v5491_v29 = vrot.slane %v14297_v45, 2  ;;  %6349 = vmatpush.bf16.msra.mxu0 %v10966_v30  ;;  %v10778_v50 = vor.u32 %v12173_v40, %v10775_v49  ;;  %v11030_v54 = vor.u32 %v12238_v9, %v11029_v63  ;;  %v12220_v45 = vld [vmem:[#allocation8 + $0x244] sm:$0xf0]  ;;  %v12155_v63 = vld [vmem:[#allocation8 + $0x44] sm:$0xf] }
 0x762   :  { %v5439_v24 = vrot.slane %v14324_v5, 3  ;;  %v15826_v37 = vrot.slane %v14329_v13, 3  ;;  %v4830_v14 = vrot.slane %v4732_v46, 2  ;;  %v14335_v21 = vpack.c.b16 %v5458_v10, %v5405_v34  ;;  %v11021_v46 = vld [vmem:[#allocation8 + $0x2c0] sm:$0xf] }
 0x763   :  { %v5157_v12 = vsel %vm5059_vm0, %v4977_v41, %v5054_v7  ;;  %v5158_v15 = vsel %vm5061_vm1, %v4977_v41, %v5054_v7  ;;  %v5160_v2 = vsel %vm5064_vm2, %v4977_v41, %v5054_v7  ;;  %v16340_v40 = vld [vmem:[#allocation96_spill] sm:$0xff]  ;;  %v4596_v49 = vadd.f32 %v4595_v55, %v4527_v61  ;;  %6466 = vmatpush.bf16.msra.mxu3 %v10778_v50  ;;  %v10703_v7 = vld [vmem:[#allocation8 + $0x48] sm:$0xf0]  ;;  %v10983_v5 = vld [vmem:[#allocation8 + $0x278] sm:$0xf0] }
 0x764   :  { %v14343_v57 = vsel %vm5425_vm3, %v5438_v43, %v5439_v24  ;;  %v5159_v0 = vrot.slane %v5158_v15, 2  ;;  %v5161_v30 = vrot.slane %v5160_v2, 4  ;;  %5276 = vst [vmem:[#allocation1 + $0x23] ss:$4 sm:$0xff] %v5157_v12  ;;  %v4926_v34 = vadd.f32 %v4830_v14, %v16340_v40  ;;  %6388 = vmatpush.bf16.msra.mxu1 %v11030_v54  ;;  %v12171_v12 = vld [vmem:[#allocation8 + $0xc4] sm:$0xf] }
 0x765   :  { %16339 = vst [vmem:[#allocation72_spill] sm:$0xff] %v14343_v57  ;;  %6292 = vmatmul.bf16.gmra.mxu2 %v14343_v57  ;;  %v4979_v41 = vadd.f32 %v13960_v52, %v13926_v60  ;;  %v14352_v43 = vsel %vm5425_vm3, %v5441_v28, %v15826_v37  ;;  %v4664_v10 = vpop.f32.mrf.mxu2  ;;  %v10958_v9 = vor.u32 %v12220_v45, %v10957_v59  ;;  %v10767_v15 = vld [vmem:[#allocation8 + $0xc8] sm:$0xf0]  ;;  %v4529_v50 = vpop.f32.mrf.mxu0  ;;  %v12236_v2 = vld [vmem:[#allocation8 + $0x2c4] sm:$0xf0]  ;;  %v15828_v40 = vrot.slane %v14335_v21, 2 }
 0x766   :  { %16341 = vst [vmem:[#allocation73_spill] sm:$0xff] %v14352_v43  ;;  %v4980_v61 = vadd.f32 %v13958_v62, %v4926_v34  ;;  %6331 = vmatmul.bf16.gmra.mxu3 %v14352_v43  ;;  %v4665_v55 = vadd.f32 %v4664_v10, %v4596_v49  ;;  %v4733_v14 = vpop.f32.mrf.mxu3  ;;  %v10706_v60 = vor.u32 %v12155_v63, %v10703_v7  ;;  %v4598_v54 = vpop.f32.mrf.mxu1  ;;  %v11013_v49 = vld [vmem:[#allocation8 + $0x2b0] sm:$0xf]  ;;  %v12234_v10 = vld [vmem:[#allocation8 + $0x2b4] sm:$0xf0] }
 0x767   :  { %5279 = vst [vmem:[#allocation1] ss:$4 sm:$0xff] %v5159_v0  ;;  %v4530_v28 = vadd.f32 %v4529_v50, %v13944_v1  ;;  %6350 = vmatpush.bf16.msra.mxu0 %v10958_v9  ;;  %v10770_v59 = vor.u32 %v12171_v12, %v10767_v15  ;;  %v11022_v45 = vor.u32 %v12236_v2, %v11021_v46  ;;  %v12218_v0 = vld [vmem:[#allocation8 + $0x234] sm:$0xf0]  ;;  %v12216_v15 = vld [vmem:[#allocation8 + $0x224] sm:$0xf0] }
 0x768   :  { %5280 = vst [vmem:[#allocation1 + $0x1] ss:$4 sm:$0xff] %v5161_v30  ;;  %v5055_v38 = vrot.slane %v4980_v61, 6  ;;  %v4734_v34 = vadd.f32 %v4733_v14, %v4665_v55  ;;  %6428 = vmatpush.bf16.msra.mxu2 %v10706_v60  ;;  %v10950_v37 = vor.u32 %v12218_v0, %v10949_v26  ;;  %v14361_v63 = vsel %vm5478_vm4, %v5491_v29, %v15828_v40  ;;  %v10941_v26 = vld [vmem:[#allocation8 + $0x220] sm:$0xf]  ;;  %v16343_v2 = vld [vmem:[#allocation97_spill] sm:$0xff] }
 0x769   :  { %16342 = vst [vmem:[#allocation74_spill] sm:$0xff] %v14361_v63  ;;  %6467 = vmatpush.bf16.msra.mxu3 %v10770_v59  ;;  %6389 = vmatpush.bf16.msra.mxu1 %v11022_v45  ;;  %v11014_v1 = vor.u32 %v12234_v10, %v11013_v49  ;;  %v5459_v30 = vunpack.c.h.b16 %v14319_v51  ;;  %v4599_v14 = vadd.f32 %v4598_v54, %v4530_v28  ;;  %v11005_v45 = vld [vmem:[#allocation8 + $0x2a0] sm:$0xf]  ;;  %v16344_v0 = vld [vmem:[#allocation38_spill] sm:$0xff]  ;;  %v10695_v10 = vld [vmem:[#allocation8 + $0x38] sm:$0xf0] }
 0x76a   :  { %v5162_v46 = vsel %vm5059_vm0, %v4979_v41, %v5055_v38  ;;  %v5163_v7 = vsel %vm5061_vm1, %v4979_v41, %v5055_v38  ;;  %v5165_v9 = vsel %vm5064_vm2, %v4979_v41, %v5055_v38  ;;  %v4832_v12 = vrot.slane %v4734_v34, 2  ;;  %v12232_v41 = vld [vmem:[#allocation8 + $0x2a4] sm:$0xf0]  ;;  %v12153_v34 = vld [vmem:[#allocation8 + $0x34] sm:$0xf] }
 0x76b   :  { %v5277_v61 = vld.sshfl [vmem:[#allocation1 + $0x20] sm:$0xff pattern:$0x73625140]  ;;  %v5278_v55 = vld.sshfl [vmem:[#allocation1 + $0x28] sm:$0xff pattern:$0x73625140]  ;;  %6351 = vmatpush.bf16.msra.mxu0 %v10950_v37  ;;  %v10942_v29 = vor.u32 %v12216_v15, %v10941_v26  ;;  %v4981_v49 = vadd.f32 %v13960_v52, %v16344_v0  ;;  %v14374_v37 = vpack.c.b16 %v5459_v30, %v5406_v47  ;;  %v11006_v56 = vor.u32 %v12232_v41, %v11005_v45 }
 0x76c   :  { %v5164_v50 = vrot.slane %v5163_v7, 2  ;;  %v5166_v60 = vrot.slane %v5165_v9, 4  ;;  %5281 = vst [vmem:[#allocation1 + $0x2] ss:$4 sm:$0xff] %v5162_v46  ;;  %v4928_v59 = vadd.f32 %v4832_v12, %v16343_v2  ;;  %v14368_v51 = vpack.c.bf16 %v5278_v55, %v5277_v61  ;;  %v12169_v26 = vld [vmem:[#allocation8 + $0xb4] sm:$0xf] }
 0x76d   :  { %v4667_v38 = vpop.f32.mrf.mxu2  ;;  %6390 = vmatpush.bf16.msra.mxu1 %v11014_v1  ;;  %v4531_v7 = vpop.f32.mrf.mxu0  ;;  %v10759_v15 = vld [vmem:[#allocation8 + $0xb8] sm:$0xf0]  ;;  %v16345_v1 = vld [vmem:[#allocation42_spill] sm:$0xff]  ;;  %v10698_v47 = vor.u32 %v12153_v34, %v10695_v10  ;;  %v5494_v41 = vrot.slane %v14300_v11, 2  ;;  %v15827_v34 = vrot.slane %v14374_v37, 2 }
 0x76e   :  { %5282 = vst [vmem:[#allocation1 + $0x3] ss:$4 sm:$0xff] %v5164_v50  ;;  %v4982_v28 = vadd.f32 %v13958_v62, %v4928_v59  ;;  %v4668_v54 = vadd.f32 %v4667_v38, %v4599_v14  ;;  %v4736_v46 = vpop.f32.mrf.mxu3  ;;  %v5391_v9 = vunpack.c.l.b16 %v14368_v51  ;;  %v5392_v12 = vunpack.c.h.b16 %v14368_v51  ;;  %v4600_v55 = vpop.f32.mrf.mxu1  ;;  %v10933_v30 = vld [vmem:[#allocation8 + $0x210] sm:$0xf]  ;;  %v12214_v50 = vld [vmem:[#allocation8 + $0x214] sm:$0xf0] }
 0x76f   :  { %5283 = vst [vmem:[#allocation1 + $0x20] ss:$4 sm:$0xff] %v5166_v60  ;;  %v4532_v61 = vadd.f32 %v4531_v7, %v16345_v1  ;;  %6352 = vmatpush.bf16.msra.mxu0 %v10942_v29  ;;  %v10997_v60 = vld [vmem:[#allocation8 + $0x290] sm:$0xf]  ;;  %v12230_v38 = vld [vmem:[#allocation8 + $0x294] sm:$0xf0]  ;;  %6429 = vmatpush.bf16.msra.mxu2 %v10698_v47  ;;  %v10762_v29 = vor.u32 %v12169_v26, %v10759_v15 }
 0x770   :  { %v5056_v2 = vrot.slane %v4982_v28, 6  ;;  %v4737_v59 = vadd.f32 %v4736_v46, %v4668_v54  ;;  %v14383_v14 = vpack.c.b16 %v5391_v9, %v14289_v8  ;;  %v14388_v0 = vpack.c.b16 %v5392_v12, %v14291_v25  ;;  %v10925_v11 = vld [vmem:[#allocation8 + $0x200] sm:$0xf]  ;;  %v16347_v15 = vld [vmem:[#allocation98_spill] sm:$0xff] }
 0x771   :  { %6391 = vmatpush.bf16.msra.mxu1 %v11006_v56  ;;  %v10934_v45 = vor.u32 %v12214_v50, %v10933_v30  ;;  %6468 = vmatpush.bf16.msra.mxu3 %v10762_v29  ;;  %v10998_v7 = vor.u32 %v12230_v38, %v10997_v60  ;;  %v14400_v26 = vsel %vm5478_vm4, %v5494_v41, %v15827_v34  ;;  %v12212_v56 = vld [vmem:[#allocation8 + $0x204] sm:$0xf0]  ;;  %v10989_v47 = vld [vmem:[#allocation8 + $0x280] sm:$0xf] }
 0x772   :  { %v5167_v10 = vsel %vm5059_vm0, %v4981_v49, %v5056_v2  ;;  %v5168_v8 = vsel %vm5061_vm1, %v4981_v49, %v5056_v2  ;;  %v5170_v28 = vsel %vm5064_vm2, %v4981_v49, %v5056_v2  ;;  %v4834_v54 = vrot.slane %v4737_v59, 2  ;;  %6219 = vmatmul.bf16.gmra.mxu0 %v14383_v14  ;;  %6258 = vmatmul.bf16.gmra.mxu1 %v14388_v0  ;;  %v12228_v30 = vld [vmem:[#allocation8 + $0x284] sm:$0xf0] }
 0x773   :  { %v5169_v25 = vrot.slane %v5168_v8, 2  ;;  %v5171_v46 = vrot.slane %v5170_v28, 4  ;;  %5284 = vst [vmem:[#allocation1 + $0x21] ss:$4 sm:$0xff] %v5167_v10  ;;  %6353 = vmatpush.bf16.msra.mxu0 %v10934_v45  ;;  %v4601_v49 = vadd.f32 %v4600_v55, %v4532_v61  ;;  %v10926_v2 = vor.u32 %v12212_v56, %v10925_v11  ;;  %v12151_v45 = vld [vmem:[#allocation8 + $0x24] sm:$0xf] }
 0x774   :  { %16346 = vst [vmem:[#allocation75_spill] sm:$0xff] %v14400_v26  ;;  %v4930_v1 = vadd.f32 %v4834_v54, %v16347_v15  ;;  %v10990_v59 = vor.u32 %v12228_v30, %v10989_v47  ;;  %v10687_v10 = vld [vmem:[#allocation8 + $0x28] sm:$0xf0]  ;;  %v16348_v61 = vld [vmem:[#allocation39_spill] sm:$0xff] }
 0x775   :  { %v4669_v50 = vpop.f32.mrf.mxu2  ;;  %6392 = vmatpush.bf16.msra.mxu1 %v10998_v7  ;;  %5285 = vst [vmem:[#allocation1 + $0x22] ss:$4 sm:$0xff] %v5169_v25  ;;  %v6200_v38 = vpop.f32.mrf.mxu0  ;;  %v10690_v28 = vor.u32 %v12151_v45, %v10687_v10  ;;  %v4983_v55 = vadd.f32 %v13960_v52, %v16348_v61  ;;  %v12167_v7 = vld [vmem:[#allocation8 + $0xa4] sm:$0xf]  ;;  %v10751_v11 = vld [vmem:[#allocation8 + $0xa8] sm:$0xf0] }
 0x776   :  { %v4984_v29 = vadd.f32 %v13958_v62, %v4930_v1  ;;  %v4670_v60 = vadd.f32 %v4669_v50, %v4601_v49  ;;  %5286 = vst [vmem:[#allocation1 + $0x23] ss:$4 sm:$0xff] %v5171_v46  ;;  %v4738_v41 = vpop.f32.mrf.mxu3  ;;  %v6239_v8 = vpop.f32.mrf.mxu1  ;;  %v10754_v25 = vor.u32 %v12167_v7, %v10751_v11  ;;  %v5287_v1 = vld.sshfl [vmem:[#allocation1] sm:$0xff pattern:$0x73625140] }
 0x777   :  { %6354 = vmatpush.bf16.msra.mxu0 %v10926_v2  ;;  %v6240_v56 = vadd.f32 %v6239_v8, %v6200_v38  ;;  %6430 = vmatpush.bf16.msra.mxu2 %v10690_v28  ;;  %v5288_v49 = vld.sshfl [vmem:[#allocation1 + $0x8] sm:$0xff pattern:$0x73625140]  ;;  %v16350_v28 = vld [vmem:[#allocation105_spill] sm:$0xff] }
 0x778   :  { %v5057_v54 = vrot.slane %v4984_v29, 6  ;;  %v4739_v15 = vadd.f32 %v4738_v41, %v4670_v60  ;;  %6469 = vmatpush.bf16.msra.mxu3 %v10754_v25  ;;  %v16349_v29 = vld [vmem:[#allocation99_spill] sm:$0xff]  ;;  %v4985_v61 = vadd.f32 %v13960_v52, %v16350_v28 }
 0x779   :  { %6393 = vmatpush.bf16.msra.mxu1 %v10990_v59  ;;  %v5357_v59 = vpack.c.bf16 %v5288_v49, %v5287_v1  ;;  %v10679_v52 = vld [vmem:[#allocation8 + $0x18] sm:$0xf0] }
 0x77a   :  { %v5172_v47 = vsel %vm5059_vm0, %v4983_v55, %v5057_v54  ;;  %v5173_v46 = vsel %vm5061_vm1, %v4983_v55, %v5057_v54  ;;  %v5175_v30 = vsel %vm5064_vm2, %v4983_v55, %v5057_v54  ;;  %v4836_v45 = vrot.slane %v4739_v15, 2 }
 0x77b   :  { %v5174_v50 = vrot.slane %v5173_v46, 2  ;;  %v5176_v2 = vrot.slane %v5175_v30, 4  ;;  %5291 = vst [vmem:[#allocation1] ss:$4 sm:$0xff] %v5172_v47  ;;  %v5393_v55 = vunpack.c.l.b16 %v5357_v59  ;;  %v5394_v54 = vunpack.c.h.b16 %v5357_v59 }
 0x77c   :  { %v4932_v60 = vadd.f32 %v4836_v45, %v16349_v29  ;;  %v10743_v45 = vld [vmem:[#allocation8 + $0x98] sm:$0xf0] }
 0x77d   :  { %5292 = vst [vmem:[#allocation1 + $0x1] ss:$4 sm:$0xff] %v5174_v50  ;;  %v5289_v38 = vld.sshfl [vmem:[#allocation1 + $0x20] sm:$0xff pattern:$0x73625140]  ;;  %v14420_v29 = vpop.f32.mrf.mxu0 }
 0x77e   :  { %5293 = vst [vmem:[#allocation1 + $0x2] ss:$4 sm:$0xff] %v5176_v2  ;;  %v4986_v10 = vadd.f32 %v13958_v62, %v4932_v60  ;;  %v5290_v41 = vld.sshfl [vmem:[#allocation1 + $0x28] sm:$0xff pattern:$0x73625140] }
 0x77f   :  { %v5358_v8 = vpack.c.bf16 %v5290_v41, %v5289_v38  ;;  %v12149_v50 = vld [vmem:[#allocation8 + $0x14] sm:$0xf]  ;;  %v14424_v38 = vpop.f32.mrf.mxu1 }
 0x780   :  { %v5058_v7 = vrot.slane %v4986_v10, 6  ;;  %v12165_v2 = vld [vmem:[#allocation8 + $0x94] sm:$0xf]  ;;  %v10682_v60 = vor.u32 %v12149_v50, %v10679_v52  ;;  %v5421_v50 = vpack.c.b16 %v5393_v55, %v5391_v9 }
 0x781   :  { %v5395_v11 = vunpack.c.l.b16 %v5358_v8  ;;  %v5396_v47 = vunpack.c.h.b16 %v5358_v8  ;;  %v10746_v59 = vor.u32 %v12165_v2, %v10743_v45  ;;  %v10735_v2 = vld [vmem:[#allocation8 + $0x88] sm:$0xf0] }
 0x782   :  { %v5177_v15 = vsel %vm5059_vm0, %v4985_v61, %v5058_v7  ;;  %v5178_v25 = vsel %vm5061_vm1, %v4985_v61, %v5058_v7  ;;  %v5180_v46 = vsel %vm5064_vm2, %v4985_v61, %v5058_v7  ;;  %6431 = vmatpush.bf16.msra.mxu2 %v10682_v60 }
 0x783   :  { %v5179_v1 = vrot.slane %v5178_v25, 2  ;;  %v5181_v49 = vrot.slane %v5180_v46, 4  ;;  %5294 = vst [vmem:[#allocation1 + $0x3] ss:$4 sm:$0xff] %v5177_v15  ;;  %v14416_v62 = vpack.c.b16 %v5395_v11, %v5393_v55  ;;  %v14418_v30 = vpack.c.b16 %v5396_v47, %v5394_v54  ;;  %6470 = vmatpush.bf16.msra.mxu3 %v10746_v59  ;;  %v12147_v25 = vld [vmem:[#allocation8 + $0x4] sm:$0xf] }
 0x784   :  { %v10671_v46 = vld [vmem:[#allocation8 + $0x8] sm:$0xf0]  ;;  %v5444_v55 = vrot.slane %v5421_v50, 3 }
 0x785   :  { %16351 = vst [vmem:[#allocation77_spill] sm:$0xff] %v14416_v62  ;;  %6224 = vmatmul.bf16.gmra.mxu0 %v14416_v62  ;;  %6263 = vmatmul.bf16.gmra.mxu1 %v14418_v30  ;;  %v10674_v52 = vor.u32 %v12147_v25, %v10671_v46  ;;  %v5535_v25 = vunpack.c.l.b16 %v5439_v24  ;;  %v16353_v46 = vrot.slane %v14329_v13, 3  ;;  %v12193_v24 = vld [vmem:[#allocation8 + $0x174] sm:$0xf] }
 0x786   :  { %16352 = vst [vmem:[#allocation20_spill] sm:$0xff] %v14418_v30 }
 0x787   :  { %5295 = vst [vmem:[#allocation1 + $0x20] ss:$4 sm:$0xff] %v5179_v1  ;;  %v6278_v10 = vpop.f32.mrf.mxu2  ;;  %v12163_v1 = vld [vmem:[#allocation8 + $0x84] sm:$0xf]  ;;  %6432 = vmatpush.bf16.msra.mxu2 %v10674_v52 }
 0x788   :  { %5296 = vst [vmem:[#allocation1 + $0x21] ss:$4 sm:$0xff] %v5181_v49  ;;  %v6279_v41 = vadd.f32 %v6278_v10, %v6240_v56  ;;  %v6317_v8 = vpop.f32.mrf.mxu3  ;;  %v5422_v56 = vpack.c.b16 %v5394_v54, %v5392_v12  ;;  %v10738_v60 = vor.u32 %v12163_v1, %v10735_v2  ;;  %v5536_v1 = vunpack.c.l.b16 %v16353_v46  ;;  %v12225_v2 = vld [vmem:[#allocation8 + $0x274] sm:$0xf] }
 0x789   :  { %v10986_v13 = vor.u32 %v12225_v2, %v10983_v5 }
 0x78a   :  { %v14426_v28 = vadd.f32 %v6317_v8, %v6279_v41  ;;  %v5297_v61 = vld.sshfl [vmem:[#allocation1] sm:$0xff pattern:$0x73625140]  ;;  %v5298_v7 = vld.sshfl [vmem:[#allocation1 + $0x8] sm:$0xff pattern:$0x73625140]  ;;  %6471 = vmatpush.bf16.msra.mxu3 %v10738_v60 }
 0x78b   :  { %v14428_v15 = vpack.c.bf16 %v5298_v7, %v5297_v61  ;;  %v5447_v51 = vrot.slane %v5422_v56, 3  ;;  %v10855_v60 = vld [vmem:[#allocation8 + $0x178] sm:$0xf0]  ;;  %6581 = vmatpush.bf16.msrb.mxu2 %v10986_v13 }
 0x78d   :  { %v15830_v49 = vunpack.c.l.b16 %v14428_v15  ;;  %v15829_v45 = vunpack.c.h.b16 %v14428_v15 }
 0x78f   :  { %v5423_v8 = vpack.c.b16 %v15830_v49, %v5395_v11  ;;  %v5424_v9 = vpack.c.b16 %v15829_v45, %v5396_v47 }
 0x790   :  { %v6205_v59 = vpop.f32.mrf.mxu0  ;;  %v6244_v10 = vpop.f32.mrf.mxu1 }
 0x791   :  { %v14436_v41 = vadd.f32 %v6244_v10, %v6205_v59  ;;  %v5445_v12 = vrot.slane %v5423_v8, 3  ;;  %v5448_v54 = vrot.slane %v5424_v9, 3  ;;  %v12241_v59 = vld [vmem:[#allocation8 + $0x2f4] sm:$0xf]  ;;  %v11047_v10 = vld [vmem:[#allocation8 + $0x2f8] sm:$0xf0]  ;;  %v10858_v9 = vor.u32 %v12193_v24, %v10855_v60 }
 0x792   :  { %v12223_v60 = vld [vmem:[#allocation8 + $0x264] sm:$0xf] }
 0x793   :  { %v5446_v61 = vsel %vm5425_vm3, %v5444_v55, %v5445_v12  ;;  %v5449_v7 = vsel %vm5425_vm3, %v5447_v51, %v5448_v54  ;;  %v11050_v55 = vor.u32 %v12241_v59, %v11047_v10  ;;  %6503 = vmatpush.bf16.msrb.mxu0 %v10858_v9  ;;  %v12209_v51 = vld [vmem:[#allocation8 + $0x1f4] sm:$0xf]  ;;  %v5547_v34 = vunpack.c.l.b16 %v5445_v12  ;;  %v10975_v59 = vld [vmem:[#allocation8 + $0x268] sm:$0xf0]  ;;  %v12191_v10 = vld [vmem:[#allocation8 + $0x164] sm:$0xf] }
 0x794   :  { %v5539_v52 = vunpack.c.l.b16 %v5446_v61  ;;  %v5540_v11 = vunpack.c.l.b16 %v5449_v7  ;;  %v5544_v40 = vunpack.c.h.b16 %v5449_v7  ;;  %v5548_v2 = vunpack.c.l.b16 %v5448_v54  ;;  %v10911_v7 = vld [vmem:[#allocation8 + $0x1e8] sm:$0xf0] }
 0x795   :  { %6355 = vmatmul.bf16.vlgmr.msra.gmra.mxu0 %v14096_v44  ;;  %6394 = vmatmul.bf16.vlgmr.msra.gmra.mxu1 %v14101_v17  ;;  %v10978_v9 = vor.u32 %v12223_v60, %v10975_v59  ;;  %v12221_v60 = vld [vmem:[#allocation8 + $0x254] sm:$0xf]  ;;  %v10967_v59 = vld [vmem:[#allocation8 + $0x258] sm:$0xf0] }
 0x796   :  { %v14450_v47 = vpack.c.b16 %v5539_v52, %v5535_v25  ;;  %v14452_v50 = vpack.c.b16 %v5540_v11, %v5536_v1  ;;  %6620 = vmatpush.bf16.msrb.mxu3 %v11050_v55  ;;  %v10919_v25 = vld [vmem:[#allocation8 + $0x1f8] sm:$0xf0]  ;;  %v5543_v11 = vunpack.c.h.b16 %v5446_v61  ;;  %v14466_v13 = vpack.c.b16 %v5548_v2, %v5544_v40  ;;  %v10847_v55 = vld [vmem:[#allocation8 + $0x168] sm:$0xf0] }
 0x797   :  { %v10922_v46 = vor.u32 %v12209_v51, %v10919_v25  ;;  %v12239_v51 = vld [vmem:[#allocation8 + $0x2e4] sm:$0xf]  ;;  %v11039_v61 = vld [vmem:[#allocation8 + $0x2e8] sm:$0xf0]  ;;  %v10850_v12 = vor.u32 %v12191_v10, %v10847_v55  ;;  %6582 = vmatpush.bf16.msrb.mxu2 %v10978_v9  ;;  %v5521_v25 = vunpack.c.h.b16 %v14218_v23  ;;  %v12189_v10 = vld [vmem:[#allocation8 + $0x154] sm:$0xf]  ;;  %v14476_v9 = vpop.f32.mrf.mxu2  ;;  %v14478_v55 = vpop.f32.mrf.mxu3  ;;  %v10970_v23 = vor.u32 %v12221_v60, %v10967_v59 }
 0x798   :  { %6297 = vmatmul.bf16.gmra.mxu2 %v14450_v47  ;;  %6336 = vmatmul.bf16.gmra.mxu3 %v14452_v50  ;;  %v14456_v56 = vpop.f32.mrf.mxu0  ;;  %v14458_v8 = vpop.f32.mrf.mxu1  ;;  %v14464_v24 = vpack.c.b16 %v5547_v34, %v5543_v11  ;;  %16355 = vst [vmem:[#allocation22_spill] sm:$0xff] %v14466_v13  ;;  %v11042_v54 = vor.u32 %v12239_v51, %v11039_v61  ;;  %v12207_v34 = vld [vmem:[#allocation8 + $0x1e4] sm:$0xf]  ;;  %v16357_v11 = vrot.slane %v14225_v27, 2  ;;  %v12205_v27 = vld [vmem:[#allocation8 + $0x1d4] sm:$0xf] }
 0x799   :  { %6542 = vmatpush.bf16.msrb.mxu1 %v10922_v46  ;;  %6504 = vmatpush.bf16.msrb.mxu0 %v10850_v12  ;;  %v10914_v40 = vor.u32 %v12207_v34, %v10911_v7  ;;  %v16356_v46 = vrot.slane %v14192_v42, 2  ;;  %v10839_v12 = vld [vmem:[#allocation8 + $0x158] sm:$0xf0]  ;;  %v12237_v42 = vld [vmem:[#allocation8 + $0x2d4] sm:$0xf] }
 0x79a   :  { %16354 = vst [vmem:[#allocation21_spill] sm:$0xff] %v14464_v24  ;;  %6621 = vmatpush.bf16.msrb.mxu3 %v11042_v54  ;;  %v5526_v2 = vunpack.c.l.b16 %v16357_v11  ;;  %v11031_v54 = vld [vmem:[#allocation8 + $0x2d8] sm:$0xf0]  ;;  %v10842_v34 = vor.u32 %v12189_v10, %v10839_v12  ;;  %v12187_v11 = vld [vmem:[#allocation8 + $0x144] sm:$0xf] }
 0x79b   :  { %6583 = vmatpush.bf16.msrb.mxu2 %v10970_v23  ;;  %v10903_v7 = vld [vmem:[#allocation8 + $0x1d8] sm:$0xf0]  ;;  %v10831_v60 = vld [vmem:[#allocation8 + $0x148] sm:$0xf0]  ;;  %v12235_v59 = vld [vmem:[#allocation8 + $0x2c4] sm:$0xf] }
 0x79c   :  { %v11023_v10 = vld [vmem:[#allocation8 + $0x2c8] sm:$0xf0]  ;;  %v10834_v23 = vor.u32 %v12187_v11, %v10831_v60 }
 0x79d   :  { %6543 = vmatpush.bf16.msrb.mxu1 %v10914_v40  ;;  %6505 = vmatpush.bf16.msrb.mxu0 %v10842_v34  ;;  %v5299_v40 = vld.sshfl [vmem:[#allocation1 + $0x20] sm:$0xff pattern:$0x73625140]  ;;  %v11026_v12 = vor.u32 %v12235_v59, %v11023_v10 }
 0x7a1   :  { %6506 = vmatpush.bf16.msrb.mxu0 %v10834_v23  ;;  %v12201_v23 = vld [vmem:[#allocation8 + $0x1b4] sm:$0xf] }
 0x7a2   :  { %v6210_v1 = vpop.f32.mrf.mxu0  ;;  %v6249_v52 = vpop.f32.mrf.mxu1 }
 0x7a3   :  { %v14460_v5 = vadd.f32 %v6249_v52, %v6210_v1  ;;  %v5525_v1 = vunpack.c.l.b16 %v16356_v46  ;;  %v5522_v52 = vunpack.c.h.b16 %v14241_v18  ;;  %v11034_v18 = vor.u32 %v12237_v42, %v11031_v54  ;;  %v5300_v46 = vld.sshfl [vmem:[#allocation1 + $0x28] sm:$0xff pattern:$0x73625140]  ;;  %v10895_v54 = vld [vmem:[#allocation8 + $0x1c8] sm:$0xf0] }
 0x7a4   :  { %v12203_v42 = vld [vmem:[#allocation8 + $0x1c4] sm:$0xf] }
 0x7a5   :  { %6360 = vmatmul.bf16.gmra.mxu0 %v14232_v19  ;;  %6399 = vmatmul.bf16.gmra.mxu1 %v14253_v36  ;;  %v14480_v51 = vpack.c.b16 %v5525_v1, %v5521_v25  ;;  %v14482_v61 = vpack.c.b16 %v5526_v2, %v5522_v52  ;;  %v10906_v25 = vor.u32 %v12205_v27, %v10903_v7  ;;  %v12219_v1 = vld [vmem:[#allocation8 + $0x244] sm:$0xf]  ;;  %v10959_v52 = vld [vmem:[#allocation8 + $0x248] sm:$0xf0] }
 0x7a6   :  { %6622 = vmatpush.bf16.msrb.mxu3 %v11034_v18  ;;  %v10962_v2 = vor.u32 %v12219_v1, %v10959_v52  ;;  %v10898_v18 = vor.u32 %v12203_v42, %v10895_v54  ;;  %v5360_v7 = vpack.c.bf16 %v5300_v46, %v5299_v40  ;;  %v10823_v46 = vld [vmem:[#allocation8 + $0x138] sm:$0xf0] }
 0x7a7   :  { %16358 = vst [vmem:[#allocation23_spill] sm:$0xff] %v14482_v61  ;;  %6544 = vmatpush.bf16.msrb.mxu1 %v10906_v25  ;;  %v10887_v42 = vld [vmem:[#allocation8 + $0x1b8] sm:$0xf0] }
 0x7a8   :  { %6302 = vmatmul.bf16.gmra.mxu2 %v14464_v24  ;;  %6341 = vmatmul.bf16.gmra.mxu3 %v14466_v13  ;;  %v5460_v25 = vunpack.c.l.b16 %v5360_v7  ;;  %v5461_v1 = vunpack.c.h.b16 %v5360_v7  ;;  %v10890_v54 = vor.u32 %v12201_v23, %v10887_v42  ;;  %v10879_v23 = vld [vmem:[#allocation8 + $0x1a8] sm:$0xf0]  ;;  %v12217_v42 = vld [vmem:[#allocation8 + $0x234] sm:$0xf]  ;;  %v10871_v24 = vld [vmem:[#allocation8 + $0x198] sm:$0xf0] }
 0x7a9   :  { %6584 = vmatpush.bf16.msrb.mxu2 %v10962_v2  ;;  %v16359_v2 = vunpack.c.l.b16 %v14428_v15 }
 0x7aa   :  { %6623 = vmatpush.bf16.msrb.mxu3 %v11026_v12  ;;  %v14491_v52 = vpop.f32.mrf.mxu0  ;;  %v14493_v11 = vpop.f32.mrf.mxu1 }
 0x7ab   :  { %6545 = vmatpush.bf16.msrb.mxu1 %v10898_v18  ;;  %v14501_v10 = vpack.c.b16 %v5460_v25, %v16359_v2  ;;  %v10815_v2 = vld [vmem:[#allocation8 + $0x128] sm:$0xf0]  ;;  %v10951_v18 = vld [vmem:[#allocation8 + $0x238] sm:$0xf0] }
 0x7af   :  { %6546 = vmatpush.bf16.msrb.mxu1 %v10890_v54 }
 0x7b5   :  { %6365 = vmatmul.bf16.gmra.mxu0 %v14480_v51  ;;  %6404 = vmatmul.bf16.gmra.mxu1 %v14482_v61 }
 0x7b8   :  { %6433 = vmatmul.bf16.vlgmr.msra.gmra.mxu2 %v14042_v32  ;;  %6472 = vmatmul.bf16.vlgmr.msra.gmra.mxu3 %v14045_v6 }
 0x7bc   :  { %v6283_v34 = vpop.f32.mrf.mxu2  ;;  %v6322_v45 = vpop.f32.mrf.mxu3 }
 0x7bd   :  { %v6284_v27 = vadd.f32 %v6283_v34, %v14436_v41  ;;  %v16360_v41 = vunpack.c.h.b16 %v14428_v15  ;;  %v5497_v34 = vrot.slane %v14416_v62, 2  ;;  %v10954_v15 = vor.u32 %v12217_v42, %v10951_v18 }
 0x7be   :  { %v16363_v42 = vrot.slane %v14335_v21, 2  ;;  %v12215_v21 = vld [vmem:[#allocation8 + $0x224] sm:$0xf] }
 0x7bf   :  { %v14489_v49 = vadd.f32 %v6322_v45, %v6284_v27  ;;  %v14505_v40 = vpack.c.b16 %v5461_v1, %v16360_v41  ;;  %v12185_v45 = vld [vmem:[#allocation8 + $0x134] sm:$0xf]  ;;  %v5500_v27 = vrot.slane %v14418_v30, 2  ;;  %v12183_v1 = vld [vmem:[#allocation8 + $0x124] sm:$0xf]  ;;  %6585 = vmatpush.bf16.msrb.mxu2 %v10954_v15 }
 0x7c0   :  { %v10826_v12 = vor.u32 %v12185_v45, %v10823_v46  ;;  %v12199_v41 = vld [vmem:[#allocation8 + $0x1a4] sm:$0xf]  ;;  %v10818_v46 = vor.u32 %v12183_v1, %v10815_v2  ;;  %v10807_v1 = vld [vmem:[#allocation8 + $0x118] sm:$0xf0]  ;;  %v12197_v2 = vld [vmem:[#allocation8 + $0x194] sm:$0xf] }
 0x7c1   :  { %v10882_v32 = vor.u32 %v12199_v41, %v10879_v23  ;;  %v16362_v54 = vrot.slane %v14505_v40, 2  ;;  %v10874_v41 = vor.u32 %v12197_v2, %v10871_v24 }
 0x7c2   :  { %6507 = vmatpush.bf16.msrb.mxu0 %v10826_v12 }
 0x7c3   :  { %v5502_v13 = vsel %vm5478_vm4, %v5500_v27, %v16362_v54  ;;  %6547 = vmatpush.bf16.msrb.mxu1 %v10882_v32  ;;  %v5537_v27 = vunpack.c.l.b16 %v16363_v42  ;;  %v10943_v54 = vld [vmem:[#allocation8 + $0x228] sm:$0xf0]  ;;  %v16368_v42 = vrot.slane %v14505_v40, 2 }
 0x7c4   :  { %v14495_v60 = vpop.f32.mrf.mxu2  ;;  %v14497_v59 = vpop.f32.mrf.mxu3 }
 0x7c5   :  { %6370 = vmatmul.bf16.gmra.mxu0 %v14361_v63  ;;  %6409 = vmatmul.bf16.gmra.mxu1 %v14400_v26  ;;  %v12233_v26 = vld [vmem:[#allocation8 + $0x2b4] sm:$0xf] }
 0x7c6   :  { %v12181_v63 = vld [vmem:[#allocation8 + $0x114] sm:$0xf]  ;;  %6508 = vmatpush.bf16.msrb.mxu0 %v10818_v46  ;;  %v12195_v46 = vld [vmem:[#allocation8 + $0x184] sm:$0xf] }
 0x7c7   :  { %v10810_v18 = vor.u32 %v12181_v63, %v10807_v1  ;;  %6548 = vmatpush.bf16.msrb.mxu1 %v10874_v41  ;;  %v16367_v41 = vrot.slane %v14501_v10, 2 }
 0x7c8   :  { %6438 = vmatmul.bf16.gmra.mxu2 %v14120_v22  ;;  %6477 = vmatmul.bf16.gmra.mxu3 %v14125_v35  ;;  %v11015_v22 = vld [vmem:[#allocation8 + $0x2b8] sm:$0xf0]  ;;  %v16361_v35 = vrot.slane %v14501_v10, 2 }
 0x7ca   :  { %v6215_v7 = vpop.f32.mrf.mxu0  ;;  %v6254_v25 = vpop.f32.mrf.mxu1  ;;  %v5499_v12 = vsel %vm5478_vm4, %v5497_v34, %v16361_v35  ;;  %v5542_v34 = vunpack.c.l.b16 %v5502_v13  ;;  %6509 = vmatpush.bf16.msrb.mxu0 %v10810_v18 }
 0x7cb   :  { %v14515_v45 = vadd.f32 %v6254_v25, %v6215_v7  ;;  %v11018_v25 = vor.u32 %v12233_v26, %v11015_v22  ;;  %v5541_v35 = vunpack.c.l.b16 %v5499_v12  ;;  %v12179_v26 = vld [vmem:[#allocation8 + $0x104] sm:$0xf]  ;;  %v5545_v18 = vunpack.c.h.b16 %v5499_v12 }
 0x7cc   :  { %v6288_v6 = vpop.f32.mrf.mxu2  ;;  %v6327_v61 = vpop.f32.mrf.mxu3 }
 0x7cd   :  { %v6289_v7 = vadd.f32 %v6288_v6, %v14460_v5  ;;  %6624 = vmatpush.bf16.msrb.mxu3 %v11018_v25  ;;  %v16364_v6 = vrot.slane %v14374_v37, 2  ;;  %v10799_v5 = vld [vmem:[#allocation8 + $0x108] sm:$0xf0]  ;;  %v14530_v32 = vpack.c.b16 %v5541_v35, %v5537_v27  ;;  %v10946_v37 = vor.u32 %v12215_v21, %v10943_v54 }
 0x7ce   :  { %v10802_v24 = vor.u32 %v12179_v26, %v10799_v5  ;;  %v11007_v25 = vld [vmem:[#allocation8 + $0x2a8] sm:$0xf0]  ;;  %v5549_v35 = vunpack.c.l.b16 %v16367_v41  ;;  %v5550_v27 = vunpack.c.l.b16 %v16368_v42  ;;  %v12213_v5 = vld [vmem:[#allocation8 + $0x214] sm:$0xf] }
 0x7cf   :  { %v14524_v23 = vadd.f32 %v6327_v61, %v6289_v7  ;;  %v5538_v22 = vunpack.c.l.b16 %v16364_v6  ;;  %16365 = vst [vmem:[#allocation48_spill] sm:$0xff] %v14530_v32  ;;  %v10863_v61 = vld [vmem:[#allocation8 + $0x188] sm:$0xf0]  ;;  %v12231_v7 = vld [vmem:[#allocation8 + $0x2a4] sm:$0xf]  ;;  %6586 = vmatpush.bf16.msrb.mxu2 %v10946_v37 }
 0x7d0   :  { %v10866_v15 = vor.u32 %v12195_v46, %v10863_v61  ;;  %6510 = vmatpush.bf16.msrb.mxu0 %v10802_v24  ;;  %v11010_v1 = vor.u32 %v12231_v7, %v11007_v25  ;;  %v10935_v46 = vld [vmem:[#allocation8 + $0x218] sm:$0xf0]  ;;  %v12229_v24 = vld [vmem:[#allocation8 + $0x294] sm:$0xf]  ;;  %v12211_v7 = vld [vmem:[#allocation8 + $0x204] sm:$0xf] }
 0x7d1   :  { %v14532_v63 = vpack.c.b16 %v5542_v34, %v5538_v22  ;;  %v5546_v34 = vunpack.c.h.b16 %v5502_v13  ;;  %v14546_v22 = vpack.c.b16 %v5549_v35, %v5545_v18  ;;  %v10938_v61 = vor.u32 %v12213_v5, %v10935_v46  ;;  %v10927_v25 = vld [vmem:[#allocation8 + $0x208] sm:$0xf0] }
 0x7d2   :  { %6549 = vmatpush.bf16.msrb.mxu1 %v10866_v15  ;;  %6625 = vmatpush.bf16.msrb.mxu3 %v11010_v1  ;;  %v10999_v15 = vld [vmem:[#allocation8 + $0x298] sm:$0xf0]  ;;  %v14550_v21 = vpop.f32.mrf.mxu0  ;;  %v14554_v10 = vpop.f32.mrf.mxu1  ;;  %v12227_v1 = vld [vmem:[#allocation8 + $0x284] sm:$0xf]  ;;  %v10930_v18 = vor.u32 %v12211_v7, %v10927_v25  ;;  %v10991_v41 = vld [vmem:[#allocation8 + $0x288] sm:$0xf0] }
 0x7d3   :  { %16366 = vst [vmem:[#allocation26_spill] sm:$0xff] %v14532_v63  ;;  %v14548_v26 = vpack.c.b16 %v5550_v27, %v5546_v34  ;;  %v11002_v13 = vor.u32 %v12229_v24, %v10999_v15  ;;  %6587 = vmatpush.bf16.msrb.mxu2 %v10938_v61  ;;  %v10994_v35 = vor.u32 %v12227_v1, %v10991_v41  ;;  %v11237_v24 = vld [vmem:[#allocation8 + $0x470] sm:$0xf]  ;;  %v12290_v61 = vld [vmem:[#allocation8 + $0x474] sm:$0xf0] }
 0x7d4   :  { %v14538_v2 = vpop.f32.mrf.mxu2  ;;  %v14544_v6 = vpop.f32.mrf.mxu3  ;;  %16369 = vst [vmem:[#allocation54_spill] sm:$0xff] %v14546_v22  ;;  %v11109_v15 = vld [vmem:[#allocation8 + $0x370] sm:$0xf] }
 0x7d5   :  { %6375 = vmatmul.bf16.gmra.mxu0 %v14530_v32  ;;  %6414 = vmatmul.bf16.gmra.mxu1 %v14532_v63  ;;  %16370 = vst [vmem:[#allocation24_spill] sm:$0xff] %v14548_v26  ;;  %v11173_v1 = vld [vmem:[#allocation8 + $0x3f0] sm:$0xf] }
 0x7d6   :  { %6626 = vmatpush.bf16.msrb.mxu3 %v11002_v13  ;;  %v11238_v13 = vor.u32 %v12290_v61, %v11237_v24  ;;  %v11101_v24 = vld [vmem:[#allocation8 + $0x360] sm:$0xf] }
 0x7d7   :  { %6588 = vmatpush.bf16.msrb.mxu2 %v10930_v18  ;;  %v12274_v18 = vld [vmem:[#allocation8 + $0x3f4] sm:$0xf0] }
 0x7d8   :  { %6443 = vmatmul.bf16.gmra.mxu2 %v14152_v16  ;;  %6482 = vmatmul.bf16.gmra.mxu3 %v14155_v20  ;;  %v11174_v41 = vor.u32 %v12274_v18, %v11173_v1  ;;  %v11165_v18 = vld [vmem:[#allocation8 + $0x3e0] sm:$0xf] }
 0x7da   :  { %6627 = vmatpush.bf16.msrb.mxu3 %v10994_v35  ;;  %7400 = vmatpush.bf16.msra.mxu1 %v11174_v41  ;;  %v12272_v41 = vld [vmem:[#allocation8 + $0x3e4] sm:$0xf0] }
 0x7db   :  { %7439 = vmatpush.bf16.msra.mxu2 %v11238_v13 }
 0x7e5   :  { %6380 = vmatmul.bf16.gmra.mxu0 %v14546_v22  ;;  %6419 = vmatmul.bf16.gmra.mxu1 %v14548_v26 }
 0x7e8   :  { %v6293_v40 = vpop.f32.mrf.mxu2  ;;  %6448 = vmatmul.bf16.gmra.mxu2 %v14278_v33  ;;  %6487 = vmatmul.bf16.gmra.mxu3 %v14280_v31 }
 0x7e9   :  { %v6294_v12 = vadd.f32 %v6293_v40, %v14515_v45  ;;  %v6332_v54 = vpop.f32.mrf.mxu3  ;;  %v12258_v40 = vld [vmem:[#allocation8 + $0x374] sm:$0xf0] }
 0x7ea   :  { %v11110_v7 = vor.u32 %v12258_v40, %v11109_v15  ;;  %v12256_v15 = vld [vmem:[#allocation8 + $0x364] sm:$0xf0]  ;;  %v11293_v40 = vld [vmem:[#allocation8 + $0x4e0] sm:$0xf] }
 0x7eb   :  { %v14559_v37 = vadd.f32 %v6332_v54, %v6294_v12  ;;  %v11301_v12 = vld [vmem:[#allocation8 + $0x4f0] sm:$0xf]  ;;  %v12306_v54 = vld [vmem:[#allocation8 + $0x4f4] sm:$0xf0]  ;;  %v11102_v13 = vor.u32 %v12256_v15, %v11101_v24 }
 0x7ec   :  { %v11302_v25 = vor.u32 %v12306_v54, %v11301_v12  ;;  %7361 = vmatpush.bf16.msra.mxu0 %v11110_v7  ;;  %v12304_v12 = vld [vmem:[#allocation8 + $0x4e4] sm:$0xf0] }
 0x7ed   :  { %v11294_v54 = vor.u32 %v12304_v12, %v11293_v40  ;;  %v11221_v12 = vld [vmem:[#allocation8 + $0x450] sm:$0xf] }
 0x7ee   :  { %7478 = vmatpush.bf16.msra.mxu3 %v11302_v25 }
 0x7ef   :  { %v6220_v34 = vpop.f32.mrf.mxu0  ;;  %v6259_v42 = vpop.f32.mrf.mxu1 }
 0x7f0   :  { %v14561_v27 = vadd.f32 %v6259_v42, %v6220_v34  ;;  %7362 = vmatpush.bf16.msra.mxu0 %v11102_v13  ;;  %v12286_v13 = vld [vmem:[#allocation8 + $0x454] sm:$0xf0] }
 0x7f1   :  { %v14581_v24 = vpop.f32.mrf.mxu3 }
 0x7f2   :  { %7479 = vmatpush.bf16.msra.mxu3 %v11294_v54  ;;  %v11093_v54 = vld [vmem:[#allocation8 + $0x350] sm:$0xf] }
 0x7f5   :  { %6511 = vmatmul.bf16.vlgmr.msrb.gmra.mxu0 %v14078_v3  ;;  %6550 = vmatmul.bf16.vlgmr.msrb.gmra.mxu1 %v14085_v48 }
 0x7f7   :  { %v6222_v45 = vpop.f32.mrf.mxu0  ;;  %v6261_v5 = vpop.f32.mrf.mxu1 }
 0x7f8   :  { %v14565_v46 = vadd.f32 %v6261_v5, %v6222_v45  ;;  %6453 = vmatmul.bf16.gmra.mxu2 %v14383_v14  ;;  %6492 = vmatmul.bf16.gmra.mxu3 %v14388_v0  ;;  %v11229_v45 = vld [vmem:[#allocation8 + $0x460] sm:$0xf]  ;;  %v12288_v5 = vld [vmem:[#allocation8 + $0x464] sm:$0xf0] }
 0x7f9   :  { %v11230_v61 = vor.u32 %v12288_v5, %v11229_v45  ;;  %v6242_v5 = vadd.f32 %v14424_v38, %v14420_v29  ;;  %v11285_v29 = vld [vmem:[#allocation8 + $0x4d0] sm:$0xf]  ;;  %v12302_v38 = vld [vmem:[#allocation8 + $0x4d4] sm:$0xf0] }
 0x7fb   :  { %7440 = vmatpush.bf16.msra.mxu2 %v11230_v61  ;;  %v6281_v15 = vadd.f32 %v14476_v9, %v6242_v5 }
 0x7fd   :  { %v6320_v9 = vadd.f32 %v14478_v55, %v6281_v15  ;;  %v12252_v55 = vld [vmem:[#allocation8 + $0x344] sm:$0xf0]  ;;  %v11277_v15 = vld [vmem:[#allocation8 + $0x4c0] sm:$0xf] }
 0x802   :  { %v6225_v35 = vpop.f32.mrf.mxu0  ;;  %v6264_v34 = vpop.f32.mrf.mxu1 }
 0x803   :  { %v14569_v42 = vadd.f32 %v6264_v34, %v6225_v35  ;;  %v11166_v35 = vor.u32 %v12272_v41, %v11165_v18  ;;  %v11286_v41 = vor.u32 %v12302_v38, %v11285_v29  ;;  %v12284_v29 = vld [vmem:[#allocation8 + $0x444] sm:$0xf0]  ;;  %v11085_v38 = vld [vmem:[#allocation8 + $0x340] sm:$0xf] }
 0x805   :  { %6516 = vmatmul.bf16.gmra.mxu0 %v14209_v39  ;;  %6555 = vmatmul.bf16.gmra.mxu1 %v14211_v4 }
 0x806   :  { %7401 = vmatpush.bf16.msra.mxu1 %v11166_v35  ;;  %v11157_v35 = vld [vmem:[#allocation8 + $0x3d0] sm:$0xf]  ;;  %7480 = vmatpush.bf16.msra.mxu3 %v11286_v41 }
 0x808   :  { %6458 = vmatmul.bf16.gmra.mxu2 %v14416_v62  ;;  %6497 = vmatmul.bf16.gmra.mxu3 %v14418_v30  ;;  %v14579_v62 = vpop.f32.mrf.mxu2  ;;  %v12270_v30 = vld [vmem:[#allocation8 + $0x3d4] sm:$0xf0] }
 0x80a   :  { %v6227_v7 = vpop.f32.mrf.mxu0  ;;  %v6266_v25 = vpop.f32.mrf.mxu1 }
 0x80b   :  { %v14575_v1 = vadd.f32 %v6266_v25, %v6227_v7  ;;  %v11222_v7 = vor.u32 %v12286_v13, %v11221_v12  ;;  %v12254_v25 = vld [vmem:[#allocation8 + $0x354] sm:$0xf0] }
 0x80c   :  { %v11094_v18 = vor.u32 %v12254_v25, %v11093_v54  ;;  %v11213_v25 = vld [vmem:[#allocation8 + $0x440] sm:$0xf] }
 0x80d   :  { %7441 = vmatpush.bf16.msra.mxu2 %v11222_v7  ;;  %v12300_v7 = vld [vmem:[#allocation8 + $0x4c4] sm:$0xf0] }
 0x80e   :  { %7363 = vmatpush.bf16.msra.mxu0 %v11094_v18  ;;  %v11086_v18 = vor.u32 %v12252_v55, %v11085_v38 }
 0x812   :  { %v6356_v34 = vpop.f32.mrf.mxu0  ;;  %v6395_v45 = vpop.f32.mrf.mxu1  ;;  %7364 = vmatpush.bf16.msra.mxu0 %v11086_v18 }
 0x813   :  { %v6357_v61 = vadd.f32 %v6356_v34, %v14426_v28  ;;  %v11158_v28 = vor.u32 %v12270_v30, %v11157_v35  ;;  %v11214_v30 = vor.u32 %v12284_v29, %v11213_v25  ;;  %v11278_v35 = vor.u32 %v12300_v7, %v11277_v15  ;;  %v12268_v25 = vld [vmem:[#allocation8 + $0x3c4] sm:$0xf0]  ;;  %v11077_v29 = vld [vmem:[#allocation8 + $0x330] sm:$0xf] }
 0x815   :  { %v14585_v40 = vadd.f32 %v6395_v45, %v6357_v61  ;;  %6521 = vmatmul.bf16.gmra.mxu0 %v14267_v53  ;;  %6560 = vmatmul.bf16.gmra.mxu1 %v14269_v58 }
 0x816   :  { %7402 = vmatpush.bf16.msra.mxu1 %v11158_v28  ;;  %7442 = vmatpush.bf16.msra.mxu2 %v11214_v30  ;;  %v12266_v30 = vld [vmem:[#allocation8 + $0x3b4] sm:$0xf0] }
 0x817   :  { %7481 = vmatpush.bf16.msra.mxu3 %v11278_v35 }
 0x818   :  { %6589 = vmatmul.bf16.vlgmr.msrb.gmra.mxu2 %v14096_v44  ;;  %6628 = vmatmul.bf16.vlgmr.msrb.gmra.mxu3 %v14101_v17 }
 0x81a   :  { %v6358_v34 = vpop.f32.mrf.mxu0  ;;  %v6397_v45 = vpop.f32.mrf.mxu1 }
 0x81b   :  { %v6359_v5 = vadd.f32 %v6358_v34, %v6320_v9  ;;  %v6298_v61 = vpop.f32.mrf.mxu2  ;;  %v6337_v12 = vpop.f32.mrf.mxu3 }
 0x81c   :  { %v6299_v13 = vadd.f32 %v6298_v61, %v14561_v27  ;;  %v6247_v27 = vadd.f32 %v14458_v8, %v14456_v56  ;;  %v12250_v8 = vld [vmem:[#allocation8 + $0x334] sm:$0xf0] }
 0x81d   :  { %v14593_v54 = vadd.f32 %v6397_v45, %v6359_v5  ;;  %v11078_v55 = vor.u32 %v12250_v8, %v11077_v29  ;;  %v11269_v8 = vld [vmem:[#allocation8 + $0x4b0] sm:$0xf] }
 0x81e   :  { %v14595_v17 = vadd.f32 %v6337_v12, %v6299_v13  ;;  %v6286_v61 = vadd.f32 %v14495_v60, %v6247_v27  ;;  %v11149_v13 = vld [vmem:[#allocation8 + $0x3c0] sm:$0xf] }
 0x81f   :  { %v11150_v56 = vor.u32 %v12268_v25, %v11149_v13  ;;  %7365 = vmatpush.bf16.msra.mxu0 %v11078_v55  ;;  %v12282_v25 = vld [vmem:[#allocation8 + $0x434] sm:$0xf0] }
 0x820   :  { %v6325_v60 = vadd.f32 %v14497_v59, %v6286_v61  ;;  %v12264_v59 = vld [vmem:[#allocation8 + $0x3a4] sm:$0xf0]  ;;  %v11205_v61 = vld [vmem:[#allocation8 + $0x430] sm:$0xf] }
 0x821   :  { %7403 = vmatpush.bf16.msra.mxu1 %v11150_v56  ;;  %v11206_v56 = vor.u32 %v12282_v25, %v11205_v61  ;;  %v11053_v61 = vld [vmem:[#allocation8 + $0x300] sm:$0xf]  ;;  %v12244_v25 = vld [vmem:[#allocation8 + $0x304] sm:$0xf0] }
 0x822   :  { %v6361_v41 = vpop.f32.mrf.mxu0  ;;  %v6400_v28 = vpop.f32.mrf.mxu1 }
 0x823   :  { %v6362_v9 = vadd.f32 %v6361_v41, %v14489_v49  ;;  %v6300_v34 = vpop.f32.mrf.mxu2  ;;  %v6339_v45 = vpop.f32.mrf.mxu3  ;;  %v11141_v49 = vld [vmem:[#allocation8 + $0x3b0] sm:$0xf]  ;;  %7443 = vmatpush.bf16.msra.mxu2 %v11206_v56 }
 0x824   :  { %v6301_v5 = vadd.f32 %v6300_v34, %v14565_v46  ;;  %v11142_v46 = vor.u32 %v12266_v30, %v11141_v49  ;;  %v12248_v34 = vld [vmem:[#allocation8 + $0x324] sm:$0xf0]  ;;  %v12298_v49 = vld [vmem:[#allocation8 + $0x4b4] sm:$0xf0]  ;;  %v11061_v30 = vld [vmem:[#allocation8 + $0x310] sm:$0xf] }
 0x825   :  { %v14602_v12 = vadd.f32 %v6400_v28, %v6362_v9  ;;  %6526 = vmatmul.bf16.gmra.mxu0 %v14343_v57  ;;  %6565 = vmatmul.bf16.gmra.mxu1 %v14352_v43  ;;  %v11069_v9 = vld [vmem:[#allocation8 + $0x320] sm:$0xf]  ;;  %v11270_v55 = vor.u32 %v12298_v49, %v11269_v8  ;;  %v12280_v8 = vld [vmem:[#allocation8 + $0x424] sm:$0xf0] }
 0x826   :  { %v14606_v38 = vadd.f32 %v6339_v45, %v6301_v5  ;;  %7404 = vmatpush.bf16.msra.mxu1 %v11142_v46  ;;  %v11133_v45 = vld [vmem:[#allocation8 + $0x3a0] sm:$0xf]  ;;  %v11070_v13 = vor.u32 %v12248_v34, %v11069_v9 }
 0x827   :  { %v11134_v29 = vor.u32 %v12264_v59, %v11133_v45  ;;  %7482 = vmatpush.bf16.msra.mxu3 %v11270_v55  ;;  %v16371_v55 = vld [vmem:[#allocation23_spill] sm:$0xff] }
 0x828   :  { %6594 = vmatmul.bf16.gmra.mxu2 %v14232_v19  ;;  %6633 = vmatmul.bf16.gmra.mxu3 %v14253_v36 }
 0x829   :  { %7366 = vmatpush.bf16.msra.mxu0 %v11070_v13 }
 0x82a   :  { %v6363_v15 = vpop.f32.mrf.mxu0  ;;  %v6402_v7 = vpop.f32.mrf.mxu1  ;;  %7405 = vmatpush.bf16.msra.mxu1 %v11134_v29  ;;  %v11117_v29 = vld [vmem:[#allocation8 + $0x380] sm:$0xf] }
 0x82b   :  { %v6364_v18 = vadd.f32 %v6363_v15, %v6325_v60  ;;  %v6303_v35 = vpop.f32.mrf.mxu2  ;;  %v6342_v41 = vpop.f32.mrf.mxu3  ;;  %v11125_v60 = vld [vmem:[#allocation8 + $0x390] sm:$0xf]  ;;  %v12262_v15 = vld [vmem:[#allocation8 + $0x394] sm:$0xf0] }
 0x82c   :  { %v6304_v28 = vadd.f32 %v6303_v35, %v14569_v42  ;;  %v12246_v42 = vld [vmem:[#allocation8 + $0x314] sm:$0xf0]  ;;  %v11126_v35 = vor.u32 %v12262_v15, %v11125_v60 }
 0x82d   :  { %v14612_v27 = vadd.f32 %v6402_v7, %v6364_v18  ;;  %v11062_v46 = vor.u32 %v12246_v42, %v11061_v30  ;;  %v11261_v30 = vld [vmem:[#allocation8 + $0x4a0] sm:$0xf] }
 0x82e   :  { %v14614_v5 = vadd.f32 %v6342_v41, %v6304_v28  ;;  %v6252_v41 = vadd.f32 %v14493_v11, %v14491_v52  ;;  %7406 = vmatpush.bf16.msra.mxu1 %v11126_v35  ;;  %v11054_v52 = vor.u32 %v12244_v25, %v11053_v61  ;;  %v12260_v11 = vld [vmem:[#allocation8 + $0x384] sm:$0xf0] }
 0x82f   :  { %7367 = vmatpush.bf16.msra.mxu0 %v11062_v46 }
 0x830   :  { %v6291_v13 = vadd.f32 %v14538_v2, %v6252_v41  ;;  %v12296_v2 = vld [vmem:[#allocation8 + $0x4a4] sm:$0xf0] }
 0x831   :  { %v11262_v42 = vor.u32 %v12296_v2, %v11261_v30  ;;  %v12294_v2 = vld [vmem:[#allocation8 + $0x494] sm:$0xf0] }
 0x832   :  { %v6366_v7 = vpop.f32.mrf.mxu0  ;;  %v6405_v18 = vpop.f32.mrf.mxu1  ;;  %v6330_v60 = vadd.f32 %v14544_v6, %v6291_v13 }
 0x833   :  { %v6367_v28 = vadd.f32 %v6366_v7, %v14524_v23  ;;  %v6305_v9 = vpop.f32.mrf.mxu2  ;;  %v6344_v34 = vpop.f32.mrf.mxu3  ;;  %v11197_v23 = vld [vmem:[#allocation8 + $0x420] sm:$0xf]  ;;  %7368 = vmatpush.bf16.msra.mxu0 %v11054_v52  ;;  %7483 = vmatpush.bf16.msra.mxu3 %v11262_v42 }
 0x834   :  { %v6306_v45 = vadd.f32 %v6305_v9, %v14575_v1  ;;  %v11118_v1 = vor.u32 %v12260_v11, %v11117_v29  ;;  %v11198_v49 = vor.u32 %v12280_v8, %v11197_v23  ;;  %v16372_v11 = vld [vmem:[#allocation21_spill] sm:$0xff]  ;;  %v16373_v23 = vld [vmem:[#allocation22_spill] sm:$0xff] }
 0x835   :  { %v14621_v59 = vadd.f32 %v6405_v18, %v6367_v28  ;;  %6531 = vmatmul.bf16.gmra.mxu0 %v14450_v47  ;;  %6570 = vmatmul.bf16.gmra.mxu1 %v14452_v50  ;;  %v11189_v8 = vld [vmem:[#allocation8 + $0x410] sm:$0xf] }
 0x836   :  { %v14625_v56 = vadd.f32 %v6344_v34, %v6306_v45  ;;  %7444 = vmatpush.bf16.msra.mxu2 %v11198_v49  ;;  %7407 = vmatpush.bf16.msra.mxu1 %v11118_v1  ;;  %v6257_v45 = vadd.f32 %v14554_v10, %v14550_v21  ;;  %v12278_v1 = vld [vmem:[#allocation8 + $0x414] sm:$0xf0]  ;;  %v11253_v49 = vld [vmem:[#allocation8 + $0x490] sm:$0xf] }
 0x837   :  { %v11190_v30 = vor.u32 %v12278_v1, %v11189_v8  ;;  %v11254_v21 = vor.u32 %v12294_v2, %v11253_v49  ;;  %v16374_v10 = vld [vmem:[#allocation74_spill] sm:$0xff] }
 0x838   :  { %6599 = vmatmul.bf16.gmra.mxu2 %v14480_v51  ;;  %6638 = vmatmul.bf16.gmra.mxu3 %v16371_v55  ;;  %v6296_v29 = vadd.f32 %v14579_v62, %v6257_v45  ;;  %v11245_v45 = vld [vmem:[#allocation8 + $0x480] sm:$0xf] }
 0x839   :  { %7484 = vmatpush.bf16.msra.mxu3 %v11254_v21  ;;  %v16376_v21 = vld [vmem:[#allocation43_spill] sm:$0xff] }
 0x83a   :  { %v6368_v15 = vpop.f32.mrf.mxu0  ;;  %v6407_v46 = vpop.f32.mrf.mxu1  ;;  %v6335_v42 = vadd.f32 %v14581_v24, %v6296_v29  ;;  %7445 = vmatpush.bf16.msra.mxu2 %v11190_v30 }
 0x83b   :  { %v6369_v7 = vadd.f32 %v6368_v15, %v6330_v60  ;;  %v6434_v18 = vpop.f32.mrf.mxu2  ;;  %v6473_v35 = vpop.f32.mrf.mxu3 }
 0x83c   :  { %v14630_v41 = vadd.f32 %v6473_v35, %v6434_v18 }
 0x83d   :  { %v14632_v28 = vadd.f32 %v6407_v46, %v6369_v7 }
 0x842   :  { %v6371_v9 = vpop.f32.mrf.mxu0  ;;  %v6410_v34 = vpop.f32.mrf.mxu1 }
 0x843   :  { %v6372_v6 = vadd.f32 %v6371_v9, %v14559_v37  ;;  %v6436_v13 = vpop.f32.mrf.mxu2  ;;  %v6475_v61 = vpop.f32.mrf.mxu3  ;;  %v16375_v37 = vld [vmem:[#allocation75_spill] sm:$0xff] }
 0x844   :  { %v14637_v25 = vadd.f32 %v6475_v61, %v6436_v13  ;;  %v11181_v9 = vld [vmem:[#allocation8 + $0x400] sm:$0xf]  ;;  %v12292_v13 = vld [vmem:[#allocation8 + $0x484] sm:$0xf0] }
 0x845   :  { %v14640_v52 = vadd.f32 %v6410_v34, %v6372_v6  ;;  %6536 = vmatmul.bf16.gmra.mxu0 %v16372_v11  ;;  %6575 = vmatmul.bf16.gmra.mxu1 %v16373_v23  ;;  %v12276_v34 = vld [vmem:[#allocation8 + $0x404] sm:$0xf0]  ;;  %v11246_v61 = vor.u32 %v12292_v13, %v11245_v45  ;;  %v11111_v45 = vld [vmem:[#allocation8 + $0x378] sm:$0xf0] }
 0x846   :  { %v11182_v6 = vor.u32 %v12276_v34, %v11181_v9  ;;  %v12257_v34 = vld [vmem:[#allocation8 + $0x374] sm:$0xf] }
 0x847   :  { %7485 = vmatpush.bf16.msra.mxu3 %v11246_v61  ;;  %v11114_v13 = vor.u32 %v12257_v34, %v11111_v45  ;;  %v12322_v61 = vld [vmem:[#allocation8 + $0x574] sm:$0xf0]  ;;  %v16378_v45 = vld [vmem:[#allocation61_spill] sm:$0xff] }
 0x848   :  { %6604 = vmatmul.bf16.gmra.mxu2 %v16374_v10  ;;  %6643 = vmatmul.bf16.gmra.mxu3 %v16375_v37 }
 0x849   :  { %7446 = vmatpush.bf16.msra.mxu2 %v11182_v6  ;;  %v11365_v6 = vld [vmem:[#allocation8 + $0x570] sm:$0xf] }
 0x84a   :  { %v6373_v62 = vpop.f32.mrf.mxu0  ;;  %v6412_v60 = vpop.f32.mrf.mxu1 }
 0x84b   :  { %v6374_v15 = vadd.f32 %v6373_v62, %v6335_v42  ;;  %v6439_v46 = vpop.f32.mrf.mxu2  ;;  %v6478_v7 = vpop.f32.mrf.mxu3  ;;  %v16377_v42 = vld [vmem:[#allocation49_spill] sm:$0xff] }
 0x84c   :  { %v14647_v18 = vadd.f32 %v6478_v7, %v6439_v46 }
 0x84d   :  { %v14649_v35 = vadd.f32 %v6412_v60, %v6374_v15  ;;  %7595 = vmatpush.bf16.msrb.mxu2 %v11114_v13  ;;  %v11103_v13 = vld [vmem:[#allocation8 + $0x368] sm:$0xf0] }
 0x852   :  { %v6376_v24 = vpop.f32.mrf.mxu0  ;;  %v6415_v29 = vpop.f32.mrf.mxu1 }
 0x853   :  { %v6377_v8 = vadd.f32 %v6376_v24, %v14595_v17  ;;  %v6441_v1 = vpop.f32.mrf.mxu2  ;;  %v6480_v49 = vpop.f32.mrf.mxu3  ;;  %v12273_v24 = vld [vmem:[#allocation8 + $0x3f4] sm:$0xf] }
 0x854   :  { %v14652_v30 = vadd.f32 %v6480_v49, %v6441_v1  ;;  %v11429_v49 = vld [vmem:[#allocation8 + $0x5f0] sm:$0xf] }
 0x855   :  { %v14654_v2 = vadd.f32 %v6415_v29, %v6377_v8  ;;  %7369 = vmatmul.bf16.vlgmr.msra.gmra.mxu0 %v16376_v21  ;;  %7408 = vmatmul.bf16.vlgmr.msra.gmra.mxu1 %v16377_v42  ;;  %v11175_v29 = vld [vmem:[#allocation8 + $0x3f8] sm:$0xf0]  ;;  %v11366_v8 = vor.u32 %v12322_v61, %v11365_v6  ;;  %v16379_v6 = vld [vmem:[#allocation62_spill] sm:$0xff]  ;;  %v12255_v61 = vld [vmem:[#allocation8 + $0x364] sm:$0xf] }
 0x856   :  { %v11178_v1 = vor.u32 %v12273_v24, %v11175_v29  ;;  %v11106_v24 = vor.u32 %v12255_v61, %v11103_v13  ;;  %v12320_v29 = vld [vmem:[#allocation8 + $0x564] sm:$0xf0]  ;;  %v11421_v13 = vld [vmem:[#allocation8 + $0x5e0] sm:$0xf] }
 0x857   :  { %7517 = vmatpush.bf16.msrb.mxu0 %v11366_v8  ;;  %v12271_v8 = vld [vmem:[#allocation8 + $0x3e4] sm:$0xf] }
 0x858   :  { %6609 = vmatmul.bf16.gmra.mxu2 %v14530_v32  ;;  %6648 = vmatmul.bf16.gmra.mxu3 %v14532_v63  ;;  %v12338_v63 = vld [vmem:[#allocation8 + $0x5f4] sm:$0xf0] }
 0x859   :  { %v11430_v32 = vor.u32 %v12338_v63, %v11429_v49  ;;  %7634 = vmatpush.bf16.msrb.mxu3 %v11178_v1  ;;  %v11357_v63 = vld [vmem:[#allocation8 + $0x560] sm:$0xf]  ;;  %v11167_v1 = vld [vmem:[#allocation8 + $0x3e8] sm:$0xf0]  ;;  %7596 = vmatpush.bf16.msrb.mxu2 %v11106_v24 }
 0x85a   :  { %v6378_v62 = vpop.f32.mrf.mxu0  ;;  %v6417_v60 = vpop.f32.mrf.mxu1  ;;  %v11170_v49 = vor.u32 %v12271_v8, %v11167_v1 }
 0x85b   :  { %v6379_v15 = vadd.f32 %v6378_v62, %v14606_v38  ;;  %v6444_v46 = vpop.f32.mrf.mxu2  ;;  %v6483_v17 = vpop.f32.mrf.mxu3  ;;  %7556 = vmatpush.bf16.msrb.mxu1 %v11430_v32  ;;  %v11358_v32 = vor.u32 %v12320_v29, %v11357_v63  ;;  %v12336_v63 = vld [vmem:[#allocation8 + $0x5e4] sm:$0xf0] }
 0x85c   :  { %v14661_v7 = vadd.f32 %v6483_v17, %v6444_v46  ;;  %v11422_v29 = vor.u32 %v12336_v63, %v11421_v13  ;;  %v11159_v13 = vld [vmem:[#allocation8 + $0x3d8] sm:$0xf0] }
 0x85d   :  { %v14663_v9 = vadd.f32 %v6417_v60, %v6379_v15  ;;  %7518 = vmatpush.bf16.msrb.mxu0 %v11358_v32  ;;  %7635 = vmatpush.bf16.msrb.mxu3 %v11170_v49 }
 0x85f   :  { %7557 = vmatpush.bf16.msrb.mxu1 %v11422_v29 }
 0x862   :  { %v6381_v38 = vpop.f32.mrf.mxu0  ;;  %v6420_v62 = vpop.f32.mrf.mxu1 }
 0x863   :  { %v6382_v60 = vadd.f32 %v6381_v38, %v14614_v5  ;;  %v6446_v15 = vpop.f32.mrf.mxu2  ;;  %v6485_v46 = vpop.f32.mrf.mxu3 }
 0x864   :  { %v14666_v17 = vadd.f32 %v6485_v46, %v6446_v15 }
 0x865   :  { %v14668_v34 = vadd.f32 %v6420_v62, %v6382_v60  ;;  %7374 = vmatmul.bf16.gmra.mxu0 %v16378_v45  ;;  %7413 = vmatmul.bf16.gmra.mxu1 %v16379_v6 }
 0x868   :  { %6614 = vmatmul.bf16.gmra.mxu2 %v14546_v22  ;;  %6653 = vmatmul.bf16.gmra.mxu3 %v14548_v26 }
 0x86a   :  { %v6383_v5 = vpop.f32.mrf.mxu0  ;;  %v6422_v38 = vpop.f32.mrf.mxu1 }
 0x86b   :  { %v6384_v62 = vadd.f32 %v6383_v5, %v14625_v56  ;;  %v6449_v60 = vpop.f32.mrf.mxu2  ;;  %v6488_v15 = vpop.f32.mrf.mxu3  ;;  %v12253_v56 = vld [vmem:[#allocation8 + $0x354] sm:$0xf]  ;;  %v11095_v5 = vld [vmem:[#allocation8 + $0x358] sm:$0xf0] }
 0x86c   :  { %v14675_v46 = vadd.f32 %v6488_v15, %v6449_v60  ;;  %v12318_v60 = vld [vmem:[#allocation8 + $0x554] sm:$0xf0]  ;;  %v12269_v15 = vld [vmem:[#allocation8 + $0x3d4] sm:$0xf] }
 0x86d   :  { %v14677_v61 = vadd.f32 %v6422_v38, %v6384_v62  ;;  %v11349_v38 = vld [vmem:[#allocation8 + $0x550] sm:$0xf]  ;;  %v11098_v62 = vor.u32 %v12253_v56, %v11095_v5  ;;  %v11162_v29 = vor.u32 %v12269_v15, %v11159_v13 }
 0x86e   :  { %v11350_v63 = vor.u32 %v12318_v60, %v11349_v38 }
 0x86f   :  { %16380 = vst [vmem:[#allocation25_spill] sm:$0xff] %v14677_v61  ;;  %7597 = vmatpush.bf16.msrb.mxu2 %v11098_v62  ;;  %7636 = vmatpush.bf16.msrb.mxu3 %v11162_v29  ;;  %v12251_v62 = vld [vmem:[#allocation8 + $0x344] sm:$0xf] }
 0x870   :  { %7519 = vmatpush.bf16.msrb.mxu0 %v11350_v63  ;;  %v11087_v63 = vld [vmem:[#allocation8 + $0x348] sm:$0xf0] }
 0x871   :  { %v11090_v29 = vor.u32 %v12251_v62, %v11087_v63  ;;  %v11333_v62 = vld [vmem:[#allocation8 + $0x530] sm:$0xf]  ;;  %v12314_v63 = vld [vmem:[#allocation8 + $0x534] sm:$0xf0] }
 0x872   :  { %v6512_v8 = vpop.f32.mrf.mxu0  ;;  %v6551_v1 = vpop.f32.mrf.mxu1 }
 0x873   :  { %v6513_v24 = vadd.f32 %v6512_v8, %v14630_v41  ;;  %v6451_v32 = vpop.f32.mrf.mxu2  ;;  %v6490_v26 = vpop.f32.mrf.mxu3  ;;  %v11413_v41 = vld [vmem:[#allocation8 + $0x5d0] sm:$0xf]  ;;  %v12334_v8 = vld [vmem:[#allocation8 + $0x5d4] sm:$0xf0]  ;;  %7598 = vmatpush.bf16.msrb.mxu2 %v11090_v29  ;;  %v11334_v29 = vor.u32 %v12314_v63, %v11333_v62 }
 0x874   :  { %v14680_v22 = vadd.f32 %v6490_v26, %v6451_v32  ;;  %v11414_v26 = vor.u32 %v12334_v8, %v11413_v41  ;;  %v11341_v8 = vld [vmem:[#allocation8 + $0x540] sm:$0xf] }
 0x875   :  { %v14682_v49 = vadd.f32 %v6551_v1, %v6513_v24  ;;  %7379 = vmatmul.bf16.gmra.mxu0 %v14152_v16  ;;  %7418 = vmatmul.bf16.gmra.mxu1 %v14155_v20  ;;  %v11143_v16 = vld [vmem:[#allocation8 + $0x3b8] sm:$0xf0] }
 0x876   :  { %7558 = vmatpush.bf16.msrb.mxu1 %v11414_v26  ;;  %v12316_v26 = vld [vmem:[#allocation8 + $0x544] sm:$0xf0] }
 0x878   :  { %7447 = vmatmul.bf16.vlgmr.msra.gmra.mxu2 %v14078_v3  ;;  %7486 = vmatmul.bf16.vlgmr.msra.gmra.mxu3 %v14085_v48 }
 0x87a   :  { %v6514_v1 = vpop.f32.mrf.mxu0  ;;  %v6553_v24 = vpop.f32.mrf.mxu1 }
 0x87b   :  { %v6515_v32 = vadd.f32 %v6514_v1, %v14637_v25  ;;  %v6454_v56 = vpop.f32.mrf.mxu2  ;;  %v6493_v5 = vpop.f32.mrf.mxu3  ;;  %v12267_v25 = vld [vmem:[#allocation8 + $0x3c4] sm:$0xf]  ;;  %v11151_v1 = vld [vmem:[#allocation8 + $0x3c8] sm:$0xf0] }
 0x87c   :  { %v14689_v61 = vadd.f32 %v6493_v5, %v6454_v56  ;;  %v12332_v56 = vld [vmem:[#allocation8 + $0x5c4] sm:$0xf0] }
 0x87d   :  { %v14691_v38 = vadd.f32 %v6553_v24, %v6515_v32  ;;  %v11342_v24 = vor.u32 %v12316_v26, %v11341_v8  ;;  %v11154_v32 = vor.u32 %v12267_v25, %v11151_v1  ;;  %v11397_v8 = vld [vmem:[#allocation8 + $0x5b0] sm:$0xf]  ;;  %v12330_v25 = vld [vmem:[#allocation8 + $0x5b4] sm:$0xf0] }
 0x87f   :  { %7520 = vmatpush.bf16.msrb.mxu0 %v11342_v24  ;;  %7637 = vmatpush.bf16.msrb.mxu3 %v11154_v32  ;;  %v11398_v24 = vor.u32 %v12330_v25, %v11397_v8  ;;  %v11325_v32 = vld [vmem:[#allocation8 + $0x520] sm:$0xf]  ;;  %v11317_v8 = vld [vmem:[#allocation8 + $0x510] sm:$0xf] }
 0x880   :  { %v11381_v25 = vld [vmem:[#allocation8 + $0x590] sm:$0xf] }
 0x882   :  { %v6517_v60 = vpop.f32.mrf.mxu0  ;;  %v6556_v15 = vpop.f32.mrf.mxu1 }
 0x883   :  { %v6518_v13 = vadd.f32 %v6517_v60, %v14647_v18  ;;  %v6456_v48 = vpop.f32.mrf.mxu2  ;;  %v6495_v41 = vpop.f32.mrf.mxu3  ;;  %v11405_v18 = vld [vmem:[#allocation8 + $0x5c0] sm:$0xf]  ;;  %7521 = vmatpush.bf16.msrb.mxu0 %v11334_v29  ;;  %v12310_v29 = vld [vmem:[#allocation8 + $0x514] sm:$0xf0] }
 0x884   :  { %v14694_v3 = vadd.f32 %v6495_v41, %v6456_v48  ;;  %v11406_v5 = vor.u32 %v12332_v56, %v11405_v18  ;;  %v12312_v18 = vld [vmem:[#allocation8 + $0x524] sm:$0xf0]  ;;  %v11389_v56 = vld [vmem:[#allocation8 + $0x5a0] sm:$0xf] }
 0x885   :  { %v14696_v20 = vadd.f32 %v6556_v15, %v6518_v13  ;;  %7384 = vmatmul.bf16.gmra.mxu0 %v14278_v33  ;;  %7423 = vmatmul.bf16.gmra.mxu1 %v14280_v31  ;;  %v12265_v33 = vld [vmem:[#allocation8 + $0x3b4] sm:$0xf] }
 0x886   :  { %7559 = vmatpush.bf16.msrb.mxu1 %v11406_v5  ;;  %v11326_v5 = vor.u32 %v12312_v18, %v11325_v32 }
 0x888   :  { %7452 = vmatmul.bf16.gmra.mxu2 %v14209_v39  ;;  %7491 = vmatmul.bf16.gmra.mxu3 %v14211_v4  ;;  %v12328_v4 = vld [vmem:[#allocation8 + $0x5a4] sm:$0xf0]  ;;  %v12249_v39 = vld [vmem:[#allocation8 + $0x334] sm:$0xf] }
 0x889   :  { %7522 = vmatpush.bf16.msrb.mxu0 %v11326_v5 }
 0x88a   :  { %v6519_v48 = vpop.f32.mrf.mxu0  ;;  %v6558_v60 = vpop.f32.mrf.mxu1  ;;  %7560 = vmatpush.bf16.msrb.mxu1 %v11398_v24 }
 0x88b   :  { %v6520_v15 = vadd.f32 %v6519_v48, %v14652_v30  ;;  %v6459_v13 = vpop.f32.mrf.mxu2  ;;  %v6498_v41 = vpop.f32.mrf.mxu3  ;;  %v11079_v30 = vld [vmem:[#allocation8 + $0x338] sm:$0xf0]  ;;  %v11390_v48 = vor.u32 %v12328_v4, %v11389_v56  ;;  %v11318_v4 = vor.u32 %v12310_v29, %v11317_v8  ;;  %v12324_v56 = vld [vmem:[#allocation8 + $0x584] sm:$0xf0] }
 0x88c   :  { %v14703_v26 = vadd.f32 %v6498_v41, %v6459_v13  ;;  %v11082_v31 = vor.u32 %v12249_v39, %v11079_v30  ;;  %v11146_v13 = vor.u32 %v12265_v33, %v11143_v16  ;;  %v12326_v39 = vld [vmem:[#allocation8 + $0x594] sm:$0xf0]  ;;  %v11309_v33 = vld [vmem:[#allocation8 + $0x500] sm:$0xf] }
 0x88d   :  { %v14705_v1 = vadd.f32 %v6558_v60, %v6520_v15  ;;  %v11382_v16 = vor.u32 %v12326_v39, %v11381_v25  ;;  %7523 = vmatpush.bf16.msrb.mxu0 %v11318_v4  ;;  %v11135_v25 = vld [vmem:[#allocation8 + $0x3a8] sm:$0xf0] }
 0x88e   :  { %7599 = vmatpush.bf16.msrb.mxu2 %v11082_v31  ;;  %7638 = vmatpush.bf16.msrb.mxu3 %v11146_v13  ;;  %v12308_v31 = vld [vmem:[#allocation8 + $0x504] sm:$0xf0] }
 0x88f   :  { %7561 = vmatpush.bf16.msrb.mxu1 %v11390_v48  ;;  %v11310_v18 = vor.u32 %v12308_v31, %v11309_v33 }
 0x891   :  { %7524 = vmatpush.bf16.msrb.mxu0 %v11310_v18 }
 0x892   :  { %v6522_v41 = vpop.f32.mrf.mxu0  ;;  %v6561_v62 = vpop.f32.mrf.mxu1 }
 0x893   :  { %v6523_v60 = vadd.f32 %v6522_v41, %v14661_v7  ;;  %v6461_v15 = vpop.f32.mrf.mxu2  ;;  %v6500_v63 = vpop.f32.mrf.mxu3  ;;  %v11373_v7 = vld [vmem:[#allocation8 + $0x580] sm:$0xf]  ;;  %7562 = vmatpush.bf16.msrb.mxu1 %v11382_v16 }
 0x894   :  { %v14708_v32 = vadd.f32 %v6500_v63, %v6461_v15  ;;  %v11374_v5 = vor.u32 %v12324_v56, %v11373_v7  ;;  %v11071_v15 = vld [vmem:[#allocation8 + $0x328] sm:$0xf0]  ;;  %v12263_v63 = vld [vmem:[#allocation8 + $0x3a4] sm:$0xf] }
 0x895   :  { %v14710_v24 = vadd.f32 %v6561_v62, %v6523_v60  ;;  %7389 = vmatmul.bf16.gmra.mxu0 %v14383_v14  ;;  %7428 = vmatmul.bf16.gmra.mxu1 %v14388_v0  ;;  %v12247_v60 = vld [vmem:[#allocation8 + $0x324] sm:$0xf]  ;;  %v11138_v39 = vor.u32 %v12263_v63, %v11135_v25  ;;  %v12261_v63 = vld [vmem:[#allocation8 + $0x394] sm:$0xf] }
 0x896   :  { %v11074_v29 = vor.u32 %v12247_v60, %v11071_v15  ;;  %v12245_v60 = vld [vmem:[#allocation8 + $0x314] sm:$0xf]  ;;  %v11063_v15 = vld [vmem:[#allocation8 + $0x318] sm:$0xf0] }
 0x897   :  { %7563 = vmatpush.bf16.msrb.mxu1 %v11374_v5  ;;  %7639 = vmatpush.bf16.msrb.mxu3 %v11138_v39 }
 0x898   :  { %7457 = vmatmul.bf16.gmra.mxu2 %v14267_v53  ;;  %7496 = vmatmul.bf16.gmra.mxu3 %v14269_v58 }
 0x899   :  { %7600 = vmatpush.bf16.msrb.mxu2 %v11074_v29  ;;  %v11127_v29 = vld [vmem:[#allocation8 + $0x398] sm:$0xf0] }
 0x89a   :  { %v6524_v30 = vpop.f32.mrf.mxu0  ;;  %v6563_v48 = vpop.f32.mrf.mxu1  ;;  %v11130_v25 = vor.u32 %v12261_v63, %v11127_v29 }
 0x89b   :  { %v6525_v13 = vadd.f32 %v6524_v30, %v14666_v17  ;;  %v6590_v41 = vpop.f32.mrf.mxu2  ;;  %v6629_v62 = vpop.f32.mrf.mxu3 }
 0x89c   :  { %v6591_v8 = vadd.f32 %v6590_v41, %v14682_v49  ;;  %v16384_v41 = vld [vmem:[#allocation77_spill] sm:$0xff]  ;;  %7640 = vmatpush.bf16.msrb.mxu3 %v11130_v25 }
 0x89d   :  { %v14718_v4 = vadd.f32 %v6563_v48, %v6525_v13 }
 0x89e   :  { %v6630_v16 = vadd.f32 %v6629_v62, %v6591_v8  ;;  %v16385_v62 = vld [vmem:[#allocation20_spill] sm:$0xff] }
 0x8a0   :  { %v6683_v33 = vrot.slane %v6630_v16, 6 }
 0x8a2   :  { %v14722_v17 = vsel %vm5059_vm0, %v14585_v40, %v6683_v33  ;;  %v14726_v31 = vsel %vm5061_vm1, %v14585_v40, %v6683_v33  ;;  %v14730_v49 = vsel %vm5478_vm4, %v6683_v33, %v14585_v40  ;;  %v6527_v7 = vpop.f32.mrf.mxu0  ;;  %v6566_v18 = vpop.f32.mrf.mxu1  ;;  %v11066_v40 = vor.u32 %v12245_v60, %v11063_v15 }
 0x8a3   :  { %16381 = vst [vmem:[#allocation106_spill] sm:$0xff] %v14722_v17  ;;  %v6528_v56 = vadd.f32 %v6527_v7, %v14675_v46  ;;  %v6592_v5 = vpop.f32.mrf.mxu2  ;;  %v6631_v30 = vpop.f32.mrf.mxu3 }
 0x8a4   :  { %16382 = vst [vmem:[#allocation55_spill] sm:$0xff] %v14726_v31  ;;  %v6593_v48 = vadd.f32 %v6592_v5, %v14691_v38  ;;  %7601 = vmatpush.bf16.msrb.mxu2 %v11066_v40 }
 0x8a5   :  { %16383 = vst [vmem:[#allocation28_spill] sm:$0xff] %v14730_v49  ;;  %v14734_v13 = vadd.f32 %v6566_v18, %v6528_v56  ;;  %7394 = vmatmul.bf16.gmra.mxu0 %v16384_v41  ;;  %7433 = vmatmul.bf16.gmra.mxu1 %v16385_v62 }
 0x8a6   :  { %v6632_v8 = vadd.f32 %v6631_v30, %v6593_v48 }
 0x8a8   :  { %v6684_v39 = vrot.slane %v6632_v8, 6  ;;  %7462 = vmatmul.bf16.gmra.mxu2 %v14343_v57  ;;  %7501 = vmatmul.bf16.gmra.mxu3 %v14352_v43 }
 0x8aa   :  { %v14742_v46 = vsel %vm5059_vm0, %v14593_v54, %v6684_v39  ;;  %v14746_v38 = vsel %vm5064_vm2, %v14593_v54, %v6684_v39  ;;  %v14750_v16 = vsel %vm5478_vm4, %v6684_v39, %v14593_v54  ;;  %v6529_v33 = vpop.f32.mrf.mxu0  ;;  %v6568_v7 = vpop.f32.mrf.mxu1  ;;  %v12243_v39 = vld [vmem:[#allocation8 + $0x304] sm:$0xf] }
 0x8ab   :  { %16386 = vst [vmem:[#allocation29_spill] sm:$0xff] %v14742_v46  ;;  %v6530_v18 = vadd.f32 %v6529_v33, %v14680_v22  ;;  %v6595_v56 = vpop.f32.mrf.mxu2  ;;  %v6634_v5 = vpop.f32.mrf.mxu3  ;;  %v11597_v46 = vld [vmem:[#allocation8 + $0x6f0] sm:$0xf] }
 0x8ac   :  { %16387 = vst [vmem:[#allocation56_spill] sm:$0xff] %v14746_v38  ;;  %v6596_v30 = vadd.f32 %v6595_v56, %v14696_v20  ;;  %v11055_v20 = vld [vmem:[#allocation8 + $0x308] sm:$0xf0]  ;;  %v12370_v38 = vld [vmem:[#allocation8 + $0x6f4] sm:$0xf0] }
 0x8ad   :  { %16388 = vst [vmem:[#allocation57_spill] sm:$0xff] %v14750_v16  ;;  %v14754_v48 = vadd.f32 %v6568_v7, %v6530_v18  ;;  %v11058_v7 = vor.u32 %v12243_v39, %v11055_v20  ;;  %v12259_v18 = vld [vmem:[#allocation8 + $0x384] sm:$0xf]  ;;  %v11119_v56 = vld [vmem:[#allocation8 + $0x388] sm:$0xf0] }
 0x8ae   :  { %v6635_v60 = vadd.f32 %v6634_v5, %v6596_v30  ;;  %v16391_v30 = vld [vmem:[#allocation60_spill] sm:$0xff]  ;;  %v12321_v20 = vld [vmem:[#allocation8 + $0x574] sm:$0xf] }
 0x8af   :  { %7602 = vmatpush.bf16.msrb.mxu2 %v11058_v7 }
 0x8b0   :  { %v6685_v15 = vrot.slane %v6635_v60, 6 }
 0x8b2   :  { %v14758_v63 = vsel %vm5061_vm1, %v14602_v12, %v6685_v15  ;;  %v14762_v54 = vsel %vm5064_vm2, %v14602_v12, %v6685_v15  ;;  %v6532_v8 = vpop.f32.mrf.mxu0  ;;  %v6571_v40 = vpop.f32.mrf.mxu1  ;;  %v11122_v12 = vor.u32 %v12259_v18, %v11119_v56  ;;  %v12289_v56 = vld [vmem:[#allocation8 + $0x474] sm:$0xf] }
 0x8b3   :  { %16389 = vst [vmem:[#allocation76_spill] sm:$0xff] %v14758_v63  ;;  %v6533_v22 = vadd.f32 %v6532_v8, %v14689_v61  ;;  %v6597_v29 = vpop.f32.mrf.mxu2  ;;  %v6636_v25 = vpop.f32.mrf.mxu3 }
 0x8b4   :  { %16390 = vst [vmem:[#allocation78_spill] sm:$0xff] %v14762_v54  ;;  %v6598_v33 = vadd.f32 %v6597_v29, %v14705_v1  ;;  %7641 = vmatpush.bf16.msrb.mxu3 %v11122_v12  ;;  %v11239_v12 = vld [vmem:[#allocation8 + $0x478] sm:$0xf0] }
 0x8b5   :  { %v14766_v5 = vadd.f32 %v6571_v40, %v6533_v22  ;;  %7525 = vmatmul.bf16.vlgmr.msrb.gmra.mxu0 %v14096_v44  ;;  %7564 = vmatmul.bf16.vlgmr.msrb.gmra.mxu1 %v16391_v30  ;;  %v11431_v54 = vld [vmem:[#allocation8 + $0x5f8] sm:$0xf0] }
 0x8b6   :  { %v6637_v60 = vadd.f32 %v6636_v25, %v6598_v33  ;;  %v11367_v33 = vld [vmem:[#allocation8 + $0x578] sm:$0xf0] }
 0x8b7   :  { %v11370_v18 = vor.u32 %v12321_v20, %v11367_v33  ;;  %v11303_v20 = vld [vmem:[#allocation8 + $0x4f8] sm:$0xf0] }
 0x8b8   :  { %v6686_v61 = vrot.slane %v6637_v60, 6  ;;  %7467 = vmatmul.bf16.gmra.mxu2 %v14450_v47  ;;  %7506 = vmatmul.bf16.gmra.mxu3 %v14452_v50  ;;  %v12337_v60 = vld [vmem:[#allocation8 + $0x5f4] sm:$0xf] }
 0x8b9   :  { %7751 = vmatpush.bf16.msra.mxu2 %v11370_v18 }
 0x8ba   :  { %v14774_v1 = vsel %vm5059_vm0, %v14612_v27, %v6686_v61  ;;  %v14778_v15 = vsel %vm5061_vm1, %v14612_v27, %v6686_v61  ;;  %v14782_v8 = vsel %vm5478_vm4, %v6686_v61, %v14612_v27  ;;  %v6534_v40 = vpop.f32.mrf.mxu0  ;;  %v6573_v22 = vpop.f32.mrf.mxu1  ;;  %v11434_v61 = vor.u32 %v12337_v60, %v11431_v54 }
 0x8bb   :  { %16392 = vst [vmem:[#allocation27_spill] sm:$0xff] %v14774_v1  ;;  %v6535_v29 = vadd.f32 %v6534_v40, %v14694_v3  ;;  %v6600_v25 = vpop.f32.mrf.mxu2  ;;  %v6639_v39 = vpop.f32.mrf.mxu3 }
 0x8bc   :  { %16393 = vst [vmem:[#allocation32_spill] sm:$0xff] %v14778_v15  ;;  %v6601_v7 = vadd.f32 %v6600_v25, %v14710_v24  ;;  %v11242_v15 = vor.u32 %v12289_v56, %v11239_v12  ;;  %7790 = vmatpush.bf16.msra.mxu3 %v11434_v61 }
 0x8bd   :  { %16394 = vst [vmem:[#allocation33_spill] sm:$0xff] %v14782_v8  ;;  %v14786_v1 = vadd.f32 %v6573_v22, %v6535_v29 }
 0x8be   :  { %v6640_v27 = vadd.f32 %v6639_v39, %v6601_v7  ;;  %7673 = vmatpush.bf16.msra.mxu0 %v11242_v15  ;;  %v12305_v39 = vld [vmem:[#allocation8 + $0x4f4] sm:$0xf] }
 0x8bf   :  { %v11306_v7 = vor.u32 %v12305_v39, %v11303_v20  ;;  %v11231_v39 = vld [vmem:[#allocation8 + $0x468] sm:$0xf0]  ;;  %v12335_v20 = vld [vmem:[#allocation8 + $0x5e4] sm:$0xf] }
 0x8c0   :  { %v6687_v8 = vrot.slane %v6640_v27, 6 }
 0x8c1   :  { %7712 = vmatpush.bf16.msra.mxu1 %v11306_v7 }
 0x8c2   :  { %v14790_v3 = vsel %vm5059_vm0, %v14621_v59, %v6687_v8  ;;  %v14794_v24 = vsel %vm5064_vm2, %v14621_v59, %v6687_v8  ;;  %v14798_v40 = vsel %vm5478_vm4, %v6687_v8, %v14621_v59  ;;  %v6537_v22 = vpop.f32.mrf.mxu0  ;;  %v6576_v29 = vpop.f32.mrf.mxu1 }
 0x8c3   :  { %16395 = vst [vmem:[#allocation34_spill] sm:$0xff] %v14790_v3  ;;  %v6538_v25 = vadd.f32 %v6537_v22, %v14703_v26  ;;  %v6602_v54 = vpop.f32.mrf.mxu2  ;;  %v6641_v15 = vpop.f32.mrf.mxu3  ;;  %v12319_v22 = vld [vmem:[#allocation8 + $0x564] sm:$0xf] }
 0x8c4   :  { %16396 = vst [vmem:[#allocation35_spill] sm:$0xff] %v14794_v24  ;;  %v6603_v33 = vadd.f32 %v6602_v54, %v14718_v4  ;;  %v16425_v24 = vld [vmem:[#allocation52_spill] sm:$0xff] }
 0x8c5   :  { %16397 = vst [vmem:[#allocation107_spill] sm:$0xff] %v14798_v40  ;;  %v14802_v18 = vadd.f32 %v6576_v29, %v6538_v25  ;;  %7530 = vmatmul.bf16.gmra.mxu0 %v14232_v19  ;;  %7569 = vmatmul.bf16.gmra.mxu1 %v14253_v36  ;;  %v11359_v29 = vld [vmem:[#allocation8 + $0x568] sm:$0xf0] }
 0x8c6   :  { %v6642_v56 = vadd.f32 %v6641_v15, %v6603_v33  ;;  %v11362_v54 = vor.u32 %v12319_v22, %v11359_v29  ;;  %v12287_v15 = vld [vmem:[#allocation8 + $0x464] sm:$0xf] }
 0x8c7   :  { %v11234_v7 = vor.u32 %v12287_v15, %v11231_v39  ;;  %v12285_v39 = vld [vmem:[#allocation8 + $0x454] sm:$0xf] }
 0x8c8   :  { %v6688_v59 = vrot.slane %v6642_v56, 6  ;;  %7472 = vmatmul.bf16.gmra.mxu2 %v16372_v11  ;;  %7511 = vmatmul.bf16.gmra.mxu3 %v16373_v23  ;;  %v11423_v56 = vld [vmem:[#allocation8 + $0x5e8] sm:$0xf0] }
 0x8c9   :  { %7752 = vmatpush.bf16.msra.mxu2 %v11362_v54  ;;  %7674 = vmatpush.bf16.msra.mxu0 %v11234_v7  ;;  %v12333_v7 = vld [vmem:[#allocation8 + $0x5d4] sm:$0xf] }
 0x8ca   :  { %v14810_v26 = vsel %vm5061_vm1, %v14632_v28, %v6688_v59  ;;  %v14814_v4 = vsel %vm5064_vm2, %v14632_v28, %v6688_v59  ;;  %v6539_v8 = vpop.f32.mrf.mxu0  ;;  %v6578_v12 = vpop.f32.mrf.mxu1  ;;  %v12303_v28 = vld [vmem:[#allocation8 + $0x4e4] sm:$0xf]  ;;  %v11295_v59 = vld [vmem:[#allocation8 + $0x4e8] sm:$0xf0] }
 0x8cb   :  { %16398 = vst [vmem:[#allocation100_spill] sm:$0xff] %v14810_v26  ;;  %v6540_v60 = vadd.f32 %v6539_v8, %v14708_v32  ;;  %v6605_v27 = vpop.f32.mrf.mxu2  ;;  %v6644_v61 = vpop.f32.mrf.mxu3  ;;  %v11426_v26 = vor.u32 %v12335_v20, %v11423_v56  ;;  %v11298_v32 = vor.u32 %v12303_v28, %v11295_v59  ;;  %v11223_v20 = vld [vmem:[#allocation8 + $0x458] sm:$0xf0] }
 0x8cc   :  { %16399 = vst [vmem:[#allocation79_spill] sm:$0xff] %v14814_v4  ;;  %v6606_v25 = vadd.f32 %v6605_v27, %v14734_v13  ;;  %v11415_v56 = vld [vmem:[#allocation8 + $0x5d8] sm:$0xf0] }
 0x8cd   :  { %v14818_v33 = vadd.f32 %v6578_v12, %v6540_v60  ;;  %7791 = vmatpush.bf16.msra.mxu3 %v11426_v26  ;;  %7713 = vmatpush.bf16.msra.mxu1 %v11298_v32  ;;  %v12317_v26 = vld [vmem:[#allocation8 + $0x554] sm:$0xf]  ;;  %v11418_v59 = vor.u32 %v12333_v7, %v11415_v56  ;;  %v11343_v56 = vld [vmem:[#allocation8 + $0x548] sm:$0xf0] }
 0x8ce   :  { %v6645_v4 = vadd.f32 %v6644_v61, %v6606_v25  ;;  %v11351_v25 = vld [vmem:[#allocation8 + $0x558] sm:$0xf0] }
 0x8cf   :  { %v11354_v15 = vor.u32 %v12317_v26, %v11351_v25 }
 0x8d0   :  { %v6689_v8 = vrot.slane %v6645_v4, 6 }
 0x8d1   :  { %7753 = vmatpush.bf16.msra.mxu2 %v11354_v15  ;;  %7792 = vmatpush.bf16.msra.mxu3 %v11418_v59  ;;  %v11287_v15 = vld [vmem:[#allocation8 + $0x4d8] sm:$0xf0] }
 0x8d2   :  { %v14822_v13 = vsel %vm5059_vm0, %v14640_v52, %v6689_v8  ;;  %v14826_v12 = vsel %vm5061_vm1, %v14640_v52, %v6689_v8  ;;  %v14830_v60 = vsel %vm5478_vm4, %v6689_v8, %v14640_v52  ;;  %v7370_v27 = vpop.f32.mrf.mxu0  ;;  %v7409_v61 = vpop.f32.mrf.mxu1  ;;  %v11226_v52 = vor.u32 %v12285_v39, %v11223_v20 }
 0x8d3   :  { %16400 = vst [vmem:[#allocation36_spill] sm:$0xff] %v14822_v13  ;;  %v14832_v22 = vadd.f32 %v7409_v61, %v7370_v27  ;;  %v6607_v29 = vpop.f32.mrf.mxu2  ;;  %v6646_v4 = vpop.f32.mrf.mxu3 }
 0x8d4   :  { %16401 = vst [vmem:[#allocation37_spill] sm:$0xff] %v14826_v12  ;;  %v6608_v54 = vadd.f32 %v6607_v29, %v14754_v48  ;;  %7675 = vmatpush.bf16.msra.mxu0 %v11226_v52  ;;  %v12315_v52 = vld [vmem:[#allocation8 + $0x544] sm:$0xf] }
 0x8d5   :  { %16402 = vst [vmem:[#allocation58_spill] sm:$0xff] %v14830_v60  ;;  %7535 = vmatmul.bf16.gmra.mxu0 %v14480_v51  ;;  %7574 = vmatmul.bf16.gmra.mxu1 %v16371_v55  ;;  %v11346_v59 = vor.u32 %v12315_v52, %v11343_v56  ;;  %v11255_v60 = vld [vmem:[#allocation8 + $0x498] sm:$0xf0] }
 0x8d6   :  { %v6647_v28 = vadd.f32 %v6646_v4, %v6608_v54  ;;  %v12301_v54 = vld [vmem:[#allocation8 + $0x4d4] sm:$0xf] }
 0x8d7   :  { %v11290_v20 = vor.u32 %v12301_v54, %v11287_v15  ;;  %7754 = vmatpush.bf16.msra.mxu2 %v11346_v59  ;;  %v11271_v59 = vld [vmem:[#allocation8 + $0x4b8] sm:$0xf0] }
 0x8d8   :  { %v6690_v32 = vrot.slane %v6647_v28, 6  ;;  %7603 = vmatmul.bf16.vlgmr.msrb.gmra.mxu2 %v16376_v21  ;;  %7642 = vmatmul.bf16.vlgmr.msrb.gmra.mxu3 %v16377_v42  ;;  %v12283_v28 = vld [vmem:[#allocation8 + $0x444] sm:$0xf] }
 0x8d9   :  { %7714 = vmatpush.bf16.msra.mxu1 %v11290_v20  ;;  %v12299_v20 = vld [vmem:[#allocation8 + $0x4c4] sm:$0xf] }
 0x8da   :  { %v14841_v48 = vsel %vm5059_vm0, %v14649_v35, %v6690_v32  ;;  %v14845_v8 = vsel %vm5064_vm2, %v14649_v35, %v6690_v32  ;;  %v14849_v27 = vsel %vm5478_vm4, %v6690_v32, %v14649_v35  ;;  %v7372_v61 = vpop.f32.mrf.mxu0  ;;  %v7411_v29 = vpop.f32.mrf.mxu1  ;;  %v12331_v35 = vld [vmem:[#allocation8 + $0x5c4] sm:$0xf]  ;;  %v11407_v32 = vld [vmem:[#allocation8 + $0x5c8] sm:$0xf0] }
 0x8db   :  { %16403 = vst [vmem:[#allocation109_spill] sm:$0xff] %v14841_v48  ;;  %v14851_v4 = vadd.f32 %v7411_v29, %v7372_v61  ;;  %v6610_v26 = vpop.f32.mrf.mxu2  ;;  %v6649_v25 = vpop.f32.mrf.mxu3  ;;  %v11215_v48 = vld [vmem:[#allocation8 + $0x448] sm:$0xf0]  ;;  %v11410_v61 = vor.u32 %v12331_v35, %v11407_v32 }
 0x8dc   :  { %16404 = vst [vmem:[#allocation40_spill] sm:$0xff] %v14845_v8  ;;  %v6611_v39 = vadd.f32 %v6610_v26, %v14766_v5  ;;  %v11218_v8 = vor.u32 %v12283_v28, %v11215_v48  ;;  %v11279_v48 = vld [vmem:[#allocation8 + $0x4c8] sm:$0xf0]  ;;  %v12297_v28 = vld [vmem:[#allocation8 + $0x4b4] sm:$0xf] }
 0x8dd   :  { %16405 = vst [vmem:[#allocation41_spill] sm:$0xff] %v14849_v27  ;;  %7793 = vmatpush.bf16.msra.mxu3 %v11410_v61  ;;  %v11282_v52 = vor.u32 %v12299_v20, %v11279_v48  ;;  %v11274_v32 = vor.u32 %v12297_v28, %v11271_v59  ;;  %v11263_v28 = vld [vmem:[#allocation8 + $0x4a8] sm:$0xf0] }
 0x8de   :  { %v6650_v7 = vadd.f32 %v6649_v25, %v6611_v39  ;;  %7676 = vmatpush.bf16.msra.mxu0 %v11218_v8 }
 0x8df   :  { %7715 = vmatpush.bf16.msra.mxu1 %v11282_v52  ;;  %v11199_v52 = vld [vmem:[#allocation8 + $0x428] sm:$0xf0] }
 0x8e0   :  { %v6691_v27 = vrot.slane %v6650_v7, 6 }
 0x8e2   :  { %v14856_v29 = vsel %vm5061_vm1, %v14654_v2, %v6691_v27  ;;  %v14860_v5 = vsel %vm5064_vm2, %v14654_v2, %v6691_v27  ;;  %v7375_v26 = vpop.f32.mrf.mxu0  ;;  %v7414_v25 = vpop.f32.mrf.mxu1  ;;  %v12281_v2 = vld [vmem:[#allocation8 + $0x434] sm:$0xf]  ;;  %v11207_v27 = vld [vmem:[#allocation8 + $0x438] sm:$0xf0] }
 0x8e3   :  { %16406 = vst [vmem:[#allocation59_spill] sm:$0xff] %v14856_v29  ;;  %v14862_v54 = vadd.f32 %v7414_v25, %v7375_v26  ;;  %v6612_v15 = vpop.f32.mrf.mxu2  ;;  %v6651_v39 = vpop.f32.mrf.mxu3  ;;  %v11210_v8 = vor.u32 %v12281_v2, %v11207_v27  ;;  %7716 = vmatpush.bf16.msra.mxu1 %v11274_v32  ;;  %v12295_v27 = vld [vmem:[#allocation8 + $0x4a4] sm:$0xf] }
 0x8e4   :  { %16407 = vst [vmem:[#allocation101_spill] sm:$0xff] %v14860_v5  ;;  %v6613_v7 = vadd.f32 %v6612_v15, %v14786_v1  ;;  %v11266_v59 = vor.u32 %v12295_v27, %v11263_v28  ;;  %v12293_v5 = vld [vmem:[#allocation8 + $0x494] sm:$0xf]  ;;  %v12291_v28 = vld [vmem:[#allocation8 + $0x484] sm:$0xf] }
 0x8e5   :  { %7540 = vmatmul.bf16.gmra.mxu0 %v16374_v10  ;;  %7579 = vmatmul.bf16.gmra.mxu1 %v16375_v37 }
 0x8e6   :  { %v6652_v56 = vadd.f32 %v6651_v39, %v6613_v7  ;;  %7677 = vmatpush.bf16.msra.mxu0 %v11210_v8  ;;  %v12279_v7 = vld [vmem:[#allocation8 + $0x424] sm:$0xf]  ;;  %v12313_v8 = vld [vmem:[#allocation8 + $0x534] sm:$0xf] }
 0x8e7   :  { %v11202_v2 = vor.u32 %v12279_v7, %v11199_v52  ;;  %7717 = vmatpush.bf16.msra.mxu1 %v11266_v59  ;;  %v16414_v59 = vld [vmem:[#allocation48_spill] sm:$0xff] }
 0x8e8   :  { %v6692_v35 = vrot.slane %v6652_v56, 6  ;;  %7608 = vmatmul.bf16.gmra.mxu2 %v16378_v45  ;;  %7647 = vmatmul.bf16.gmra.mxu3 %v16379_v6 }
 0x8ea   :  { %v14871_v1 = vsel %vm5059_vm0, %v14663_v9, %v6692_v35  ;;  %v14875_v61 = vsel %vm5061_vm1, %v14663_v9, %v6692_v35  ;;  %v14879_v26 = vsel %vm5478_vm4, %v6692_v35, %v14663_v9  ;;  %v7377_v25 = vpop.f32.mrf.mxu0  ;;  %v7416_v15 = vpop.f32.mrf.mxu1  ;;  %v11399_v9 = vld [vmem:[#allocation8 + $0x5b8] sm:$0xf0]  ;;  %7678 = vmatpush.bf16.msra.mxu0 %v11202_v2 }
 0x8eb   :  { %16408 = vst [vmem:[#allocation44_spill] sm:$0xff] %v14871_v1  ;;  %v14881_v39 = vadd.f32 %v7416_v15, %v7377_v25  ;;  %v6615_v20 = vpop.f32.mrf.mxu2  ;;  %v6654_v48 = vpop.f32.mrf.mxu3  ;;  %v11335_v1 = vld [vmem:[#allocation8 + $0x538] sm:$0xf0]  ;;  %v12277_v25 = vld [vmem:[#allocation8 + $0x414] sm:$0xf] }
 0x8ec   :  { %16409 = vst [vmem:[#allocation45_spill] sm:$0xff] %v14875_v61  ;;  %v6616_v56 = vadd.f32 %v6615_v20, %v14802_v18  ;;  %v12329_v61 = vld [vmem:[#allocation8 + $0x5b4] sm:$0xf]  ;;  %v11191_v15 = vld [vmem:[#allocation8 + $0x418] sm:$0xf0]  ;;  %v11258_v18 = vor.u32 %v12293_v5, %v11255_v60 }
 0x8ed   :  { %16410 = vst [vmem:[#allocation81_spill] sm:$0xff] %v14879_v26  ;;  %v11338_v26 = vor.u32 %v12313_v8, %v11335_v1  ;;  %v11402_v32 = vor.u32 %v12329_v61, %v11399_v9  ;;  %v11194_v29 = vor.u32 %v12277_v25, %v11191_v15  ;;  %v12275_v60 = vld [vmem:[#allocation8 + $0x404] sm:$0xf]  ;;  %v11183_v5 = vld [vmem:[#allocation8 + $0x408] sm:$0xf0]  ;;  %v16415_v9 = vld [vmem:[#allocation26_spill] sm:$0xff] }
 0x8ee   :  { %v6655_v35 = vadd.f32 %v6654_v48, %v6616_v56  ;;  %7718 = vmatpush.bf16.msra.mxu1 %v11258_v18  ;;  %v11186_v27 = vor.u32 %v12275_v60, %v11183_v5  ;;  %v11247_v8 = vld [vmem:[#allocation8 + $0x488] sm:$0xf0] }
 0x8ef   :  { %7755 = vmatpush.bf16.msra.mxu2 %v11338_v26  ;;  %7794 = vmatpush.bf16.msra.mxu3 %v11402_v32  ;;  %v12327_v32 = vld [vmem:[#allocation8 + $0x5a4] sm:$0xf]  ;;  %v11391_v15 = vld [vmem:[#allocation8 + $0x5a8] sm:$0xf0] }
 0x8f0   :  { %v6693_v12 = vrot.slane %v6655_v35, 6  ;;  %7679 = vmatpush.bf16.msra.mxu0 %v11194_v29  ;;  %v12311_v29 = vld [vmem:[#allocation8 + $0x524] sm:$0xf]  ;;  %v11327_v35 = vld [vmem:[#allocation8 + $0x528] sm:$0xf0] }
 0x8f1   :  { %v11330_v25 = vor.u32 %v12311_v29, %v11327_v35 }
 0x8f2   :  { %v14886_v20 = vsel %vm5059_vm0, %v14668_v34, %v6693_v12  ;;  %v14890_v48 = vsel %vm5064_vm2, %v14668_v34, %v6693_v12  ;;  %v14894_v1 = vsel %vm5478_vm4, %v6693_v12, %v14668_v34  ;;  %v7380_v61 = vpop.f32.mrf.mxu0  ;;  %v7419_v7 = vpop.f32.mrf.mxu1  ;;  %v11250_v34 = vor.u32 %v12291_v28, %v11247_v8 }
 0x8f3   :  { %16411 = vst [vmem:[#allocation82_spill] sm:$0xff] %v14886_v20  ;;  %v14896_v52 = vadd.f32 %v7419_v7, %v7380_v61  ;;  %v6617_v26 = vpop.f32.mrf.mxu2  ;;  %v6656_v56 = vpop.f32.mrf.mxu3  ;;  %v16416_v61 = vld [vmem:[#allocation63_spill] sm:$0xff]  ;;  %v11394_v7 = vor.u32 %v12327_v32, %v11391_v15  ;;  %7756 = vmatpush.bf16.msra.mxu2 %v11330_v25 }
 0x8f4   :  { %16412 = vst [vmem:[#allocation46_spill] sm:$0xff] %v14890_v48  ;;  %v6618_v2 = vadd.f32 %v6617_v26, %v14818_v33  ;;  %7680 = vmatpush.bf16.msra.mxu0 %v11186_v27  ;;  %7719 = vmatpush.bf16.msra.mxu1 %v11250_v34  ;;  %v16417_v33 = vld [vmem:[#allocation64_spill] sm:$0xff]  ;;  %v16418_v26 = vld [vmem:[#allocation25_spill] sm:$0xff] }
 0x8f5   :  { %16413 = vst [vmem:[#allocation47_spill] sm:$0xff] %v14894_v1  ;;  %7545 = vmatmul.bf16.gmra.mxu0 %v16414_v59  ;;  %7584 = vmatmul.bf16.gmra.mxu1 %v16415_v9  ;;  %v16422_v1 = vld [vmem:[#allocation24_spill] sm:$0xff] }
 0x8f6   :  { %v6657_v12 = vadd.f32 %v6656_v56, %v6618_v2  ;;  %7795 = vmatpush.bf16.msra.mxu3 %v11394_v7  ;;  %v12307_v48 = vld [vmem:[#allocation8 + $0x504] sm:$0xf] }
 0x8f8   :  { %v6694_v18 = vrot.slane %v6657_v12, 6  ;;  %7613 = vmatmul.bf16.gmra.mxu2 %v16416_v61  ;;  %7652 = vmatmul.bf16.gmra.mxu3 %v16417_v33 }
 0x8fa   :  { %v14905_v60 = vsel %vm5061_vm1, %v16418_v26, %v6694_v18  ;;  %v14909_v56 = vsel %vm5064_vm2, %v16418_v26, %v6694_v18  ;;  %v7382_v5 = vpop.f32.mrf.mxu0  ;;  %v7421_v2 = vpop.f32.mrf.mxu1  ;;  %v11319_v18 = vld [vmem:[#allocation8 + $0x518] sm:$0xf0]  ;;  %v12325_v26 = vld [vmem:[#allocation8 + $0x594] sm:$0xf] }
 0x8fb   :  { %16419 = vst [vmem:[#allocation83_spill] sm:$0xff] %v14905_v60  ;;  %v14911_v27 = vadd.f32 %v7421_v2, %v7382_v5  ;;  %v7448_v28 = vpop.f32.mrf.mxu2  ;;  %v7487_v8 = vpop.f32.mrf.mxu3  ;;  %v12309_v60 = vld [vmem:[#allocation8 + $0x514] sm:$0xf]  ;;  %v11383_v5 = vld [vmem:[#allocation8 + $0x598] sm:$0xf0] }
 0x8fc   :  { %16420 = vst [vmem:[#allocation84_spill] sm:$0xff] %v14909_v56  ;;  %v7449_v34 = vadd.f32 %v7448_v28, %v14832_v22  ;;  %v11322_v7 = vor.u32 %v12309_v60, %v11319_v18  ;;  %v16421_v2 = vld [vmem:[#allocation54_spill] sm:$0xff]  ;;  %v11386_v22 = vor.u32 %v12325_v26, %v11383_v5  ;;  %v11311_v26 = vld [vmem:[#allocation8 + $0x508] sm:$0xf0] }
 0x8fe   :  { %v14914_v12 = vadd.f32 %v7487_v8, %v7449_v34  ;;  %7757 = vmatpush.bf16.msra.mxu2 %v11322_v7  ;;  %7796 = vmatpush.bf16.msra.mxu3 %v11386_v22  ;;  %v16423_v8 = vld [vmem:[#allocation70_spill] sm:$0xff]  ;;  %v16424_v34 = vld [vmem:[#allocation71_spill] sm:$0xff]  ;;  %v11375_v7 = vld [vmem:[#allocation8 + $0x588] sm:$0xf0] }
 0x902   :  { %v7385_v29 = vpop.f32.mrf.mxu0  ;;  %v7424_v35 = vpop.f32.mrf.mxu1 }
 0x903   :  { %v14916_v32 = vadd.f32 %v7424_v35, %v7385_v29  ;;  %v7450_v25 = vpop.f32.mrf.mxu2  ;;  %v7489_v15 = vpop.f32.mrf.mxu3 }
 0x904   :  { %v7451_v56 = vadd.f32 %v7450_v25, %v14851_v4 }
 0x905   :  { %7550 = vmatmul.bf16.gmra.mxu0 %v16421_v2  ;;  %7589 = vmatmul.bf16.gmra.mxu1 %v16422_v1 }
 0x906   :  { %v14921_v28 = vadd.f32 %v7489_v15, %v7451_v56  ;;  %v12323_v56 = vld [vmem:[#allocation8 + $0x584] sm:$0xf]  ;;  %v11314_v15 = vor.u32 %v12307_v48, %v11311_v26 }
 0x907   :  { %v11378_v5 = vor.u32 %v12323_v56, %v11375_v7  ;;  %v11533_v7 = vld [vmem:[#allocation8 + $0x670] sm:$0xf] }
 0x908   :  { %7618 = vmatmul.bf16.gmra.mxu2 %v16423_v8  ;;  %7657 = vmatmul.bf16.gmra.mxu3 %v16424_v34 }
 0x909   :  { %7758 = vmatpush.bf16.msra.mxu2 %v11314_v15  ;;  %7797 = vmatpush.bf16.msra.mxu3 %v11378_v5  ;;  %v11661_v15 = vld [vmem:[#allocation8 + $0x770] sm:$0xf] }
 0x90a   :  { %v7387_v29 = vpop.f32.mrf.mxu0  ;;  %v7426_v35 = vpop.f32.mrf.mxu1 }
 0x90b   :  { %v14925_v20 = vadd.f32 %v7426_v35, %v7387_v29  ;;  %v7453_v4 = vpop.f32.mrf.mxu2  ;;  %v7492_v60 = vpop.f32.mrf.mxu3 }
 0x90c   :  { %v7454_v25 = vadd.f32 %v7453_v4, %v14862_v54  ;;  %v16426_v54 = vld [vmem:[#allocation53_spill] sm:$0xff] }
 0x90e   :  { %v14928_v18 = vadd.f32 %v7492_v60, %v7454_v25 }
 0x912   :  { %v7390_v22 = vpop.f32.mrf.mxu0  ;;  %v7429_v13 = vpop.f32.mrf.mxu1 }
 0x913   :  { %v14930_v40 = vadd.f32 %v7429_v13, %v7390_v22  ;;  %v7455_v29 = vpop.f32.mrf.mxu2  ;;  %v7494_v35 = vpop.f32.mrf.mxu3 }
 0x914   :  { %v7456_v3 = vadd.f32 %v7455_v29, %v14881_v39  ;;  %v12386_v39 = vld [vmem:[#allocation8 + $0x774] sm:$0xf0]  ;;  %v11725_v29 = vld [vmem:[#allocation8 + $0x7f0] sm:$0xf] }
 0x915   :  { %7681 = vmatmul.bf16.vlgmr.msra.gmra.mxu0 %v16425_v24  ;;  %7720 = vmatmul.bf16.vlgmr.msra.gmra.mxu1 %v16426_v54  ;;  %v11662_v22 = vor.u32 %v12386_v39, %v11661_v15  ;;  %v16427_v15 = vld [vmem:[#allocation65_spill] sm:$0xff]  ;;  %v16428_v39 = vld [vmem:[#allocation66_spill] sm:$0xff] }
 0x916   :  { %v14935_v4 = vadd.f32 %v7494_v35, %v7456_v3  ;;  %v12354_v3 = vld [vmem:[#allocation8 + $0x674] sm:$0xf0] }
 0x917   :  { %v12402_v35 = vld [vmem:[#allocation8 + $0x7f4] sm:$0xf0]  ;;  %v11534_v63 = vor.u32 %v12354_v3, %v11533_v7  ;;  %8787 = vmatpush.bf16.msrb.mxu2 %v11662_v22  ;;  %v11653_v3 = vld [vmem:[#allocation8 + $0x760] sm:$0xf]  ;;  %v12384_v22 = vld [vmem:[#allocation8 + $0x764] sm:$0xf0] }
 0x918   :  { %7623 = vmatmul.bf16.gmra.mxu2 %v14383_v14  ;;  %7662 = vmatmul.bf16.gmra.mxu3 %v14388_v0  ;;  %v11726_v16 = vor.u32 %v12402_v35, %v11725_v29  ;;  %v12400_v29 = vld [vmem:[#allocation8 + $0x7e4] sm:$0xf0] }
 0x919   :  { %8709 = vmatpush.bf16.msrb.mxu0 %v11534_v63  ;;  %v11717_v63 = vld [vmem:[#allocation8 + $0x7e0] sm:$0xf] }
 0x91a   :  { %v7392_v48 = vpop.f32.mrf.mxu0  ;;  %v7431_v60 = vpop.f32.mrf.mxu1  ;;  %8826 = vmatpush.bf16.msrb.mxu3 %v11726_v16  ;;  %v12352_v16 = vld [vmem:[#allocation8 + $0x664] sm:$0xf0]  ;;  %v11718_v35 = vor.u32 %v12400_v29, %v11717_v63 }
 0x91b   :  { %v14939_v25 = vadd.f32 %v7431_v60, %v7392_v48  ;;  %v7458_v13 = vpop.f32.mrf.mxu2  ;;  %v7497_v26 = vpop.f32.mrf.mxu3  ;;  %v11598_v48 = vor.u32 %v12370_v38, %v11597_v46  ;;  %v11525_v46 = vld [vmem:[#allocation8 + $0x660] sm:$0xf]  ;;  %v11654_v38 = vor.u32 %v12384_v22, %v11653_v3  ;;  %v12368_v22 = vld [vmem:[#allocation8 + $0x6e4] sm:$0xf0] }
 0x91c   :  { %v7459_v56 = vadd.f32 %v7458_v13, %v14896_v52  ;;  %v11589_v3 = vld [vmem:[#allocation8 + $0x6e0] sm:$0xf] }
 0x91d   :  { %8748 = vmatpush.bf16.msrb.mxu1 %v11598_v48  ;;  %8788 = vmatpush.bf16.msrb.mxu2 %v11654_v38  ;;  %v11590_v17 = vor.u32 %v12368_v22, %v11589_v3  ;;  %v11581_v3 = vld [vmem:[#allocation8 + $0x6d0] sm:$0xf]  ;;  %v12366_v22 = vld [vmem:[#allocation8 + $0x6d4] sm:$0xf0] }
 0x91e   :  { %v14942_v5 = vadd.f32 %v7497_v26, %v7459_v56  ;;  %8827 = vmatpush.bf16.msrb.mxu3 %v11718_v35  ;;  %v12382_v35 = vld [vmem:[#allocation8 + $0x754] sm:$0xf0] }
 0x921   :  { %8749 = vmatpush.bf16.msrb.mxu1 %v11590_v17 }
 0x922   :  { %v7395_v60 = vpop.f32.mrf.mxu0  ;;  %v7434_v49 = vpop.f32.mrf.mxu1 }
 0x923   :  { %v14944_v52 = vadd.f32 %v7434_v49, %v7395_v60  ;;  %v7460_v13 = vpop.f32.mrf.mxu2  ;;  %v7499_v26 = vpop.f32.mrf.mxu3  ;;  %v11526_v49 = vor.u32 %v12352_v16, %v11525_v46 }
 0x924   :  { %v7461_v56 = vadd.f32 %v7460_v13, %v14911_v27 }
 0x925   :  { %7686 = vmatmul.bf16.gmra.mxu0 %v16427_v15  ;;  %7725 = vmatmul.bf16.gmra.mxu1 %v16428_v39 }
 0x926   :  { %v14949_v7 = vadd.f32 %v7499_v26, %v7461_v56  ;;  %8710 = vmatpush.bf16.msrb.mxu0 %v11526_v49 }
 0x928   :  { %7628 = vmatmul.bf16.gmra.mxu2 %v16384_v41  ;;  %7667 = vmatmul.bf16.gmra.mxu3 %v16385_v62 }
 0x92a   :  { %v7397_v27 = vpop.f32.mrf.mxu0  ;;  %v7436_v48 = vpop.f32.mrf.mxu1 }
 0x92b   :  { %v14953_v60 = vadd.f32 %v7436_v48, %v7397_v27  ;;  %v7463_v13 = vpop.f32.mrf.mxu2  ;;  %v7502_v26 = vpop.f32.mrf.mxu3  ;;  %v11517_v27 = vld [vmem:[#allocation8 + $0x650] sm:$0xf] }
 0x92c   :  { %v7464_v56 = vadd.f32 %v7463_v13, %v14916_v32  ;;  %v11645_v32 = vld [vmem:[#allocation8 + $0x750] sm:$0xf]  ;;  %v12350_v13 = vld [vmem:[#allocation8 + $0x654] sm:$0xf0] }
 0x92d   :  { %v11646_v17 = vor.u32 %v12382_v35, %v11645_v32 }
 0x92e   :  { %v14956_v31 = vadd.f32 %v7502_v26, %v7464_v56  ;;  %v11709_v26 = vld [vmem:[#allocation8 + $0x7d0] sm:$0xf]  ;;  %v12398_v56 = vld [vmem:[#allocation8 + $0x7d4] sm:$0xf0] }
 0x92f   :  { %8789 = vmatpush.bf16.msrb.mxu2 %v11646_v17  ;;  %v12348_v17 = vld [vmem:[#allocation8 + $0x644] sm:$0xf0] }
 0x932   :  { %v7526_v62 = vpop.f32.mrf.mxu0  ;;  %v7565_v46 = vpop.f32.mrf.mxu1 }
 0x933   :  { %v7527_v38 = vadd.f32 %v7526_v62, %v14914_v12  ;;  %v7465_v16 = vpop.f32.mrf.mxu2  ;;  %v7504_v63 = vpop.f32.mrf.mxu3  ;;  %v11518_v62 = vor.u32 %v12350_v13, %v11517_v27  ;;  %v11710_v12 = vor.u32 %v12398_v56, %v11709_v26  ;;  %v11637_v27 = vld [vmem:[#allocation8 + $0x740] sm:$0xf]  ;;  %v12380_v13 = vld [vmem:[#allocation8 + $0x744] sm:$0xf0] }
 0x934   :  { %v7466_v29 = vadd.f32 %v7465_v16, %v14925_v20  ;;  %v11582_v20 = vor.u32 %v12366_v22, %v11581_v3  ;;  %v11509_v26 = vld [vmem:[#allocation8 + $0x640] sm:$0xf]  ;;  %v11638_v3 = vor.u32 %v12380_v13, %v11637_v27  ;;  %v12396_v22 = vld [vmem:[#allocation8 + $0x7c4] sm:$0xf0]  ;;  %v11501_v27 = vld [vmem:[#allocation8 + $0x630] sm:$0xf] }
 0x935   :  { %v14960_v49 = vadd.f32 %v7565_v46, %v7527_v38  ;;  %7691 = vmatmul.bf16.gmra.mxu0 %v14267_v53  ;;  %7730 = vmatmul.bf16.gmra.mxu1 %v14269_v58 }
 0x936   :  { %v14964_v48 = vadd.f32 %v7504_v63, %v7466_v29  ;;  %8711 = vmatpush.bf16.msrb.mxu0 %v11518_v62  ;;  %8828 = vmatpush.bf16.msrb.mxu3 %v11710_v12  ;;  %v11701_v62 = vld [vmem:[#allocation8 + $0x7c0] sm:$0xf] }
 0x937   :  { %8750 = vmatpush.bf16.msrb.mxu1 %v11582_v20  ;;  %v11702_v12 = vor.u32 %v12396_v22, %v11701_v62  ;;  %8790 = vmatpush.bf16.msrb.mxu2 %v11638_v3  ;;  %v11565_v3 = vld [vmem:[#allocation8 + $0x6b0] sm:$0xf] }
 0x938   :  { %7759 = vmatmul.bf16.vlgmr.msra.gmra.mxu2 %v14096_v44  ;;  %7798 = vmatmul.bf16.vlgmr.msra.gmra.mxu3 %v16391_v30  ;;  %v11510_v30 = vor.u32 %v12348_v17, %v11509_v26  ;;  %v12346_v26 = vld [vmem:[#allocation8 + $0x634] sm:$0xf0] }
 0x939   :  { %v12362_v17 = vld [vmem:[#allocation8 + $0x6b4] sm:$0xf0] }
 0x93a   :  { %v7528_v46 = vpop.f32.mrf.mxu0  ;;  %v7567_v38 = vpop.f32.mrf.mxu1  ;;  %8712 = vmatpush.bf16.msrb.mxu0 %v11510_v30  ;;  %8829 = vmatpush.bf16.msrb.mxu3 %v11702_v12 }
 0x93b   :  { %v7529_v16 = vadd.f32 %v7528_v46, %v14921_v28  ;;  %v7468_v63 = vpop.f32.mrf.mxu2  ;;  %v7507_v29 = vpop.f32.mrf.mxu3 }
 0x93c   :  { %v7469_v32 = vadd.f32 %v7468_v63, %v14930_v40 }
 0x93d   :  { %v14970_v35 = vadd.f32 %v7567_v38, %v7529_v16 }
 0x93e   :  { %v14972_v56 = vadd.f32 %v7507_v29, %v7469_v32  ;;  %v11573_v29 = vld [vmem:[#allocation8 + $0x6c0] sm:$0xf]  ;;  %v12364_v32 = vld [vmem:[#allocation8 + $0x6c4] sm:$0xf0] }
 0x93f   :  { %v11574_v30 = vor.u32 %v12364_v32, %v11573_v29  ;;  %v11557_v29 = vld [vmem:[#allocation8 + $0x6a0] sm:$0xf] }
 0x941   :  { %8751 = vmatpush.bf16.msrb.mxu1 %v11574_v30  ;;  %v12360_v30 = vld [vmem:[#allocation8 + $0x6a4] sm:$0xf0] }
 0x942   :  { %v7531_v28 = vpop.f32.mrf.mxu0  ;;  %v7570_v20 = vpop.f32.mrf.mxu1 }
 0x943   :  { %v7532_v40 = vadd.f32 %v7531_v28, %v14928_v18  ;;  %v7470_v46 = vpop.f32.mrf.mxu2  ;;  %v7509_v38 = vpop.f32.mrf.mxu3  ;;  %v11502_v18 = vor.u32 %v12346_v26, %v11501_v27  ;;  %v11629_v26 = vld [vmem:[#allocation8 + $0x730] sm:$0xf] }
 0x944   :  { %v7471_v16 = vadd.f32 %v7470_v46, %v14939_v25  ;;  %v11566_v25 = vor.u32 %v12362_v17, %v11565_v3  ;;  %v12378_v3 = vld [vmem:[#allocation8 + $0x734] sm:$0xf0]  ;;  %v11558_v17 = vor.u32 %v12360_v30, %v11557_v29 }
 0x945   :  { %v14976_v63 = vadd.f32 %v7570_v20, %v7532_v40  ;;  %7696 = vmatmul.bf16.gmra.mxu0 %v14343_v57  ;;  %7735 = vmatmul.bf16.gmra.mxu1 %v14352_v43 }
 0x946   :  { %v14980_v13 = vadd.f32 %v7509_v38, %v7471_v16  ;;  %8713 = vmatpush.bf16.msrb.mxu0 %v11502_v18  ;;  %8752 = vmatpush.bf16.msrb.mxu1 %v11566_v25  ;;  %v11493_v38 = vld [vmem:[#allocation8 + $0x620] sm:$0xf]  ;;  %v12344_v16 = vld [vmem:[#allocation8 + $0x624] sm:$0xf0]  ;;  %v11630_v18 = vor.u32 %v12378_v3, %v11629_v26 }
 0x947   :  { %v11494_v27 = vor.u32 %v12344_v16, %v11493_v38  ;;  %v11541_v3 = vld [vmem:[#allocation8 + $0x680] sm:$0xf] }
 0x948   :  { %7764 = vmatmul.bf16.gmra.mxu2 %v14232_v19  ;;  %7803 = vmatmul.bf16.gmra.mxu3 %v14253_v36  ;;  %v11693_v36 = vld [vmem:[#allocation8 + $0x7b0] sm:$0xf] }
 0x949   :  { %8791 = vmatpush.bf16.msrb.mxu2 %v11630_v18  ;;  %v12356_v18 = vld [vmem:[#allocation8 + $0x684] sm:$0xf0] }
 0x94a   :  { %v7533_v62 = vpop.f32.mrf.mxu0  ;;  %v7572_v22 = vpop.f32.mrf.mxu1  ;;  %8714 = vmatpush.bf16.msrb.mxu0 %v11494_v27  ;;  %8753 = vmatpush.bf16.msrb.mxu1 %v11558_v17  ;;  %v12340_v27 = vld [vmem:[#allocation8 + $0x604] sm:$0xf0] }
 0x94b   :  { %v7534_v12 = vadd.f32 %v7533_v62, %v14935_v4  ;;  %v7473_v28 = vpop.f32.mrf.mxu2  ;;  %v7512_v20 = vpop.f32.mrf.mxu3  ;;  %v12394_v4 = vld [vmem:[#allocation8 + $0x7b4] sm:$0xf0]  ;;  %v11485_v62 = vld [vmem:[#allocation8 + $0x610] sm:$0xf] }
 0x94c   :  { %v7474_v40 = vadd.f32 %v7473_v28, %v14944_v52  ;;  %v11694_v19 = vor.u32 %v12394_v4, %v11693_v36  ;;  %v12342_v52 = vld [vmem:[#allocation8 + $0x614] sm:$0xf0]  ;;  %v11477_v36 = vld [vmem:[#allocation8 + $0x600] sm:$0xf]  ;;  %v12376_v4 = vld [vmem:[#allocation8 + $0x724] sm:$0xf0] }
 0x94d   :  { %v14986_v46 = vadd.f32 %v7572_v22, %v7534_v12  ;;  %v11549_v22 = vld [vmem:[#allocation8 + $0x690] sm:$0xf]  ;;  %v12358_v12 = vld [vmem:[#allocation8 + $0x694] sm:$0xf0]  ;;  %v11486_v25 = vor.u32 %v12342_v52, %v11485_v62  ;;  %v11542_v62 = vor.u32 %v12356_v18, %v11541_v3 }
 0x94e   :  { %v14988_v32 = vadd.f32 %v7512_v20, %v7474_v40  ;;  %8830 = vmatpush.bf16.msrb.mxu3 %v11694_v19  ;;  %v11550_v40 = vor.u32 %v12358_v12, %v11549_v22  ;;  %v11478_v19 = vor.u32 %v12340_v27, %v11477_v36  ;;  %v12392_v22 = vld [vmem:[#allocation8 + $0x7a4] sm:$0xf0] }
 0x94f   :  { %8715 = vmatpush.bf16.msrb.mxu0 %v11486_v25 }
 0x950   :  { %8754 = vmatpush.bf16.msrb.mxu1 %v11550_v40 }
 0x952   :  { %v7536_v28 = vpop.f32.mrf.mxu0  ;;  %v7575_v20 = vpop.f32.mrf.mxu1 }
 0x953   :  { %v7537_v38 = vadd.f32 %v7536_v28, %v14942_v5  ;;  %v7475_v16 = vpop.f32.mrf.mxu2  ;;  %v7514_v29 = vpop.f32.mrf.mxu3  ;;  %v11621_v5 = vld [vmem:[#allocation8 + $0x720] sm:$0xf]  ;;  %8716 = vmatpush.bf16.msrb.mxu0 %v11478_v19 }
 0x954   :  { %v7476_v30 = vadd.f32 %v7475_v16, %v14953_v60  ;;  %v11622_v52 = vor.u32 %v12376_v4, %v11621_v5  ;;  %v11685_v60 = vld [vmem:[#allocation8 + $0x7a0] sm:$0xf]  ;;  %8755 = vmatpush.bf16.msrb.mxu1 %v11542_v62  ;;  %v12374_v4 = vld [vmem:[#allocation8 + $0x714] sm:$0xf0]  ;;  %v11677_v62 = vld [vmem:[#allocation8 + $0x790] sm:$0xf] }
 0x955   :  { %v14992_v26 = vadd.f32 %v7575_v20, %v7537_v38  ;;  %7701 = vmatmul.bf16.gmra.mxu0 %v14450_v47  ;;  %7740 = vmatmul.bf16.gmra.mxu1 %v14452_v50  ;;  %v11686_v12 = vor.u32 %v12392_v22, %v11685_v60  ;;  %v12390_v60 = vld [vmem:[#allocation8 + $0x794] sm:$0xf0] }
 0x956   :  { %v14996_v17 = vadd.f32 %v7514_v29, %v7476_v30  ;;  %8792 = vmatpush.bf16.msrb.mxu2 %v11622_v52  ;;  %v11678_v22 = vor.u32 %v12390_v60, %v11677_v62 }
 0x957   :  { %8831 = vmatpush.bf16.msrb.mxu3 %v11686_v12 }
 0x958   :  { %7769 = vmatmul.bf16.gmra.mxu2 %v14480_v51  ;;  %7808 = vmatmul.bf16.gmra.mxu3 %v16371_v55 }
 0x95a   :  { %v7538_v25 = vpop.f32.mrf.mxu0  ;;  %v7577_v28 = vpop.f32.mrf.mxu1 }
 0x95b   :  { %v7539_v20 = vadd.f32 %v7538_v25, %v14949_v7  ;;  %v7604_v40 = vpop.f32.mrf.mxu2  ;;  %v7643_v38 = vpop.f32.mrf.mxu3  ;;  %v11613_v7 = vld [vmem:[#allocation8 + $0x710] sm:$0xf]  ;;  %8832 = vmatpush.bf16.msrb.mxu3 %v11678_v22 }
 0x95c   :  { %v15001_v16 = vadd.f32 %v7643_v38, %v7604_v40  ;;  %v11614_v52 = vor.u32 %v12374_v4, %v11613_v7 }
 0x95d   :  { %v15003_v29 = vadd.f32 %v7577_v28, %v7539_v20 }
 0x95e   :  { %8793 = vmatpush.bf16.msrb.mxu2 %v11614_v52 }
 0x962   :  { %v7541_v30 = vpop.f32.mrf.mxu0  ;;  %v7580_v36 = vpop.f32.mrf.mxu1 }
 0x963   :  { %v7542_v27 = vadd.f32 %v7541_v30, %v14956_v31  ;;  %v7606_v3 = vpop.f32.mrf.mxu2  ;;  %v7645_v18 = vpop.f32.mrf.mxu3  ;;  %v11605_v30 = vld [vmem:[#allocation8 + $0x700] sm:$0xf] }
 0x964   :  { %v15006_v19 = vadd.f32 %v7645_v18, %v7606_v3  ;;  %v12388_v18 = vld [vmem:[#allocation8 + $0x784] sm:$0xf0] }
 0x965   :  { %v15008_v5 = vadd.f32 %v7580_v36, %v7542_v27  ;;  %7706 = vmatmul.bf16.gmra.mxu0 %v16372_v11  ;;  %7745 = vmatmul.bf16.gmra.mxu1 %v16373_v23  ;;  %v12372_v36 = vld [vmem:[#allocation8 + $0x704] sm:$0xf0]  ;;  %v11669_v27 = vld [vmem:[#allocation8 + $0x780] sm:$0xf] }
 0x966   :  { %v11606_v3 = vor.u32 %v12372_v36, %v11605_v30  ;;  %v11670_v7 = vor.u32 %v12388_v18, %v11669_v27  ;;  %v12353_v27 = vld [vmem:[#allocation8 + $0x674] sm:$0xf]  ;;  %v11789_v18 = vld [vmem:[#allocation8 + $0x870] sm:$0xf] }
 0x968   :  { %7774 = vmatmul.bf16.gmra.mxu2 %v16374_v10  ;;  %7813 = vmatmul.bf16.gmra.mxu3 %v16375_v37 }
 0x969   :  { %8794 = vmatpush.bf16.msrb.mxu2 %v11606_v3  ;;  %8833 = vmatpush.bf16.msrb.mxu3 %v11670_v7  ;;  %v11535_v3 = vld [vmem:[#allocation8 + $0x678] sm:$0xf0] }
 0x96a   :  { %v7543_v31 = vpop.f32.mrf.mxu0  ;;  %v7582_v12 = vpop.f32.mrf.mxu1  ;;  %v11538_v7 = vor.u32 %v12353_v27, %v11535_v3  ;;  %v12351_v3 = vld [vmem:[#allocation8 + $0x664] sm:$0xf] }
 0x96b   :  { %v7544_v25 = vadd.f32 %v7543_v31, %v14964_v48  ;;  %v7609_v28 = vpop.f32.mrf.mxu2  ;;  %v7648_v20 = vpop.f32.mrf.mxu3 }
 0x96c   :  { %v15015_v40 = vadd.f32 %v7648_v20, %v7609_v28 }
 0x96d   :  { %v15017_v38 = vadd.f32 %v7582_v12, %v7544_v25  ;;  %8943 = vmatpush.bf16.msra.mxu2 %v11538_v7  ;;  %v12416_v7 = vld [vmem:[#allocation8 + $0x864] sm:$0xf0] }
 0x972   :  { %v7546_v4 = vpop.f32.mrf.mxu0  ;;  %v7585_v62 = vpop.f32.mrf.mxu1 }
 0x973   :  { %v7547_v52 = vadd.f32 %v7546_v4, %v14972_v56  ;;  %v7611_v60 = vpop.f32.mrf.mxu2  ;;  %v7650_v48 = vpop.f32.mrf.mxu3  ;;  %v12418_v4 = vld [vmem:[#allocation8 + $0x874] sm:$0xf0] }
 0x974   :  { %v15020_v22 = vadd.f32 %v7650_v48, %v7611_v60  ;;  %v11790_v60 = vor.u32 %v12418_v4, %v11789_v18  ;;  %v11527_v18 = vld [vmem:[#allocation8 + $0x668] sm:$0xf0]  ;;  %v12367_v4 = vld [vmem:[#allocation8 + $0x6e4] sm:$0xf] }
 0x975   :  { %v15022_v31 = vadd.f32 %v7585_v62, %v7547_v52  ;;  %8717 = vmatmul.bf16.vlgmr.msrb.gmra.mxu0 %v16376_v21  ;;  %8756 = vmatmul.bf16.vlgmr.msrb.gmra.mxu1 %v16377_v42  ;;  %v12369_v62 = vld [vmem:[#allocation8 + $0x6f4] sm:$0xf]  ;;  %v11599_v52 = vld [vmem:[#allocation8 + $0x6f8] sm:$0xf0] }
 0x976   :  { %v11602_v48 = vor.u32 %v12369_v62, %v11599_v52  ;;  %8865 = vmatpush.bf16.msra.mxu0 %v11790_v60  ;;  %v11591_v62 = vld [vmem:[#allocation8 + $0x6e8] sm:$0xf0] }
 0x977   :  { %v11594_v52 = vor.u32 %v12367_v4, %v11591_v62 }
 0x978   :  { %7779 = vmatmul.bf16.gmra.mxu2 %v16414_v59  ;;  %7818 = vmatmul.bf16.gmra.mxu3 %v16415_v9  ;;  %v11853_v9 = vld [vmem:[#allocation8 + $0x8f0] sm:$0xf]  ;;  %v12434_v59 = vld [vmem:[#allocation8 + $0x8f4] sm:$0xf0] }
 0x979   :  { %v11854_v37 = vor.u32 %v12434_v59, %v11853_v9  ;;  %8982 = vmatpush.bf16.msra.mxu3 %v11602_v48  ;;  %v11781_v59 = vld [vmem:[#allocation8 + $0x860] sm:$0xf]  ;;  %v11530_v9 = vor.u32 %v12351_v3, %v11527_v18  ;;  %v12432_v3 = vld [vmem:[#allocation8 + $0x8e4] sm:$0xf0] }
 0x97a   :  { %v7548_v12 = vpop.f32.mrf.mxu0  ;;  %v7587_v25 = vpop.f32.mrf.mxu1 }
 0x97b   :  { %v7549_v28 = vadd.f32 %v7548_v12, %v14980_v13  ;;  %v7614_v20 = vpop.f32.mrf.mxu2  ;;  %v7653_v56 = vpop.f32.mrf.mxu3  ;;  %8904 = vmatpush.bf16.msra.mxu1 %v11854_v37  ;;  %v11782_v37 = vor.u32 %v12416_v7, %v11781_v59  ;;  %8944 = vmatpush.bf16.msra.mxu2 %v11530_v9 }
 0x97c   :  { %v15029_v30 = vadd.f32 %v7653_v56, %v7614_v20 }
 0x97d   :  { %v15031_v36 = vadd.f32 %v7587_v25, %v7549_v28  ;;  %8866 = vmatpush.bf16.msra.mxu0 %v11782_v37  ;;  %8983 = vmatpush.bf16.msra.mxu3 %v11594_v52 }
 0x982   :  { %v7551_v13 = vpop.f32.mrf.mxu0  ;;  %v7590_v12 = vpop.f32.mrf.mxu1 }
 0x983   :  { %v7552_v25 = vadd.f32 %v7551_v13, %v14988_v32  ;;  %v7616_v28 = vpop.f32.mrf.mxu2  ;;  %v7655_v20 = vpop.f32.mrf.mxu3 }
 0x984   :  { %v15034_v56 = vadd.f32 %v7655_v20, %v7616_v28  ;;  %v11845_v20 = vld [vmem:[#allocation8 + $0x8e0] sm:$0xf] }
 0x985   :  { %v15036_v27 = vadd.f32 %v7590_v12, %v7552_v25  ;;  %8722 = vmatmul.bf16.gmra.mxu0 %v16378_v45  ;;  %8761 = vmatmul.bf16.gmra.mxu1 %v16379_v6  ;;  %v11846_v18 = vor.u32 %v12432_v3, %v11845_v20  ;;  %v11583_v20 = vld [vmem:[#allocation8 + $0x6d8] sm:$0xf0] }
 0x987   :  { %8905 = vmatpush.bf16.msra.mxu1 %v11846_v18 }
 0x988   :  { %7784 = vmatmul.bf16.gmra.mxu2 %v16421_v2  ;;  %7823 = vmatmul.bf16.gmra.mxu3 %v16422_v1 }
 0x98a   :  { %v7553_v32 = vpop.f32.mrf.mxu0  ;;  %v7592_v60 = vpop.f32.mrf.mxu1 }
 0x98b   :  { %v7554_v48 = vadd.f32 %v7553_v32, %v14996_v17  ;;  %v7619_v13 = vpop.f32.mrf.mxu2  ;;  %v7658_v12 = vpop.f32.mrf.mxu3  ;;  %v12349_v17 = vld [vmem:[#allocation8 + $0x654] sm:$0xf]  ;;  %v11519_v32 = vld [vmem:[#allocation8 + $0x658] sm:$0xf0] }
 0x98c   :  { %v15043_v25 = vadd.f32 %v7658_v12, %v7619_v13  ;;  %v12414_v13 = vld [vmem:[#allocation8 + $0x854] sm:$0xf0]  ;;  %v12365_v12 = vld [vmem:[#allocation8 + $0x6d4] sm:$0xf] }
 0x98d   :  { %v15045_v28 = vadd.f32 %v7592_v60, %v7554_v48  ;;  %v11773_v60 = vld [vmem:[#allocation8 + $0x850] sm:$0xf]  ;;  %v11522_v48 = vor.u32 %v12349_v17, %v11519_v32  ;;  %v11586_v18 = vor.u32 %v12365_v12, %v11583_v20 }
 0x98e   :  { %v11774_v3 = vor.u32 %v12414_v13, %v11773_v60 }
 0x98f   :  { %16429 = vst [vmem:[#allocation50_spill] sm:$0xff] %v15045_v28  ;;  %8945 = vmatpush.bf16.msra.mxu2 %v11522_v48  ;;  %8984 = vmatpush.bf16.msra.mxu3 %v11586_v18  ;;  %v11511_v18 = vld [vmem:[#allocation8 + $0x648] sm:$0xf0] }
 0x990   :  { %8867 = vmatpush.bf16.msra.mxu0 %v11774_v3 }
 0x992   :  { %v7682_v59 = vpop.f32.mrf.mxu0  ;;  %v7721_v7 = vpop.f32.mrf.mxu1 }
 0x993   :  { %v7683_v9 = vadd.f32 %v7682_v59, %v15001_v16  ;;  %v7621_v4 = vpop.f32.mrf.mxu2  ;;  %v7660_v62 = vpop.f32.mrf.mxu3  ;;  %v11837_v16 = vld [vmem:[#allocation8 + $0x8d0] sm:$0xf]  ;;  %v12430_v59 = vld [vmem:[#allocation8 + $0x8d4] sm:$0xf0] }
 0x994   :  { %v15048_v37 = vadd.f32 %v7660_v62, %v7621_v4 }
 0x995   :  { %v15050_v52 = vadd.f32 %v7721_v7, %v7683_v9  ;;  %8727 = vmatmul.bf16.gmra.mxu0 %v16416_v61  ;;  %8766 = vmatmul.bf16.gmra.mxu1 %v16417_v33  ;;  %v11838_v7 = vor.u32 %v12430_v59, %v11837_v16  ;;  %v11765_v59 = vld [vmem:[#allocation8 + $0x840] sm:$0xf] }
 0x997   :  { %8906 = vmatpush.bf16.msra.mxu1 %v11838_v7 }
 0x998   :  { %8795 = vmatmul.bf16.vlgmr.msrb.gmra.mxu2 %v16425_v24  ;;  %8834 = vmatmul.bf16.vlgmr.msrb.gmra.mxu3 %v16426_v54 }
 0x99a   :  { %v7684_v9 = vpop.f32.mrf.mxu0  ;;  %v7723_v4 = vpop.f32.mrf.mxu1 }
 0x99b   :  { %v7685_v62 = vadd.f32 %v7684_v9, %v15006_v19  ;;  %v7624_v17 = vpop.f32.mrf.mxu2  ;;  %v7663_v32 = vpop.f32.mrf.mxu3  ;;  %v12347_v19 = vld [vmem:[#allocation8 + $0x644] sm:$0xf]  ;;  %v12412_v9 = vld [vmem:[#allocation8 + $0x844] sm:$0xf0] }
 0x99c   :  { %v15057_v1 = vadd.f32 %v7663_v32, %v7624_v17  ;;  %v11514_v7 = vor.u32 %v12347_v19, %v11511_v18  ;;  %v11829_v17 = vld [vmem:[#allocation8 + $0x8c0] sm:$0xf]  ;;  %v12428_v32 = vld [vmem:[#allocation8 + $0x8c4] sm:$0xf0]  ;;  %v11757_v18 = vld [vmem:[#allocation8 + $0x830] sm:$0xf] }
 0x99d   :  { %v15059_v60 = vadd.f32 %v7723_v4, %v7685_v62  ;;  %v11575_v4 = vld [vmem:[#allocation8 + $0x6c8] sm:$0xf0]  ;;  %v11766_v62 = vor.u32 %v12412_v9, %v11765_v59  ;;  %v12410_v59 = vld [vmem:[#allocation8 + $0x834] sm:$0xf0]  ;;  %v11821_v9 = vld [vmem:[#allocation8 + $0x8b0] sm:$0xf] }
 0x99e   :  { %8946 = vmatpush.bf16.msra.mxu2 %v11514_v7 }
 0x99f   :  { %8868 = vmatpush.bf16.msra.mxu0 %v11766_v62 }
 0x9a2   :  { %v7687_v13 = vpop.f32.mrf.mxu0  ;;  %v7726_v12 = vpop.f32.mrf.mxu1 }
 0x9a3   :  { %v7688_v20 = vadd.f32 %v7687_v13, %v15015_v40  ;;  %v7626_v54 = vpop.f32.mrf.mxu2  ;;  %v7665_v16 = vpop.f32.mrf.mxu3  ;;  %v12363_v40 = vld [vmem:[#allocation8 + $0x6c4] sm:$0xf] }
 0x9a4   :  { %v15062_v48 = vadd.f32 %v7665_v16, %v7626_v54  ;;  %v11578_v54 = vor.u32 %v12363_v40, %v11575_v4  ;;  %v11758_v40 = vor.u32 %v12410_v59, %v11757_v18  ;;  %v12426_v4 = vld [vmem:[#allocation8 + $0x8b4] sm:$0xf0] }
 0x9a5   :  { %v15064_v3 = vadd.f32 %v7726_v12, %v7688_v20  ;;  %8732 = vmatmul.bf16.gmra.mxu0 %v16423_v8  ;;  %8771 = vmatmul.bf16.gmra.mxu1 %v16424_v34  ;;  %v11830_v20 = vor.u32 %v12428_v32, %v11829_v17  ;;  %v12408_v8 = vld [vmem:[#allocation8 + $0x824] sm:$0xf0]  ;;  %v11822_v7 = vor.u32 %v12426_v4, %v11821_v9  ;;  %v11813_v17 = vld [vmem:[#allocation8 + $0x8a0] sm:$0xf]  ;;  %v12422_v4 = vld [vmem:[#allocation8 + $0x894] sm:$0xf0] }
 0x9a6   :  { %8985 = vmatpush.bf16.msra.mxu3 %v11578_v54  ;;  %v12424_v32 = vld [vmem:[#allocation8 + $0x8a4] sm:$0xf0]  ;;  %8869 = vmatpush.bf16.msra.mxu0 %v11758_v40  ;;  %v11567_v54 = vld [vmem:[#allocation8 + $0x6b8] sm:$0xf0] }
 0x9a7   :  { %8907 = vmatpush.bf16.msra.mxu1 %v11830_v20  ;;  %v11814_v18 = vor.u32 %v12424_v32, %v11813_v17  ;;  %v11797_v32 = vld [vmem:[#allocation8 + $0x880] sm:$0xf] }
 0x9a8   :  { %8800 = vmatmul.bf16.gmra.mxu2 %v16427_v15  ;;  %8839 = vmatmul.bf16.gmra.mxu3 %v16428_v39  ;;  %v11749_v39 = vld [vmem:[#allocation8 + $0x820] sm:$0xf] }
 0x9a9   :  { %v11750_v62 = vor.u32 %v12408_v8, %v11749_v39  ;;  %v11741_v8 = vld [vmem:[#allocation8 + $0x810] sm:$0xf]  ;;  %v12406_v39 = vld [vmem:[#allocation8 + $0x814] sm:$0xf0] }
 0x9aa   :  { %v7689_v13 = vpop.f32.mrf.mxu0  ;;  %v7728_v12 = vpop.f32.mrf.mxu1  ;;  %v11742_v40 = vor.u32 %v12406_v39, %v11741_v8  ;;  %v11495_v8 = vld [vmem:[#allocation8 + $0x628] sm:$0xf0]  ;;  %v12359_v39 = vld [vmem:[#allocation8 + $0x6a4] sm:$0xf] }
 0x9ab   :  { %v7690_v16 = vadd.f32 %v7689_v13, %v15020_v22  ;;  %v7629_v24 = vpop.f32.mrf.mxu2  ;;  %v7668_v34 = vpop.f32.mrf.mxu3  ;;  %v12345_v22 = vld [vmem:[#allocation8 + $0x634] sm:$0xf]  ;;  %8908 = vmatpush.bf16.msra.mxu1 %v11822_v7  ;;  %8870 = vmatpush.bf16.msra.mxu0 %v11750_v62  ;;  %v11733_v7 = vld [vmem:[#allocation8 + $0x800] sm:$0xf] }
 0x9ac   :  { %v15071_v15 = vadd.f32 %v7668_v34, %v7629_v24  ;;  %v11503_v24 = vld [vmem:[#allocation8 + $0x638] sm:$0xf0]  ;;  %v12361_v34 = vld [vmem:[#allocation8 + $0x6b4] sm:$0xf] }
 0x9ad   :  { %v15073_v19 = vadd.f32 %v7728_v12, %v7690_v16  ;;  %v11506_v59 = vor.u32 %v12345_v22, %v11503_v24  ;;  %v11570_v28 = vor.u32 %v12361_v34, %v11567_v54  ;;  %v12420_v22 = vld [vmem:[#allocation8 + $0x884] sm:$0xf0] }
 0x9af   :  { %8947 = vmatpush.bf16.msra.mxu2 %v11506_v59  ;;  %8909 = vmatpush.bf16.msra.mxu1 %v11814_v18  ;;  %v12343_v59 = vld [vmem:[#allocation8 + $0x624] sm:$0xf] }
 0x9b0   :  { %8986 = vmatpush.bf16.msra.mxu3 %v11570_v28  ;;  %8871 = vmatpush.bf16.msra.mxu0 %v11742_v40  ;;  %v11559_v40 = vld [vmem:[#allocation8 + $0x6a8] sm:$0xf0] }
 0x9b2   :  { %v7692_v13 = vpop.f32.mrf.mxu0  ;;  %v7731_v2 = vpop.f32.mrf.mxu1 }
 0x9b3   :  { %v7693_v12 = vadd.f32 %v7692_v13, %v15029_v30  ;;  %v7631_v20 = vpop.f32.mrf.mxu2  ;;  %v7670_v16 = vpop.f32.mrf.mxu3  ;;  %v11805_v30 = vld [vmem:[#allocation8 + $0x890] sm:$0xf] }
 0x9b4   :  { %v15076_v33 = vadd.f32 %v7670_v16, %v7631_v20  ;;  %v11806_v17 = vor.u32 %v12422_v4, %v11805_v30  ;;  %v11562_v4 = vor.u32 %v12359_v39, %v11559_v40 }
 0x9b5   :  { %v15078_v9 = vadd.f32 %v7731_v2, %v7693_v12  ;;  %8737 = vmatmul.bf16.gmra.mxu0 %v14383_v14  ;;  %8776 = vmatmul.bf16.gmra.mxu1 %v14388_v0  ;;  %v12404_v2 = vld [vmem:[#allocation8 + $0x804] sm:$0xf0]  ;;  %v11798_v12 = vor.u32 %v12420_v22, %v11797_v32 }
 0x9b6   :  { %v11734_v62 = vor.u32 %v12404_v2, %v11733_v7  ;;  %8910 = vmatpush.bf16.msra.mxu1 %v11806_v17  ;;  %8987 = vmatpush.bf16.msra.mxu3 %v11562_v4  ;;  %v12357_v7 = vld [vmem:[#allocation8 + $0x694] sm:$0xf] }
 0x9b8   :  { %8805 = vmatmul.bf16.gmra.mxu2 %v14267_v53  ;;  %8844 = vmatmul.bf16.gmra.mxu3 %v14269_v58 }
 0x9b9   :  { %8872 = vmatpush.bf16.msra.mxu0 %v11734_v62 }
 0x9ba   :  { %v7694_v13 = vpop.f32.mrf.mxu0  ;;  %v7733_v24 = vpop.f32.mrf.mxu1  ;;  %8911 = vmatpush.bf16.msra.mxu1 %v11798_v12 }
 0x9bb   :  { %v7695_v28 = vadd.f32 %v7694_v13, %v15034_v56  ;;  %v7760_v34 = vpop.f32.mrf.mxu2  ;;  %v7799_v54 = vpop.f32.mrf.mxu3  ;;  %v11498_v56 = vor.u32 %v12343_v59, %v11495_v8 }
 0x9bc   :  { %v7761_v20 = vadd.f32 %v7760_v34, %v15050_v52 }
 0x9bd   :  { %v15086_v16 = vadd.f32 %v7733_v24, %v7695_v28  ;;  %8948 = vmatpush.bf16.msra.mxu2 %v11498_v56  ;;  %v11487_v56 = vld [vmem:[#allocation8 + $0x618] sm:$0xf0] }
 0x9be   :  { %v7800_v18 = vadd.f32 %v7799_v54, %v7761_v20 }
 0x9c0   :  { %v7853_v30 = vrot.slane %v7800_v18, 6 }
 0x9c2   :  { %v7865_v52 = vsel %vm5059_vm0, %v14960_v49, %v7853_v30  ;;  %v7866_v2 = vsel %vm5061_vm1, %v14960_v49, %v7853_v30  ;;  %v7868_v17 = vsel %vm5064_vm2, %v14960_v49, %v7853_v30  ;;  %v7870_v32 = vsel %vm5478_vm4, %v7853_v30, %v14960_v49  ;;  %v7697_v22 = vpop.f32.mrf.mxu0  ;;  %v7736_v13 = vpop.f32.mrf.mxu1  ;;  %v16434_v49 = vld [vmem:[#allocation20_spill] sm:$0xff] }
 0x9c3   :  { %v7867_v24 = vrot.slane %v7866_v2, 2  ;;  %v7762_v62 = vpop.f32.mrf.mxu2  ;;  %v7801_v28 = vpop.f32.mrf.mxu3  ;;  %v7698_v34 = vadd.f32 %v7697_v22, %v15043_v25  ;;  %v11435_v20 = vrot.slane %v7865_v52, 9  ;;  %v11436_v30 = vrot.slane %v7868_v17, 11  ;;  %v12341_v25 = vld [vmem:[#allocation8 + $0x614] sm:$0xf] }
 0x9c4   :  { %v7763_v54 = vadd.f32 %v7762_v62, %v15059_v60  ;;  %v11490_v4 = vor.u32 %v12341_v25, %v11487_v56  ;;  %v11551_v52 = vld [vmem:[#allocation8 + $0x698] sm:$0xf0]  ;;  %v16435_v2 = vld [vmem:[#allocation106_spill] sm:$0xff]  ;;  %v16438_v25 = vld [vmem:[#allocation28_spill] sm:$0xff] }
 0x9c5   :  { %v7958_v18 = vrot.slane %v7867_v24, 7  ;;  %8742 = vmatmul.bf16.gmra.mxu0 %v16384_v41  ;;  %8781 = vmatmul.bf16.gmra.mxu1 %v16434_v49  ;;  %v15110_v59 = vadd.f32 %v7736_v13, %v7698_v34  ;;  %v16437_v13 = vld [vmem:[#allocation55_spill] sm:$0xff]  ;;  %v11554_v62 = vor.u32 %v12357_v7, %v11551_v52  ;;  %v6700_v56 = vrot.slane %v16438_v25, 6  ;;  %v16439_v25 = vld [vmem:[#allocation56_spill] sm:$0xff] }
 0x9c6   :  { %v7802_v8 = vadd.f32 %v7801_v28, %v7763_v54  ;;  %v6697_v24 = vrot.slane %v16437_v13, 2  ;;  %8949 = vmatpush.bf16.msra.mxu2 %v11490_v4 }
 0x9c7   :  { %v7960_v39 = vrot.slane %v7958_v18, 2  ;;  %v7959_v60 = vsel %vm15104_vm11, %v11435_v20, %v7958_v18  ;;  %8988 = vmatpush.bf16.msra.mxu3 %v11554_v62  ;;  %v16440_v62 = vld [vmem:[#allocation29_spill] sm:$0xff] }
 0x9c8   :  { %v7854_v40 = vrot.slane %v7802_v8, 6  ;;  %8810 = vmatmul.bf16.gmra.mxu2 %v14343_v57  ;;  %8849 = vmatmul.bf16.gmra.mxu3 %v14352_v43  ;;  %v15117_v22 = vadd.f32 %v7959_v60, %v16435_v2  ;;  %v11438_v60 = vrot.slane %v7870_v32, 15  ;;  %v6703_v32 = vrot.slane %v16439_v25, 4 }
 0x9c9   :  { %v7962_v17 = vsel %vm15104_vm11, %v7960_v39, %v11436_v30 }
 0x9ca   :  { %16436 = vst [vmem:[#allocation51_spill] sm:$0xff] %v15117_v22  ;;  %v7872_v28 = vsel %vm5059_vm0, %v14970_v35, %v7854_v40  ;;  %v7873_v34 = vsel %vm5061_vm1, %v14970_v35, %v7854_v40  ;;  %v7875_v54 = vsel %vm5064_vm2, %v14970_v35, %v7854_v40  ;;  %v7877_v20 = vsel %vm5478_vm4, %v7854_v40, %v14970_v35  ;;  %v7699_v18 = vpop.f32.mrf.mxu0  ;;  %v7738_v8 = vpop.f32.mrf.mxu1 }
 0x9cb   :  { %v7878_v7 = vrot.slane %v7877_v20, 6  ;;  %v7965_v39 = vrot.slane %v7872_v28, 7  ;;  %v7765_v30 = vpop.f32.mrf.mxu2  ;;  %v7804_v52 = vpop.f32.mrf.mxu3  ;;  %v11439_v2 = vrot.slane %v7873_v34, 9  ;;  %v7700_v13 = vadd.f32 %v7699_v18, %v15048_v37 }
 0x9cc   :  { %v7766_v22 = vadd.f32 %v7765_v30, %v15064_v3  ;;  %v15133_v43 = vadd.f32 %v7962_v17, %v6697_v24  ;;  %v11441_v35 = vrot.slane %v7875_v54, 13 }
 0x9cd   :  { %v7967_v57 = vrot.slane %v7965_v39, 2  ;;  %v7972_v40 = vrot.slane %v7878_v7, 7  ;;  %v7966_v4 = vsel %vm15104_vm11, %v11438_v60, %v7965_v39  ;;  %v15138_v20 = vadd.f32 %v7738_v8, %v7700_v13 }
 0x9ce   :  { %v7805_v28 = vadd.f32 %v7804_v52, %v7766_v22  ;;  %v15140_v58 = vadd.f32 %v7966_v4, %v6700_v56 }
 0x9cf   :  { %v7969_v37 = vsel %vm15104_vm11, %v7967_v57, %v11439_v2  ;;  %v7973_v3 = vsel %vm15104_vm11, %v11441_v35, %v7972_v40  ;;  %v7974_v60 = vrot.slane %v7972_v40, 2  ;;  %v16442_v2 = vld [vmem:[#allocation57_spill] sm:$0xff]  ;;  %v16444_v40 = vld [vmem:[#allocation76_spill] sm:$0xff] }
 0x9d0   :  { %v7855_v24 = vrot.slane %v7805_v28, 6  ;;  %v15147_v17 = vadd.f32 %v7969_v37, %v16440_v62  ;;  %v15149_v34 = vadd.f32 %v7973_v3, %v6703_v32  ;;  %v6705_v13 = vrot.slane %v16442_v2, 6  ;;  %v16443_v28 = vld [vmem:[#allocation60_spill] sm:$0xff] }
 0x9d1   :  { %v6707_v37 = vrot.slane %v16444_v40, 2 }
 0x9d2   :  { %16441 = vst [vmem:[#allocation85_spill] sm:$0xff] %v15149_v34  ;;  %v7879_v54 = vsel %vm5059_vm0, %v14976_v63, %v7855_v24  ;;  %v7880_v22 = vsel %vm5061_vm1, %v14976_v63, %v7855_v24  ;;  %v7882_v18 = vsel %vm5064_vm2, %v14976_v63, %v7855_v24  ;;  %v7884_v57 = vsel %vm5478_vm4, %v7855_v24, %v14976_v63  ;;  %v7702_v8 = vpop.f32.mrf.mxu0  ;;  %v7741_v56 = vpop.f32.mrf.mxu1 }
 0x9d3   :  { %v7883_v7 = vrot.slane %v7882_v18, 4  ;;  %v7975_v39 = vrot.slane %v7879_v54, 7  ;;  %v7767_v30 = vpop.f32.mrf.mxu2  ;;  %v7806_v52 = vpop.f32.mrf.mxu3  ;;  %v7703_v35 = vadd.f32 %v7702_v8, %v15057_v1  ;;  %v11443_v25 = vrot.slane %v7880_v22, 11  ;;  %v12339_v18 = vld [vmem:[#allocation8 + $0x604] sm:$0xf] }
 0x9d4   :  { %v7768_v4 = vadd.f32 %v7767_v30, %v15073_v19  ;;  %v11444_v1 = vrot.slane %v7884_v57, 13  ;;  %v11479_v19 = vld [vmem:[#allocation8 + $0x608] sm:$0xf0]  ;;  %v16447_v30 = vld [vmem:[#allocation78_spill] sm:$0xff] }
 0x9d5   :  { %v7979_v32 = vrot.slane %v7883_v7, 7  ;;  %8873 = vmatmul.bf16.vlgmr.msra.gmra.mxu0 %v14096_v44  ;;  %8912 = vmatmul.bf16.vlgmr.msra.gmra.mxu1 %v16443_v28  ;;  %v7976_v63 = vsel %vm15104_vm11, %v7974_v60, %v7975_v39  ;;  %v15167_v3 = vadd.f32 %v7741_v56, %v7703_v35  ;;  %v11482_v60 = vor.u32 %v12339_v18, %v11479_v19  ;;  %v12355_v7 = vld [vmem:[#allocation8 + $0x684] sm:$0xf]  ;;  %v11543_v39 = vld [vmem:[#allocation8 + $0x688] sm:$0xf0] }
 0x9d6   :  { %v7807_v24 = vadd.f32 %v7806_v52, %v7768_v4  ;;  %v15169_v62 = vadd.f32 %v7976_v63, %v6705_v13  ;;  %v6709_v52 = vrot.slane %v16447_v30, 4  ;;  %v11546_v2 = vor.u32 %v12355_v7, %v11543_v39 }
 0x9d7   :  { %v7981_v54 = vrot.slane %v7979_v32, 2  ;;  %v7980_v22 = vsel %vm15104_vm11, %v11443_v25, %v7979_v32  ;;  %8950 = vmatpush.bf16.msra.mxu2 %v11482_v60 }
 0x9d8   :  { %16445 = vst [vmem:[#allocation30_spill] sm:$0xff] %v15169_v62  ;;  %v7856_v8 = vrot.slane %v7807_v24, 6  ;;  %8815 = vmatmul.bf16.gmra.mxu2 %v14450_v47  ;;  %8854 = vmatmul.bf16.gmra.mxu3 %v14452_v50  ;;  %v15175_v56 = vadd.f32 %v7980_v22, %v6707_v37  ;;  %v12385_v62 = vld [vmem:[#allocation8 + $0x774] sm:$0xf] }
 0x9d9   :  { %v7983_v57 = vsel %vm15104_vm11, %v7981_v54, %v11444_v1  ;;  %8989 = vmatpush.bf16.msra.mxu3 %v11546_v2 }
 0x9da   :  { %16446 = vst [vmem:[#allocation86_spill] sm:$0xff] %v15175_v56  ;;  %v7886_v13 = vsel %vm5059_vm0, %v14986_v46, %v7856_v8  ;;  %v7887_v35 = vsel %vm5061_vm1, %v14986_v46, %v7856_v8  ;;  %v7889_v4 = vsel %vm5064_vm2, %v14986_v46, %v7856_v8  ;;  %v7891_v25 = vsel %vm5478_vm4, %v7856_v8, %v14986_v46  ;;  %v7704_v32 = vpop.f32.mrf.mxu0  ;;  %v7743_v63 = vpop.f32.mrf.mxu1  ;;  %v12417_v8 = vld [vmem:[#allocation8 + $0x874] sm:$0xf]  ;;  %v11791_v56 = vld [vmem:[#allocation8 + $0x878] sm:$0xf0] }
 0x9db   :  { %v7888_v40 = vrot.slane %v7887_v35, 2  ;;  %v7770_v37 = vpop.f32.mrf.mxu2  ;;  %v7809_v24 = vpop.f32.mrf.mxu3  ;;  %v7705_v54 = vadd.f32 %v7704_v32, %v15062_v48  ;;  %v15190_v18 = vadd.f32 %v7983_v57, %v6709_v52  ;;  %v11445_v19 = vrot.slane %v7886_v13, 9  ;;  %v11663_v48 = vld [vmem:[#allocation8 + $0x778] sm:$0xf0]  ;;  %v16451_v52 = vld [vmem:[#allocation32_spill] sm:$0xff]  ;;  %v16452_v13 = vld [vmem:[#allocation33_spill] sm:$0xff] }
 0x9dc   :  { %v7771_v1 = vadd.f32 %v7770_v37, %v15078_v9  ;;  %v11446_v46 = vrot.slane %v7889_v4, 11  ;;  %v11794_v2 = vor.u32 %v12417_v8, %v11791_v56  ;;  %v16449_v32 = vld [vmem:[#allocation27_spill] sm:$0xff]  ;;  %v6712_v57 = vrot.slane %v16451_v52, 2  ;;  %v12433_v37 = vld [vmem:[#allocation8 + $0x8f4] sm:$0xf] }
 0x9dd   :  { %16448 = vst [vmem:[#allocation31_spill] sm:$0xff] %v15190_v18  ;;  %v7986_v22 = vrot.slane %v7888_v40, 7  ;;  %v15192_v7 = vadd.f32 %v7743_v63, %v7705_v54  ;;  %v6714_v63 = vrot.slane %v16452_v13, 6  ;;  %v11666_v40 = vor.u32 %v12385_v62, %v11663_v48 }
 0x9de   :  { %v7810_v39 = vadd.f32 %v7809_v24, %v7771_v1  ;;  %v11855_v24 = vld [vmem:[#allocation8 + $0x8f8] sm:$0xf0]  ;;  %9099 = vmatpush.bf16.msrb.mxu2 %v11794_v2  ;;  %v11448_v62 = vrot.slane %v7891_v25, 15  ;;  %v16454_v2 = vld [vmem:[#allocation68_spill] sm:$0xff] }
 0x9df   :  { %v7988_v30 = vrot.slane %v7986_v22, 2  ;;  %v7987_v60 = vsel %vm15104_vm11, %v11445_v19, %v7986_v22  ;;  %9021 = vmatpush.bf16.msrb.mxu0 %v11666_v40  ;;  %v11858_v13 = vor.u32 %v12433_v37, %v11855_v24  ;;  %v11727_v37 = vld [vmem:[#allocation8 + $0x7f8] sm:$0xf0] }
 0x9e0   :  { %v7857_v35 = vrot.slane %v7810_v39, 6  ;;  %v15197_v9 = vadd.f32 %v7987_v60, %v16449_v32 }
 0x9e1   :  { %v7990_v4 = vsel %vm15104_vm11, %v7988_v30, %v11446_v46  ;;  %9138 = vmatpush.bf16.msrb.mxu3 %v11858_v13 }
 0x9e2   :  { %16450 = vst [vmem:[#allocation87_spill] sm:$0xff] %v15197_v9  ;;  %v7893_v54 = vsel %vm5059_vm0, %v14992_v26, %v7857_v35  ;;  %v7894_v56 = vsel %vm5061_vm1, %v14992_v26, %v7857_v35  ;;  %v7896_v1 = vsel %vm5064_vm2, %v14992_v26, %v7857_v35  ;;  %v7898_v19 = vsel %vm5478_vm4, %v7857_v35, %v14992_v26  ;;  %v7707_v22 = vpop.f32.mrf.mxu0  ;;  %v7746_v39 = vpop.f32.mrf.mxu1  ;;  %v16453_v35 = vld [vmem:[#allocation67_spill] sm:$0xff] }
 0x9e3   :  { %v7899_v8 = vrot.slane %v7898_v19, 6  ;;  %v7993_v60 = vrot.slane %v7893_v54, 7  ;;  %v11449_v48 = vrot.slane %v7894_v56, 9  ;;  %v7772_v30 = vpop.f32.mrf.mxu2  ;;  %v7811_v46 = vpop.f32.mrf.mxu3  ;;  %v7708_v32 = vadd.f32 %v7707_v22, %v15071_v15  ;;  %v16455_v54 = vld [vmem:[#allocation35_spill] sm:$0xff]  ;;  %v16456_v22 = vld [vmem:[#allocation34_spill] sm:$0xff] }
 0x9e4   :  { %v7773_v52 = vadd.f32 %v7772_v30, %v15086_v16  ;;  %v15213_v9 = vadd.f32 %v7990_v4, %v6712_v57  ;;  %v11451_v34 = vrot.slane %v7896_v1, 13  ;;  %v6717_v56 = vrot.slane %v16455_v54, 4  ;;  %v12401_v57 = vld [vmem:[#allocation8 + $0x7f4] sm:$0xf] }
 0x9e5   :  { %v7995_v18 = vrot.slane %v7993_v60, 2  ;;  %v8000_v26 = vrot.slane %v7899_v8, 7  ;;  %8878 = vmatmul.bf16.gmra.mxu0 %v16453_v35  ;;  %8917 = vmatmul.bf16.gmra.mxu1 %v16454_v2  ;;  %v7994_v25 = vsel %vm15104_vm11, %v11448_v62, %v7993_v60  ;;  %v15220_v40 = vadd.f32 %v7746_v39, %v7708_v32 }
 0x9e6   :  { %v7812_v15 = vadd.f32 %v7811_v46, %v7773_v52  ;;  %v15222_v16 = vadd.f32 %v7994_v25, %v6714_v63  ;;  %v11730_v19 = vor.u32 %v12401_v57, %v11727_v37  ;;  %v16457_v25 = vld [vmem:[#allocation107_spill] sm:$0xff] }
 0x9e7   :  { %v7997_v24 = vsel %vm15104_vm11, %v7995_v18, %v11449_v48  ;;  %v8001_v4 = vsel %vm15104_vm11, %v11451_v34, %v8000_v26  ;;  %v8002_v30 = vrot.slane %v8000_v26, 2  ;;  %v6719_v54 = vrot.slane %v16457_v25, 6  ;;  %v11783_v25 = vld [vmem:[#allocation8 + $0x868] sm:$0xf0] }
 0x9e8   :  { %v7858_v1 = vrot.slane %v7812_v15, 6  ;;  %8820 = vmatmul.bf16.gmra.mxu2 %v16372_v11  ;;  %8859 = vmatmul.bf16.gmra.mxu3 %v16373_v23  ;;  %v15231_v39 = vadd.f32 %v7997_v24, %v16456_v22  ;;  %v15233_v62 = vadd.f32 %v8001_v4, %v6717_v56 }
 0x9e9   :  { %9060 = vmatpush.bf16.msrb.mxu1 %v11730_v19 }
 0x9ea   :  { %v7900_v63 = vsel %vm5059_vm0, %v15003_v29, %v7858_v1  ;;  %v7901_v18 = vsel %vm5061_vm1, %v15003_v29, %v7858_v1  ;;  %v7903_v34 = vsel %vm5064_vm2, %v15003_v29, %v7858_v1  ;;  %v7905_v8 = vsel %vm5478_vm4, %v7858_v1, %v15003_v29  ;;  %v7709_v60 = vpop.f32.mrf.mxu0  ;;  %v7748_v48 = vpop.f32.mrf.mxu1  ;;  %v16458_v29 = vld [vmem:[#allocation100_spill] sm:$0xff] }
 0x9eb   :  { %v7904_v46 = vrot.slane %v7903_v34, 4  ;;  %v8003_v32 = vrot.slane %v7900_v63, 7  ;;  %v7775_v52 = vpop.f32.mrf.mxu2  ;;  %v7814_v13 = vpop.f32.mrf.mxu3  ;;  %v7710_v56 = vadd.f32 %v7709_v60, %v15076_v33  ;;  %v11453_v57 = vrot.slane %v7901_v18, 11  ;;  %v12415_v34 = vld [vmem:[#allocation8 + $0x864] sm:$0xf] }
 0x9ec   :  { %v7776_v15 = vadd.f32 %v7775_v52, %v15110_v59  ;;  %v6721_v4 = vrot.slane %v16458_v29, 2  ;;  %v11454_v63 = vrot.slane %v7905_v8, 13  ;;  %v11786_v18 = vor.u32 %v12415_v34, %v11783_v25  ;;  %v12383_v60 = vld [vmem:[#allocation8 + $0x764] sm:$0xf]  ;;  %v11719_v29 = vld [vmem:[#allocation8 + $0x7e8] sm:$0xf0] }
 0x9ed   :  { %v8007_v37 = vrot.slane %v7904_v46, 7  ;;  %v8004_v24 = vsel %vm15104_vm11, %v8002_v30, %v8003_v32  ;;  %v15249_v1 = vadd.f32 %v7748_v48, %v7710_v56  ;;  %v11655_v46 = vld [vmem:[#allocation8 + $0x768] sm:$0xf0]  ;;  %v12431_v32 = vld [vmem:[#allocation8 + $0x8e4] sm:$0xf] }
 0x9ee   :  { %v7815_v26 = vadd.f32 %v7814_v13, %v7776_v15  ;;  %v15251_v19 = vadd.f32 %v8004_v24, %v6719_v54  ;;  %v11658_v30 = vor.u32 %v12383_v60, %v11655_v46  ;;  %v11847_v48 = vld [vmem:[#allocation8 + $0x8e8] sm:$0xf0]  ;;  %v12399_v56 = vld [vmem:[#allocation8 + $0x7e4] sm:$0xf]  ;;  %9100 = vmatpush.bf16.msrb.mxu2 %v11786_v18 }
 0x9ef   :  { %v8009_v22 = vrot.slane %v8007_v37, 2  ;;  %v8008_v33 = vsel %vm15104_vm11, %v11453_v57, %v8007_v37  ;;  %v11850_v60 = vor.u32 %v12431_v32, %v11847_v48  ;;  %v11722_v46 = vor.u32 %v12399_v56, %v11719_v29  ;;  %v12381_v56 = vld [vmem:[#allocation8 + $0x754] sm:$0xf]  ;;  %v16464_v29 = vld [vmem:[#allocation37_spill] sm:$0xff] }
 0x9f0   :  { %16459 = vst [vmem:[#allocation88_spill] sm:$0xff] %v15251_v19  ;;  %v7859_v59 = vrot.slane %v7815_v26, 6  ;;  %v15255_v52 = vadd.f32 %v8008_v33, %v6721_v4  ;;  %v16461_v4 = vld [vmem:[#allocation79_spill] sm:$0xff]  ;;  %9022 = vmatpush.bf16.msrb.mxu0 %v11658_v30  ;;  %v12413_v30 = vld [vmem:[#allocation8 + $0x854] sm:$0xf] }
 0x9f1   :  { %v8011_v13 = vsel %vm15104_vm11, %v8009_v22, %v11454_v63  ;;  %v6723_v26 = vrot.slane %v16461_v4, 4  ;;  %9139 = vmatpush.bf16.msrb.mxu3 %v11850_v60  ;;  %9061 = vmatpush.bf16.msrb.mxu1 %v11722_v46  ;;  %v6726_v4 = vrot.slane %v16464_v29, 2 }
 0x9f2   :  { %16460 = vst [vmem:[#allocation89_spill] sm:$0xff] %v15255_v52  ;;  %v7907_v8 = vsel %vm5059_vm0, %v15008_v5, %v7859_v59  ;;  %v7908_v54 = vsel %vm5061_vm1, %v15008_v5, %v7859_v59  ;;  %v7910_v15 = vsel %vm5064_vm2, %v15008_v5, %v7859_v59  ;;  %v15267_v57 = vsel %vm5478_vm4, %v7859_v59, %v15008_v5  ;;  %v8718_v37 = vpop.f32.mrf.mxu0  ;;  %v8757_v24 = vpop.f32.mrf.mxu1 }
 0x9f3   :  { %v7909_v22 = vrot.slane %v7908_v54, 2  ;;  %v7777_v63 = vpop.f32.mrf.mxu2  ;;  %v7816_v34 = vpop.f32.mrf.mxu3  ;;  %v15270_v25 = vadd.f32 %v8757_v24, %v8718_v37  ;;  %v11455_v52 = vrot.slane %v7907_v8, 9  ;;  %v15275_v5 = vadd.f32 %v8011_v13, %v6723_v26  ;;  %v11775_v37 = vld [vmem:[#allocation8 + $0x858] sm:$0xf0]  ;;  %v16462_v13 = vld [vmem:[#allocation36_spill] sm:$0xff]  ;;  %v16465_v26 = vld [vmem:[#allocation58_spill] sm:$0xff] }
 0x9f4   :  { %v7778_v33 = vadd.f32 %v7777_v63, %v15138_v20  ;;  %v11456_v54 = vrot.slane %v7910_v15, 11  ;;  %v11778_v48 = vor.u32 %v12413_v30, %v11775_v37  ;;  %v11647_v8 = vld [vmem:[#allocation8 + $0x758] sm:$0xf0]  ;;  %v6728_v15 = vrot.slane %v16465_v26, 6  ;;  %v12429_v63 = vld [vmem:[#allocation8 + $0x8d4] sm:$0xf] }
 0x9f5   :  { %v8014_v19 = vrot.slane %v7909_v22, 7  ;;  %8883 = vmatmul.bf16.gmra.mxu0 %v14480_v51  ;;  %8922 = vmatmul.bf16.gmra.mxu1 %v16371_v55  ;;  %v11650_v22 = vor.u32 %v12381_v56, %v11647_v8 }
 0x9f6   :  { %v7817_v59 = vadd.f32 %v7816_v34, %v7778_v33  ;;  %v11839_v34 = vld [vmem:[#allocation8 + $0x8d8] sm:$0xf0]  ;;  %9101 = vmatpush.bf16.msrb.mxu2 %v11778_v48 }
 0x9f7   :  { %v8016_v18 = vrot.slane %v8014_v19, 2  ;;  %v8015_v20 = vsel %vm15104_vm11, %v11455_v52, %v8014_v19  ;;  %9023 = vmatpush.bf16.msrb.mxu0 %v11650_v22  ;;  %v16469_v22 = vld [vmem:[#allocation41_spill] sm:$0xff] }
 0x9f8   :  { %v7860_v32 = vrot.slane %v7817_v59, 6  ;;  %8951 = vmatmul.bf16.vlgmr.msra.gmra.mxu2 %v16376_v21  ;;  %8990 = vmatmul.bf16.vlgmr.msra.gmra.mxu3 %v16377_v42  ;;  %v15282_v24 = vadd.f32 %v8015_v20, %v16462_v13  ;;  %v11458_v59 = vrot.slane %v15267_v57, 15  ;;  %v11842_v13 = vor.u32 %v12429_v63, %v11839_v34  ;;  %v16467_v57 = vld [vmem:[#allocation40_spill] sm:$0xff] }
 0x9f9   :  { %v8018_v19 = vsel %vm15104_vm11, %v8016_v18, %v11456_v54 }
 0x9fa   :  { %16463 = vst [vmem:[#allocation16_spill] sm:$0xff] %v15282_v24  ;;  %v7914_v21 = vsel %vm5059_vm0, %v15017_v38, %v7860_v32  ;;  %v7915_v42 = vsel %vm5061_vm1, %v15017_v38, %v7860_v32  ;;  %v7917_v52 = vsel %vm5064_vm2, %v15017_v38, %v7860_v32  ;;  %v7919_v33 = vsel %vm5478_vm4, %v7860_v32, %v15017_v38  ;;  %v8720_v60 = vpop.f32.mrf.mxu0  ;;  %v8759_v46 = vpop.f32.mrf.mxu1  ;;  %v11711_v24 = vld [vmem:[#allocation8 + $0x7d8] sm:$0xf0] }
 0x9fb   :  { %v7920_v30 = vrot.slane %v7919_v33, 6  ;;  %v8021_v37 = vrot.slane %v7914_v21, 7  ;;  %v11459_v18 = vrot.slane %v7915_v42, 9  ;;  %v7780_v54 = vpop.f32.mrf.mxu2  ;;  %v7819_v20 = vpop.f32.mrf.mxu3  ;;  %v15297_v56 = vadd.f32 %v8759_v46, %v8720_v60  ;;  %9140 = vmatpush.bf16.msrb.mxu3 %v11842_v13  ;;  %v12397_v46 = vld [vmem:[#allocation8 + $0x7d4] sm:$0xf] }
 0x9fc   :  { %v7781_v8 = vadd.f32 %v7780_v54, %v15167_v3  ;;  %v15300_v29 = vadd.f32 %v8018_v19, %v6726_v4  ;;  %v11461_v38 = vrot.slane %v7917_v52, 13  ;;  %v6731_v33 = vrot.slane %v16467_v57, 4  ;;  %v12411_v19 = vld [vmem:[#allocation8 + $0x844] sm:$0xf]  ;;  %v11767_v52 = vld [vmem:[#allocation8 + $0x848] sm:$0xf0] }
 0x9fd   :  { %v8023_v26 = vrot.slane %v8021_v37, 2  ;;  %v8028_v32 = vrot.slane %v7920_v30, 7  ;;  %v8022_v48 = vsel %vm15104_vm11, %v11458_v59, %v8021_v37  ;;  %v6733_v60 = vrot.slane %v16469_v22, 6  ;;  %v16470_v59 = vld [vmem:[#allocation109_spill] sm:$0xff]  ;;  %v12379_v54 = vld [vmem:[#allocation8 + $0x744] sm:$0xf] }
 0x9fe   :  { %16466 = vst [vmem:[#allocation17_spill] sm:$0xff] %v15300_v29  ;;  %v7820_v21 = vadd.f32 %v7819_v20, %v7781_v8  ;;  %v15305_v42 = vadd.f32 %v8022_v48, %v6728_v15  ;;  %v11714_v34 = vor.u32 %v12397_v46, %v11711_v24  ;;  %v11770_v15 = vor.u32 %v12411_v19, %v11767_v52  ;;  %v11639_v20 = vld [vmem:[#allocation8 + $0x748] sm:$0xf0]  ;;  %v12427_v8 = vld [vmem:[#allocation8 + $0x8c4] sm:$0xf] }
 0x9ff   :  { %v8025_v3 = vsel %vm15104_vm11, %v8023_v26, %v11459_v18  ;;  %v8029_v4 = vsel %vm15104_vm11, %v11461_v38, %v8028_v32  ;;  %v11831_v57 = vld [vmem:[#allocation8 + $0x8c8] sm:$0xf0]  ;;  %v8030_v22 = vrot.slane %v8028_v32, 2  ;;  %v12395_v52 = vld [vmem:[#allocation8 + $0x7c4] sm:$0xf] }
 0xa00   :  { %16468 = vst [vmem:[#allocation90_spill] sm:$0xff] %v15305_v42  ;;  %v7861_v63 = vrot.slane %v7820_v21, 6  ;;  %v15313_v30 = vadd.f32 %v8025_v3, %v16470_v59  ;;  %v15315_v37 = vadd.f32 %v8029_v4, %v6731_v33  ;;  %9062 = vmatpush.bf16.msrb.mxu1 %v11714_v34  ;;  %v16473_v33 = vld [vmem:[#allocation59_spill] sm:$0xff]  ;;  %9102 = vmatpush.bf16.msrb.mxu2 %v11770_v15  ;;  %v12377_v15 = vld [vmem:[#allocation8 + $0x734] sm:$0xf] }
 0xa01   :  { %v6735_v21 = vrot.slane %v16473_v33, 2  ;;  %v11834_v42 = vor.u32 %v12427_v8, %v11831_v57  ;;  %v16474_v34 = vld [vmem:[#allocation75_spill] sm:$0xff] }
 0xa02   :  { %16471 = vst [vmem:[#allocation91_spill] sm:$0xff] %v15313_v30  ;;  %v7921_v13 = vsel %vm5059_vm0, %v15022_v31, %v7861_v63  ;;  %v7922_v18 = vsel %vm5061_vm1, %v15022_v31, %v7861_v63  ;;  %v7924_v24 = vsel %vm5064_vm2, %v15022_v31, %v7861_v63  ;;  %v7926_v26 = vsel %vm5478_vm4, %v7861_v63, %v15022_v31  ;;  %v8723_v38 = vpop.f32.mrf.mxu0  ;;  %v8762_v48 = vpop.f32.mrf.mxu1  ;;  %v11703_v31 = vld [vmem:[#allocation8 + $0x7c8] sm:$0xf0] }
 0xa03   :  { %16472 = vst [vmem:[#allocation92_spill] sm:$0xff] %v15315_v37  ;;  %v7925_v46 = vrot.slane %v7924_v24, 4  ;;  %v8031_v3 = vrot.slane %v7921_v13, 7  ;;  %v7782_v4 = vpop.f32.mrf.mxu2  ;;  %v7821_v19 = vpop.f32.mrf.mxu3  ;;  %v15326_v59 = vadd.f32 %v8762_v48, %v8723_v38  ;;  %v11642_v30 = vor.u32 %v12379_v54, %v11639_v20  ;;  %9141 = vmatpush.bf16.msrb.mxu3 %v11834_v42  ;;  %v11631_v38 = vld [vmem:[#allocation8 + $0x738] sm:$0xf0] }
 0xa04   :  { %v7783_v37 = vadd.f32 %v7782_v4, %v15192_v7  ;;  %v11463_v63 = vrot.slane %v7922_v18, 11  ;;  %v11706_v32 = vor.u32 %v12395_v52, %v11703_v31  ;;  %v12393_v48 = vld [vmem:[#allocation8 + $0x7b4] sm:$0xf]  ;;  %v11464_v20 = vrot.slane %v7926_v26, 13  ;;  %v11695_v18 = vld [vmem:[#allocation8 + $0x7b8] sm:$0xf0] }
 0xa05   :  { %v8035_v29 = vrot.slane %v7925_v46, 7  ;;  %8888 = vmatmul.bf16.gmra.mxu0 %v16374_v10  ;;  %8927 = vmatmul.bf16.gmra.mxu1 %v16474_v34  ;;  %v8032_v13 = vsel %vm15104_vm11, %v8030_v22, %v8031_v3  ;;  %v11634_v8 = vor.u32 %v12377_v15, %v11631_v38  ;;  %v12375_v52 = vld [vmem:[#allocation8 + $0x724] sm:$0xf] }
 0xa06   :  { %v7822_v24 = vadd.f32 %v7821_v19, %v7783_v37  ;;  %9024 = vmatpush.bf16.msrb.mxu0 %v11642_v30  ;;  %v15333_v7 = vadd.f32 %v8032_v13, %v6733_v60  ;;  %9063 = vmatpush.bf16.msrb.mxu1 %v11706_v32  ;;  %v11698_v30 = vor.u32 %v12393_v48, %v11695_v18  ;;  %v16475_v37 = vld [vmem:[#allocation101_spill] sm:$0xff]  ;;  %v12391_v13 = vld [vmem:[#allocation8 + $0x7a4] sm:$0xf] }
 0xa07   :  { %v8037_v54 = vrot.slane %v8035_v29, 2  ;;  %v8036_v57 = vsel %vm15104_vm11, %v11463_v63, %v8035_v29  ;;  %v6737_v22 = vrot.slane %v16475_v37, 4  ;;  %v11623_v32 = vld [vmem:[#allocation8 + $0x728] sm:$0xf0]  ;;  %v12373_v37 = vld [vmem:[#allocation8 + $0x714] sm:$0xf] }
 0xa08   :  { %v7862_v33 = vrot.slane %v7822_v24, 6  ;;  %8956 = vmatmul.bf16.gmra.mxu2 %v16378_v45  ;;  %8995 = vmatmul.bf16.gmra.mxu3 %v16379_v6  ;;  %v15339_v42 = vadd.f32 %v8036_v57, %v6735_v21  ;;  %v11687_v24 = vld [vmem:[#allocation8 + $0x7a8] sm:$0xf0]  ;;  %v11626_v48 = vor.u32 %v12375_v52, %v11623_v32 }
 0xa09   :  { %v8039_v60 = vsel %vm15104_vm11, %v8037_v54, %v11464_v20  ;;  %v11690_v54 = vor.u32 %v12391_v13, %v11687_v24  ;;  %v12409_v20 = vld [vmem:[#allocation8 + $0x834] sm:$0xf]  ;;  %v16478_v13 = vld [vmem:[#allocation81_spill] sm:$0xff] }
 0xa0a   :  { %v7928_v26 = vsel %vm5059_vm0, %v15031_v36, %v7862_v33  ;;  %v7929_v46 = vsel %vm5061_vm1, %v15031_v36, %v7862_v33  ;;  %v7931_v29 = vsel %vm5064_vm2, %v15031_v36, %v7862_v33  ;;  %v15352_v45 = vsel %vm5478_vm4, %v7862_v33, %v15031_v36  ;;  %v8725_v6 = vpop.f32.mrf.mxu0  ;;  %v8764_v21 = vpop.f32.mrf.mxu1  ;;  %9025 = vmatpush.bf16.msrb.mxu0 %v11634_v8  ;;  %v11759_v8 = vld [vmem:[#allocation8 + $0x838] sm:$0xf0]  ;;  %v12425_v33 = vld [vmem:[#allocation8 + $0x8b4] sm:$0xf] }
 0xa0b   :  { %v7930_v3 = vrot.slane %v7929_v46, 2  ;;  %v7785_v4 = vpop.f32.mrf.mxu2  ;;  %v7824_v19 = vpop.f32.mrf.mxu3  ;;  %9064 = vmatpush.bf16.msrb.mxu1 %v11698_v30  ;;  %v15354_v31 = vadd.f32 %v8764_v21, %v8725_v6  ;;  %v15357_v15 = vadd.f32 %v8039_v60, %v6737_v22  ;;  %v11465_v38 = vrot.slane %v7928_v26, 9  ;;  %v11823_v30 = vld [vmem:[#allocation8 + $0x8b8] sm:$0xf0]  ;;  %v16476_v60 = vld [vmem:[#allocation45_spill] sm:$0xff] }
 0xa0c   :  { %v7786_v63 = vadd.f32 %v7785_v4, %v15220_v40  ;;  %v11762_v57 = vor.u32 %v12409_v20, %v11759_v8  ;;  %v11466_v6 = vrot.slane %v7931_v29, 11  ;;  %v11826_v40 = vor.u32 %v12425_v33, %v11823_v30  ;;  %v11615_v21 = vld [vmem:[#allocation8 + $0x718] sm:$0xf0]  ;;  %v12389_v4 = vld [vmem:[#allocation8 + $0x794] sm:$0xf] }
 0xa0d   :  { %v8042_v36 = vrot.slane %v7930_v3, 7  ;;  %v6740_v26 = vrot.slane %v16476_v60, 2  ;;  %v11618_v52 = vor.u32 %v12373_v37, %v11615_v21  ;;  %v6742_v24 = vrot.slane %v16478_v13, 6  ;;  %v12387_v60 = vld [vmem:[#allocation8 + $0x784] sm:$0xf] }
 0xa0e   :  { %v7825_v18 = vadd.f32 %v7824_v19, %v7786_v63  ;;  %9026 = vmatpush.bf16.msrb.mxu0 %v11626_v48  ;;  %9103 = vmatpush.bf16.msrb.mxu2 %v11762_v57  ;;  %v11679_v19 = vld [vmem:[#allocation8 + $0x798] sm:$0xf0]  ;;  %v16477_v63 = vld [vmem:[#allocation44_spill] sm:$0xff]  ;;  %v11468_v29 = vrot.slane %v15352_v45, 15 }
 0xa0f   :  { %v8044_v46 = vrot.slane %v8042_v36, 2  ;;  %9065 = vmatpush.bf16.msrb.mxu1 %v11690_v54  ;;  %v8043_v22 = vsel %vm15104_vm11, %v11465_v38, %v8042_v36  ;;  %9142 = vmatpush.bf16.msrb.mxu3 %v11826_v40  ;;  %v11682_v48 = vor.u32 %v12389_v4, %v11679_v19  ;;  %v11671_v19 = vld [vmem:[#allocation8 + $0x788] sm:$0xf0]  ;;  %v16479_v13 = vld [vmem:[#allocation48_spill] sm:$0xff] }
 0xa10   :  { %v7863_v3 = vrot.slane %v7825_v18, 6  ;;  %v15363_v32 = vadd.f32 %v8043_v22, %v16477_v63  ;;  %v11607_v22 = vld [vmem:[#allocation8 + $0x708] sm:$0xf0] }
 0xa11   :  { %v8046_v54 = vsel %vm15104_vm11, %v8044_v46, %v11466_v6  ;;  %v12371_v6 = vld [vmem:[#allocation8 + $0x704] sm:$0xf] }
 0xa12   :  { %v7935_v38 = vsel %vm5059_vm0, %v15036_v27, %v7863_v3  ;;  %v7936_v36 = vsel %vm5061_vm1, %v15036_v27, %v7863_v3  ;;  %v7938_v20 = vsel %vm5064_vm2, %v15036_v27, %v7863_v3  ;;  %v7940_v8 = vsel %vm5478_vm4, %v7863_v3, %v15036_v27  ;;  %v8728_v18 = vpop.f32.mrf.mxu0  ;;  %v8767_v57 = vpop.f32.mrf.mxu1  ;;  %9027 = vmatpush.bf16.msrb.mxu0 %v11618_v52 }
 0xa13   :  { %v7941_v45 = vrot.slane %v7940_v8, 6  ;;  %v8049_v33 = vrot.slane %v7935_v38, 7  ;;  %v11469_v30 = vrot.slane %v7936_v36, 9  ;;  %v11471_v37 = vrot.slane %v7938_v20, 13  ;;  %v7787_v40 = vpop.f32.mrf.mxu2  ;;  %v7826_v46 = vpop.f32.mrf.mxu3  ;;  %9066 = vmatpush.bf16.msrb.mxu1 %v11682_v48  ;;  %v16480_v38 = vld [vmem:[#allocation26_spill] sm:$0xff] }
 0xa14   :  { %v15377_v21 = vadd.f32 %v8767_v57, %v8728_v18  ;;  %v7788_v4 = vadd.f32 %v7787_v40, %v15249_v1  ;;  %v15380_v63 = vadd.f32 %v8046_v54, %v6740_v26  ;;  %v11610_v36 = vor.u32 %v12371_v6, %v11607_v22  ;;  %v12407_v48 = vld [vmem:[#allocation8 + $0x824] sm:$0xf]  ;;  %v11751_v8 = vld [vmem:[#allocation8 + $0x828] sm:$0xf0]  ;;  %v16481_v57 = vld [vmem:[#allocation46_spill] sm:$0xff] }
 0xa15   :  { %v8051_v27 = vrot.slane %v8049_v33, 2  ;;  %v8056_v3 = vrot.slane %v7941_v45, 7  ;;  %8893 = vmatmul.bf16.gmra.mxu0 %v16479_v13  ;;  %8932 = vmatmul.bf16.gmra.mxu1 %v16480_v38  ;;  %v11674_v20 = vor.u32 %v12387_v60, %v11671_v19  ;;  %v12423_v18 = vld [vmem:[#allocation8 + $0x8a4] sm:$0xf]  ;;  %v8050_v1 = vsel %vm15104_vm11, %v11468_v29, %v8049_v33  ;;  %v11815_v54 = vld [vmem:[#allocation8 + $0x8a8] sm:$0xf0] }
 0xa16   :  { %v7827_v52 = vadd.f32 %v7826_v46, %v7788_v4  ;;  %v6745_v40 = vrot.slane %v16481_v57, 4  ;;  %9028 = vmatpush.bf16.msrb.mxu0 %v11610_v36  ;;  %v11754_v26 = vor.u32 %v12407_v48, %v11751_v8  ;;  %v16482_v46 = vld [vmem:[#allocation64_spill] sm:$0xff]  ;;  %v11818_v4 = vor.u32 %v12423_v18, %v11815_v54  ;;  %v16483_v29 = vld [vmem:[#allocation82_spill] sm:$0xff]  ;;  %v16485_v57 = vld [vmem:[#allocation47_spill] sm:$0xff] }
 0xa17   :  { %9067 = vmatpush.bf16.msrb.mxu1 %v11674_v20  ;;  %v8053_v45 = vsel %vm15104_vm11, %v8051_v27, %v11469_v30  ;;  %v8057_v6 = vsel %vm15104_vm11, %v11471_v37, %v8056_v3  ;;  %v15393_v60 = vadd.f32 %v8050_v1, %v6742_v24  ;;  %v16484_v36 = vld [vmem:[#allocation50_spill] sm:$0xff] }
 0xa18   :  { %v7864_v22 = vrot.slane %v7827_v52, 6  ;;  %8961 = vmatmul.bf16.gmra.mxu2 %v16416_v61  ;;  %9000 = vmatmul.bf16.gmra.mxu3 %v16482_v46  ;;  %v15396_v33 = vadd.f32 %v8053_v45, %v16483_v29  ;;  %v15398_v19 = vadd.f32 %v8057_v6, %v6745_v40  ;;  %v8058_v52 = vrot.slane %v8056_v3, 2 }
 0xa19   :  { %9104 = vmatpush.bf16.msrb.mxu2 %v11754_v26  ;;  %9143 = vmatpush.bf16.msrb.mxu3 %v11818_v4  ;;  %v6747_v40 = vrot.slane %v16485_v57, 6 }
 0xa1a   :  { %v7942_v30 = vsel %vm5059_vm0, %v16484_v36, %v7864_v22  ;;  %v7943_v37 = vsel %vm5061_vm1, %v16484_v36, %v7864_v22  ;;  %v7945_v61 = vsel %vm5064_vm2, %v16484_v36, %v7864_v22  ;;  %v7947_v27 = vsel %vm5478_vm4, %v7864_v22, %v16484_v36  ;;  %v8730_v24 = vpop.f32.mrf.mxu0  ;;  %v8769_v20 = vpop.f32.mrf.mxu1  ;;  %v16486_v22 = vld [vmem:[#allocation83_spill] sm:$0xff] }
 0xa1b   :  { %v7946_v48 = vrot.slane %v7945_v61, 4  ;;  %v8059_v8 = vrot.slane %v7942_v30, 7  ;;  %v8796_v18 = vpop.f32.mrf.mxu2  ;;  %v8835_v1 = vpop.f32.mrf.mxu3  ;;  %v15409_v26 = vadd.f32 %v8769_v20, %v8730_v24  ;;  %v11473_v45 = vrot.slane %v7943_v37, 11  ;;  %v16487_v24 = vld [vmem:[#allocation84_spill] sm:$0xff] }
 0xa1c   :  { %v8797_v54 = vadd.f32 %v8796_v18, %v15270_v25  ;;  %v6749_v29 = vrot.slane %v16486_v22, 2  ;;  %v11474_v30 = vrot.slane %v7947_v27, 13  ;;  %v6751_v20 = vrot.slane %v16487_v24, 4  ;;  %v11743_v27 = vld [vmem:[#allocation8 + $0x818] sm:$0xf0]  ;;  %v16490_v22 = vld [vmem:[#allocation54_spill] sm:$0xff] }
 0xa1d   :  { %v8063_v6 = vrot.slane %v7946_v48, 7  ;;  %v8060_v46 = vsel %vm15104_vm11, %v8058_v52, %v8059_v8 }
 0xa1e   :  { %v15415_v36 = vadd.f32 %v8835_v1, %v8797_v54  ;;  %v15417_v3 = vadd.f32 %v8060_v46, %v6747_v40  ;;  %v12405_v40 = vld [vmem:[#allocation8 + $0x814] sm:$0xf]  ;;  %v11807_v46 = vld [vmem:[#allocation8 + $0x898] sm:$0xf0] }
 0xa1f   :  { %v8065_v4 = vrot.slane %v8063_v6, 2  ;;  %v8064_v61 = vsel %vm15104_vm11, %v11473_v45, %v8063_v6  ;;  %v12421_v54 = vld [vmem:[#allocation8 + $0x894] sm:$0xf]  ;;  %v11746_v6 = vor.u32 %v12405_v40, %v11743_v27  ;;  %v12403_v40 = vld [vmem:[#allocation8 + $0x804] sm:$0xf] }
 0xa20   :  { %v15422_v57 = vadd.f32 %v8064_v61, %v6749_v29  ;;  %v16491_v29 = vld [vmem:[#allocation24_spill] sm:$0xff]  ;;  %v11810_v12 = vor.u32 %v12421_v54, %v11807_v46  ;;  %v16493_v61 = vld [vmem:[#allocation71_spill] sm:$0xff]  ;;  %v11735_v27 = vld [vmem:[#allocation8 + $0x808] sm:$0xf0] }
 0xa21   :  { %v8067_v25 = vsel %vm15104_vm11, %v8065_v4, %v11474_v30  ;;  %9105 = vmatpush.bf16.msrb.mxu2 %v11746_v6  ;;  %v16492_v30 = vld [vmem:[#allocation70_spill] sm:$0xff]  ;;  %v12419_v54 = vld [vmem:[#allocation8 + $0x884] sm:$0xf] }
 0xa22   :  { %16488 = vst [vmem:[#allocation93_spill] sm:$0xff] %v15422_v57  ;;  %v8733_v37 = vpop.f32.mrf.mxu0  ;;  %v8772_v52 = vpop.f32.mrf.mxu1  ;;  %v15426_v48 = vadd.f32 %v8067_v25, %v6751_v20  ;;  %9144 = vmatpush.bf16.msrb.mxu3 %v11810_v12 }
 0xa23   :  { %v15428_v8 = vadd.f32 %v8772_v52, %v8733_v37  ;;  %v8798_v18 = vpop.f32.mrf.mxu2  ;;  %v8837_v1 = vpop.f32.mrf.mxu3 }
 0xa24   :  { %16489 = vst [vmem:[#allocation94_spill] sm:$0xff] %v15426_v48  ;;  %v8799_v45 = vadd.f32 %v8798_v18, %v15297_v56 }
 0xa25   :  { %8898 = vmatmul.bf16.gmra.mxu0 %v16490_v22  ;;  %8937 = vmatmul.bf16.gmra.mxu1 %v16491_v29 }
 0xa26   :  { %v15433_v4 = vadd.f32 %v8837_v1, %v8799_v45  ;;  %v11738_v1 = vor.u32 %v12403_v40, %v11735_v27  ;;  %v11799_v45 = vld [vmem:[#allocation8 + $0x888] sm:$0xf0] }
 0xa27   :  { %v11802_v6 = vor.u32 %v12419_v54, %v11799_v45 }
 0xa28   :  { %8966 = vmatmul.bf16.gmra.mxu2 %v16492_v30  ;;  %9005 = vmatmul.bf16.gmra.mxu3 %v16493_v61 }
 0xa29   :  { %9106 = vmatpush.bf16.msrb.mxu2 %v11738_v1  ;;  %9145 = vmatpush.bf16.msrb.mxu3 %v11802_v6 }
 0xa2a   :  { %v8735_v24 = vpop.f32.mrf.mxu0  ;;  %v8774_v20 = vpop.f32.mrf.mxu1 }
 0xa2b   :  { %v8775_v25 = vadd.f32 %v8774_v20, %v8735_v24  ;;  %v8801_v37 = vpop.f32.mrf.mxu2  ;;  %v8840_v56 = vpop.f32.mrf.mxu3  ;;  %v16494_v20 = vld [vmem:[#allocation52_spill] sm:$0xff] }
 0xa2c   :  { %v8802_v52 = vadd.f32 %v8801_v37, %v15326_v59  ;;  %v16495_v59 = vld [vmem:[#allocation53_spill] sm:$0xff] }
 0xa2e   :  { %v15438_v18 = vadd.f32 %v8840_v56, %v8802_v52 }
 0xa32   :  { %v8738_v46 = vpop.f32.mrf.mxu0  ;;  %v8777_v12 = vpop.f32.mrf.mxu1 }
 0xa33   :  { %v8778_v30 = vadd.f32 %v8777_v12, %v8738_v46  ;;  %v8803_v61 = vpop.f32.mrf.mxu2  ;;  %v8842_v48 = vpop.f32.mrf.mxu3 }
 0xa34   :  { %v8804_v24 = vadd.f32 %v8803_v61, %v15354_v31 }
 0xa35   :  { %9029 = vmatmul.bf16.vlgmr.msrb.gmra.mxu0 %v16494_v20  ;;  %9068 = vmatmul.bf16.vlgmr.msrb.gmra.mxu1 %v16495_v59 }
 0xa36   :  { %v8843_v37 = vadd.f32 %v8842_v48, %v8804_v24  ;;  %v16496_v48 = vld [vmem:[#allocation65_spill] sm:$0xff] }
 0xa38   :  { %8971 = vmatmul.bf16.gmra.mxu2 %v14383_v14  ;;  %9010 = vmatmul.bf16.gmra.mxu3 %v14388_v0  ;;  %v16497_v14 = vld [vmem:[#allocation66_spill] sm:$0xff] }
 0xa3a   :  { %v8740_v56 = vpop.f32.mrf.mxu0  ;;  %v8779_v52 = vpop.f32.mrf.mxu1 }
 0xa3b   :  { %v8780_v40 = vadd.f32 %v8779_v52, %v8740_v56  ;;  %v8806_v27 = vpop.f32.mrf.mxu2  ;;  %v8845_v54 = vpop.f32.mrf.mxu3 }
 0xa3c   :  { %v8807_v1 = vadd.f32 %v8806_v27, %v15377_v21 }
 0xa3e   :  { %v8846_v45 = vadd.f32 %v8845_v54, %v8807_v1 }
 0xa42   :  { %v8743_v6 = vpop.f32.mrf.mxu0  ;;  %v8782_v46 = vpop.f32.mrf.mxu1 }
 0xa43   :  { %v8783_v31 = vadd.f32 %v8782_v46, %v8743_v6  ;;  %v8808_v12 = vpop.f32.mrf.mxu2  ;;  %v8847_v61 = vpop.f32.mrf.mxu3 }
 0xa44   :  { %v8809_v20 = vadd.f32 %v8808_v12, %v15409_v26 }
 0xa45   :  { %9034 = vmatmul.bf16.gmra.mxu0 %v16496_v48  ;;  %9073 = vmatmul.bf16.gmra.mxu1 %v16497_v14 }
 0xa46   :  { %v15449_v0 = vadd.f32 %v8847_v61, %v8809_v20 }
 0xa48   :  { %8976 = vmatmul.bf16.gmra.mxu2 %v16384_v41  ;;  %9015 = vmatmul.bf16.gmra.mxu3 %v16434_v49  ;;  %v16498_v41 = vld [vmem:[#allocation69_spill] sm:$0xff] }
 0xa4a   :  { %v8745_v24 = vpop.f32.mrf.mxu0  ;;  %v8784_v21 = vpop.f32.mrf.mxu1 }
 0xa4b   :  { %v8785_v59 = vadd.f32 %v8784_v21, %v8745_v24  ;;  %v8811_v56 = vpop.f32.mrf.mxu2  ;;  %v8850_v52 = vpop.f32.mrf.mxu3 }
 0xa4c   :  { %v8812_v27 = vadd.f32 %v8811_v56, %v15428_v8 }
 0xa4e   :  { %v8851_v54 = vadd.f32 %v8850_v52, %v8812_v27 }
 0xa52   :  { %v8874_v1 = vpop.f32.mrf.mxu0  ;;  %v8913_v26 = vpop.f32.mrf.mxu1 }
 0xa53   :  { %v8875_v6 = vadd.f32 %v8874_v1, %v15415_v36  ;;  %v8813_v46 = vpop.f32.mrf.mxu2  ;;  %v8852_v12 = vpop.f32.mrf.mxu3 }
 0xa54   :  { %v8814_v61 = vadd.f32 %v8813_v46, %v8775_v25  ;;  %v16500_v46 = vld [vmem:[#allocation73_spill] sm:$0xff] }
 0xa55   :  { %v15455_v20 = vadd.f32 %v8913_v26, %v8875_v6  ;;  %9039 = vmatmul.bf16.gmra.mxu0 %v14267_v53  ;;  %9078 = vmatmul.bf16.gmra.mxu1 %v16498_v41 }
 0xa56   :  { %v15459_v49 = vadd.f32 %v8852_v12, %v8814_v61 }
 0xa58   :  { %9107 = vmatmul.bf16.vlgmr.msrb.gmra.mxu2 %v14096_v44  ;;  %9146 = vmatmul.bf16.vlgmr.msrb.gmra.mxu3 %v16443_v28  ;;  %v16499_v28 = vld [vmem:[#allocation72_spill] sm:$0xff] }
 0xa5a   :  { %v8876_v8 = vpop.f32.mrf.mxu0  ;;  %v8915_v48 = vpop.f32.mrf.mxu1 }
 0xa5b   :  { %v8877_v14 = vadd.f32 %v8876_v8, %v15433_v4  ;;  %v8816_v36 = vpop.f32.mrf.mxu2  ;;  %v8855_v24 = vpop.f32.mrf.mxu3 }
 0xa5c   :  { %v8817_v21 = vadd.f32 %v8816_v36, %v8778_v30 }
 0xa5d   :  { %v15464_v25 = vadd.f32 %v8915_v48, %v8877_v14 }
 0xa5e   :  { %v8856_v56 = vadd.f32 %v8855_v24, %v8817_v21 }
 0xa62   :  { %v8879_v52 = vpop.f32.mrf.mxu0  ;;  %v8918_v53 = vpop.f32.mrf.mxu1 }
 0xa63   :  { %v8880_v27 = vadd.f32 %v8879_v52, %v15438_v18  ;;  %v8818_v1 = vpop.f32.mrf.mxu2  ;;  %v8857_v26 = vpop.f32.mrf.mxu3 }
 0xa64   :  { %v8819_v6 = vadd.f32 %v8818_v1, %v8780_v40 }
 0xa65   :  { %v15467_v44 = vadd.f32 %v8918_v53, %v8880_v27  ;;  %9044 = vmatmul.bf16.gmra.mxu0 %v16499_v28  ;;  %9083 = vmatmul.bf16.gmra.mxu1 %v16500_v46 }
 0xa66   :  { %v8858_v4 = vadd.f32 %v8857_v26, %v8819_v6 }
 0xa68   :  { %9112 = vmatmul.bf16.gmra.mxu2 %v16453_v35  ;;  %9151 = vmatmul.bf16.gmra.mxu3 %v16454_v2 }
 0xa6a   :  { %v8881_v30 = vpop.f32.mrf.mxu0  ;;  %v8920_v12 = vpop.f32.mrf.mxu1 }
 0xa6b   :  { %v8882_v61 = vadd.f32 %v8881_v30, %v8843_v37  ;;  %v8821_v41 = vpop.f32.mrf.mxu2  ;;  %v8860_v8 = vpop.f32.mrf.mxu3 }
 0xa6c   :  { %v8822_v18 = vadd.f32 %v8821_v41, %v8783_v31 }
 0xa6d   :  { %v15473_v48 = vadd.f32 %v8920_v12, %v8882_v61 }
 0xa6e   :  { %v8861_v40 = vadd.f32 %v8860_v8, %v8822_v18 }
 0xa72   :  { %v8884_v14 = vpop.f32.mrf.mxu0  ;;  %v8923_v36 = vpop.f32.mrf.mxu1 }
 0xa73   :  { %v8885_v24 = vadd.f32 %v8884_v14, %v8846_v45  ;;  %v8823_v21 = vpop.f32.mrf.mxu2  ;;  %v8862_v52 = vpop.f32.mrf.mxu3 }
 0xa74   :  { %v8824_v53 = vadd.f32 %v8823_v21, %v8785_v59 }
 0xa75   :  { %v15475_v27 = vadd.f32 %v8923_v36, %v8885_v24  ;;  %9049 = vmatmul.bf16.gmra.mxu0 %v14450_v47  ;;  %9088 = vmatmul.bf16.gmra.mxu1 %v14452_v50 }
 0xa76   :  { %v8863_v35 = vadd.f32 %v8862_v52, %v8824_v53 }
 0xa78   :  { %9117 = vmatmul.bf16.gmra.mxu2 %v14480_v51  ;;  %9156 = vmatmul.bf16.gmra.mxu3 %v16371_v55 }
 0xa7a   :  { %v8886_v2 = vpop.f32.mrf.mxu0  ;;  %v8925_v37 = vpop.f32.mrf.mxu1 }
 0xa7b   :  { %v8887_v31 = vadd.f32 %v8886_v2, %v15449_v0  ;;  %v8952_v1 = vpop.f32.mrf.mxu2  ;;  %v8991_v45 = vpop.f32.mrf.mxu3 }
 0xa7c   :  { %v15482_v26 = vadd.f32 %v8991_v45, %v8952_v1 }
 0xa7d   :  { %v15484_v59 = vadd.f32 %v8925_v37, %v8887_v31 }
 0xa82   :  { %v8889_v6 = vpop.f32.mrf.mxu0  ;;  %v8928_v28 = vpop.f32.mrf.mxu1 }
 0xa83   :  { %v8890_v47 = vadd.f32 %v8889_v6, %v8851_v54  ;;  %v8954_v46 = vpop.f32.mrf.mxu2  ;;  %v8993_v50 = vpop.f32.mrf.mxu3 }
 0xa84   :  { %v15486_v30 = vadd.f32 %v8993_v50, %v8954_v46 }
 0xa85   :  { %v15488_v51 = vadd.f32 %v8928_v28, %v8890_v47  ;;  %9054 = vmatmul.bf16.gmra.mxu0 %v16372_v11  ;;  %9093 = vmatmul.bf16.gmra.mxu1 %v16373_v23 }
 0xa88   :  { %9122 = vmatmul.bf16.gmra.mxu2 %v16374_v10  ;;  %9161 = vmatmul.bf16.gmra.mxu3 %v16474_v34 }
 0xa8a   :  { %v8891_v55 = vpop.f32.mrf.mxu0  ;;  %v8930_v0 = vpop.f32.mrf.mxu1 }
 0xa8b   :  { %v8892_v12 = vadd.f32 %v8891_v55, %v15459_v49  ;;  %v8957_v61 = vpop.f32.mrf.mxu2  ;;  %v8996_v54 = vpop.f32.mrf.mxu3 }
 0xa8c   :  { %v15495_v41 = vadd.f32 %v8996_v54, %v8957_v61 }
 0xa8d   :  { %v15497_v8 = vadd.f32 %v8930_v0, %v8892_v12 }
 0xa92   :  { %v8894_v18 = vpop.f32.mrf.mxu0  ;;  %v8933_v14 = vpop.f32.mrf.mxu1 }
 0xa93   :  { %v8895_v36 = vadd.f32 %v8894_v18, %v8856_v56  ;;  %v8959_v11 = vpop.f32.mrf.mxu2  ;;  %v8998_v24 = vpop.f32.mrf.mxu3 }
 0xa94   :  { %v15499_v23 = vadd.f32 %v8998_v24, %v8959_v11 }
 0xa95   :  { %v15501_v10 = vadd.f32 %v8933_v14, %v8895_v36 }
 0xa98   :  { %9127 = vmatmul.bf16.gmra.mxu2 %v16479_v13  ;;  %9166 = vmatmul.bf16.gmra.mxu3 %v16480_v38 }
 0xa9a   :  { %v8896_v34 = vpop.f32.mrf.mxu0  ;;  %v8935_v49 = vpop.f32.mrf.mxu1 }
 0xa9b   :  { %v8897_v21 = vadd.f32 %v8896_v34, %v8858_v4  ;;  %v8962_v52 = vpop.f32.mrf.mxu2  ;;  %v9001_v53 = vpop.f32.mrf.mxu3 }
 0xa9c   :  { %v15505_v2 = vadd.f32 %v9001_v53, %v8962_v52 }
 0xa9d   :  { %v15507_v37 = vadd.f32 %v8935_v49, %v8897_v21 }
 0xaa2   :  { %v8899_v56 = vpop.f32.mrf.mxu0  ;;  %v8938_v31 = vpop.f32.mrf.mxu1 }
 0xaa3   :  { %v8900_v1 = vadd.f32 %v8899_v56, %v8861_v40  ;;  %v8964_v45 = vpop.f32.mrf.mxu2  ;;  %v9003_v6 = vpop.f32.mrf.mxu3 }
 0xaa4   :  { %v15509_v28 = vadd.f32 %v9003_v6, %v8964_v45  ;;  %v9333_v45 = vld [vmem:[#allocation10] sm:$0x3] }
 0xaa5   :  { %v15511_v47 = vadd.f32 %v8938_v31, %v8900_v1 }
 0xaa8   :  { %9132 = vmatmul.bf16.gmra.mxu2 %v16490_v22  ;;  %9171 = vmatmul.bf16.gmra.mxu3 %v16491_v29 }
 0xaaa   :  { %v8901_v13 = vpop.f32.mrf.mxu0  ;;  %v8940_v50 = vpop.f32.mrf.mxu1 }
 0xaab   :  { %v8902_v38 = vadd.f32 %v8901_v13, %v8863_v35  ;;  %v8967_v4 = vpop.f32.mrf.mxu2  ;;  %v9006_v46 = vpop.f32.mrf.mxu3 }
 0xaac   :  { %v15515_v55 = vadd.f32 %v9006_v46, %v8967_v4 }
 0xaad   :  { %v15517_v0 = vadd.f32 %v8940_v50, %v8902_v38  ;;  %v9336_v38 = vperm.slane %v9333_v45, 1 }
 0xab2   :  { %v9030_v14 = vpop.f32.mrf.mxu0  ;;  %v9069_v22 = vpop.f32.mrf.mxu1 }
 0xab3   :  { %v8969_v40 = vpop.f32.mrf.mxu2  ;;  %v9008_v12 = vpop.f32.mrf.mxu3  ;;  %v9031_v6 = vadd.f32 %v9030_v14, %v15482_v26 }
 0xab4   :  { %v15519_v61 = vadd.f32 %v9008_v12, %v8969_v40 }
 0xab5   :  { %v9070_v4 = vadd.f32 %v9069_v22, %v9031_v6 }
 0xaba   :  { %v9032_v24 = vpop.f32.mrf.mxu0  ;;  %v9071_v21 = vpop.f32.mrf.mxu1 }
 0xabb   :  { %v8972_v54 = vpop.f32.mrf.mxu2  ;;  %v9011_v18 = vpop.f32.mrf.mxu3 }
 0xabc   :  { %v15521_v36 = vadd.f32 %v9011_v18, %v8972_v54  ;;  %v9335_v54 = vperm.slane %v9333_v45, 0  ;;  %v9337_v18 = vrot.slane %v9336_v38, 6 }
 0xac2   :  { %v9035_v53 = vpop.f32.mrf.mxu0  ;;  %v9074_v13 = vpop.f32.mrf.mxu1 }
 0xac3   :  { %v8974_v29 = vpop.f32.mrf.mxu2  ;;  %v9013_v11 = vpop.f32.mrf.mxu3 }
 0xac4   :  { %v15523_v35 = vadd.f32 %v9013_v11, %v8974_v29  ;;  %v9033_v29 = vadd.f32 %v9032_v24, %v15486_v30  ;;  %v15539_v30 = vsel %vm5059_vm0, %v9335_v54, %v9337_v18 }
 0xaca   :  { %v9037_v46 = vpop.f32.mrf.mxu0 }
 0xacb   :  { %v8977_v34 = vpop.f32.mrf.mxu2  ;;  %v9016_v49 = vpop.f32.mrf.mxu3 }
 0xacc   :  { %v15525_v52 = vadd.f32 %v9016_v49, %v8977_v34  ;;  %v9076_v34 = vpop.f32.mrf.mxu1 }
 0xad3   :  { %v8979_v56 = vpop.f32.mrf.mxu2  ;;  %v9018_v31 = vpop.f32.mrf.mxu3 }
 0xad4   :  { %v15527_v1 = vadd.f32 %v9018_v31, %v8979_v56  ;;  %v9339_v56 = vsel %vm5061_vm1, %v9335_v54, %v9337_v18  ;;  %v9072_v31 = vadd.f32 %v9071_v21, %v9033_v29 }
 0xad5   :  { %v15536_v57 = vrot.slane %v9339_v56, 2 }
 0xadb   :  { %v9108_v50 = vpop.f32.mrf.mxu2  ;;  %v9147_v40 = vpop.f32.mrf.mxu3 }
 0xadc   :  { %v9109_v12 = vadd.f32 %v9108_v50, %v9070_v4  ;;  %v9040_v4 = vpop.f32.mrf.mxu0  ;;  %v16501_v50 = vld [vmem:[#allocation51_spill] sm:$0xff] }
 0xade   :  { %v9148_v11 = vadd.f32 %v9147_v40, %v9109_v12  ;;  %v9036_v12 = vadd.f32 %v9035_v53, %v15495_v41 }
 0xae0   :  { %v9201_v49 = vrot.slane %v9148_v11, 6  ;;  %v9075_v56 = vadd.f32 %v9074_v13, %v9036_v12 }
 0xae2   :  { %v9213_v26 = vsel %vm5061_vm1, %v15455_v20, %v9201_v49  ;;  %v9215_v14 = vsel %vm5064_vm2, %v15455_v20, %v9201_v49 }
 0xae3   :  { %v9214_v22 = vrot.slane %v9213_v26, 2  ;;  %v9216_v6 = vrot.slane %v9215_v14, 4  ;;  %v9110_v45 = vpop.f32.mrf.mxu2  ;;  %v9149_v38 = vpop.f32.mrf.mxu3 }
 0xae4   :  { %v9111_v24 = vadd.f32 %v9110_v45, %v9072_v31  ;;  %v9079_v26 = vpop.f32.mrf.mxu1  ;;  %v16502_v45 = vld [vmem:[#allocation85_spill] sm:$0xff] }
 0xae5   :  { %v9301_v40 = vadd.f32 %v9214_v22, %v16501_v50  ;;  %v9302_v21 = vadd.f32 %v9216_v6, %v15133_v43  ;;  %v9038_v50 = vadd.f32 %v9037_v46, %v15499_v23 }
 0xae6   :  { %v9150_v29 = vadd.f32 %v9149_v38, %v9111_v24 }
 0xae7   :  { %v9343_v20 = vadd.f32 %v15539_v30, %v9301_v40  ;;  %v9344_v11 = vadd.f32 %v15536_v57, %v9302_v21  ;;  %v9042_v40 = vpop.f32.mrf.mxu0 }
 0xae8   :  { %v9202_v49 = vrot.slane %v9150_v29, 6 }
 0xae9   :  { %9407 = vst [vmem:[#allocation1] ss:$4 sm:$0xff] %v9343_v20 }
 0xaea   :  { %9409 = vst [vmem:[#allocation1 + $0x1] ss:$4 sm:$0xff] %v9344_v11  ;;  %v9217_v54 = vsel %vm5059_vm0, %v15464_v25, %v9202_v49  ;;  %v9218_v18 = vsel %vm5061_vm1, %v15464_v25, %v9202_v49  ;;  %v9220_v43 = vsel %vm5478_vm4, %v9202_v49, %v15464_v25  ;;  %v16503_v49 = vld [vmem:[#allocation30_spill] sm:$0xff] }
 0xaeb   :  { %v9219_v41 = vrot.slane %v9218_v18, 2  ;;  %v9221_v53 = vrot.slane %v9220_v43, 6  ;;  %v9303_v31 = vadd.f32 %v9217_v54, %v15140_v58  ;;  %v9113_v14 = vpop.f32.mrf.mxu2  ;;  %v9152_v22 = vpop.f32.mrf.mxu3  ;;  %v9077_v58 = vadd.f32 %v9076_v34, %v9038_v50 }
 0xaec   :  { %v9114_v6 = vadd.f32 %v9113_v14, %v9075_v56  ;;  %v9081_v43 = vpop.f32.mrf.mxu1 }
 0xaed   :  { %v9304_v13 = vadd.f32 %v9219_v41, %v15147_v17  ;;  %v9305_v38 = vadd.f32 %v9221_v53, %v16502_v45  ;;  %v9345_v24 = vadd.f32 %v15539_v30, %v9303_v31  ;;  %v16504_v53 = vld [vmem:[#allocation86_spill] sm:$0xff]  ;;  %v16505_v31 = vld [vmem:[#allocation31_spill] sm:$0xff] }
 0xaee   :  { %v9153_v21 = vadd.f32 %v9152_v22, %v9114_v6  ;;  %v9041_v6 = vadd.f32 %v9040_v4, %v15505_v2 }
 0xaef   :  { %v9346_v12 = vadd.f32 %v15536_v57, %v9304_v13  ;;  %v9347_v25 = vadd.f32 %v15539_v30, %v9305_v38  ;;  %9411 = vst [vmem:[#allocation1 + $0x2] ss:$4 sm:$0xff] %v9345_v24  ;;  %v9045_v38 = vpop.f32.mrf.mxu0 }
 0xaf0   :  { %v9203_v29 = vrot.slane %v9153_v21, 6 }
 0xaf1   :  { %9413 = vst [vmem:[#allocation1 + $0x3] ss:$4 sm:$0xff] %v9346_v12  ;;  %v9080_v12 = vadd.f32 %v9079_v26, %v9041_v6  ;;  %v9043_v26 = vadd.f32 %v9042_v40, %v15509_v28 }
 0xaf2   :  { %9415 = vst [vmem:[#allocation1 + $0x20] ss:$4 sm:$0xff] %v9347_v25  ;;  %v9222_v17 = vsel %vm5059_vm0, %v15467_v44, %v9203_v29  ;;  %v9223_v20 = vsel %vm5064_vm2, %v15467_v44, %v9203_v29  ;;  %v9225_v23 = vsel %vm5478_vm4, %v9203_v29, %v15467_v44 }
 0xaf3   :  { %v9224_v46 = vrot.slane %v9223_v20, 4  ;;  %v9226_v11 = vrot.slane %v9225_v23, 6  ;;  %v9306_v56 = vadd.f32 %v9222_v17, %v16503_v49  ;;  %v9115_v54 = vpop.f32.mrf.mxu2  ;;  %v9154_v18 = vpop.f32.mrf.mxu3  ;;  %v16506_v23 = vld [vmem:[#allocation87_spill] sm:$0xff] }
 0xaf4   :  { %v9116_v41 = vadd.f32 %v9115_v54, %v9077_v58  ;;  %v9084_v49 = vpop.f32.mrf.mxu1 }
 0xaf5   :  { %v9307_v34 = vadd.f32 %v9224_v46, %v16504_v53  ;;  %v9308_v14 = vadd.f32 %v9226_v11, %v16505_v31  ;;  %v9348_v22 = vadd.f32 %v15536_v57, %v9306_v56  ;;  %v9082_v53 = vadd.f32 %v9081_v43, %v9043_v26  ;;  %v16508_v26 = vld [vmem:[#allocation89_spill] sm:$0xff] }
 0xaf6   :  { %v9155_v13 = vadd.f32 %v9154_v18, %v9116_v41 }
 0xaf7   :  { %v9349_v45 = vadd.f32 %v15539_v30, %v9307_v34  ;;  %v9350_v44 = vadd.f32 %v15536_v57, %v9308_v14  ;;  %9417 = vst [vmem:[#allocation1 + $0x21] ss:$4 sm:$0xff] %v9348_v22  ;;  %v9047_v34 = vpop.f32.mrf.mxu0 }
 0xaf8   :  { %v9204_v24 = vrot.slane %v9155_v13, 6  ;;  %v9422_v50 = vld.sshfl [vmem:[#allocation1] sm:$0xff pattern:$0x73625140] }
 0xaf9   :  { %9419 = vst [vmem:[#allocation1 + $0x22] ss:$4 sm:$0xff] %v9349_v45  ;;  %v9423_v21 = vld.sshfl [vmem:[#allocation1 + $0x8] sm:$0xff pattern:$0x73625140] }
 0xafa   :  { %9421 = vst [vmem:[#allocation1 + $0x23] ss:$4 sm:$0xff] %v9350_v44  ;;  %v9227_v25 = vsel %vm5061_vm1, %v15473_v48, %v9204_v24  ;;  %v9229_v29 = vsel %vm5064_vm2, %v15473_v48, %v9204_v24 }
 0xafb   :  { %v9228_v2 = vrot.slane %v9227_v25, 2  ;;  %v9230_v4 = vrot.slane %v9229_v29, 4  ;;  %v9118_v58 = vpop.f32.mrf.mxu2  ;;  %v9157_v17 = vpop.f32.mrf.mxu3  ;;  %9478 = vst [vmem:[#allocation11] sm:$0xff] %v9422_v50 }
 0xafc   :  { %v9119_v20 = vadd.f32 %v9118_v58, %v9080_v12  ;;  %9479 = vst [vmem:[#allocation11 + $0x8] sm:$0xff] %v9423_v21  ;;  %v16507_v58 = vld [vmem:[#allocation88_spill] sm:$0xff] }
 0xafd   :  { %v9309_v46 = vadd.f32 %v9228_v2, %v16506_v23  ;;  %v9310_v11 = vadd.f32 %v9230_v4, %v15213_v9 }
 0xafe   :  { %v9158_v56 = vadd.f32 %v9157_v17, %v9119_v20 }
 0xaff   :  { %v9351_v54 = vadd.f32 %v15539_v30, %v9309_v46  ;;  %v9352_v18 = vadd.f32 %v15536_v57, %v9310_v11  ;;  %v9050_v46 = vpop.f32.mrf.mxu0 }
 0xb00   :  { %v9205_v48 = vrot.slane %v9158_v56, 6 }
 0xb01   :  { %v9424_v41 = vld.sshfl [vmem:[#allocation1 + $0x20] sm:$0xff pattern:$0x73625140]  ;;  %v9425_v28 = vld.sshfl [vmem:[#allocation1 + $0x28] sm:$0xff pattern:$0x73625140] }
 0xb02   :  { %v9231_v31 = vsel %vm5059_vm0, %v15475_v27, %v9205_v48  ;;  %v9232_v14 = vsel %vm5061_vm1, %v15475_v27, %v9205_v48  ;;  %v9234_v9 = vsel %vm5478_vm4, %v9205_v48, %v15475_v27  ;;  %9426 = vst [vmem:[#allocation1] ss:$4 sm:$0xff] %v9351_v54  ;;  %v9046_v27 = vadd.f32 %v9045_v38, %v15515_v55 }
 0xb03   :  { %v9233_v40 = vrot.slane %v9232_v14, 2  ;;  %v9235_v22 = vrot.slane %v9234_v9, 6  ;;  %v9311_v6 = vadd.f32 %v9231_v31, %v15222_v16  ;;  %v9120_v13 = vpop.f32.mrf.mxu2  ;;  %v9159_v45 = vpop.f32.mrf.mxu3  ;;  %9427 = vst [vmem:[#allocation1 + $0x1] ss:$4 sm:$0xff] %v9352_v18  ;;  %v9048_v18 = vadd.f32 %v9047_v34, %v15519_v61 }
 0xb04   :  { %v9121_v43 = vadd.f32 %v9120_v13, %v9082_v53  ;;  %9480 = vst [vmem:[#allocation11 + $0x10] sm:$0xff] %v9424_v41  ;;  %v9086_v16 = vpop.f32.mrf.mxu1  ;;  %v9085_v2 = vadd.f32 %v9084_v49, %v9046_v27 }
 0xb05   :  { %v9312_v44 = vadd.f32 %v9233_v40, %v15231_v39  ;;  %v9313_v24 = vadd.f32 %v9235_v22, %v15233_v62  ;;  %v9353_v50 = vadd.f32 %v15539_v30, %v9311_v6  ;;  %9481 = vst [vmem:[#allocation11 + $0x18] sm:$0xff] %v9425_v28  ;;  %v9087_v9 = vadd.f32 %v9086_v16, %v9048_v18 }
 0xb06   :  { %v9160_v21 = vadd.f32 %v9159_v45, %v9121_v43  ;;  %v16509_v45 = vld [vmem:[#allocation16_spill] sm:$0xff] }
 0xb07   :  { %v9354_v12 = vadd.f32 %v15536_v57, %v9312_v44  ;;  %v9355_v25 = vadd.f32 %v15539_v30, %v9313_v24  ;;  %9428 = vst [vmem:[#allocation1 + $0x2] ss:$4 sm:$0xff] %v9353_v50  ;;  %v16510_v44 = vld [vmem:[#allocation17_spill] sm:$0xff]  ;;  %v9051_v50 = vadd.f32 %v9050_v46, %v15521_v36  ;;  %v9052_v27 = vpop.f32.mrf.mxu0 }
 0xb08   :  { %v9206_v29 = vrot.slane %v9160_v21, 6 }
 0xb09   :  { %9429 = vst [vmem:[#allocation1 + $0x3] ss:$4 sm:$0xff] %v9354_v12 }
 0xb0a   :  { %v9236_v39 = vsel %vm5059_vm0, %v15484_v59, %v9206_v29  ;;  %v9237_v62 = vsel %vm5064_vm2, %v15484_v59, %v9206_v29  ;;  %v9239_v4 = vsel %vm5478_vm4, %v9206_v29, %v15484_v59  ;;  %9430 = vst [vmem:[#allocation1 + $0x20] ss:$4 sm:$0xff] %v9355_v25 }
 0xb0b   :  { %v9238_v55 = vrot.slane %v9237_v62, 4  ;;  %v9240_v38 = vrot.slane %v9239_v4, 6  ;;  %v9314_v17 = vadd.f32 %v9236_v39, %v16507_v58  ;;  %v9123_v20 = vpop.f32.mrf.mxu2  ;;  %v9162_v23 = vpop.f32.mrf.mxu3 }
 0xb0c   :  { %v9124_v11 = vadd.f32 %v9123_v20, %v9085_v2  ;;  %v9089_v28 = vpop.f32.mrf.mxu1 }
 0xb0d   :  { %v9315_v49 = vadd.f32 %v9238_v55, %v16508_v26  ;;  %v9316_v56 = vadd.f32 %v9240_v38, %v15275_v5  ;;  %v9356_v54 = vadd.f32 %v15536_v57, %v9314_v17  ;;  %v9090_v29 = vadd.f32 %v9089_v28, %v9051_v50  ;;  %v16511_v38 = vld [vmem:[#allocation90_spill] sm:$0xff] }
 0xb0e   :  { %v9163_v48 = vadd.f32 %v9162_v23, %v9124_v11  ;;  %v16512_v11 = vld [vmem:[#allocation91_spill] sm:$0xff] }
 0xb0f   :  { %v9357_v59 = vadd.f32 %v15539_v30, %v9315_v49  ;;  %v9358_v41 = vadd.f32 %v15536_v57, %v9316_v56  ;;  %9431 = vst [vmem:[#allocation1 + $0x21] ss:$4 sm:$0xff] %v9356_v54  ;;  %v16513_v49 = vld [vmem:[#allocation92_spill] sm:$0xff] }
 0xb10   :  { %v9207_v53 = vrot.slane %v9163_v48, 6  ;;  %v9434_v31 = vld.sshfl [vmem:[#allocation1] sm:$0xff pattern:$0x73625140] }
 0xb11   :  { %9432 = vst [vmem:[#allocation1 + $0x22] ss:$4 sm:$0xff] %v9357_v59  ;;  %v9435_v14 = vld.sshfl [vmem:[#allocation1 + $0x8] sm:$0xff pattern:$0x73625140] }
 0xb12   :  { %v9241_v40 = vsel %vm5061_vm1, %v15488_v51, %v9207_v53  ;;  %v9243_v5 = vsel %vm5064_vm2, %v15488_v51, %v9207_v53  ;;  %9433 = vst [vmem:[#allocation1 + $0x23] ss:$4 sm:$0xff] %v9358_v41  ;;  %v9055_v41 = vpop.f32.mrf.mxu0 }
 0xb13   :  { %v9242_v61 = vrot.slane %v9241_v40, 2  ;;  %v9244_v34 = vrot.slane %v9243_v5, 4  ;;  %v9125_v22 = vpop.f32.mrf.mxu2  ;;  %v9164_v6 = vpop.f32.mrf.mxu3  ;;  %9482 = vst [vmem:[#allocation11 + $0x20] sm:$0xff] %v9434_v31 }
 0xb14   :  { %v9126_v13 = vadd.f32 %v9125_v22, %v9087_v9  ;;  %9483 = vst [vmem:[#allocation11 + $0x28] sm:$0xff] %v9435_v14  ;;  %v9091_v46 = vpop.f32.mrf.mxu1 }
 0xb15   :  { %v9317_v43 = vadd.f32 %v9242_v61, %v16509_v45  ;;  %v9318_v24 = vadd.f32 %v9244_v34, %v16510_v44 }
 0xb16   :  { %v9165_v21 = vadd.f32 %v9164_v6, %v9126_v13 }
 0xb17   :  { %v9359_v12 = vadd.f32 %v15539_v30, %v9317_v43  ;;  %v9360_v51 = vadd.f32 %v15536_v57, %v9318_v24  ;;  %v9056_v43 = vadd.f32 %v9055_v41, %v15525_v52 }
 0xb18   :  { %v9208_v25 = vrot.slane %v9165_v21, 6 }
 0xb19   :  { %v9436_v16 = vld.sshfl [vmem:[#allocation1 + $0x20] sm:$0xff pattern:$0x73625140]  ;;  %v9437_v4 = vld.sshfl [vmem:[#allocation1 + $0x28] sm:$0xff pattern:$0x73625140] }
 0xb1a   :  { %v9245_v2 = vsel %vm5059_vm0, %v15497_v8, %v9208_v25  ;;  %v9246_v39 = vsel %vm5061_vm1, %v15497_v8, %v9208_v25  ;;  %v9248_v62 = vsel %vm5478_vm4, %v9208_v25, %v15497_v8  ;;  %9438 = vst [vmem:[#allocation1] ss:$4 sm:$0xff] %v9359_v12  ;;  %v9053_v8 = vadd.f32 %v9052_v27, %v15523_v35 }
 0xb1b   :  { %v9247_v36 = vrot.slane %v9246_v39, 2  ;;  %v9249_v55 = vrot.slane %v9248_v62, 6  ;;  %v9319_v58 = vadd.f32 %v9245_v2, %v16511_v38  ;;  %v9128_v17 = vpop.f32.mrf.mxu2  ;;  %v9167_v20 = vpop.f32.mrf.mxu3  ;;  %9439 = vst [vmem:[#allocation1 + $0x1] ss:$4 sm:$0xff] %v9360_v51 }
 0xb1c   :  { %v9129_v23 = vadd.f32 %v9128_v17, %v9090_v29  ;;  %9484 = vst [vmem:[#allocation11 + $0x30] sm:$0xff] %v9436_v16  ;;  %v9092_v31 = vadd.f32 %v9091_v46, %v9053_v8  ;;  %v9094_v24 = vpop.f32.mrf.mxu1  ;;  %v9057_v51 = vpop.f32.mrf.mxu0 }
 0xb1d   :  { %v9320_v26 = vadd.f32 %v9247_v36, %v16512_v11  ;;  %v9321_v56 = vadd.f32 %v9249_v55, %v16513_v49  ;;  %v9361_v54 = vadd.f32 %v15539_v30, %v9319_v58  ;;  %9485 = vst [vmem:[#allocation11 + $0x38] sm:$0xff] %v9437_v4  ;;  %v9095_v12 = vadd.f32 %v9094_v24, %v9056_v43 }
 0xb1e   :  { %v9168_v18 = vadd.f32 %v9167_v20, %v9129_v23  ;;  %v9058_v4 = vadd.f32 %v9057_v51, %v15527_v1 }
 0xb1f   :  { %v9362_v48 = vadd.f32 %v15536_v57, %v9320_v26  ;;  %v9363_v59 = vadd.f32 %v15539_v30, %v9321_v56  ;;  %9440 = vst [vmem:[#allocation1 + $0x2] ss:$4 sm:$0xff] %v9361_v54 }
 0xb20   :  { %v9209_v53 = vrot.slane %v9168_v18, 6 }
 0xb21   :  { %9441 = vst [vmem:[#allocation1 + $0x3] ss:$4 sm:$0xff] %v9362_v48 }
 0xb22   :  { %v9250_v14 = vsel %vm5059_vm0, %v15501_v10, %v9209_v53  ;;  %v9251_v9 = vsel %vm5064_vm2, %v15501_v10, %v9209_v53  ;;  %v9253_v28 = vsel %vm5478_vm4, %v9209_v53, %v15501_v10  ;;  %9442 = vst [vmem:[#allocation1 + $0x20] ss:$4 sm:$0xff] %v9363_v59 }
 0xb23   :  { %v9252_v35 = vrot.slane %v9251_v9, 4  ;;  %v9254_v40 = vrot.slane %v9253_v28, 6  ;;  %v9322_v5 = vadd.f32 %v9250_v14, %v15333_v7  ;;  %v9130_v61 = vpop.f32.mrf.mxu2  ;;  %v9169_v34 = vpop.f32.mrf.mxu3  ;;  %v16514_v28 = vld [vmem:[#allocation93_spill] sm:$0xff] }
 0xb24   :  { %v9131_v22 = vadd.f32 %v9130_v61, %v9092_v31  ;;  %v9096_v58 = vpop.f32.mrf.mxu1 }
 0xb25   :  { %v9323_v6 = vadd.f32 %v9252_v35, %v15339_v42  ;;  %v9324_v13 = vadd.f32 %v9254_v40, %v15357_v15  ;;  %v9364_v45 = vadd.f32 %v15536_v57, %v9322_v5  ;;  %v9097_v20 = vadd.f32 %v9096_v58, %v9058_v4  ;;  %v16515_v40 = vld [vmem:[#allocation94_spill] sm:$0xff] }
 0xb26   :  { %v9170_v44 = vadd.f32 %v9169_v34, %v9131_v22 }
 0xb27   :  { %v9365_v10 = vadd.f32 %v15539_v30, %v9323_v6  ;;  %v9366_v50 = vadd.f32 %v15536_v57, %v9324_v13  ;;  %9443 = vst [vmem:[#allocation1 + $0x21] ss:$4 sm:$0xff] %v9364_v45 }
 0xb28   :  { %v9210_v27 = vrot.slane %v9170_v44, 6  ;;  %v9446_v7 = vld.sshfl [vmem:[#allocation1] sm:$0xff pattern:$0x73625140] }
 0xb29   :  { %9444 = vst [vmem:[#allocation1 + $0x22] ss:$4 sm:$0xff] %v9365_v10  ;;  %v9447_v21 = vld.sshfl [vmem:[#allocation1 + $0x8] sm:$0xff pattern:$0x73625140] }
 0xb2a   :  { %v9255_v42 = vsel %vm5061_vm1, %v15507_v37, %v9210_v27  ;;  %v9257_v15 = vsel %vm5064_vm2, %v15507_v37, %v9210_v27  ;;  %9445 = vst [vmem:[#allocation1 + $0x23] ss:$4 sm:$0xff] %v9366_v50 }
 0xb2b   :  { %v9256_v52 = vrot.slane %v9255_v42, 2  ;;  %v9258_v25 = vrot.slane %v9257_v15, 4  ;;  %v9133_v16 = vpop.f32.mrf.mxu2  ;;  %v9172_v29 = vpop.f32.mrf.mxu3  ;;  %9486 = vst [vmem:[#allocation11 + $0x40] sm:$0xff] %v9446_v7 }
 0xb2c   :  { %v9134_v2 = vadd.f32 %v9133_v16, %v9095_v12  ;;  %9487 = vst [vmem:[#allocation11 + $0x48] sm:$0xff] %v9447_v21 }
 0xb2d   :  { %v9325_v39 = vadd.f32 %v9256_v52, %v15363_v32  ;;  %v9326_v62 = vadd.f32 %v9258_v25, %v15380_v63 }
 0xb2e   :  { %v9173_v36 = vadd.f32 %v9172_v29, %v9134_v2 }
 0xb2f   :  { %v9367_v55 = vadd.f32 %v15539_v30, %v9325_v39  ;;  %v9368_v38 = vadd.f32 %v15536_v57, %v9326_v62 }
 0xb30   :  { %v9211_v37 = vrot.slane %v9173_v36, 6 }
 0xb31   :  { %v9448_v17 = vld.sshfl [vmem:[#allocation1 + $0x20] sm:$0xff pattern:$0x73625140]  ;;  %v9449_v63 = vld.sshfl [vmem:[#allocation1 + $0x28] sm:$0xff pattern:$0x73625140] }
 0xb32   :  { %v9259_v23 = vsel %vm5059_vm0, %v15511_v47, %v9211_v37  ;;  %v9260_v46 = vsel %vm5061_vm1, %v15511_v47, %v9211_v37  ;;  %v9262_v32 = vsel %vm5478_vm4, %v9211_v37, %v15511_v47  ;;  %9450 = vst [vmem:[#allocation1] ss:$4 sm:$0xff] %v9367_v55 }
 0xb33   :  { %v9261_v1 = vrot.slane %v9260_v46, 2  ;;  %v9263_v11 = vrot.slane %v9262_v32, 6  ;;  %v9327_v26 = vadd.f32 %v9259_v23, %v15393_v60  ;;  %v9135_v49 = vpop.f32.mrf.mxu2  ;;  %9451 = vst [vmem:[#allocation1 + $0x1] ss:$4 sm:$0xff] %v9368_v38  ;;  %v9174_v48 = vpop.f32.mrf.mxu3 }
 0xb34   :  { %v9136_v56 = vadd.f32 %v9135_v49, %v9097_v20  ;;  %9488 = vst [vmem:[#allocation11 + $0x50] sm:$0xff] %v9448_v17 }
 0xb35   :  { %v9328_v54 = vadd.f32 %v9261_v1, %v15396_v33  ;;  %v9329_v8 = vadd.f32 %v9263_v11, %v15398_v19  ;;  %v9369_v18 = vadd.f32 %v15539_v30, %v9327_v26  ;;  %9489 = vst [vmem:[#allocation11 + $0x58] sm:$0xff] %v9449_v63 }
 0xb36   :  { %v9175_v59 = vadd.f32 %v9174_v48, %v9136_v56 }
 0xb37   :  { %v9370_v47 = vadd.f32 %v15536_v57, %v9328_v54  ;;  %v9371_v41 = vadd.f32 %v15539_v30, %v9329_v8  ;;  %9452 = vst [vmem:[#allocation1 + $0x2] ss:$4 sm:$0xff] %v9369_v18 }
 0xb38   :  { %v9212_v53 = vrot.slane %v9175_v59, 6 }
 0xb39   :  { %9453 = vst [vmem:[#allocation1 + $0x3] ss:$4 sm:$0xff] %v9370_v47 }
 0xb3a   :  { %v9264_v60 = vsel %vm5059_vm0, %v15517_v0, %v9212_v53  ;;  %v9265_v33 = vsel %vm5064_vm2, %v15517_v0, %v9212_v53  ;;  %v9267_v19 = vsel %vm5478_vm4, %v9212_v53, %v15517_v0  ;;  %9454 = vst [vmem:[#allocation1 + $0x20] ss:$4 sm:$0xff] %v9371_v41 }
 0xb3b   :  { %v9266_v31 = vrot.slane %v9265_v33, 4  ;;  %v9268_v14 = vrot.slane %v9267_v19, 6  ;;  %v9330_v9 = vadd.f32 %v9264_v60, %v15417_v3 }
 0xb3d   :  { %v9331_v35 = vadd.f32 %v9266_v31, %v16514_v28  ;;  %v9332_v5 = vadd.f32 %v9268_v14, %v16515_v40  ;;  %v9372_v61 = vadd.f32 %v15536_v57, %v9330_v9 }
 0xb3f   :  { %v9373_v34 = vadd.f32 %v15539_v30, %v9331_v35  ;;  %v9374_v22 = vadd.f32 %v15536_v57, %v9332_v5  ;;  %9455 = vst [vmem:[#allocation1 + $0x21] ss:$4 sm:$0xff] %v9372_v61 }
 0xb40   :  { %v9458_v6 = vld.sshfl [vmem:[#allocation1] sm:$0xff pattern:$0x73625140]  ;;  %v9459_v13 = vld.sshfl [vmem:[#allocation1 + $0x8] sm:$0xff pattern:$0x73625140] }
 0xb41   :  { %9456 = vst [vmem:[#allocation1 + $0x22] ss:$4 sm:$0xff] %v9373_v34 }
 0xb42   :  { %9457 = vst [vmem:[#allocation1 + $0x23] ss:$4 sm:$0xff] %v9374_v22 }
 0xb43   :  { %9490 = vst [vmem:[#allocation11 + $0x60] sm:$0xff] %v9458_v6 }
 0xb44   :  { %9491 = vst [vmem:[#allocation11 + $0x68] sm:$0xff] %v9459_v13 }
 0xb49   :  { %v9460_v3 = vld.sshfl [vmem:[#allocation1 + $0x20] sm:$0xff pattern:$0x73625140]  ;;  %v9461_v0 = vld.sshfl [vmem:[#allocation1 + $0x28] sm:$0xff pattern:$0x73625140] }
 0xb4a   :  { %9492 = vst [vmem:[#allocation11 + $0x70] sm:$0xff] %v9460_v3 }
 0xb4b   :  { %9493 = vst [vmem:[#allocation11 + $0x78] sm:$0xff] %v9461_v0 }
 0xb4c   :  { %9506 = dma.vmem_to_hbm [thread:$0]  %s9499_s4, 2048, %s9501_s19, [#allocation4], %s12605_s20, %s12605_s20, %s12606_s21  }
 0xb4d   :  { %12595 = dma.done.wait [#allocation4], 2048  }
 0xb4e   :  { %12596 = vsyncadd [#allocation4], 4294965248 }
 0xb4f   :  { %9511 = vsyncpa [#allocation3], 1 }
 0xb50   :  { %9512 = vsyncpa [#allocation6], 1 }
 0xb51   :  { %9513 = vsyncpa [#allocation9], 1 }
 0xb52   :  { %9514 = vsyncpa [#allocation4], 1 }

</bundles_post_ra>
